<compile_context>
chip_gen: v6e
topology: v6e:2x2x1
jax: 0.10.0
libtpu: 0.0.40
codegen_flags: <defaults>
</compile_context>

<pallas_src>
import jax
import jax.numpy as jnp
import numpy as np
from jax import lax
from jax.experimental import pallas as pl
from jax.experimental.pallas import tpu as pltpu

BN_EPS = 1e-5


# ---------------------------------------------------------------------------------------
# One-time (init) constant builders.
# ---------------------------------------------------------------------------------------
def _conv_as_matmul(w, in_hw, stride, pad, spatial_major_out):
    """Fold Conv2d (weight (Co,Ci,K,K), zero padding, stride) into a dense matmul matrix.

    Maps the NCHW-flattened *unpadded* (in_hw x in_hw) input to the flattened output.
    Output column order: channel-major if not spatial_major_out, else (oh,ow)-major.
    """
    w = np.asarray(w, np.float32)
    co_n, ci_n, kh_n, kw_n = w.shape
    H = W = in_hw
    Ho = (H + 2 * pad - kh_n) // stride + 1
    Wo = (W + 2 * pad - kw_n) // stride + 1
    m = np.zeros((ci_n * H * W, co_n * Ho * Wo), np.float32)
    for co in range(co_n):
        for ci in range(ci_n):
            for oh in range(Ho):
                for ow in range(Wo):
                    col = ((oh * Wo + ow) * co_n + co) if spatial_major_out \
                        else (co * Ho * Wo + oh * Wo + ow)
                    for kh in range(kh_n):
                        h = stride * oh + kh - pad
                        if h < 0 or h >= H:
                            continue
                        for kw in range(kw_n):
                            ww = stride * ow + kw - pad
                            if ww < 0 or ww >= W:
                                continue
                            m[ci * H * W + h * W + ww, col] = w[co, ci, kh, kw]
    return m, Ho


def _bn_pool_matrices(channels, spatial, spatial_major):
    """avg: (channels*spatial, channels) with 1/spatial entries (per-channel pooling);
       sel: (channels, channels*spatial) 0/1                     (per-channel broadcast)."""
    cols = channels * spatial
    avg = np.zeros((cols, channels), np.float32)
    sel = np.zeros((channels, cols), np.float32)
    for c in range(channels):
        for s in range(spatial):
            col = s * channels + c if spatial_major else c * spatial + s
            avg[col, c] = 1.0 / spatial
            sel[c, col] = 1.0
    return avg, sel


def _const_layout(c1, c2, ncls, cols1, cols2, tcols):
    """Static layout of the packed (1, W) constant slab; 128-lane-aligned offsets.

    Used both at init (to build the slab) and in-kernel (to slice it), so they agree.
    """
    def up(v):
        return ((v + 127) // 128) * 128
    off, cur = {}, 0
    for name, width in (("g1", c1), ("g2", c2), ("lb", ncls),
                        ("bc1", cols1), ("bc2", cols2), ("bt", tcols)):
        off[name] = cur
        cur += up(width)
    return off, cur


def init_params(key, num_classes, C):
    ks = jax.random.split(key, 12)

    def nrm(k, shape, scale=0.1):
        return scale * jax.random.normal(k, shape, jnp.float32)

    return dict(
        conv1_w=nrm(ks[0], (2 * C, C, 4, 4)), conv1_b=nrm(ks[1], (2 * C,)),
        bn1_g=1.0 + nrm(ks[2], (2 * C,)),     bn1_b=nrm(ks[3], (2 * C,)),
        conv2_w=nrm(ks[4], (4 * C, 2 * C, 4, 4)), conv2_b=nrm(ks[5], (4 * C,)),
        bn2_g=1.0 + nrm(ks[6], (4 * C,)),     bn2_b=nrm(ks[7], (4 * C,)),
        convt_w=nrm(ks[8], (4 * C, 8 * C, 4, 4)), convt_b=nrm(ks[9], (8 * C,)),
        lin_w=nrm(ks[10], (num_classes, 8 * C)), lin_b=nrm(ks[11], (num_classes,)),
    )


def build_kernel_constants(params, image_size, C):
    """Pre-pack all weights into kernel-ready matmul layouts (done once, outside jit)."""
    C1, C2, C3 = 2 * C, 4 * C, 8 * C
    num_classes = int(params["lin_w"].shape[0])

    w1eff, H1 = _conv_as_matmul(params["conv1_w"], image_size, 2, 1, spatial_major_out=False)
    w2eff, H2 = _conv_as_matmul(params["conv2_w"], H1, 2, 1, spatial_major_out=True)
    bn1_avg, bn1_sel = _bn_pool_matrices(C1, H1 * H1, spatial_major=False)
    bn2_avg, bn2_sel = _bn_pool_matrices(C2, H2 * H2, spatial_major=True)

    # ConvTranspose2d(k=4, s=4, p=0): stride == kernel ⇒ each input pixel owns a disjoint
    # 4x4 output block.  Pack the per-cell (C2, C3*16) weight into a block-diagonal matrix
    # so the whole stage is ONE matmul over all H2*H2 cells.
    n_cells = H2 * H2
    cell_out = C3 * 16
    wt2d = np.asarray(params["convt_w"], np.float32).reshape(C2, cell_out)
    wt_bd = np.zeros((n_cells * C2, n_cells * cell_out), np.float32)
    for s in range(n_cells):
        wt_bd[s * C2:(s + 1) * C2, s * cell_out:(s + 1) * cell_out] = wt2d
    bt_cell = np.repeat(np.asarray(params["convt_b"], np.float32), 16)     # (cell_out,)
    bt_row = np.tile(bt_cell, n_cells)                                     # (n_cells*cell_out,)

    # GAP divisor + Linear folded into one classifier matrix, tiled over the 16 cells so it
    # consumes the full sigmoid slab directly (cell-sum folded in).
    out_hw = H2 * 4                      # ConvT output spatial == image_size
    gap_div = float(out_hw * out_hw)
    lin_w = np.asarray(params["lin_w"], np.float32)                        # (ncls, C3)
    pool_lin = np.repeat(lin_w.T, 16, axis=0) / gap_div                    # (cell_out, ncls)
    cls_w = np.tile(pool_lin, (n_cells, 1))                                # (n_cells*cell_out, ncls)

    # Column-broadcast BN betas are batch-independent -> precompute at init.
    beta_cols1 = np.asarray(params["bn1_b"], np.float32)[None, :] @ bn1_sel   # (1, C1*H1*H1)
    beta_cols2 = np.asarray(params["bn2_b"], np.float32)[None, :] @ bn2_sel   # (1, C2*H2*H2)

    cols1, cols2, tcols = C1 * H1 * H1, C2 * H2 * H2, n_cells * cell_out
    off, width = _const_layout(C1, C2, num_classes, cols1, cols2, tcols)
    assert max(C1, C2, num_classes) <= 128
    const_row = np.zeros((1, width), np.float32)
    const_row[0, off["g1"]:off["g1"] + C1] = np.asarray(params["bn1_g"], np.float32)
    const_row[0, off["g2"]:off["g2"] + C2] = np.asarray(params["bn2_g"], np.float32)
    const_row[0, off["lb"]:off["lb"] + num_classes] = np.asarray(params["lin_b"], np.float32)
    const_row[0, off["bc1"]:off["bc1"] + cols1] = beta_cols1[0]
    const_row[0, off["bc2"]:off["bc2"] + cols2] = beta_cols2[0]
    const_row[0, off["bt"]:off["bt"] + tcols] = bt_row

    # NOTE: conv1_b / conv2_b are intentionally unused: a per-channel constant added before
    # a batch-statistics BatchNorm cancels exactly (training-mode BN only).
    # bf16 MXU operands (f32 accumulate) are native on v5e, v6e and v7x.
    return dict(
        w1eff=jnp.asarray(w1eff, jnp.bfloat16),
        w2eff=jnp.asarray(w2eff, jnp.bfloat16),
        bn1_avg=jnp.asarray(bn1_avg), bn1_sel=jnp.asarray(bn1_sel),
        bn2_avg=jnp.asarray(bn2_avg), bn2_sel=jnp.asarray(bn2_sel),
        wt_bd=jnp.asarray(wt_bd, jnp.bfloat16),
        cls_w=jnp.asarray(cls_w, jnp.bfloat16),
        const_row=jnp.asarray(const_row, jnp.float32),
    )


# ---------------------------------------------------------------------------------------
# Fused kernel.
# ---------------------------------------------------------------------------------------
def _bn_relu(y, pool_avg, pool_sel, gamma, beta_cols):
    """Training-mode BatchNorm + ReLU on a (N, channels*spatial) slab, f32 epilogue.

    Two-pass variance E[(y-mu)^2] (robust vs catastrophic cancellation).  Per-channel
    stats and broadcast-back use tiny constant matmuls; (1, cols) rows broadcast over
    sublanes for free on the VPU (no materialized (N, cols) broadcasts).
    """
    f32 = jnp.float32
    mu = jnp.mean(jnp.dot(y, pool_avg, preferred_element_type=f32),
                  axis=0, keepdims=True)                                   # (1, ch)
    d = y - jnp.dot(mu, pool_sel, preferred_element_type=f32)              # (N, cols)
    var = jnp.mean(jnp.dot(d * d, pool_avg, preferred_element_type=f32),
                   axis=0, keepdims=True)                                  # (1, ch) biased
    scale = gamma * lax.rsqrt(var + BN_EPS)                                # (1, ch)
    s_cols = jnp.dot(scale, pool_sel, preferred_element_type=f32)          # (1, cols)
    return jnp.maximum(d * s_cols + beta_cols, 0.0)                        # ReLU


def fused_cnn_kernel(x_ref, w1_ref, p1a_ref, p1s_ref,
                     w2_ref, p2a_ref, p2s_ref,
                     wt_ref, cls_ref, cr_ref, out_ref):
    f32, bf16 = jnp.float32, jnp.bfloat16
    c1, cols1 = p1s_ref.shape
    c2, cols2 = p2s_ref.shape
    ncls = cls_ref.shape[1]
    tcols = wt_ref.shape[1]

    # Slice the packed constant slab (all offsets static, 128-lane aligned).
    off, _ = _const_layout(c1, c2, ncls, cols1, cols2, tcols)
    g1 = cr_ref[:, off["g1"]:off["g1"] + c1]
    g2 = cr_ref[:, off["g2"]:off["g2"] + c2]
    lb = cr_ref[:, off["lb"]:off["lb"] + ncls]
    bc1 = cr_ref[:, off["bc1"]:off["bc1"] + cols1]
    bc2 = cr_ref[:, off["bc2"]:off["bc2"] + cols2]
    bt = cr_ref[:, off["bt"]:off["bt"] + tcols]

    # Conv1 (im2col + zero pad folded into w1eff) -> (N, C1*8*8), channel-major columns.
    y1 = jnp.dot(x_ref[...].astype(bf16), w1_ref[...], preferred_element_type=f32)
    y1 = _bn_relu(y1, p1a_ref[...], p1s_ref[...], g1, bc1)

    # Conv2 -> (N, 4*4*C2), spatial-major (each output pixel's channels contiguous).
    y2 = jnp.dot(y1.astype(bf16), w2_ref[...], preferred_element_type=f32)
    y2 = _bn_relu(y2, p2a_ref[...], p2s_ref[...], g2, bc2)    # stays in vregs (no scratch)

    # ConvTranspose2d(k=4, s=4, p=0) over all 16 disjoint cells as ONE block-diagonal
    # matmul, then bias + Sigmoid (EUP exp + approx reciprocal; no VPU divide).
    t = jnp.dot(y2.astype(bf16), wt_ref[...], preferred_element_type=f32) + bt
    sig = pl.reciprocal(1.0 + jnp.exp(-t), approx=True)       # (N, 16*C3*16)

    # GAP + Linear folded into cls_w (cell-sum + /HW + weights), then Softmax(dim=1).
    logits = jnp.dot(sig.astype(bf16), cls_ref[...], preferred_element_type=f32) + lb
    m = jnp.max(logits, axis=-1, keepdims=True)
    e = jnp.exp(logits - m)
    out_ref[...] = e * pl.reciprocal(jnp.sum(e, axis=-1, keepdims=True), approx=True)


def cnn_forward(consts, x):
    n = x.shape[0]
    num_classes = consts["cls_w"].shape[1]
    vmem = pl.BlockSpec(memory_space=pltpu.MemorySpace.VMEM)
    inputs = (x.reshape(n, -1).astype(jnp.float32),    # NCHW flatten (layout-preserving)
              consts["w1eff"], consts["bn1_avg"], consts["bn1_sel"],
              consts["w2eff"], consts["bn2_avg"], consts["bn2_sel"],
              consts["wt_bd"], consts["cls_w"], consts["const_row"])
    # NOTE: like torch.squeeze in the original, output is (N, num_classes); we always keep
    # the batch dim (the PyTorch code would also drop it when N == 1).
    return pl.pallas_call(
        fused_cnn_kernel,
        out_shape=jax.ShapeDtypeStruct((n, num_classes), jnp.float32),
        in_specs=[vmem] * len(inputs),
        out_specs=vmem,
    )(*inputs)


# ---------------------------------------------------------------------------------------
# Pure-JAX reference of the PyTorch forward (for a numerical self-check).
# ---------------------------------------------------------------------------------------
def reference_forward(params, x):
    hi = lax.Precision.HIGHEST

    def bn(y, g, b):
        mu = jnp.mean(y, axis=(0, 2, 3), keepdims=True)
        var = jnp.mean(jnp.square(y - mu), axis=(0, 2, 3), keepdims=True)
        return (y - mu) * lax.rsqrt(var + BN_EPS) * g[None, :, None, None] + b[None, :, None, None]

    def conv(y, w, b, stride, pad):
        out = lax.conv_general_dilated(
            y, w, (stride, stride), ((pad, pad), (pad, pad)),
            dimension_numbers=("NCHW", "OIHW", "NCHW"), precision=hi)
        return out + b[None, :, None, None]

    y = jax.nn.relu(bn(conv(x, params["conv1_w"], params["conv1_b"], 2, 1),
                       params["bn1_g"], params["bn1_b"]))
    y = jax.nn.relu(bn(conv(y, params["conv2_w"], params["conv2_b"], 2, 1),
                       params["bn2_g"], params["bn2_b"]))
    # ConvTranspose2d(k=4, s=4, p=0): stride == kernel -> disjoint 4x4 blocks.
    n, c2, h2, w2 = y.shape
    c3 = params["convt_w"].shape[1]
    yt = jnp.einsum("ncij,cdab->ndiajb", y, params["convt_w"], precision=hi)
    yt = yt.reshape(n, c3, h2 * 4, w2 * 4) + params["convt_b"][None, :, None, None]
    yt = jax.nn.sigmoid(yt)
    gap = jnp.mean(yt, axis=(2, 3))
    logits = jnp.dot(gap, params["lin_w"].T, precision=hi) + params["lin_b"]
    return jax.nn.softmax(logits, axis=-1)


if __name__ == "__main__":
    C = 3
    image_size = 16
    num_classes = 10
    batch = 16            # multiple of 8 -> full f32 sublane / MXU-row occupancy

    key = jax.random.PRNGKey(0)
    kx, kp = jax.random.split(key)
    x = jax.random.normal(kx, (batch, C, image_size, image_size), jnp.float32)
    params = init_params(kp, num_classes, C)
    consts = build_kernel_constants(params, image_size, C)   # one-time weight packing

    fwd = jax.jit(cnn_forward)
    out = jax.block_until_ready(fwd(consts, x))

    assert out.shape == (batch, num_classes), out.shape
    assert bool(jnp.all(jnp.isfinite(out)))
    # approx-reciprocal softmax denominator -> rows sum to 1 only approximately
    assert bool(jnp.allclose(jnp.sum(out, axis=-1), 1.0, atol=1e-2))

    # Numerical self-check vs the PyTorch-equivalent reference
    # (loose tol: bf16 MXU operands on all four big matmuls + approx EUP reciprocals).
    ref = jax.jit(reference_forward)(params, x)
    err = float(jnp.max(jnp.abs(out - ref)))
    assert err < 7.5e-3, f"kernel vs reference max|diff| = {err}"

    print("KERNEL_OK")
</pallas_src>

<mosaic_0001>
module attributes {stable_mosaic.version = 11 : i64} {
  func.func @fused_cnn_kernel(%arg0: memref<16x768xf32, #tpu.memory_space<vmem>>, %arg1: memref<768x384xbf16, #tpu.memory_space<vmem>>, %arg2: memref<384x6xf32, #tpu.memory_space<vmem>>, %arg3: memref<6x384xf32, #tpu.memory_space<vmem>>, %arg4: memref<384x192xbf16, #tpu.memory_space<vmem>>, %arg5: memref<192x12xf32, #tpu.memory_space<vmem>>, %arg6: memref<12x192xf32, #tpu.memory_space<vmem>>, %arg7: memref<192x6144xbf16, #tpu.memory_space<vmem>>, %arg8: memref<6144x10xbf16, #tpu.memory_space<vmem>>, %arg9: memref<1x7168xf32, #tpu.memory_space<vmem>>, %arg10: memref<16x10xf32, #tpu.memory_space<vmem>>) attributes {dimension_semantics = [], scalar_prefetch = 0 : i64, scratch_operands = 0 : i64, tpu.core_type = #tpu.core_type<tc>} {
    %c0 = arith.constant 0 : index
    %c0_0 = arith.constant 0 : index
    %0 = vector.load %arg9[%c0, %c0_0] : memref<1x7168xf32, #tpu.memory_space<vmem>>, vector<1x6xf32>
    %c0_1 = arith.constant 0 : index
    %c128 = arith.constant 128 : index
    %1 = vector.load %arg9[%c0_1, %c128] : memref<1x7168xf32, #tpu.memory_space<vmem>>, vector<1x12xf32>
    %c0_2 = arith.constant 0 : index
    %c256 = arith.constant 256 : index
    %2 = vector.load %arg9[%c0_2, %c256] : memref<1x7168xf32, #tpu.memory_space<vmem>>, vector<1x10xf32>
    %c0_3 = arith.constant 0 : index
    %c384 = arith.constant 384 : index
    %3 = vector.load %arg9[%c0_3, %c384] : memref<1x7168xf32, #tpu.memory_space<vmem>>, vector<1x384xf32>
    %c0_4 = arith.constant 0 : index
    %c768 = arith.constant 768 : index
    %4 = vector.load %arg9[%c0_4, %c768] : memref<1x7168xf32, #tpu.memory_space<vmem>>, vector<1x192xf32>
    %c0_5 = arith.constant 0 : index
    %c1024 = arith.constant 1024 : index
    %5 = vector.load %arg9[%c0_5, %c1024] : memref<1x7168xf32, #tpu.memory_space<vmem>>, vector<1x6144xf32>
    %c0_6 = arith.constant 0 : index
    %c0_7 = arith.constant 0 : index
    %6 = vector.load %arg0[%c0_6, %c0_7] : memref<16x768xf32, #tpu.memory_space<vmem>>, vector<16x768xf32>
    %7 = arith.truncf %6 : vector<16x768xf32> to vector<16x768xbf16>
    %c0_8 = arith.constant 0 : index
    %c0_9 = arith.constant 0 : index
    %8 = vector.load %arg1[%c0_8, %c0_9] : memref<768x384xbf16, #tpu.memory_space<vmem>>, vector<768x384xbf16>
    %cst = arith.constant dense<0.000000e+00> : vector<16x384xf32>
    %9 = tpu.matmul %7, %8, %cst {dimension_numbers = #tpu.dot_dimension_numbers<[1], [0], [0], [1], [0, 0, 1, 1], [], []>} : vector<16x768xbf16>, vector<768x384xbf16>, vector<16x384xf32> -> vector<16x384xf32>
    %c0_10 = arith.constant 0 : index
    %c0_11 = arith.constant 0 : index
    %10 = vector.load %arg2[%c0_10, %c0_11] : memref<384x6xf32, #tpu.memory_space<vmem>>, vector<384x6xf32>
    %c0_12 = arith.constant 0 : index
    %c0_13 = arith.constant 0 : index
    %11 = vector.load %arg3[%c0_12, %c0_13] : memref<6x384xf32, #tpu.memory_space<vmem>>, vector<6x384xf32>
    %cst_14 = arith.constant dense<0.000000e+00> : vector<16x6xf32>
    %12 = tpu.matmul %9, %10, %cst_14 {dimension_numbers = #tpu.dot_dimension_numbers<[1], [0], [0], [1], [0, 0, 1, 1], [], []>} : vector<16x384xf32>, vector<384x6xf32>, vector<16x6xf32> -> vector<16x6xf32>
    %cst_15 = arith.constant dense<0.000000e+00> : vector<6xf32>
    %13 = vector.multi_reduction <add>, %12, %cst_15 [0] : vector<16x6xf32> to vector<6xf32>
    %14 = vector.shape_cast %13 : vector<6xf32> to vector<1x6xf32>
    %cst_16 = arith.constant 1.600000e+01 : f32
    %15 = vector.broadcast %cst_16 : f32 to vector<1x6xf32>
    %16 = arith.divf %14, %15 : vector<1x6xf32>
    %cst_17 = arith.constant dense<0.000000e+00> : vector<1x384xf32>
    %17 = tpu.matmul %16, %11, %cst_17 {dimension_numbers = #tpu.dot_dimension_numbers<[1], [0], [0], [1], [0, 0, 1, 1], [], []>} : vector<1x6xf32>, vector<6x384xf32>, vector<1x384xf32> -> vector<1x384xf32>
    %18 = vector.broadcast %17 : vector<1x384xf32> to vector<16x384xf32>
    %19 = arith.subf %9, %18 : vector<16x384xf32>
    %20 = arith.mulf %19, %19 : vector<16x384xf32>
    %cst_18 = arith.constant dense<0.000000e+00> : vector<16x6xf32>
    %21 = tpu.matmul %20, %10, %cst_18 {dimension_numbers = #tpu.dot_dimension_numbers<[1], [0], [0], [1], [0, 0, 1, 1], [], []>} : vector<16x384xf32>, vector<384x6xf32>, vector<16x6xf32> -> vector<16x6xf32>
    %cst_19 = arith.constant dense<0.000000e+00> : vector<6xf32>
    %22 = vector.multi_reduction <add>, %21, %cst_19 [0] : vector<16x6xf32> to vector<6xf32>
    %23 = vector.shape_cast %22 : vector<6xf32> to vector<1x6xf32>
    %cst_20 = arith.constant 1.600000e+01 : f32
    %24 = vector.broadcast %cst_20 : f32 to vector<1x6xf32>
    %25 = arith.divf %23, %24 : vector<1x6xf32>
    %cst_21 = arith.constant 9.99999974E-6 : f32
    %26 = vector.broadcast %cst_21 : f32 to vector<1x6xf32>
    %27 = arith.addf %25, %26 : vector<1x6xf32>
    %28 = math.rsqrt %27 : vector<1x6xf32>
    %29 = arith.mulf %0, %28 : vector<1x6xf32>
    %cst_22 = arith.constant dense<0.000000e+00> : vector<1x384xf32>
    %30 = tpu.matmul %29, %11, %cst_22 {dimension_numbers = #tpu.dot_dimension_numbers<[1], [0], [0], [1], [0, 0, 1, 1], [], []>} : vector<1x6xf32>, vector<6x384xf32>, vector<1x384xf32> -> vector<1x384xf32>
    %31 = vector.broadcast %30 : vector<1x384xf32> to vector<16x384xf32>
    %32 = arith.mulf %19, %31 : vector<16x384xf32>
    %33 = vector.broadcast %3 : vector<1x384xf32> to vector<16x384xf32>
    %34 = arith.addf %32, %33 : vector<16x384xf32>
    %cst_23 = arith.constant 0.000000e+00 : f32
    %35 = vector.broadcast %cst_23 : f32 to vector<16x384xf32>
    %36 = arith.maximumf %34, %35 : vector<16x384xf32>
    %37 = arith.truncf %36 : vector<16x384xf32> to vector<16x384xbf16>
    %c0_24 = arith.constant 0 : index
    %c0_25 = arith.constant 0 : index
    %38 = vector.load %arg4[%c0_24, %c0_25] : memref<384x192xbf16, #tpu.memory_space<vmem>>, vector<384x192xbf16>
    %cst_26 = arith.constant dense<0.000000e+00> : vector<16x192xf32>
    %39 = tpu.matmul %37, %38, %cst_26 {dimension_numbers = #tpu.dot_dimension_numbers<[1], [0], [0], [1], [0, 0, 1, 1], [], []>} : vector<16x384xbf16>, vector<384x192xbf16>, vector<16x192xf32> -> vector<16x192xf32>
    %c0_27 = arith.constant 0 : index
    %c0_28 = arith.constant 0 : index
    %40 = vector.load %arg5[%c0_27, %c0_28] : memref<192x12xf32, #tpu.memory_space<vmem>>, vector<192x12xf32>
    %c0_29 = arith.constant 0 : index
    %c0_30 = arith.constant 0 : index
    %41 = vector.load %arg6[%c0_29, %c0_30] : memref<12x192xf32, #tpu.memory_space<vmem>>, vector<12x192xf32>
    %cst_31 = arith.constant dense<0.000000e+00> : vector<16x12xf32>
    %42 = tpu.matmul %39, %40, %cst_31 {dimension_numbers = #tpu.dot_dimension_numbers<[1], [0], [0], [1], [0, 0, 1, 1], [], []>} : vector<16x192xf32>, vector<192x12xf32>, vector<16x12xf32> -> vector<16x12xf32>
    %cst_32 = arith.constant dense<0.000000e+00> : vector<12xf32>
    %43 = vector.multi_reduction <add>, %42, %cst_32 [0] : vector<16x12xf32> to vector<12xf32>
    %44 = vector.shape_cast %43 : vector<12xf32> to vector<1x12xf32>
    %cst_33 = arith.constant 1.600000e+01 : f32
    %45 = vector.broadcast %cst_33 : f32 to vector<1x12xf32>
    %46 = arith.divf %44, %45 : vector<1x12xf32>
    %cst_34 = arith.constant dense<0.000000e+00> : vector<1x192xf32>
    %47 = tpu.matmul %46, %41, %cst_34 {dimension_numbers = #tpu.dot_dimension_numbers<[1], [0], [0], [1], [0, 0, 1, 1], [], []>} : vector<1x12xf32>, vector<12x192xf32>, vector<1x192xf32> -> vector<1x192xf32>
    %48 = vector.broadcast %47 : vector<1x192xf32> to vector<16x192xf32>
    %49 = arith.subf %39, %48 : vector<16x192xf32>
    %50 = arith.mulf %49, %49 : vector<16x192xf32>
    %cst_35 = arith.constant dense<0.000000e+00> : vector<16x12xf32>
    %51 = tpu.matmul %50, %40, %cst_35 {dimension_numbers = #tpu.dot_dimension_numbers<[1], [0], [0], [1], [0, 0, 1, 1], [], []>} : vector<16x192xf32>, vector<192x12xf32>, vector<16x12xf32> -> vector<16x12xf32>
    %cst_36 = arith.constant dense<0.000000e+00> : vector<12xf32>
    %52 = vector.multi_reduction <add>, %51, %cst_36 [0] : vector<16x12xf32> to vector<12xf32>
    %53 = vector.shape_cast %52 : vector<12xf32> to vector<1x12xf32>
    %cst_37 = arith.constant 1.600000e+01 : f32
    %54 = vector.broadcast %cst_37 : f32 to vector<1x12xf32>
    %55 = arith.divf %53, %54 : vector<1x12xf32>
    %cst_38 = arith.constant 9.99999974E-6 : f32
    %56 = vector.broadcast %cst_38 : f32 to vector<1x12xf32>
    %57 = arith.addf %55, %56 : vector<1x12xf32>
    %58 = math.rsqrt %57 : vector<1x12xf32>
    %59 = arith.mulf %1, %58 : vector<1x12xf32>
    %cst_39 = arith.constant dense<0.000000e+00> : vector<1x192xf32>
    %60 = tpu.matmul %59, %41, %cst_39 {dimension_numbers = #tpu.dot_dimension_numbers<[1], [0], [0], [1], [0, 0, 1, 1], [], []>} : vector<1x12xf32>, vector<12x192xf32>, vector<1x192xf32> -> vector<1x192xf32>
    %61 = vector.broadcast %60 : vector<1x192xf32> to vector<16x192xf32>
    %62 = arith.mulf %49, %61 : vector<16x192xf32>
    %63 = vector.broadcast %4 : vector<1x192xf32> to vector<16x192xf32>
    %64 = arith.addf %62, %63 : vector<16x192xf32>
    %cst_40 = arith.constant 0.000000e+00 : f32
    %65 = vector.broadcast %cst_40 : f32 to vector<16x192xf32>
    %66 = arith.maximumf %64, %65 : vector<16x192xf32>
    %67 = arith.truncf %66 : vector<16x192xf32> to vector<16x192xbf16>
    %c0_41 = arith.constant 0 : index
    %c0_42 = arith.constant 0 : index
    %68 = vector.load %arg7[%c0_41, %c0_42] : memref<192x6144xbf16, #tpu.memory_space<vmem>>, vector<192x6144xbf16>
    %cst_43 = arith.constant dense<0.000000e+00> : vector<16x6144xf32>
    %69 = tpu.matmul %67, %68, %cst_43 {dimension_numbers = #tpu.dot_dimension_numbers<[1], [0], [0], [1], [0, 0, 1, 1], [], []>} : vector<16x192xbf16>, vector<192x6144xbf16>, vector<16x6144xf32> -> vector<16x6144xf32>
    %70 = vector.broadcast %5 : vector<1x6144xf32> to vector<16x6144xf32>
    %71 = arith.addf %69, %70 : vector<16x6144xf32>
    %cst_44 = arith.constant 0.000000e+00 : f32
    %72 = vector.broadcast %cst_44 : f32 to vector<16x6144xf32>
    %73 = arith.subf %72, %71 : vector<16x6144xf32>
    %74 = math.exp %73 : vector<16x6144xf32>
    %cst_45 = arith.constant 1.000000e+00 : f32
    %75 = vector.broadcast %cst_45 : f32 to vector<16x6144xf32>
    %76 = arith.addf %75, %74 : vector<16x6144xf32>
    %77 = tpu.reciprocal %76 {approx = true} : vector<16x6144xf32> -> vector<16x6144xf32>
    %78 = arith.truncf %77 : vector<16x6144xf32> to vector<16x6144xbf16>
    %c0_46 = arith.constant 0 : index
    %c0_47 = arith.constant 0 : index
    %79 = vector.load %arg8[%c0_46, %c0_47] : memref<6144x10xbf16, #tpu.memory_space<vmem>>, vector<6144x10xbf16>
    %cst_48 = arith.constant dense<0.000000e+00> : vector<16x10xf32>
    %80 = tpu.matmul %78, %79, %cst_48 {dimension_numbers = #tpu.dot_dimension_numbers<[1], [0], [0], [1], [0, 0, 1, 1], [], []>} : vector<16x6144xbf16>, vector<6144x10xbf16>, vector<16x10xf32> -> vector<16x10xf32>
    %81 = vector.broadcast %2 : vector<1x10xf32> to vector<16x10xf32>
    %82 = arith.addf %80, %81 : vector<16x10xf32>
    %cst_49 = arith.constant dense<0xFF800000> : vector<16xf32>
    %83 = vector.multi_reduction <maximumf>, %82, %cst_49 [1] : vector<16x10xf32> to vector<16xf32>
    %84 = vector.shape_cast %83 : vector<16xf32> to vector<16x1xf32>
    %85 = vector.broadcast %84 : vector<16x1xf32> to vector<16x10xf32>
    %86 = arith.subf %82, %85 : vector<16x10xf32>
    %87 = math.exp %86 : vector<16x10xf32>
    %cst_50 = arith.constant dense<0.000000e+00> : vector<16xf32>
    %88 = vector.multi_reduction <add>, %87, %cst_50 [1] : vector<16x10xf32> to vector<16xf32>
    %89 = vector.shape_cast %88 : vector<16xf32> to vector<16x1xf32>
    %90 = tpu.reciprocal %89 {approx = true} : vector<16x1xf32> -> vector<16x1xf32>
    %91 = vector.broadcast %90 : vector<16x1xf32> to vector<16x10xf32>
    %92 = arith.mulf %87, %91 : vector<16x10xf32>
    %c0_51 = arith.constant 0 : index
    %c0_52 = arith.constant 0 : index
    %93 = vector.load %arg10[%c0_51, %c0_52] : memref<16x10xf32, #tpu.memory_space<vmem>>, vector<16x10xf32>
    tpu.vector_store %arg10[%c0_51, %c0_52], %92 {strides = array<i32>} : memref<16x10xf32, #tpu.memory_space<vmem>>, vector<16x10xf32>,
    return
  }
}

</mosaic_0001>

<bundles_post_ra>
// kernel: cnn_forward.1
= control target key start
LH: loop header
LB: loop body
LE: loop exit
PB: predicated region body
PF: predicated region fallthrough
CT: control target
= control target key end

     0   :  { %15 = vsyncpa [#allocation3], 0  ;;  %s19627_s0 = inlined_call_operand.vmem [shape: f32[16,768], index: 0, kind: input, shape index: {}]   ;;  %s19628_s1 = inlined_call_operand.hbm [shape: bf16[768,384], index: 1, kind: input, shape index: {}]   ;;  %s19629_s2 = inlined_call_operand.vmem [shape: f32[384,6], index: 2, kind: input, shape index: {}]   ;;  %s19630_s3 = inlined_call_operand.vmem [shape: f32[6,384], index: 3, kind: input, shape index: {}]   ;;  %s19631_s4 = inlined_call_operand.vmem [shape: bf16[384,192], index: 4, kind: input, shape index: {}]   ;;  %s19632_s5 = inlined_call_operand.vmem [shape: f32[192,12], index: 5, kind: input, shape index: {}]   ;;  %s19633_s6 = inlined_call_operand.vmem [shape: f32[12,192], index: 6, kind: input, shape index: {}]   ;;  %s19634_s7 = inlined_call_operand.vmem [shape: bf16[192,6144], index: 7, kind: input, shape index: {}]   ;;  %s19635_s8 = inlined_call_operand.vmem [shape: bf16[6144,10], index: 8, kind: input, shape index: {}]   ;;  %s19636_s9 = inlined_call_operand.vmem [shape: f32[1,7168], index: 9, kind: input, shape index: {}]   ;;  %s19637_s10 = inlined_call_operand.hbm [shape: f32[16,10], index: 10, kind: output, shape index: {}]  }
   0x1   :  { %16 = vsyncpa [#allocation4], 0  ;;  %s15333_s13 = smov [#allocation2]  }
   0x2   :  { %s24_s14 = sshll.u32 %s15333_s13, 4  ;;  %s25_s14 = int_to_ptr.vmem [resolvable:$true] %s24_s14 }
   0x3   :  { %s15297_s15 = scalar_lea.vmem %s25_s14, 18432  ;;  %p15302_p1 = scmp.lt.s32.totalorder %s25_s14, %s25_s14 }
   0x4   :  { %p15298_p0 = scmp.ne.s32.totalorder %s25_s14, %s15297_s15  ;;  %p15303_p2 = scmp.lt.s32.totalorder %s15297_s15, %s15297_s15 }
   0x6   :  { %p15304_p3 = por %p15303_p2, %p15302_p1 }
   0x8   :  { %p15305_p4 = pnand %p15304_p3, %p15298_p0 }
   0xa   :  { %15308 = shalt.err (!%p15305_p4)
}
   0xb   :  { %s15334_s16 = smov 192   ;;  %s15335_s17 = smov 12  }
   0xc   :  { %30 = dma.hbm_to_vmem [thread:$0]  %s19628_s1, 18432, %s25_s14, [#allocation3], %s15334_s16, %s15334_s16, %s15335_s17  }
   0xd   :  { %15329 = dma.done.wait [#allocation3], 18432  }
   0xe   :  { %15330 = vsyncadd [#allocation3], 4294948864  ;;  %v14197_v0 = vld [vmem:[#allocation2 + $0xac] ss:$12 sps:$4 sm:$0xff]   ;;  %v14201_v2 = vld [vmem:[#allocation2 + $0xa8] ss:$12 sps:$4 sm:$0xff]  }
   0xf   :  { %v14199_v1 = vld [vmem:[#allocation2 + $0x22c] ss:$12 sps:$4 sm:$0xff]   ;;  %1040 = vmatprep.subr.bf16.mxu0 %v14197_v0  ;;  %v14202_v3 = vld [vmem:[#allocation2 + $0x228] ss:$12 sps:$4 sm:$0xff]   ;;  %v14207_v6 = vld [vmem:[#allocation2 + $0x90] ss:$12 sps:$4 sm:$0xff]  }
  0x10   :  { %1083 = vmatprep.subr.bf16.mxu1 %v14199_v1  ;;  %v14203_v4 = vld [vmem:[#allocation2 + $0x94] ss:$12 sps:$4 sm:$0xff]   ;;  %1041 = vmatpush1.bf16.msra.mxu0 %v14201_v2  ;;  %v14208_v7 = vld [vmem:[#allocation2 + $0x210] ss:$12 sps:$4 sm:$0xff]   ;;  %v14213_v10 = vld [vmem:[#allocation2 + $0x78] ss:$12 sps:$4 sm:$0xff]  }
  0x11   :  { %1084 = vmatpush1.bf16.msra.mxu1 %v14202_v3  ;;  %v14205_v5 = vld [vmem:[#allocation2 + $0x214] ss:$12 sps:$4 sm:$0xff]   ;;  %1042 = vmatprep.subr.bf16.mxu0 %v14203_v4  ;;  %v14209_v8 = vld [vmem:[#allocation2 + $0x7c] ss:$12 sps:$4 sm:$0xff]   ;;  %v14214_v11 = vld [vmem:[#allocation2 + $0x1f8] ss:$12 sps:$4 sm:$0xff]  }
  0x12   :  { %1085 = vmatprep.subr.bf16.mxu1 %v14205_v5  ;;  %v14211_v9 = vld [vmem:[#allocation2 + $0x1fc] ss:$12 sps:$4 sm:$0xff]   ;;  %v14215_v12 = vld [vmem:[#allocation2 + $0x64] ss:$12 sps:$4 sm:$0xff]   ;;  %v14219_v14 = vld [vmem:[#allocation2 + $0x60] ss:$12 sps:$4 sm:$0xff]  }
  0x13   :  { %v14217_v13 = vld [vmem:[#allocation2 + $0x1e4] ss:$12 sps:$4 sm:$0xff]   ;;  %v14220_v15 = vld [vmem:[#allocation2 + $0x1e0] ss:$12 sps:$4 sm:$0xff]   ;;  %v14225_v18 = vld [vmem:[#allocation2 + $0x48] ss:$12 sps:$4 sm:$0xff]  }
  0x14   :  { %1043 = vmatpush1.bf16.msra.mxu0 %v14207_v6  ;;  %v14221_v16 = vld [vmem:[#allocation2 + $0x4c] ss:$12 sps:$4 sm:$0xff]   ;;  %v14226_v19 = vld [vmem:[#allocation2 + $0x1c8] ss:$12 sps:$4 sm:$0xff]   ;;  %v14231_v22 = vld [vmem:[#allocation2 + $0x30] ss:$12 sps:$4 sm:$0xff]  }
  0x15   :  { %1086 = vmatpush1.bf16.msra.mxu1 %v14208_v7  ;;  %1044 = vmatprep.subr.bf16.mxu0 %v14209_v8  ;;  %v14223_v17 = vld [vmem:[#allocation2 + $0x1cc] ss:$12 sps:$4 sm:$0xff]   ;;  %v14227_v20 = vld [vmem:[#allocation2 + $0x34] ss:$12 sps:$4 sm:$0xff]   ;;  %v14232_v23 = vld [vmem:[#allocation2 + $0x1b0] ss:$12 sps:$4 sm:$0xff]  }
  0x16   :  { %1087 = vmatprep.subr.bf16.mxu1 %v14211_v9  ;;  %v14229_v21 = vld [vmem:[#allocation2 + $0x1b4] ss:$12 sps:$4 sm:$0xff]   ;;  %v14233_v24 = vld [vmem:[#allocation2 + $0x1c] ss:$12 sps:$4 sm:$0xff]   ;;  %v14237_v26 = vld [vmem:[#allocation2 + $0x18] ss:$12 sps:$4 sm:$0xff]  }
  0x17   :  { %v14235_v25 = vld [vmem:[#allocation2 + $0x19c] ss:$12 sps:$4 sm:$0xff]   ;;  %v14238_v27 = vld [vmem:[#allocation2 + $0x198] ss:$12 sps:$4 sm:$0xff]   ;;  %v14243_v30 = vld [vmem:[#allocation2] ss:$12 sps:$4 sm:$0xff]  }
  0x18   :  { %1045 = vmatpush1.bf16.msra.mxu0 %v14213_v10  ;;  %v14239_v28 = vld [vmem:[#allocation2 + $0x4] ss:$12 sps:$4 sm:$0xff]   ;;  %v14244_v31 = vld [vmem:[#allocation2 + $0x180] ss:$12 sps:$4 sm:$0xff]   ;;  %v14249_v34 = vld [vmem:[#allocation2 + $0x168] ss:$12 sps:$4 sm:$0xff]  }
  0x19   :  { %1088 = vmatpush1.bf16.msra.mxu1 %v14214_v11  ;;  %1046 = vmatprep.subr.bf16.mxu0 %v14215_v12  ;;  %v14241_v29 = vld [vmem:[#allocation2 + $0x184] ss:$12 sps:$4 sm:$0xff]   ;;  %v14245_v32 = vld [vmem:[#allocation2 + $0x16c] ss:$12 sps:$4 sm:$0xff]   ;;  %v14250_v35 = vld [vmem:[#allocation2 + $0x2e8] ss:$12 sps:$4 sm:$0xff]  }
  0x1a   :  { %1089 = vmatprep.subr.bf16.mxu1 %v14217_v13  ;;  %v14247_v33 = vld [vmem:[#allocation2 + $0x2ec] ss:$12 sps:$4 sm:$0xff]   ;;  %v14251_v36 = vld [vmem:[#allocation2 + $0x154] ss:$12 sps:$4 sm:$0xff]   ;;  %v14255_v38 = vld [vmem:[#allocation2 + $0x150] ss:$12 sps:$4 sm:$0xff]  }
  0x1b   :  { %v14253_v37 = vld [vmem:[#allocation2 + $0x2d4] ss:$12 sps:$4 sm:$0xff]   ;;  %v14256_v39 = vld [vmem:[#allocation2 + $0x2d0] ss:$12 sps:$4 sm:$0xff]   ;;  %v14261_v42 = vld [vmem:[#allocation2 + $0x138] ss:$12 sps:$4 sm:$0xff]  }
  0x1c   :  { %1047 = vmatpush1.bf16.msra.mxu0 %v14219_v14  ;;  %v14257_v40 = vld [vmem:[#allocation2 + $0x13c] ss:$12 sps:$4 sm:$0xff]   ;;  %v14262_v43 = vld [vmem:[#allocation2 + $0x2b8] ss:$12 sps:$4 sm:$0xff]   ;;  %v14267_v50 = vld [vmem:[#allocation2 + $0x120] ss:$12 sps:$4 sm:$0xff]  }
  0x1d   :  { %1090 = vmatpush1.bf16.msra.mxu1 %v14220_v15  ;;  %1048 = vmatprep.subr.bf16.mxu0 %v14221_v16  ;;  %v14259_v41 = vld [vmem:[#allocation2 + $0x2bc] ss:$12 sps:$4 sm:$0xff]   ;;  %v14263_v44 = vld [vmem:[#allocation2 + $0x124] ss:$12 sps:$4 sm:$0xff]   ;;  %v14268_v51 = vld [vmem:[#allocation2 + $0x2a0] ss:$12 sps:$4 sm:$0xff]  }
  0x1e   :  { %1091 = vmatprep.subr.bf16.mxu1 %v14223_v17  ;;  %v14265_v45 = vld [vmem:[#allocation2 + $0x2a4] ss:$12 sps:$4 sm:$0xff]   ;;  %v63_v46 = vld [vmem:[%s19627_s0 + $0x8] sm:$0xff]  ;;  %v69_v47 = vld [vmem:[%s19627_s0 + $0x38] sm:$0xff]  ;;  %vm1508_vm0 = vcmask 1045504   ;;  %vm15337_vm1 = vmmov 0  }
  0x1f   :  { %v65_v48 = vld [vmem:[%s19627_s0 + $0x18] sm:$0xff]  ;;  %v71_v49 = vld [vmem:[%s19627_s0 + $0x48] sm:$0xff]  ;;  %v15412_v53 = vpack.c.bf16 %v69_v47, %v63_v46  ;;  %v14275_v58 = vld [vmem:[#allocation2 + $0xf4] ss:$12 sps:$4 sm:$0xff]   ;;  %vm1493_vm2 = vcmask 48128   ;;  %vm2441_vm3 = vcmask 523264  }
  0x20   :  { %1049 = vmatpush1.bf16.msra.mxu0 %v14225_v18  ;;  %v14269_v52 = vld [vmem:[#allocation2 + $0x10c] ss:$12 sps:$4 sm:$0xff]   ;;  %v15414_v54 = vpack.c.bf16 %v71_v49, %v65_v48  ;;  %v14273_v56 = vld [vmem:[#allocation2 + $0x108] ss:$12 sps:$4 sm:$0xff]   ;;  %v14279_v60 = vld [vmem:[#allocation2 + $0xf0] ss:$12 sps:$4 sm:$0xff]  }
  0x21   :  { %1092 = vmatpush1.bf16.msra.mxu1 %v14226_v19  ;;  %1050 = vmatprep.subr.bf16.mxu0 %v14227_v20  ;;  %v14271_v55 = vld [vmem:[#allocation2 + $0x28c] ss:$12 sps:$4 sm:$0xff]   ;;  %v14274_v57 = vld [vmem:[#allocation2 + $0x288] ss:$12 sps:$4 sm:$0xff]   ;;  %v14280_v61 = vld [vmem:[#allocation2 + $0x270] ss:$12 sps:$4 sm:$0xff]  }
  0x22   :  { %1093 = vmatprep.subr.bf16.mxu1 %v14229_v21  ;;  %1072 = vmatprep.mubr.bf16.mxu0 %v15412_v53  ;;  %v14277_v59 = vld [vmem:[#allocation2 + $0x274] ss:$12 sps:$4 sm:$0xff]   ;;  %v14281_v62 = vld [vmem:[#allocation2 + $0xdc] ss:$12 sps:$4 sm:$0xff]   ;;  %v14285_v0 = vld [vmem:[#allocation2 + $0xd8] ss:$12 sps:$4 sm:$0xff]  }
  0x23   :  { %1115 = vmatprep.mubr.bf16.mxu1 %v15414_v54  ;;  %v14283_v63 = vld [vmem:[#allocation2 + $0x25c] ss:$12 sps:$4 sm:$0xff]   ;;  %v14286_v1 = vld [vmem:[#allocation2 + $0x258] ss:$12 sps:$4 sm:$0xff]   ;;  %v14291_v4 = vld [vmem:[#allocation2 + $0xc0] ss:$12 sps:$4 sm:$0xff]  }
  0x24   :  { %1051 = vmatpush1.bf16.msra.mxu0 %v14231_v22  ;;  %v14287_v2 = vld [vmem:[#allocation2 + $0xc4] ss:$12 sps:$4 sm:$0xff]   ;;  %v14292_v5 = vld [vmem:[#allocation2 + $0x240] ss:$12 sps:$4 sm:$0xff]   ;;  %v14293_v12 = vld [vmem:[#allocation2 + $0x3a8] ss:$12 sps:$4 sm:$0xff]  }
  0x25   :  { %1094 = vmatpush1.bf16.msra.mxu1 %v14232_v23  ;;  %1052 = vmatprep.subr.bf16.mxu0 %v14233_v24  ;;  %v14289_v3 = vld [vmem:[#allocation2 + $0x244] ss:$12 sps:$4 sm:$0xff]   ;;  %v14295_v10 = vld [vmem:[#allocation2 + $0x3ac] ss:$12 sps:$4 sm:$0xff]   ;;  %v14300_v16 = vld [vmem:[#allocation2 + $0x394] ss:$12 sps:$4 sm:$0xff]  }
  0x26   :  { %1095 = vmatprep.subr.bf16.mxu1 %v14235_v25  ;;  %v62_v6 = vld [vmem:[%s19627_s0] sm:$0xff]  ;;  %v68_v7 = vld [vmem:[%s19627_s0 + $0x30] sm:$0xff]  ;;  %v14305_v20 = vld [vmem:[#allocation2 + $0x37c] ss:$12 sps:$4 sm:$0xff]   ;;  %vm2537_vm4 = vcmask 1043456   ;;  %vm2523_vm5 = vcmask 97280  }
  0x27   :  { %v64_v8 = vld [vmem:[%s19627_s0 + $0x10] sm:$0xff]  ;;  %v70_v9 = vld [vmem:[%s19627_s0 + $0x40] sm:$0xff]  ;;  %v15430_v13 = vpack.c.bf16 %v68_v7, %v62_v6  ;;  %v14365_v7 = vld [vmem:[#allocation2 + $0x3dc] ss:$12 sps:$4 sm:$0xff]   ;;  %vm12159_vm6 = vcmask 80896  }
  0x28   :  { %1053 = vmatpush1.bf16.msra.mxu0 %v14237_v26  ;;  %v14296_v11 = vld [vmem:[#allocation2 + $0x170] ss:$12 sps:$4 sm:$0xff]   ;;  %v15432_v14 = vpack.c.bf16 %v70_v9, %v64_v8  ;;  %v14301_v17 = vld [vmem:[#allocation2 + $0x158] ss:$12 sps:$4 sm:$0xff]   ;;  %v14306_v21 = vld [vmem:[#allocation2 + $0x140] ss:$12 sps:$4 sm:$0xff]  }
  0x29   :  { %1096 = vmatpush1.bf16.msra.mxu1 %v14238_v27  ;;  %1054 = vmatprep.subr.bf16.mxu0 %v14239_v28  ;;  %v14297_v15 = vld [vmem:[#allocation2 + $0xb0] ss:$12 sps:$4 sm:$0xff]   ;;  %v14302_v19 = vld [vmem:[#allocation2 + $0x98] ss:$12 sps:$4 sm:$0xff]   ;;  %v14307_v23 = vld [vmem:[#allocation2 + $0x80] ss:$12 sps:$4 sm:$0xff]  }
  0x2a   :  { %1097 = vmatprep.subr.bf16.mxu1 %v14241_v29  ;;  %v14298_v18 = vld [vmem:[#allocation2 + $0x390] ss:$12 sps:$4 sm:$0xff]   ;;  %v14303_v22 = vld [vmem:[#allocation2 + $0x378] ss:$12 sps:$4 sm:$0xff]   ;;  %v14311_v25 = vld [vmem:[#allocation2 + $0x128] ss:$12 sps:$4 sm:$0xff]  }
  0x2b   :  { %v14310_v24 = vld [vmem:[#allocation2 + $0x364] ss:$12 sps:$4 sm:$0xff]   ;;  %v14308_v26 = vld [vmem:[#allocation2 + $0x360] ss:$12 sps:$4 sm:$0xff]   ;;  %v14312_v27 = vld [vmem:[#allocation2 + $0x68] ss:$12 sps:$4 sm:$0xff]  }
  0x2c   :  { %1055 = vmatpush1.bf16.msra.mxu0 %v14243_v30  ;;  %v14315_v28 = vld [vmem:[#allocation2 + $0x34c] ss:$12 sps:$4 sm:$0xff]   ;;  %v14316_v29 = vld [vmem:[#allocation2 + $0x110] ss:$12 sps:$4 sm:$0xff]   ;;  %v14313_v30 = vld [vmem:[#allocation2 + $0x348] ss:$12 sps:$4 sm:$0xff]  }
  0x2d   :  { %1098 = vmatpush1.bf16.msra.mxu1 %v14244_v31  ;;  %1056 = vmatprep.subr.bf16.mxu0 %v14245_v32  ;;  %v14317_v31 = vld [vmem:[#allocation2 + $0x50] ss:$12 sps:$4 sm:$0xff]   ;;  %v14320_v32 = vld [vmem:[#allocation2 + $0x334] ss:$12 sps:$4 sm:$0xff]   ;;  %v14341_v49 = vld [vmem:[#allocation2 + $0x2d8] ss:$12 sps:$4 sm:$0xff]  }
  0x2e   :  { %1099 = vmatprep.subr.bf16.mxu1 %v14247_v33  ;;  %v14321_v33 = vld [vmem:[#allocation2 + $0xf8] ss:$12 sps:$4 sm:$0xff]   ;;  %v14333_v46 = vld [vmem:[#allocation2 + $0x468] ss:$12 sps:$4 sm:$0xff]   ;;  %v14337_v47 = vld [vmem:[#allocation2 + $0x230] ss:$12 sps:$4 sm:$0xff]  }
  0x2f   :  { %v14340_v48 = vld [vmem:[#allocation2 + $0x454] ss:$12 sps:$4 sm:$0xff]   ;;  %v14362_v6 = vld [vmem:[#allocation2 + $0x1b8] ss:$12 sps:$4 sm:$0xff]  }
  0x30   :  { %1057 = vmatpush2.bf16.msra.mxu0 %v14249_v34  ;;  %v14318_v34 = vld [vmem:[#allocation2 + $0x330] ss:$12 sps:$4 sm:$0xff]   ;;  %v14366_v8 = vld [vmem:[#allocation2 + $0x260] ss:$12 sps:$4 sm:$0xff]   ;;  %v14363_v9 = vld [vmem:[#allocation2 + $0x3d8] ss:$12 sps:$4 sm:$0xff]  }
  0x31   :  { %1100 = vmatpush2.bf16.msra.mxu1 %v14250_v35  ;;  %1058 = vmatprep.subr.bf16.mxu0 %v14251_v36  ;;  %v14322_v35 = vld [vmem:[#allocation2 + $0x38] ss:$12 sps:$4 sm:$0xff]   ;;  %v14325_v36 = vld [vmem:[#allocation2 + $0x31c] ss:$12 sps:$4 sm:$0xff]  }
  0x32   :  { %1101 = vmatprep.subr.bf16.mxu1 %v14253_v37  ;;  %v14326_v37 = vld [vmem:[#allocation2 + $0xe0] ss:$12 sps:$4 sm:$0xff]  }
  0x34   :  { %1059 = vmatpush2.bf16.msra.mxu0 %v14255_v38  ;;  %v14323_v38 = vld [vmem:[#allocation2 + $0x318] ss:$12 sps:$4 sm:$0xff]  }
  0x35   :  { %1102 = vmatpush2.bf16.msra.mxu1 %v14256_v39  ;;  %1060 = vmatprep.subr.bf16.mxu0 %v14257_v40  ;;  %v14327_v39 = vld [vmem:[#allocation2 + $0x20] ss:$12 sps:$4 sm:$0xff]   ;;  %v14330_v40 = vld [vmem:[#allocation2 + $0x304] ss:$12 sps:$4 sm:$0xff]  }
  0x36   :  { %1103 = vmatprep.subr.bf16.mxu1 %v14259_v41  ;;  %v14331_v41 = vld [vmem:[#allocation2 + $0xc8] ss:$12 sps:$4 sm:$0xff]  }
  0x38   :  { %1061 = vmatpush2.bf16.msra.mxu0 %v14261_v42  ;;  %v14328_v42 = vld [vmem:[#allocation2 + $0x300] ss:$12 sps:$4 sm:$0xff]  }
  0x39   :  { %1104 = vmatpush2.bf16.msra.mxu1 %v14262_v43  ;;  %1062 = vmatprep.subr.bf16.mxu0 %v14263_v44  ;;  %v14332_v43 = vld [vmem:[#allocation2 + $0x8] ss:$12 sps:$4 sm:$0xff]   ;;  %v14335_v44 = vld [vmem:[#allocation2 + $0x46c] ss:$12 sps:$4 sm:$0xff]  }
  0x3a   :  { %1105 = vmatprep.subr.bf16.mxu1 %v14265_v45  ;;  %v14336_v45 = vld [vmem:[#allocation2 + $0x2f0] ss:$12 sps:$4 sm:$0xff]  }
  0x3c   :  { %1063 = vmatpush2.bf16.msra.mxu0 %v14267_v50  ;;  %v67_v50 = vld [vmem:[%s19627_s0 + $0x28] sm:$0xff] }
  0x3d   :  { %1106 = vmatpush2.bf16.msra.mxu1 %v14268_v51  ;;  %1064 = vmatprep.subr.bf16.mxu0 %v14269_v52  ;;  %v14338_v51 = vld [vmem:[#allocation2 + $0x450] ss:$12 sps:$4 sm:$0xff]   ;;  %v14342_v52 = vld [vmem:[#allocation2 + $0x218] ss:$12 sps:$4 sm:$0xff]  }
  0x3e   :  { %1107 = vmatprep.subr.bf16.mxu1 %v14271_v55  ;;  %v14345_v55 = vld [vmem:[#allocation2 + $0x43c] ss:$12 sps:$4 sm:$0xff]  }
  0x40   :  { %1065 = vmatpush2.bf16.msra.mxu0 %v14273_v56 }
  0x41   :  { %1108 = vmatpush2.bf16.msra.mxu1 %v14274_v57  ;;  %1066 = vmatprep.subr.bf16.mxu0 %v14275_v58  ;;  %v14346_v57 = vld [vmem:[#allocation2 + $0x2c0] ss:$12 sps:$4 sm:$0xff]   ;;  %v14343_v58 = vld [vmem:[#allocation2 + $0x438] ss:$12 sps:$4 sm:$0xff]  }
  0x42   :  { %1109 = vmatprep.subr.bf16.mxu1 %v14277_v59  ;;  %v14347_v59 = vld [vmem:[#allocation2 + $0x200] ss:$12 sps:$4 sm:$0xff]  }
  0x44   :  { %1067 = vmatpush2.bf16.msra.mxu0 %v14279_v60  ;;  %v14350_v60 = vld [vmem:[#allocation2 + $0x424] ss:$12 sps:$4 sm:$0xff]  }
  0x45   :  { %1110 = vmatpush2.bf16.msra.mxu1 %v14280_v61  ;;  %1068 = vmatprep.subr.bf16.mxu0 %v14281_v62  ;;  %v14351_v61 = vld [vmem:[#allocation2 + $0x2a8] ss:$12 sps:$4 sm:$0xff]   ;;  %v14348_v62 = vld [vmem:[#allocation2 + $0x420] ss:$12 sps:$4 sm:$0xff]  }
  0x46   :  { %1111 = vmatprep.subr.bf16.mxu1 %v14283_v63  ;;  %v14352_v63 = vld [vmem:[#allocation2 + $0x1e8] ss:$12 sps:$4 sm:$0xff]  }
  0x48   :  { %1069 = vmatpush2.bf16.msra.mxu0 %v14285_v0  ;;  %v14355_v0 = vld [vmem:[#allocation2 + $0x40c] ss:$12 sps:$4 sm:$0xff]  }
  0x49   :  { %1112 = vmatpush2.bf16.msra.mxu1 %v14286_v1  ;;  %1070 = vmatprep.subr.bf16.mxu0 %v14287_v2  ;;  %v14356_v1 = vld [vmem:[#allocation2 + $0x290] ss:$12 sps:$4 sm:$0xff]   ;;  %v14353_v2 = vld [vmem:[#allocation2 + $0x408] ss:$12 sps:$4 sm:$0xff]  }
  0x4a   :  { %1113 = vmatprep.subr.bf16.mxu1 %v14289_v3  ;;  %v14357_v3 = vld [vmem:[#allocation2 + $0x1d0] ss:$12 sps:$4 sm:$0xff]  }
  0x4c   :  { %1071 = vmatpush2.bf16.msra.mxu0 %v14291_v4  ;;  %v14361_v4 = vld [vmem:[#allocation2 + $0x278] ss:$12 sps:$4 sm:$0xff]  }
  0x4d   :  { %1114 = vmatpush2.bf16.msra.mxu1 %v14292_v5  ;;  %1126 = vmatprep.subr.bf16.mxu0 %v14295_v10  ;;  %v14358_v5 = vld [vmem:[#allocation2 + $0x3f0] ss:$12 sps:$4 sm:$0xff]   ;;  %v14367_v10 = vld [vmem:[#allocation2 + $0x1a0] ss:$12 sps:$4 sm:$0xff]  }
  0x4e   :  { %13398 = vmatprep.subr.bf16.mxu1 %v14296_v11  ;;  %v14370_v11 = vld [vmem:[#allocation2 + $0x3c4] ss:$12 sps:$4 sm:$0xff]  }
  0x4f   :  { %1073 = vmatmul.mubr.bf16.vlgmr.msra.gmra.mxu0 %v15430_v13 }
  0x50   :  { %1116 = vmatmul.mubr.bf16.vlgmr.msra.gmra.mxu1 %v15432_v14  ;;  %1127 = vmatpush1.bf16.msra.mxu0 %v14293_v12  ;;  %v14371_v12 = vld [vmem:[#allocation2 + $0x248] ss:$12 sps:$4 sm:$0xff]  }
  0x51   :  { %13399 = vmatpush3.bf16.msra.mxu1 %v14297_v15  ;;  %1128 = vmatprep.subr.bf16.mxu0 %v14300_v16  ;;  %v14372_v15 = vld [vmem:[#allocation2 + $0x188] ss:$12 sps:$4 sm:$0xff]   ;;  %v66_v16 = vld [vmem:[%s19627_s0 + $0x20] sm:$0xff] }
  0x52   :  { %13400 = vmatprep.subr.bf16.mxu1 %v14301_v17  ;;  %1201 = vmatprep.mubr.bf16.mxu1 %v15412_v53  ;;  %v73_v53 = vld [vmem:[%s19627_s0 + $0x58] sm:$0xff]  ;;  %v72_v17 = vld [vmem:[%s19627_s0 + $0x50] sm:$0xff] }
  0x53   :  { %v15444_v56 = vpack.c.bf16 %v73_v53, %v67_v50  ;;  %v1299_v50 = vld [vmem:[%s19629_s2 + $0x38] sm:$0xff]  ;;  %v1298_v53 = vld [vmem:[%s19629_s2 + $0x30] sm:$0xff] }
  0x54   :  { %1129 = vmatpush1.bf16.msra.mxu0 %v14298_v18  ;;  %v14373_v18 = vld [vmem:[#allocation2 + $0x470] ss:$12 sps:$4 sm:$0xff]  }
  0x55   :  { %13401 = vmatpush3.bf16.msra.mxu1 %v14302_v19  ;;  %1130 = vmatprep.subr.bf16.mxu0 %v14305_v20  ;;  %v14374_v19 = vld [vmem:[#allocation2 + $0x3b0] ss:$12 sps:$4 sm:$0xff]   ;;  %v15454_v20 = vpack.c.bf16 %v72_v17, %v66_v16  ;;  %v1325_v17 = vld [vmem:[%s19629_s2 + $0x108] sm:$0xff] }
  0x56   :  { %13402 = vmatprep.subr.bf16.mxu1 %v14306_v21  ;;  %1158 = vmatprep.mubr.bf16.mxu0 %v15444_v56  ;;  %v14375_v21 = vld [vmem:[#allocation2 + $0x458] ss:$12 sps:$4 sm:$0xff]   ;;  %v1326_v16 = vld [vmem:[%s19629_s2 + $0x110] sm:$0xff] }
  0x58   :  { %1131 = vmatpush1.bf16.msra.mxu0 %v14303_v22  ;;  %v14376_v22 = vld [vmem:[#allocation2 + $0x398] ss:$12 sps:$4 sm:$0xff]  }
  0x59   :  { %13403 = vmatpush3.bf16.msra.mxu1 %v14307_v23  ;;  %1132 = vmatprep.subr.bf16.mxu0 %v14310_v24  ;;  %v14377_v23 = vld [vmem:[#allocation2 + $0x440] ss:$12 sps:$4 sm:$0xff]  }
  0x5a   :  { %13404 = vmatprep.subr.bf16.mxu1 %v14311_v25  ;;  %v14378_v24 = vld [vmem:[#allocation2 + $0x380] ss:$12 sps:$4 sm:$0xff]   ;;  %v14379_v25 = vld [vmem:[#allocation2 + $0x428] ss:$12 sps:$4 sm:$0xff]  }
  0x5c   :  { %1133 = vmatpush1.bf16.msra.mxu0 %v14308_v26  ;;  %v1323_v26 = vld [vmem:[%s19629_s2 + $0xf8] sm:$0xff] }
  0x5d   :  { %13405 = vmatpush3.bf16.msra.mxu1 %v14312_v27  ;;  %1134 = vmatprep.subr.bf16.mxu0 %v14315_v28  ;;  %v1307_v27 = vld [vmem:[%s19629_s2 + $0x78] sm:$0xff]  ;;  %v1306_v28 = vld [vmem:[%s19629_s2 + $0x70] sm:$0xff] }
  0x5e   :  { %13406 = vmatprep.subr.bf16.mxu1 %v14316_v29  ;;  %v14380_v29 = vld [vmem:[#allocation2 + $0x368] ss:$12 sps:$4 sm:$0xff]  }
  0x60   :  { %1135 = vmatpush1.bf16.msra.mxu0 %v14313_v30  ;;  %v1321_v30 = vld [vmem:[%s19629_s2 + $0xe8] sm:$0xff] }
  0x61   :  { %13407 = vmatpush3.bf16.msra.mxu1 %v14317_v31  ;;  %1136 = vmatprep.subr.bf16.mxu0 %v14320_v32  ;;  %v14381_v31 = vld [vmem:[#allocation2 + $0x410] ss:$12 sps:$4 sm:$0xff]   ;;  %v1305_v32 = vld [vmem:[%s19629_s2 + $0x68] sm:$0xff] }
  0x62   :  { %13408 = vmatprep.subr.bf16.mxu1 %v14321_v33  ;;  %v14382_v33 = vld [vmem:[#allocation2 + $0x350] ss:$12 sps:$4 sm:$0xff]  }
  0x64   :  { %1137 = vmatpush1.bf16.msra.mxu0 %v14318_v34  ;;  %v1320_v34 = vld [vmem:[%s19629_s2 + $0xe0] sm:$0xff] }
  0x65   :  { %13409 = vmatpush3.bf16.msra.mxu1 %v14322_v35  ;;  %1138 = vmatprep.subr.bf16.mxu0 %v14325_v36  ;;  %v14383_v35 = vld [vmem:[#allocation2 + $0x3f8] ss:$12 sps:$4 sm:$0xff]  }
  0x66   :  { %13410 = vmatprep.subr.bf16.mxu1 %v14326_v37  ;;  %v1304_v36 = vld [vmem:[%s19629_s2 + $0x60] sm:$0xff]  ;;  %v1319_v37 = vld [vmem:[%s19629_s2 + $0xd8] sm:$0xff] }
  0x68   :  { %1139 = vmatpush1.bf16.msra.mxu0 %v14323_v38  ;;  %v1303_v38 = vld [vmem:[%s19629_s2 + $0x58] sm:$0xff] }
  0x69   :  { %13411 = vmatpush3.bf16.msra.mxu1 %v14327_v39  ;;  %1140 = vmatprep.subr.bf16.mxu0 %v14330_v40  ;;  %v1318_v39 = vld [vmem:[%s19629_s2 + $0xd0] sm:$0xff] }
  0x6a   :  { %13412 = vmatprep.subr.bf16.mxu1 %v14331_v41  ;;  %v1302_v40 = vld [vmem:[%s19629_s2 + $0x50] sm:$0xff]  ;;  %v14384_v41 = vld [vmem:[#allocation2 + $0x338] ss:$12 sps:$4 sm:$0xff]  }
  0x6c   :  { %1141 = vmatpush1.bf16.msra.mxu0 %v14328_v42  ;;  %v1317_v42 = vld [vmem:[%s19629_s2 + $0xc8] sm:$0xff] }
  0x6d   :  { %13413 = vmatpush3.bf16.msra.mxu1 %v14332_v43  ;;  %1142 = vmatprep.subr.bf16.mxu0 %v14335_v44  ;;  %v14385_v43 = vld [vmem:[#allocation2 + $0x3e0] ss:$12 sps:$4 sm:$0xff]  }
  0x6e   :  { %13420 = vmatprep.subr.bf16.mxu1 %v14336_v45  ;;  %v1301_v44 = vld [vmem:[%s19629_s2 + $0x48] sm:$0xff]  ;;  %v1316_v45 = vld [vmem:[%s19629_s2 + $0xc0] sm:$0xff] }
  0x70   :  { %1202 = vmatmul.mubr.bf16.vlgmr.msra.gmra.mxu1 %v15430_v13  ;;  %1143 = vmatpush2.bf16.msra.mxu0 %v14333_v46  ;;  %v14368_v13 = vld [vmem:[#allocation2 + $0x3c0] ss:$12 sps:$4 sm:$0xff]  }
  0x71   :  { %13421 = vmatpush3.bf16.msra.mxu1 %v14337_v47  ;;  %1144 = vmatprep.subr.bf16.mxu0 %v14340_v48  ;;  %v1300_v46 = vld [vmem:[%s19629_s2 + $0x40] sm:$0xff]  ;;  %v1315_v48 = vld [vmem:[%s19629_s2 + $0xb8] sm:$0xff] }
  0x72   :  { %13422 = vmatprep.subr.bf16.mxu1 %v14341_v49  ;;  %1242 = vmatprep.mubr.bf16.mxu1 %v15414_v54  ;;  %v14360_v54 = vld [vmem:[#allocation2 + $0x3f4] ss:$12 sps:$4 sm:$0xff]  }
  0x73   :  { %v14386_v47 = vld [vmem:[#allocation2 + $0x320] ss:$12 sps:$4 sm:$0xff]   ;;  %v14387_v49 = vld [vmem:[#allocation2 + $0x3c8] ss:$12 sps:$4 sm:$0xff]  }
  0x74   :  { %1145 = vmatpush2.bf16.msra.mxu0 %v14338_v51  ;;  %v14388_v51 = vld [vmem:[#allocation2 + $0x308] ss:$12 sps:$4 sm:$0xff]  }
  0x75   :  { %13423 = vmatpush3.bf16.msra.mxu1 %v14342_v52  ;;  %1146 = vmatprep.subr.bf16.mxu0 %v14345_v55  ;;  %v1314_v52 = vld [vmem:[%s19629_s2 + $0xb0] sm:$0xff]  ;;  %v1313_v55 = vld [vmem:[%s19629_s2 + $0xa8] sm:$0xff] }
  0x76   :  { %13424 = vmatprep.subr.bf16.mxu1 %v14346_v57  ;;  %v1312_v57 = vld [vmem:[%s19629_s2 + $0xa0] sm:$0xff] }
  0x78   :  { %1147 = vmatpush2.bf16.msra.mxu0 %v14343_v58  ;;  %v1296_v58 = vld [vmem:[%s19629_s2 + $0x20] sm:$0xff] }
  0x79   :  { %13425 = vmatpush3.bf16.msra.mxu1 %v14347_v59  ;;  %1148 = vmatprep.subr.bf16.mxu0 %v14350_v60  ;;  %v1311_v59 = vld [vmem:[%s19629_s2 + $0x98] sm:$0xff] }
  0x7a   :  { %13426 = vmatprep.subr.bf16.mxu1 %v14351_v61  ;;  %v1295_v60 = vld [vmem:[%s19629_s2 + $0x18] sm:$0xff]  ;;  %v1310_v61 = vld [vmem:[%s19629_s2 + $0x90] sm:$0xff] }
  0x7c   :  { %1149 = vmatpush2.bf16.msra.mxu0 %v14348_v62  ;;  %v1294_v62 = vld [vmem:[%s19629_s2 + $0x10] sm:$0xff] }
  0x7d   :  { %13427 = vmatpush3.bf16.msra.mxu1 %v14352_v63  ;;  %1150 = vmatprep.subr.bf16.mxu0 %v14355_v0  ;;  %v1309_v63 = vld [vmem:[%s19629_s2 + $0x88] sm:$0xff] }
  0x7e   :  { %13428 = vmatprep.subr.bf16.mxu1 %v14356_v1  ;;  %v1293_v0 = vld [vmem:[%s19629_s2 + $0x8] sm:$0xff]  ;;  %v1308_v1 = vld [vmem:[%s19629_s2 + $0x80] sm:$0xff] }
  0x80   :  { %1151 = vmatpush2.bf16.msra.mxu0 %v14353_v2  ;;  %v1292_v2 = vld [vmem:[%s19629_s2] sm:$0xff] }
  0x81   :  { %13429 = vmatpush3.bf16.msra.mxu1 %v14357_v3  ;;  %1152 = vmatprep.subr.bf16.mxu0 %v14360_v54  ;;  %v1339_v3 = vld [vmem:[%s19629_s2 + $0x178] sm:$0xff]  ;;  %v1338_v54 = vld [vmem:[%s19629_s2 + $0x170] sm:$0xff] }
  0x82   :  { %13430 = vmatprep.subr.bf16.mxu1 %v14361_v4  ;;  %v1337_v4 = vld [vmem:[%s19629_s2 + $0x168] sm:$0xff] }
  0x84   :  { %1153 = vmatpush2.bf16.msra.mxu0 %v14358_v5  ;;  %v1336_v5 = vld [vmem:[%s19629_s2 + $0x160] sm:$0xff] }
  0x85   :  { %13431 = vmatpush3.bf16.msra.mxu1 %v14362_v6  ;;  %1154 = vmatprep.subr.bf16.mxu0 %v14365_v7  ;;  %v1335_v6 = vld [vmem:[%s19629_s2 + $0x158] sm:$0xff]  ;;  %v1334_v7 = vld [vmem:[%s19629_s2 + $0x150] sm:$0xff] }
  0x86   :  { %13432 = vmatprep.subr.bf16.mxu1 %v14366_v8  ;;  %v1333_v8 = vld [vmem:[%s19629_s2 + $0x148] sm:$0xff] }
  0x88   :  { %1155 = vmatpush2.bf16.msra.mxu0 %v14363_v9  ;;  %v1332_v9 = vld [vmem:[%s19629_s2 + $0x140] sm:$0xff] }
  0x89   :  { %13433 = vmatpush3.bf16.msra.mxu1 %v14367_v10  ;;  %1156 = vmatprep.subr.bf16.mxu0 %v14370_v11  ;;  %v1331_v10 = vld [vmem:[%s19629_s2 + $0x138] sm:$0xff]  ;;  %v1330_v11 = vld [vmem:[%s19629_s2 + $0x130] sm:$0xff] }
  0x8a   :  { %13434 = vmatprep.subr.bf16.mxu1 %v14371_v12  ;;  %v1329_v12 = vld [vmem:[%s19629_s2 + $0x128] sm:$0xff] }
  0x8c   :  { %1157 = vmatpush2.bf16.msra.mxu0 %v14368_v13  ;;  %v1328_v13 = vld [vmem:[%s19629_s2 + $0x120] sm:$0xff] }
  0x8d   :  { %13435 = vmatpush3.bf16.msra.mxu1 %v14372_v15  ;;  %13442 = vmatprep.subr.bf16.mxu0 %v14373_v18  ;;  %v1327_v15 = vld [vmem:[%s19629_s2 + $0x118] sm:$0xff]  ;;  %v1324_v18 = vld [vmem:[%s19629_s2 + $0x100] sm:$0xff] }
  0x8e   :  { %13464 = vmatprep.subr.mxu1 %v1323_v26 }
  0x8f   :  { %1159 = vmatmul.mubr.bf16.vlgmr.msra.gmra.mxu0 %v15454_v20 }
  0x90   :  { %1243 = vmatmul.mubr.bf16.vlgmr.msra.gmra.mxu1 %v15432_v14  ;;  %13443 = vmatpush3.bf16.msra.mxu0 %v14374_v19  ;;  %v1322_v14 = vld [vmem:[%s19629_s2 + $0xf0] sm:$0xff] }
  0x91   :  { %1283 = vmatprep.mubr.bf16.mxu0 %v15444_v56  ;;  %13444 = vmatprep.subr.bf16.mxu0 %v14375_v21  ;;  %v1297_v56 = vld [vmem:[%s19629_s2 + $0x28] sm:$0xff] }
  0x92   :  { %13465 = vmatpush3.msra.mxu1 %v1307_v27 }
  0x93   :  { %13466 = vmatprep.subr.mxu1 %v1322_v14 }
  0x94   :  { %13445 = vmatpush3.bf16.msra.mxu0 %v14376_v22  ;;  %13467 = vmatpush3.msra.mxu1 %v1306_v28 }
  0x95   :  { %13446 = vmatprep.subr.bf16.mxu0 %v14377_v23  ;;  %13468 = vmatprep.subr.mxu1 %v1321_v30 }
  0x96   :  { %13469 = vmatpush3.msra.mxu1 %v1305_v32 }
  0x97   :  { %13470 = vmatprep.subr.mxu1 %v1320_v34 }
  0x98   :  { %13447 = vmatpush3.bf16.msra.mxu0 %v14378_v24  ;;  %13471 = vmatpush3.msra.mxu1 %v1304_v36 }
  0x99   :  { %13448 = vmatprep.subr.bf16.mxu0 %v14379_v25  ;;  %13472 = vmatprep.subr.mxu1 %v1319_v37 }
  0x9a   :  { %13473 = vmatpush3.msra.mxu1 %v1303_v38 }
  0x9b   :  { %13474 = vmatprep.subr.mxu1 %v1318_v39 }
  0x9c   :  { %13449 = vmatpush3.bf16.msra.mxu0 %v14380_v29  ;;  %13475 = vmatpush3.msra.mxu1 %v1302_v40 }
  0x9d   :  { %13450 = vmatprep.subr.bf16.mxu0 %v14381_v31  ;;  %13476 = vmatprep.subr.mxu1 %v1317_v42 }
  0x9e   :  { %13477 = vmatpush3.msra.mxu1 %v1301_v44 }
  0x9f   :  { %13478 = vmatprep.subr.mxu1 %v1316_v45 }
  0xa0   :  { %13451 = vmatpush3.bf16.msra.mxu0 %v14382_v33  ;;  %13479 = vmatpush3.msra.mxu1 %v1300_v46 }
  0xa1   :  { %13452 = vmatprep.subr.bf16.mxu0 %v14383_v35  ;;  %13480 = vmatprep.subr.mxu1 %v1315_v48 }
  0xa2   :  { %13481 = vmatpush3.msra.mxu1 %v1299_v50 }
  0xa3   :  { %13482 = vmatprep.subr.mxu1 %v1314_v52 }
  0xa4   :  { %13453 = vmatpush3.bf16.msra.mxu0 %v14384_v41  ;;  %13483 = vmatpush3.msra.mxu1 %v1298_v53 }
  0xa5   :  { %13454 = vmatprep.subr.bf16.mxu0 %v14385_v43  ;;  %13484 = vmatprep.subr.mxu1 %v1313_v55 }
  0xa6   :  { %13485 = vmatpush3.msra.mxu1 %v1297_v56 }
  0xa7   :  { %13486 = vmatprep.subr.mxu1 %v1312_v57 }
  0xa8   :  { %13455 = vmatpush3.bf16.msra.mxu0 %v14386_v47  ;;  %13487 = vmatpush3.msra.mxu1 %v1296_v58 }
  0xa9   :  { %13456 = vmatprep.subr.bf16.mxu0 %v14387_v49  ;;  %13488 = vmatprep.subr.mxu1 %v1311_v59 }
  0xaa   :  { %13489 = vmatpush3.msra.mxu1 %v1295_v60 }
  0xab   :  { %13490 = vmatprep.subr.mxu1 %v1310_v61  ;;  %v15625_v61 = vld [vmem:[%s19630_s3 + $0x8] sm:$0x3f] }
  0xac   :  { %13457 = vmatpush3.bf16.msra.mxu0 %v14388_v51  ;;  %13491 = vmatpush3.msra.mxu1 %v1294_v62  ;;  %v15632_v62 = vld [vmem:[%s19630_s3] sm:$0x3f] }
  0xad   :  { %13492 = vmatprep.subr.mxu1 %v1309_v63  ;;  %14108 = vmatprep.subr.mxu0 %v1339_v3  ;;  %v15336_v63 = vmov 0.0  }
  0xae   :  { %13493 = vmatpush3.msra.mxu1 %v1293_v0  ;;  %v15638_v0 = vld [vmem:[%s19630_s3 + $0x10] sm:$0x3f] }
  0xaf   :  { %1284 = vmatmul.mubr.bf16.vlgmr.msra.gmra.mxu0 %v15454_v20  ;;  %13494 = vmatprep.subr.mxu1 %v1308_v1  ;;  %v15241_v1 = vld [vmem:[%s19629_s2 + $0x178] sm:$0xff] }
  0xb0   :  { %13495 = vmatpush3.msra.mxu1 %v1292_v2  ;;  %14109 = vmatpush3.msra.mxu0 %v1339_v3  ;;  %v15242_v2 = vld [vmem:[%s19629_s2 + $0xf8] sm:$0xff] }
  0xb1   :  { %14110 = vmatprep.subr.mxu0 %v1338_v54  ;;  %14143 = vmatprep.subr.mxu1 %v15336_v63 }
  0xb2   :  { %14111 = vmatpush3.msra.mxu0 %v1338_v54 }
  0xb3   :  { %14112 = vmatprep.subr.mxu0 %v1337_v4 }
  0xb4   :  { %14113 = vmatpush3.msra.mxu0 %v1337_v4 }
  0xb5   :  { %14114 = vmatprep.subr.mxu0 %v1336_v5 }
  0xb6   :  { %14115 = vmatpush3.msra.mxu0 %v1336_v5 }
  0xb7   :  { %14116 = vmatprep.subr.mxu0 %v1335_v6 }
  0xb8   :  { %14117 = vmatpush3.msra.mxu0 %v1335_v6 }
  0xb9   :  { %14118 = vmatprep.subr.mxu0 %v1334_v7 }
  0xba   :  { %14119 = vmatpush3.msra.mxu0 %v1334_v7 }
  0xbb   :  { %14120 = vmatprep.subr.mxu0 %v1333_v8 }
  0xbc   :  { %14121 = vmatpush3.msra.mxu0 %v1333_v8 }
  0xbd   :  { %14122 = vmatprep.subr.mxu0 %v1332_v9 }
  0xbe   :  { %14123 = vmatpush3.msra.mxu0 %v1332_v9 }
  0xbf   :  { %14124 = vmatprep.subr.mxu0 %v1331_v10 }
  0xc0   :  { %14125 = vmatpush3.msra.mxu0 %v1331_v10 }
  0xc1   :  { %14126 = vmatprep.subr.mxu0 %v1330_v11 }
  0xc2   :  { %14127 = vmatpush3.msra.mxu0 %v1330_v11 }
  0xc3   :  { %14128 = vmatprep.subr.mxu0 %v1329_v12 }
  0xc4   :  { %14129 = vmatpush3.msra.mxu0 %v1329_v12 }
  0xc5   :  { %14130 = vmatprep.subr.mxu0 %v1328_v13 }
  0xc6   :  { %14131 = vmatpush3.msra.mxu0 %v1328_v13 }
  0xc7   :  { %14132 = vmatprep.subr.mxu0 %v1327_v15 }
  0xc8   :  { %14133 = vmatpush3.msra.mxu0 %v1327_v15 }
  0xc9   :  { %14134 = vmatprep.subr.mxu0 %v1326_v16 }
  0xca   :  { %14135 = vmatpush3.msra.mxu0 %v1326_v16 }
  0xcb   :  { %14136 = vmatprep.subr.mxu0 %v1325_v17 }
  0xcc   :  { %14137 = vmatpush3.msra.mxu0 %v1325_v17 }
  0xcd   :  { %14138 = vmatprep.subr.mxu0 %v1324_v18 }
  0xce   :  { %14139 = vmatpush3.msra.mxu0 %v1324_v18 }
  0xcf   :  { %12345 = vmatprep.subr.msk.mxu0 %vm1508_vm0, %v15625_v61 }
 0x10f   :  { %v1074_v19 = vpop.f32.mrf.mxu0 }
 0x110   :  { %v1117_v20 = vpop.f32.mrf.mxu1 }
 0x111   :  { %v1076_v21 = vpop.f32.mrf.mxu0  ;;  %v1118_v14 = vadd.f32 %v1117_v20, %v1074_v19 }
 0x112   :  { %v1119_v22 = vpop.f32.mrf.mxu1 }
 0x113   :  { %v1078_v23 = vpop.f32.mrf.mxu0  ;;  %v1120_v27 = vadd.f32 %v1119_v22, %v1076_v21 }
 0x114   :  { %v1121_v24 = vpop.f32.mrf.mxu1 }
 0x115   :  { %v1080_v25 = vpop.f32.mrf.mxu0  ;;  %v1122_v35 = vadd.f32 %v1121_v24, %v1078_v23  ;;  %v15243_v23 = vld [vmem:[%s19629_s2 + $0x78] sm:$0xff]  ;;  %v15244_v24 = vld [vmem:[%s19629_s2 + $0x170] sm:$0xff] }
 0x116   :  { %v1123_v28 = vpop.f32.mrf.mxu1 }
 0x117   :  { %v1124_v34 = vadd.f32 %v1123_v28, %v1080_v25  ;;  %v15245_v25 = vld [vmem:[%s19629_s2 + $0xf0] sm:$0xff]  ;;  %v15249_v28 = vld [vmem:[%s19629_s2 + $0x68] sm:$0xff] }
 0x130   :  { %v13414_v31 = vpop.f32.mrf.mxu1 }
 0x132   :  { %v13415_v38 = vpop.f32.mrf.mxu1 }
 0x133   :  { %v13416_v48 = vadd.f32 %v13415_v38, %v13414_v31  ;;  %v15251_v31 = vld [vmem:[%s19629_s2 + $0xe0] sm:$0xff]  ;;  %v15256_v38 = vld [vmem:[%s19629_s2 + $0x150] sm:$0xff] }
 0x134   :  { %v13417_v40 = vpop.f32.mrf.mxu1 }
 0x136   :  { %v13418_v41 = vpop.f32.mrf.mxu1 }
 0x137   :  { %v13419_v55 = vadd.f32 %v13418_v41, %v13417_v40  ;;  %v15257_v40 = vld [vmem:[%s19629_s2 + $0xd0] sm:$0xff] }
 0x138   :  { %v15258_v41 = vld [vmem:[%s19629_s2 + $0x50] sm:$0xff] }
 0x14f   :  { %v1160_v26 = vpop.f32.mrf.mxu0 }
 0x150   :  { %v15606_v32 = vadd.f32 %v1160_v26, %v1118_v14  ;;  %v13436_v42 = vpop.f32.mrf.mxu1  ;;  %v15246_v26 = vld [vmem:[%s19629_s2 + $0x70] sm:$0xff]  ;;  %v15248_v14 = vld [vmem:[%s19629_s2 + $0xe8] sm:$0xff] }
 0x151   :  { %v1162_v29 = vpop.f32.mrf.mxu0 }
 0x152   :  { %v15604_v30 = vadd.f32 %v1162_v29, %v1120_v27  ;;  %v13437_v43 = vpop.f32.mrf.mxu1  ;;  %v15247_v27 = vld [vmem:[%s19629_s2 + $0x168] sm:$0xff]  ;;  %v15250_v29 = vld [vmem:[%s19629_s2 + $0x160] sm:$0xff] }
 0x153   :  { %v1164_v33 = vpop.f32.mrf.mxu0  ;;  %v13438_v45 = vadd.f32 %v13437_v43, %v13436_v42  ;;  %v15259_v42 = vld [vmem:[%s19629_s2 + $0x148] sm:$0xff] }
 0x154   :  { %1407 = vmatprep.mubr.f32.mxu1 %v15604_v30  ;;  %v15612_v39 = vadd.f32 %v1164_v33, %v1122_v35  ;;  %v13439_v44 = vpop.f32.mrf.mxu1  ;;  %v15252_v33 = vld [vmem:[%s19629_s2 + $0x60] sm:$0xff]  ;;  %v15254_v35 = vld [vmem:[%s19629_s2 + $0xd8] sm:$0xff]  ;;  %v15260_v43 = vld [vmem:[%s19629_s2 + $0xc8] sm:$0xff] }
 0x155   :  { %v1166_v36 = vpop.f32.mrf.mxu0  ;;  %1408 = vmatmul.mubr.f32.vlgmr.msra.gmra.mxu1 %v15606_v32  ;;  %v1245_v50 = vadd.f32 %v13438_v45, %v13416_v48  ;;  %v15262_v45 = vld [vmem:[%s19629_s2 + $0x140] sm:$0xff]  ;;  %v15265_v48 = vld [vmem:[%s19629_s2 + $0x138] sm:$0xff] }
 0x156   :  { %v15610_v37 = vadd.f32 %v1166_v36, %v1124_v34  ;;  %v13440_v46 = vpop.f32.mrf.mxu1  ;;  %14144 = vmatpush3.msk.msra.mxu1 %vm1508_vm0, %v15638_v0  ;;  %v15253_v34 = vld [vmem:[%s19629_s2 + $0x158] sm:$0xff] }
 0x157   :  { %v13441_v51 = vadd.f32 %v13440_v46, %v13439_v44  ;;  %13522 = vmatprep.subr.mxu1 %v15242_v2  ;;  %v15255_v36 = vld [vmem:[%s19629_s2 + $0x58] sm:$0xff]  ;;  %v15261_v44 = vld [vmem:[%s19629_s2 + $0x48] sm:$0xff]  ;;  %v15263_v46 = vld [vmem:[%s19629_s2 + $0xc0] sm:$0xff] }
 0x158   :  { %1412 = vmatprep.mubr.f32.mxu1 %v15610_v37  ;;  %v15276_v2 = vld [vmem:[%s19629_s2 + $0x20] sm:$0xff] }
 0x159   :  { %1413 = vmatmul.mubr.f32.gmra.mxu1 %v15612_v39  ;;  %v1248_v58 = vadd.f32 %v13441_v51, %v13419_v55  ;;  %v15268_v51 = vld [vmem:[%s19629_s2 + $0x130] sm:$0xff]  ;;  %v15271_v55 = vld [vmem:[%s19629_s2 + $0x128] sm:$0xff] }
 0x15a   :  { %14145 = vmatprep.mubr.msk.f32.mxu1 %vm15337_vm1, %v15336_v63 }
 0x16f   :  { %v13458_v47 = vpop.f32.mrf.mxu0 }
 0x171   :  { %v13459_v49 = vpop.f32.mrf.mxu0 }
 0x172   :  { %v13460_v52 = vadd.f32 %v13459_v49, %v13458_v47  ;;  %v15264_v47 = vld [vmem:[%s19629_s2 + $0x40] sm:$0xff]  ;;  %v15266_v49 = vld [vmem:[%s19629_s2 + $0xb8] sm:$0xff] }
 0x173   :  { %v13461_v53 = vpop.f32.mrf.mxu0 }
 0x174   :  { %v15616_v56 = vadd.f32 %v13460_v52, %v1245_v50  ;;  %v15267_v50 = vld [vmem:[%s19629_s2 + $0x38] sm:$0xff]  ;;  %v15269_v52 = vld [vmem:[%s19629_s2 + $0xb0] sm:$0xff] }
 0x175   :  { %v13462_v57 = vpop.f32.mrf.mxu0 }
 0x176   :  { %v13463_v59 = vadd.f32 %v13462_v57, %v13461_v53  ;;  %14140 = vmatprep.mubr.f32.mxu0 %v15616_v56  ;;  %v15270_v53 = vld [vmem:[%s19629_s2 + $0x30] sm:$0xff]  ;;  %v15272_v57 = vld [vmem:[%s19629_s2 + $0xa8] sm:$0xff] }
 0x178   :  { %v15619_v60 = vadd.f32 %v13463_v59, %v1248_v58  ;;  %v15273_v58 = vld [vmem:[%s19629_s2 + $0x28] sm:$0xff]  ;;  %v15274_v59 = vld [vmem:[%s19629_s2 + $0x120] sm:$0xff] }
 0x17a   :  { %14141 = vmatmul.mubr.f32.vlgmr.msra.gmra.mxu0 %v15619_v60 }
 0x17b   :  { %12346 = vmatpush1.msk.msra.mxu0 %vm1508_vm0, %v15632_v62  ;;  %1582 = vmatprep.mubr.f32.mxu0 %v15336_v63 }
 0x17c   :  { %14148 = vmatprep.subr.mxu0 %v15241_v1 }
 0x215   :  { %v13496_v3 = vpop.f32.mrf.mxu1 }
 0x217   :  { %v13497_v54 = vpop.f32.mrf.mxu1 }
 0x218   :  { %v13498_v8 = vadd.f32 %v13497_v54, %v13496_v3  ;;  %v15277_v3 = vld [vmem:[%s19629_s2 + $0x118] sm:$0xff] }
 0x219   :  { %v13499_v4 = vpop.f32.mrf.mxu1  ;;  %v15278_v54 = vld [vmem:[%s19629_s2 + $0x98] sm:$0xff] }
 0x21b   :  { %v13500_v5 = vpop.f32.mrf.mxu1 }
 0x21c   :  { %v13501_v6 = vadd.f32 %v13500_v5, %v13499_v4  ;;  %v15279_v4 = vld [vmem:[%s19629_s2 + $0x18] sm:$0xff]  ;;  %v15280_v5 = vld [vmem:[%s19629_s2 + $0x110] sm:$0xff] }
 0x23a   :  { %v14142_v7 = vpop.f32.mrf.mxu0 }
 0x23b   :  { %v1490_v9 = vadd.f32 %v14142_v7, %v13501_v6  ;;  %v15281_v6 = vld [vmem:[%s19629_s2 + $0x90] sm:$0xff] }
 0x23c   :  { %v1484_v10 = vpop.f32.mrf.mxu0  ;;  %v15282_v7 = vld [vmem:[%s19629_s2 + $0x10] sm:$0xff] }
 0x23d   :  { %v1485_v11 = vadd.f32 %v13498_v8, %v1484_v10  ;;  %v1495_v12 = vsel %vm1493_vm2, %v1490_v9, 0.0  ;;  %v15283_v8 = vld [vmem:[%s19629_s2 + $0x108] sm:$0xff] }
 0x23e   :  { %v15284_v9 = vld [vmem:[%s19629_s2 + $0x88] sm:$0xff] }
 0x23f   :  { %v1494_v13 = vsel %vm1493_vm2, %v1485_v11, 0.0  ;;  %v15285_v10 = vld [vmem:[%s19629_s2 + $0x8] sm:$0xff]  ;;  %v15286_v11 = vld [vmem:[%s19629_s2 + $0x100] sm:$0xff] }
 0x240   :  { %v1496_v15 = vadd.f32 %v1495_v12, %v1494_v13  ;;  %v15287_v12 = vld [vmem:[%s19629_s2 + $0x80] sm:$0xff] }
 0x241   :  { %v15288_v13 = vld [vmem:[%s19629_s2] sm:$0xff] }
 0x242   :  { %v1497_v16 = vrot.slane %v1496_v15, 4 }
 0x244   :  { %v1498_v17 = vadd.f32 %v1497_v16, %v1496_v15  ;;  %v1659_v15 = vlaneseq }
 0x246   :  { %v1499_v18 = vrot.slane %v1498_v17, 2  ;;  %v15797_v16 = vshrl.u32 %v1659_v15, 7  ;;  %v14398_v15 = vld [vmem:[%s19631_s4 + $0x40] ss:$8 sps:$4 sm:$0xff]  }
 0x248   :  { %v1500_v19 = vadd.f32 %v1499_v18, %v1498_v17  ;;  %v15800_v17 = vsub.s32 0, %v15797_v16 }
 0x24a   :  { %v1501_v20 = vrot.slane %v1500_v19, 1 }
 0x24c   :  { %v1502_v21 = vadd.f32 %v1501_v20, %v1500_v19 }
 0x24e   :  { %v1504_v22 = vmul.f32 0.0625, %v1502_v21 }
 0x250   :  { %12347 = vmatmul.mubr.msk.f32.vlgmr.msra.gmra.mxu0 %vm1493_vm2, %v1504_v22  ;;  %14146 = vmatmul.mubr.msk.f32.vlgmr.msra.gmra.mxu1 %vm1493_vm2, %v1504_v22 }
 0x251   :  { %14149 = vmatpush3.msra.mxu0 %v15241_v1  ;;  %13523 = vmatpush3.msra.mxu1 %v15243_v23  ;;  %v15275_v1 = vld [vmem:[%s19629_s2 + $0xa0] sm:$0xff] }
 0x252   :  { %14150 = vmatprep.subr.mxu0 %v15244_v24  ;;  %13524 = vmatprep.subr.mxu1 %v15245_v25 }
 0x253   :  { %14151 = vmatpush3.msra.mxu0 %v15244_v24  ;;  %13525 = vmatpush3.msra.mxu1 %v15246_v26 }
 0x254   :  { %14152 = vmatprep.subr.mxu0 %v15247_v27  ;;  %13526 = vmatprep.subr.mxu1 %v15248_v14 }
 0x255   :  { %14153 = vmatpush3.msra.mxu0 %v15247_v27  ;;  %13527 = vmatpush3.msra.mxu1 %v15249_v28 }
 0x256   :  { %14154 = vmatprep.subr.mxu0 %v15250_v29  ;;  %13528 = vmatprep.subr.mxu1 %v15251_v31 }
 0x257   :  { %14155 = vmatpush3.msra.mxu0 %v15250_v29  ;;  %13529 = vmatpush3.msra.mxu1 %v15252_v33  ;;  %v14424_v33 = vld [vmem:[%s19631_s4 + $0x164] ss:$8 sps:$4 sm:$0xff]  }
 0x258   :  { %14156 = vmatprep.subr.mxu0 %v15253_v34  ;;  %13530 = vmatprep.subr.mxu1 %v15254_v35  ;;  %v14430_v35 = vld [vmem:[%s19631_s4 + $0x154] ss:$8 sps:$4 sm:$0xff]  }
 0x259   :  { %14157 = vmatpush3.msra.mxu0 %v15253_v34  ;;  %13531 = vmatpush3.msra.mxu1 %v15255_v36  ;;  %v14428_v34 = vld [vmem:[%s19631_s4 + $0x150] ss:$8 sps:$4 sm:$0xff]   ;;  %v14434_v36 = vld [vmem:[%s19631_s4 + $0x140] ss:$8 sps:$4 sm:$0xff]  }
 0x25a   :  { %14158 = vmatprep.subr.mxu0 %v15256_v38  ;;  %13532 = vmatprep.subr.mxu1 %v15257_v40  ;;  %v14440_v40 = vld [vmem:[%s19631_s4 + $0x130] ss:$8 sps:$4 sm:$0xff]  }
 0x25b   :  { %14159 = vmatpush3.msra.mxu0 %v15256_v38  ;;  %13533 = vmatpush3.msra.mxu1 %v15258_v41  ;;  %v14436_v38 = vld [vmem:[%s19631_s4 + $0x144] ss:$8 sps:$4 sm:$0xff]   ;;  %v14442_v41 = vld [vmem:[%s19631_s4 + $0x134] ss:$8 sps:$4 sm:$0xff]  }
 0x25c   :  { %14160 = vmatprep.subr.mxu0 %v15259_v42  ;;  %13534 = vmatprep.subr.mxu1 %v15260_v43 }
 0x25d   :  { %14161 = vmatpush3.msra.mxu0 %v15259_v42  ;;  %13535 = vmatpush3.msra.mxu1 %v15261_v44 }
 0x25e   :  { %14162 = vmatprep.subr.mxu0 %v15262_v45  ;;  %13536 = vmatprep.subr.mxu1 %v15263_v46 }
 0x25f   :  { %14163 = vmatpush3.msra.mxu0 %v15262_v45  ;;  %13537 = vmatpush3.msra.mxu1 %v15264_v47 }
 0x260   :  { %14164 = vmatprep.subr.mxu0 %v15265_v48  ;;  %13538 = vmatprep.subr.mxu1 %v15266_v49 }
 0x261   :  { %14165 = vmatpush3.msra.mxu0 %v15265_v48  ;;  %13539 = vmatpush3.msra.mxu1 %v15267_v50 }
 0x262   :  { %14166 = vmatprep.subr.mxu0 %v15268_v51  ;;  %13540 = vmatprep.subr.mxu1 %v15269_v52 }
 0x263   :  { %14167 = vmatpush3.msra.mxu0 %v15268_v51  ;;  %13541 = vmatpush3.msra.mxu1 %v15270_v53 }
 0x264   :  { %14168 = vmatprep.subr.mxu0 %v15271_v55  ;;  %13542 = vmatprep.subr.mxu1 %v15272_v57 }
 0x265   :  { %14169 = vmatpush3.msra.mxu0 %v15271_v55  ;;  %13543 = vmatpush3.msra.mxu1 %v15273_v58 }
 0x266   :  { %14170 = vmatprep.subr.mxu0 %v15274_v59  ;;  %13544 = vmatprep.subr.mxu1 %v15275_v1 }
 0x267   :  { %14171 = vmatpush3.msra.mxu0 %v15274_v59  ;;  %13545 = vmatpush3.msra.mxu1 %v15276_v2 }
 0x268   :  { %14172 = vmatprep.subr.mxu0 %v15277_v3  ;;  %13546 = vmatprep.subr.mxu1 %v15278_v54 }
 0x269   :  { %14173 = vmatpush3.msra.mxu0 %v15277_v3  ;;  %13547 = vmatpush3.msra.mxu1 %v15279_v4 }
 0x26a   :  { %14174 = vmatprep.subr.mxu0 %v15280_v5  ;;  %13548 = vmatprep.subr.mxu1 %v15281_v6 }
 0x26b   :  { %14175 = vmatpush3.msra.mxu0 %v15280_v5  ;;  %13549 = vmatpush3.msra.mxu1 %v15282_v7  ;;  %v51_v5 = vld [vmem:[%s19636_s9] sm:$0x1] }
 0x26c   :  { %14176 = vmatprep.subr.mxu0 %v15283_v8  ;;  %13550 = vmatprep.subr.mxu1 %v15284_v9  ;;  %v14389_v9 = vld [vmem:[%s19631_s4 + $0x70] ss:$8 sps:$4 sm:$0xff]  }
 0x26d   :  { %14177 = vmatpush3.msra.mxu0 %v15283_v8  ;;  %13551 = vmatpush3.msra.mxu1 %v15285_v10  ;;  %v14391_v8 = vld [vmem:[%s19631_s4 + $0x74] ss:$8 sps:$4 sm:$0xff]   ;;  %v14394_v10 = vld [vmem:[%s19631_s4 + $0x64] ss:$8 sps:$4 sm:$0xff]  }
 0x26e   :  { %14178 = vmatprep.subr.mxu0 %v15286_v11  ;;  %13552 = vmatprep.subr.mxu1 %v15287_v12  ;;  %v14395_v12 = vld [vmem:[%s19631_s4 + $0x50] ss:$8 sps:$4 sm:$0xff]  }
 0x26f   :  { %14179 = vmatpush3.msra.mxu0 %v15286_v11  ;;  %13553 = vmatpush3.msra.mxu1 %v15288_v13  ;;  %v14392_v11 = vld [vmem:[%s19631_s4 + $0x60] ss:$8 sps:$4 sm:$0xff]   ;;  %v14400_v13 = vld [vmem:[%s19631_s4 + $0x44] ss:$8 sps:$4 sm:$0xff]  }
 0x270   :  { %12350 = vmatprep.subr.msk.mxu1 %vm1508_vm0, %v15625_v61 }
 0x310   :  { %v1584_v18 = vpop.f32.mrf.mxu0  ;;  %v1655_v19 = vpop.f32.mrf.mxu1 }
 0x311   :  { %v1662_v20 = vrot.slane %v1584_v18, %v15800_v17  ;;  %v1670_v21 = vrot.slane %v1655_v19, %v15800_v17  ;;  %v14403_v18 = vld [vmem:[%s19631_s4 + $0x34] ss:$8 sps:$4 sm:$0xff]   ;;  %v14401_v19 = vld [vmem:[%s19631_s4 + $0x30] ss:$8 sps:$4 sm:$0xff]  }
 0x312   :  { %v1586_v22 = vpop.f32.mrf.mxu0  ;;  %v14147_v23 = vpop.f32.mrf.mxu1 }
 0x313   :  { %v15805_v24 = vsub.f32 %v15616_v56, %v1670_v21  ;;  %v15808_v25 = vsub.f32 %v15619_v60, %v1670_v21  ;;  %v1666_v61 = vrot.slane %v1586_v22, %v15800_v17  ;;  %v15812_v26 = vsub.f32 %v15606_v32, %v1662_v20  ;;  %v14404_v21 = vld [vmem:[%s19631_s4 + $0x20] ss:$8 sps:$4 sm:$0xff]   ;;  %v14409_v22 = vld [vmem:[%s19631_s4 + $0x14] ss:$8 sps:$4 sm:$0xff]   ;;  %v14407_v23 = vld [vmem:[%s19631_s4 + $0x10] ss:$8 sps:$4 sm:$0xff]  }
 0x314   :  { %v15827_v32 = vsub.f32 %v15612_v39, %v1662_v20  ;;  %v14418_v39 = vld [vmem:[%s19631_s4 + $0x174] ss:$8 sps:$4 sm:$0xff]   ;;  %v14406_v20 = vld [vmem:[%s19631_s4 + $0x24] ss:$8 sps:$4 sm:$0xff]  }
 0x315   :  { %v1682_v27 = vmul.f32 %v15808_v25, %v15808_v25  ;;  %v1679_v14 = vmul.f32 %v15805_v24, %v15805_v24  ;;  %v15819_v28 = vsub.f32 %v15604_v30, %v1666_v61  ;;  %v15822_v56 = vsub.f32 %v15610_v37, %v1666_v61  ;;  %v14416_v37 = vld [vmem:[%s19631_s4 + $0x170] ss:$8 sps:$4 sm:$0xff]   ;;  %2370 = vmatprep.subr.bf16.mxu0 %v14418_v39  ;;  %v14412_v61 = vld [vmem:[%s19631_s4 + $0x4] ss:$8 sps:$4 sm:$0xff]  }
 0x316   :  { %v1677_v29 = vmul.f32 %v15812_v26, %v15812_v26  ;;  %v1680_v30 = vmul.f32 %v15827_v32, %v15827_v32  ;;  %v14433_v39 = vld [vmem:[%s19631_s4 + $0xc4] ss:$8 sps:$4 sm:$0xff]  }
 0x317   :  { %14180 = vmatprep.mubr.f32.mxu0 %v1679_v14  ;;  %v1678_v60 = vmul.f32 %v15819_v28, %v15819_v28  ;;  %v1681_v31 = vmul.f32 %v15822_v56, %v15822_v56  ;;  %v14415_v14 = vld [vmem:[%s19631_s4 + $0xf4] ss:$8 sps:$4 sm:$0xff]  }
 0x318   :  { %14181 = vmatmul.mubr.f32.vlgmr.msra.gmra.mxu0 %v1682_v27  ;;  %v14410_v27 = vld [vmem:[%s19631_s4] ss:$8 sps:$4 sm:$0xff]  }
 0x319   :  { %1747 = vmatprep.mubr.f32.mxu1 %v1678_v60  ;;  %2371 = vmatpush1.bf16.msra.mxu0 %v14416_v37  ;;  %v14413_v60 = vld [vmem:[%s19631_s4 + $0xf0] ss:$8 sps:$4 sm:$0xff]  }
 0x31a   :  { %1748 = vmatmul.mubr.f32.vlgmr.msra.gmra.mxu1 %v1677_v29  ;;  %2372 = vmatprep.subr.bf16.mxu0 %v14424_v33  ;;  %v14421_v29 = vld [vmem:[%s19631_s4 + $0xe4] ss:$8 sps:$4 sm:$0xff]   ;;  %v14425_v37 = vld [vmem:[%s19631_s4 + $0xd0] ss:$8 sps:$4 sm:$0xff]   ;;  %v14439_v33 = vld [vmem:[%s19631_s4 + $0xb4] ss:$8 sps:$4 sm:$0xff]  }
 0x31b   :  { %1752 = vmatprep.mubr.f32.mxu1 %v1681_v31  ;;  %12351 = vmatpush1.msk.msra.mxu1 %vm1508_vm0, %v15632_v62  ;;  %v14422_v62 = vld [vmem:[%s19631_s4 + $0x160] ss:$8 sps:$4 sm:$0xff]  }
 0x31c   :  { %14183 = vmatprep.subr.mxu1 %v15336_v63  ;;  %v14419_v31 = vld [vmem:[%s19631_s4 + $0xe0] ss:$8 sps:$4 sm:$0xff]  }
 0x31d   :  { %2373 = vmatpush1.bf16.msra.mxu0 %v14422_v62  ;;  %v14431_v62 = vld [vmem:[%s19631_s4 + $0xc0] ss:$8 sps:$4 sm:$0xff]  }
 0x31e   :  { %1753 = vmatmul.mubr.f32.gmra.mxu1 %v1680_v30  ;;  %2374 = vmatprep.subr.bf16.mxu0 %v14430_v35  ;;  %v14427_v30 = vld [vmem:[%s19631_s4 + $0xd4] ss:$8 sps:$4 sm:$0xff]   ;;  %v14445_v35 = vld [vmem:[%s19631_s4 + $0xa4] ss:$8 sps:$4 sm:$0xff]  }
 0x31f   :  { %1913 = vmatprep.mubr.f32.mxu1 %v15336_v63 }
 0x321   :  { %2375 = vmatpush1.bf16.msra.mxu0 %v14428_v34  ;;  %v14437_v34 = vld [vmem:[%s19631_s4 + $0xb0] ss:$8 sps:$4 sm:$0xff]  }
 0x322   :  { %2376 = vmatprep.subr.bf16.mxu0 %v14436_v38  ;;  %v14448_v38 = vld [vmem:[%s19631_s4 + $0x124] ss:$8 sps:$4 sm:$0xff]  }
 0x325   :  { %2377 = vmatpush1.bf16.msra.mxu0 %v14434_v36  ;;  %v14443_v36 = vld [vmem:[%s19631_s4 + $0xa0] ss:$8 sps:$4 sm:$0xff]  }
 0x326   :  { %2378 = vmatprep.subr.bf16.mxu0 %v14442_v41  ;;  %v14451_v41 = vld [vmem:[%s19631_s4 + $0x94] ss:$8 sps:$4 sm:$0xff]  }
 0x329   :  { %2379 = vmatpush1.bf16.msra.mxu0 %v14440_v40  ;;  %v14446_v40 = vld [vmem:[%s19631_s4 + $0x120] ss:$8 sps:$4 sm:$0xff]  }
 0x32a   :  { %2380 = vmatprep.subr.bf16.mxu0 %v14448_v38  ;;  %v2436_v38 = vld [vmem:[%s19632_s5 + $0xb8] sm:$0xff] }
 0x32d   :  { %2381 = vmatpush1.bf16.msra.mxu0 %v14446_v40  ;;  %v2435_v40 = vld [vmem:[%s19632_s5 + $0xb0] sm:$0xff] }
 0x3d8   :  { %v14182_v43 = vpop.f32.mrf.mxu0 }
 0x3da   :  { %v13554_v42 = vpop.f32.mrf.mxu1  ;;  %v1824_v47 = vpop.f32.mrf.mxu0 }
 0x3dc   :  { %v13555_v44 = vpop.f32.mrf.mxu1 }
 0x3dd   :  { %v13556_v45 = vadd.f32 %v13555_v44, %v13554_v42  ;;  %v14449_v42 = vld [vmem:[%s19631_s4 + $0x90] ss:$8 sps:$4 sm:$0xff]  }
 0x3de   :  { %v13557_v46 = vpop.f32.mrf.mxu1  ;;  %v14452_v44 = vld [vmem:[%s19631_s4 + $0x110] ss:$8 sps:$4 sm:$0xff]  }
 0x3df   :  { %v1825_v49 = vadd.f32 %v13556_v45, %v1824_v47  ;;  %v14457_v45 = vld [vmem:[%s19631_s4 + $0x84] ss:$8 sps:$4 sm:$0xff]  }
 0x3e0   :  { %v13558_v48 = vpop.f32.mrf.mxu1  ;;  %v14460_v47 = vld [vmem:[%s19631_s4 + $0x104] ss:$8 sps:$4 sm:$0xff]  }
 0x3e1   :  { %v13559_v50 = vadd.f32 %v13558_v48, %v13557_v46  ;;  %v1833_v52 = vsel %vm1493_vm2, %v1825_v49, 0.0  ;;  %v14455_v46 = vld [vmem:[%s19631_s4 + $0x80] ss:$8 sps:$4 sm:$0xff]   ;;  %v15338_v49 = vmov 0  }
 0x3e2   :  { %v14458_v48 = vld [vmem:[%s19631_s4 + $0x100] ss:$8 sps:$4 sm:$0xff]   ;;  %2402 = vmatprep.mubr.bf16.mxu0 %v15338_v49 }
 0x3e3   :  { %v1830_v51 = vadd.f32 %v14182_v43, %v13559_v50  ;;  %v14454_v43 = vld [vmem:[%s19631_s4 + $0x114] ss:$8 sps:$4 sm:$0xff]   ;;  %v54_v50 = vld [vmem:[%s19636_s9 + $0x3] sm:$0x7] }
 0x3e4   :  { %2382 = vmatprep.subr.bf16.mxu0 %v14454_v43  ;;  %v2432_v43 = vld [vmem:[%s19632_s5 + $0x98] sm:$0xff] }
 0x3e5   :  { %v1834_v53 = vsel %vm1493_vm2, %v1830_v51, 0.0  ;;  %2383 = vmatpush1.bf16.msra.mxu0 %v14452_v44  ;;  %v16000_v51 = vsub.s32 1, %v15797_v16  ;;  %v2431_v44 = vld [vmem:[%s19632_s5 + $0x90] sm:$0xff] }
 0x3e6   :  { %v1835_v55 = vadd.f32 %v1834_v53, %v1833_v52  ;;  %2384 = vmatprep.subr.bf16.mxu0 %v14460_v47 }
 0x3e8   :  { %v1836_v57 = vrot.slane %v1835_v55, 4 }
 0x3e9   :  { %2385 = vmatpush1.bf16.msra.mxu0 %v14458_v48 }
 0x3ea   :  { %v1837_v58 = vadd.f32 %v1836_v57, %v1835_v55  ;;  %2448 = vmatprep.subr.mxu0 %v15336_v63  ;;  %v2012_v55 = vrot.slane %v54_v50, %v15800_v17 }
 0x3ec   :  { %v1838_v59 = vrot.slane %v1837_v58, 2 }
 0x3ee   :  { %v1839_v1 = vadd.f32 %v1838_v59, %v1837_v58  ;;  %v16005_v58 = vsub.s32 2, %v15797_v16 }
 0x3f0   :  { %v1840_v2 = vrot.slane %v1839_v1, 1 }
 0x3f2   :  { %v1841_v3 = vadd.f32 %v1840_v2, %v1839_v1 }
 0x3f4   :  { %v1842_v54 = vmul.f32 0.0625, %v1841_v3  ;;  %v2016_v3 = vrot.slane %v54_v50, %v16000_v51 }
 0x3f6   :  { %v1843_v4 = vadd.f32 1e-05, %v1842_v54 }
 0x3f8   :  { %14845 = vrsqrt.f32 %v1843_v4 }
 0x405   :  { %v14846_v6 = vpop.eup %14845 }
 0x406   :  { %v1845_v7 = vmul.f32 %v14846_v6, %v51_v5 }
 0x408   :  { %12352 = vmatmul.mubr.msk.f32.vlgmr.msra.gmra.mxu1 %vm1493_vm2, %v1845_v7 }
 0x409   :  { %14184 = vmatpush3.msk.msra.mxu1 %vm1508_vm0, %v15638_v0  ;;  %14185 = vmatprep.mubr.msk.f32.mxu1 %vm15337_vm1, %v15336_v63  ;;  %v14397_v0 = vld [vmem:[%s19631_s4 + $0x54] ss:$8 sps:$4 sm:$0xff]  }
 0x40a   :  { %2327 = vmatprep.subr.bf16.mxu1 %v14391_v8 }
 0x40c   :  { %14186 = vmatmul.mubr.msk.f32.vlgmr.msra.gmra.mxu1 %vm1493_vm2, %v1845_v7 }
 0x40d   :  { %2328 = vmatpush1.bf16.msra.mxu1 %v14389_v9  ;;  %v2020_v9 = vrot.slane %v54_v50, %v16005_v58 }
 0x40e   :  { %2329 = vmatprep.subr.bf16.mxu1 %v14394_v10 }
 0x411   :  { %2330 = vmatpush1.bf16.msra.mxu1 %v14392_v11 }
 0x412   :  { %2331 = vmatprep.subr.bf16.mxu1 %v14397_v0 }
 0x415   :  { %2332 = vmatpush1.bf16.msra.mxu1 %v14395_v12 }
 0x416   :  { %2333 = vmatprep.subr.bf16.mxu1 %v14400_v13 }
 0x419   :  { %2334 = vmatpush1.bf16.msra.mxu1 %v14398_v15 }
 0x41a   :  { %2335 = vmatprep.subr.bf16.mxu1 %v14403_v18 }
 0x41d   :  { %2336 = vmatpush1.bf16.msra.mxu1 %v14401_v19 }
 0x41e   :  { %2337 = vmatprep.subr.bf16.mxu1 %v14406_v20 }
 0x421   :  { %2338 = vmatpush1.bf16.msra.mxu1 %v14404_v21 }
 0x422   :  { %2339 = vmatprep.subr.bf16.mxu1 %v14409_v22 }
 0x425   :  { %2340 = vmatpush1.bf16.msra.mxu1 %v14407_v23 }
 0x426   :  { %2341 = vmatprep.subr.bf16.mxu1 %v14412_v61  ;;  %v2428_v61 = vld [vmem:[%s19632_s5 + $0x78] sm:$0xff] }
 0x429   :  { %2342 = vmatpush1.bf16.msra.mxu1 %v14410_v27  ;;  %v2425_v27 = vld [vmem:[%s19632_s5 + $0x60] sm:$0xff] }
 0x42a   :  { %2343 = vmatprep.subr.bf16.mxu1 %v14415_v14  ;;  %v2424_v14 = vld [vmem:[%s19632_s5 + $0x58] sm:$0xff] }
 0x42d   :  { %2344 = vmatpush2.bf16.msra.mxu1 %v14413_v60  ;;  %v2423_v60 = vld [vmem:[%s19632_s5 + $0x50] sm:$0xff] }
 0x42e   :  { %2345 = vmatprep.subr.bf16.mxu1 %v14421_v29  ;;  %v2422_v29 = vld [vmem:[%s19632_s5 + $0x48] sm:$0xff] }
 0x431   :  { %2346 = vmatpush2.bf16.msra.mxu1 %v14419_v31  ;;  %v2421_v31 = vld [vmem:[%s19632_s5 + $0x40] sm:$0xff] }
 0x432   :  { %2347 = vmatprep.subr.bf16.mxu1 %v14427_v30  ;;  %v2420_v30 = vld [vmem:[%s19632_s5 + $0x38] sm:$0xff] }
 0x435   :  { %2348 = vmatpush2.bf16.msra.mxu1 %v14425_v37  ;;  %v2419_v37 = vld [vmem:[%s19632_s5 + $0x30] sm:$0xff] }
 0x436   :  { %2349 = vmatprep.subr.bf16.mxu1 %v14433_v39  ;;  %v2418_v39 = vld [vmem:[%s19632_s5 + $0x28] sm:$0xff] }
 0x439   :  { %2350 = vmatpush2.bf16.msra.mxu1 %v14431_v62  ;;  %v2417_v62 = vld [vmem:[%s19632_s5 + $0x20] sm:$0xff] }
 0x43a   :  { %2351 = vmatprep.subr.bf16.mxu1 %v14439_v33  ;;  %v2416_v33 = vld [vmem:[%s19632_s5 + $0x18] sm:$0xff] }
 0x43d   :  { %2352 = vmatpush2.bf16.msra.mxu1 %v14437_v34  ;;  %v2415_v34 = vld [vmem:[%s19632_s5 + $0x10] sm:$0xff] }
 0x43e   :  { %2353 = vmatprep.subr.bf16.mxu1 %v14445_v35  ;;  %v2414_v35 = vld [vmem:[%s19632_s5 + $0x8] sm:$0xff] }
 0x441   :  { %2354 = vmatpush2.bf16.msra.mxu1 %v14443_v36  ;;  %v2413_v36 = vld [vmem:[%s19632_s5] sm:$0xff] }
 0x442   :  { %2355 = vmatprep.subr.bf16.mxu1 %v14451_v41  ;;  %v2434_v41 = vld [vmem:[%s19632_s5 + $0xa8] sm:$0xff] }
 0x445   :  { %2356 = vmatpush2.bf16.msra.mxu1 %v14449_v42  ;;  %v2433_v42 = vld [vmem:[%s19632_s5 + $0xa0] sm:$0xff] }
 0x446   :  { %2357 = vmatprep.subr.bf16.mxu1 %v14457_v45  ;;  %v2430_v45 = vld [vmem:[%s19632_s5 + $0x88] sm:$0xff] }
 0x449   :  { %2358 = vmatpush2.bf16.msra.mxu1 %v14455_v46  ;;  %v2429_v46 = vld [vmem:[%s19632_s5 + $0x80] sm:$0xff] }
 0x44a   :  { %2637 = vmatprep.subr.mxu1 %v15336_v63 }
 0x4c8   :  { %v1915_v52 = vpop.f32.mrf.mxu1 }
 0x4c9   :  { %v1993_v53 = vrot.slane %v1915_v52, %v15800_v17 }
 0x4ca   :  { %v1917_v57 = vpop.f32.mrf.mxu1 }
 0x4cb   :  { %v2002_v59 = vmul.f32 %v1993_v53, %v15812_v26  ;;  %v2005_v1 = vmul.f32 %v1993_v53, %v15827_v32  ;;  %v1997_v2 = vrot.slane %v1917_v57, %v15800_v17 }
 0x4cc   :  { %v1986_v54 = vpop.f32.mrf.mxu1 }
 0x4cd   :  { %v2024_v4 = vadd.f32 %v2012_v55, %v2002_v59  ;;  %v2027_v5 = vadd.f32 %v2012_v55, %v2005_v1  ;;  %v2003_v6 = vmul.f32 %v1997_v2, %v15819_v28  ;;  %v2006_v7 = vmul.f32 %v1997_v2, %v15822_v56 }
 0x4ce   :  { %v2001_v8 = vrot.slane %v1986_v54, %v15800_v17  ;;  %v14187_v10 = vpop.f32.mrf.mxu1  ;;  %v2440_v54 = vld [vmem:[%s19633_s6 + $0x18] sm:$0xf] }
 0x4cf   :  { %v2025_v11 = vadd.f32 %v2016_v3, %v2003_v6  ;;  %v2028_v26 = vadd.f32 %v2016_v3, %v2006_v7  ;;  %v2030_v0 = vmax.f32 %v2024_v4, 0.0  ;;  %v2033_v32 = vmax.f32 %v2027_v5, 0.0  ;;  %v2439_v4 = vld [vmem:[%s19633_s6 + $0x10] sm:$0xf]  ;;  %v2438_v5 = vld [vmem:[%s19633_s6 + $0x8] sm:$0xff]  ;;  %v2437_v6 = vld [vmem:[%s19633_s6] sm:$0xff] }
 0x4d0   :  { %v2004_v12 = vmul.f32 %v2001_v8, %v15805_v24  ;;  %v2007_v13 = vmul.f32 %v2001_v8, %v15808_v25  ;;  %v2427_v24 = vld [vmem:[%s19632_s5 + $0x70] sm:$0xff]  ;;  %v2426_v25 = vld [vmem:[%s19632_s5 + $0x68] sm:$0xff] }
 0x4d1   :  { %v2031_v15 = vmax.f32 %v2025_v11, 0.0  ;;  %v2034_v18 = vmax.f32 %v2028_v26, 0.0  ;;  %v2036_v21 = vpack.c.bf16 %v2033_v32, %v2030_v0 }
 0x4d2   :  { %v2026_v19 = vadd.f32 %v2020_v9, %v2004_v12  ;;  %v2029_v20 = vadd.f32 %v2020_v9, %v2007_v13 }
 0x4d3   :  { %v2037_v28 = vpack.c.bf16 %v2034_v18, %v2031_v15 }
 0x4d4   :  { %v2032_v56 = vmax.f32 %v2026_v19, 0.0  ;;  %v2035_v22 = vmax.f32 %v2029_v20, 0.0 }
 0x4d5   :  { %2359 = vmatprep.mubr.bf16.mxu1 %v2037_v28 }
 0x4d6   :  { %v2038_v23 = vpack.c.bf16 %v2035_v22, %v2032_v56  ;;  %2360 = vmatmul.mubr.bf16.vlgmr.msra.gmra.mxu1 %v2036_v21 }
 0x4d7   :  { %2638 = vmatpush1.msra.mxu1 %v2428_v61 }
 0x4d8   :  { %2403 = vmatmul.mubr.bf16.vlgmr.msra.gmra.mxu0 %v2038_v23  ;;  %2639 = vmatprep.subr.mxu1 %v15336_v63 }
 0x4d9   :  { %2449 = vmatpush1.msra.mxu0 %v2428_v61  ;;  %2640 = vmatpush1.msra.mxu1 %v2427_v24 }
 0x4da   :  { %2450 = vmatprep.subr.mxu0 %v15336_v63  ;;  %2641 = vmatprep.subr.mxu1 %v15336_v63 }
 0x4db   :  { %2451 = vmatpush1.msra.mxu0 %v2427_v24  ;;  %2642 = vmatpush1.msra.mxu1 %v2426_v25 }
 0x4dc   :  { %2452 = vmatprep.subr.mxu0 %v15336_v63  ;;  %2643 = vmatprep.subr.mxu1 %v15336_v63 }
 0x4dd   :  { %2453 = vmatpush1.msra.mxu0 %v2426_v25  ;;  %2644 = vmatpush1.msra.mxu1 %v2425_v27 }
 0x4de   :  { %2454 = vmatprep.subr.mxu0 %v15336_v63  ;;  %2645 = vmatprep.subr.mxu1 %v15336_v63 }
 0x4df   :  { %2455 = vmatpush1.msra.mxu0 %v2425_v27  ;;  %2646 = vmatpush1.msra.mxu1 %v2424_v14 }
 0x4e0   :  { %2456 = vmatprep.subr.mxu0 %v15336_v63  ;;  %2647 = vmatprep.subr.mxu1 %v15336_v63 }
 0x4e1   :  { %2457 = vmatpush1.msra.mxu0 %v2424_v14  ;;  %2648 = vmatpush1.msra.mxu1 %v2423_v60 }
 0x4e2   :  { %2458 = vmatprep.subr.mxu0 %v15336_v63  ;;  %2649 = vmatprep.subr.mxu1 %v15336_v63 }
 0x4e3   :  { %2459 = vmatpush1.msra.mxu0 %v2423_v60  ;;  %2650 = vmatpush1.msra.mxu1 %v2422_v29 }
 0x4e4   :  { %2460 = vmatprep.subr.mxu0 %v15336_v63  ;;  %2651 = vmatprep.subr.mxu1 %v15336_v63 }
 0x4e5   :  { %2461 = vmatpush1.msra.mxu0 %v2422_v29  ;;  %2652 = vmatpush1.msra.mxu1 %v2421_v31  ;;  %v16181_v29 = vld [vmem:[%s19634_s7 + $0xa80] sm:$0xff] }
 0x4e6   :  { %2462 = vmatprep.subr.mxu0 %v15336_v63  ;;  %2653 = vmatprep.subr.mxu1 %v15336_v63 }
 0x4e7   :  { %2463 = vmatpush1.msra.mxu0 %v2421_v31  ;;  %2654 = vmatpush1.msra.mxu1 %v2420_v30  ;;  %v16186_v31 = vld [vmem:[%s19634_s7 + $0xb40] sm:$0xff] }
 0x4e8   :  { %2464 = vmatprep.subr.mxu0 %v15336_v63  ;;  %2655 = vmatprep.subr.mxu1 %v15336_v63 }
 0x4e9   :  { %2465 = vmatpush1.msra.mxu0 %v2420_v30  ;;  %2656 = vmatpush1.msra.mxu1 %v2419_v37  ;;  %v3169_v30 = vld [vmem:[%s19634_s7 + $0xa88] sm:$0xff] }
 0x4ea   :  { %2466 = vmatprep.subr.mxu0 %v15336_v63  ;;  %2657 = vmatprep.subr.mxu1 %v15336_v63 }
 0x4eb   :  { %2467 = vmatpush1.msra.mxu0 %v2419_v37  ;;  %2658 = vmatpush1.msra.mxu1 %v2418_v39  ;;  %v12749_v37 = vcombine.low %v16181_v29, %v16186_v31 }
 0x4ec   :  { %2468 = vmatprep.subr.mxu0 %v15336_v63  ;;  %2659 = vmatprep.subr.mxu1 %v15336_v63 }
 0x4ed   :  { %2469 = vmatpush1.msra.mxu0 %v2418_v39  ;;  %2660 = vmatpush1.msra.mxu1 %v2417_v62  ;;  %v12750_v39 = vcombine.high %v16181_v29, %v16186_v31  ;;  %v2976_v29 = vld [vmem:[%s19634_s7 + $0x480] sm:$0xff] }
 0x4ee   :  { %2470 = vmatprep.subr.mxu0 %v15336_v63  ;;  %2661 = vmatprep.subr.mxu1 %v15336_v63  ;;  %v3000_v31 = vld [vmem:[%s19634_s7 + $0x540] sm:$0xff] }
 0x4ef   :  { %2471 = vmatpush1.msra.mxu0 %v2417_v62  ;;  %2662 = vmatpush1.msra.mxu1 %v2416_v33  ;;  %v3193_v62 = vld [vmem:[%s19634_s7 + $0xb48] sm:$0xff] }
 0x4f0   :  { %2472 = vmatprep.subr.mxu0 %v15336_v63  ;;  %2663 = vmatprep.subr.mxu1 %v15336_v63 }
 0x4f1   :  { %2473 = vmatpush1.msra.mxu0 %v2416_v33  ;;  %2664 = vmatpush1.msra.mxu1 %v2415_v34  ;;  %v12751_v33 = vcombine.low %v3169_v30, %v3193_v62 }
 0x4f2   :  { %2474 = vmatprep.subr.mxu0 %v15336_v63  ;;  %2665 = vmatprep.subr.mxu1 %v15336_v63 }
 0x4f3   :  { %2475 = vmatpush1.msra.mxu0 %v2415_v34  ;;  %2666 = vmatpush1.msra.mxu1 %v2414_v35  ;;  %v12752_v34 = vcombine.high %v3169_v30, %v3193_v62  ;;  %v3120_v30 = vld [vmem:[%s19634_s7 + $0x900] sm:$0xff] }
 0x4f4   :  { %2476 = vmatprep.subr.mxu0 %v15336_v63  ;;  %2667 = vmatprep.subr.mxu1 %v15336_v63 }
 0x4f5   :  { %2477 = vmatpush1.msra.mxu0 %v2414_v35  ;;  %2668 = vmatpush1.msra.mxu1 %v2413_v36  ;;  %v3121_v35 = vld [vmem:[%s19634_s7 + $0x908] sm:$0xff] }
 0x4f6   :  { %2478 = vmatprep.subr.mxu0 %v15336_v63  ;;  %2685 = vmatprep.subr.mxu1 %v15336_v63 }
 0x4f7   :  { %2479 = vmatpush1.msra.mxu0 %v2413_v36  ;;  %2686 = vmatpush2.msra.mxu1 %v2436_v38  ;;  %v3145_v36 = vld [vmem:[%s19634_s7 + $0x9c8] sm:$0xff] }
 0x4f8   :  { %2496 = vmatprep.subr.mxu0 %v15336_v63  ;;  %2687 = vmatprep.subr.mxu1 %v15336_v63 }
 0x4f9   :  { %2497 = vmatpush2.msra.mxu0 %v2436_v38  ;;  %2688 = vmatpush2.msra.mxu1 %v2435_v40  ;;  %v12704_v38 = vcombine.high %v3121_v35, %v3145_v36 }
 0x4fa   :  { %2498 = vmatprep.subr.mxu0 %v15336_v63  ;;  %2689 = vmatprep.subr.mxu1 %v15336_v63 }
 0x4fb   :  { %2499 = vmatpush2.msra.mxu0 %v2435_v40  ;;  %2690 = vmatpush2.msra.mxu1 %v2434_v41  ;;  %v12703_v40 = vcombine.low %v3121_v35, %v3145_v36  ;;  %v3072_v35 = vld [vmem:[%s19634_s7 + $0x780] sm:$0xff] }
 0x4fc   :  { %2500 = vmatprep.subr.mxu0 %v15336_v63  ;;  %2691 = vmatprep.subr.mxu1 %v15336_v63  ;;  %v3096_v36 = vld [vmem:[%s19634_s7 + $0x840] sm:$0xff] }
 0x4fd   :  { %2501 = vmatpush2.msra.mxu0 %v2434_v41  ;;  %2692 = vmatpush2.msra.mxu1 %v2433_v42  ;;  %v3073_v41 = vld [vmem:[%s19634_s7 + $0x788] sm:$0xff] }
 0x4fe   :  { %2502 = vmatprep.subr.mxu0 %v15336_v63  ;;  %2693 = vmatprep.subr.mxu1 %v15336_v63 }
 0x4ff   :  { %2503 = vmatpush2.msra.mxu0 %v2433_v42  ;;  %2694 = vmatpush2.msra.mxu1 %v2432_v43  ;;  %v3097_v42 = vld [vmem:[%s19634_s7 + $0x848] sm:$0xff] }
 0x500   :  { %2504 = vmatprep.subr.mxu0 %v15336_v63  ;;  %2695 = vmatprep.subr.mxu1 %v15336_v63 }
 0x501   :  { %2505 = vmatpush2.msra.mxu0 %v2432_v43  ;;  %2696 = vmatpush2.msra.mxu1 %v2431_v44  ;;  %v12656_v43 = vcombine.high %v3073_v41, %v3097_v42 }
 0x502   :  { %2506 = vmatprep.subr.mxu0 %v15336_v63  ;;  %2697 = vmatprep.subr.mxu1 %v15336_v63 }
 0x503   :  { %2507 = vmatpush2.msra.mxu0 %v2431_v44  ;;  %2698 = vmatpush2.msra.mxu1 %v2430_v45  ;;  %v12655_v44 = vcombine.low %v3073_v41, %v3097_v42  ;;  %v3024_v41 = vld [vmem:[%s19634_s7 + $0x600] sm:$0xff] }
 0x504   :  { %2508 = vmatprep.subr.mxu0 %v15336_v63  ;;  %2699 = vmatprep.subr.mxu1 %v15336_v63  ;;  %v3048_v42 = vld [vmem:[%s19634_s7 + $0x6c0] sm:$0xff] }
 0x505   :  { %2509 = vmatpush2.msra.mxu0 %v2430_v45  ;;  %2700 = vmatpush2.msra.mxu1 %v2429_v46  ;;  %v3025_v45 = vld [vmem:[%s19634_s7 + $0x608] sm:$0xff] }
 0x506   :  { %2510 = vmatprep.subr.mxu0 %v15336_v63  ;;  %6580 = vmatprep.subr.bf16.mxu1 %v12752_v34 }
 0x507   :  { %2511 = vmatpush2.msra.mxu0 %v2429_v46  ;;  %v3049_v46 = vld [vmem:[%s19634_s7 + $0x6c8] sm:$0xff] }
 0x508   :  { %12405 = vmatprep.subr.msk.mxu0 %vm2537_vm4, %v2440_v54 }
 0x596   :  { %v2361_v47 = vpop.f32.mrf.mxu1 }
 0x598   :  { %v2404_v48 = vpop.f32.mrf.mxu0  ;;  %v2363_v49 = vpop.f32.mrf.mxu1 }
 0x599   :  { %v2405_v55 = vadd.f32 %v2404_v48, %v2361_v47  ;;  %v12608_v47 = vcombine.high %v3025_v45, %v3049_v46  ;;  %v12607_v48 = vcombine.low %v3025_v45, %v3049_v46  ;;  %v12558_v45 = vcombine.high %v2976_v29, %v3000_v31  ;;  %v2928_v46 = vld [vmem:[%s19634_s7 + $0x300] sm:$0xff] }
 0x59a   :  { %v2406_v50 = vpop.f32.mrf.mxu0  ;;  %v2365_v52 = vpop.f32.mrf.mxu1 }
 0x59b   :  { %v2407_v53 = vadd.f32 %v2406_v50, %v2363_v49  ;;  %v2977_v49 = vld [vmem:[%s19634_s7 + $0x488] sm:$0xff] }
 0x59c   :  { %v2408_v57 = vpop.f32.mrf.mxu0  ;;  %v2367_v59 = vpop.f32.mrf.mxu1  ;;  %v3001_v50 = vld [vmem:[%s19634_s7 + $0x548] sm:$0xff] }
 0x59d   :  { %12403 = vmatprep.mubr.msk.f32.mxu0 %vm2441_vm3, %v2407_v53  ;;  %v2409_v3 = vadd.f32 %v2408_v57, %v2365_v52  ;;  %v12560_v52 = vcombine.high %v2977_v49, %v3001_v50  ;;  %v2953_v57 = vld [vmem:[%s19634_s7 + $0x3c8] sm:$0xff] }
 0x59e   :  { %v2410_v1 = vpop.f32.mrf.mxu0  ;;  %2513 = vmatmul.mubr.f32.vlgmr.msra.gmra.mxu0 %v2405_v55 }
 0x59f   :  { %v2411_v2 = vadd.f32 %v2410_v1, %v2367_v59  ;;  %12406 = vmatpush1.msk.msra.mxu0 %vm2537_vm4, %v2439_v4 }
 0x5a0   :  { %2574 = vmatprep.subr.mxu0 %v2438_v5 }
 0x5a1   :  { %12404 = vmatprep.mubr.msk.f32.mxu0 %vm2441_vm3, %v2411_v2  ;;  %2575 = vmatpush1.msra.mxu0 %v2437_v6 }
 0x5a2   :  { %2518 = vmatmul.mubr.f32.gmra.mxu0 %v2409_v3  ;;  %12410 = vmatprep.subr.msk.mxu0 %vm2537_vm4, %v2440_v54 }
 0x5a3   :  { %2608 = vmatprep.mubr.f32.mxu0 %v15336_v63 }
 0x65e   :  { %v2514_v7 = vpop.f32.mrf.mxu0 }
 0x65f   :  { %v2524_v10 = vsel %vm2523_vm5, %v2514_v7, 0.0 }
 0x660   :  { %v2516_v8 = vpop.f32.mrf.mxu0 }
 0x662   :  { %v2519_v9 = vpop.f32.mrf.mxu0 }
 0x663   :  { %v2525_v11 = vsel %vm2523_vm5, %v2519_v9, 0.0  ;;  %v3361_v9 = vld [vmem:[%s19634_s7 + $0x1088] sm:$0xff] }
 0x664   :  { %v2526_v26 = vadd.f32 %v2525_v11, %v2524_v10  ;;  %v2521_v0 = vpop.f32.mrf.mxu0  ;;  %v3385_v10 = vld [vmem:[%s19634_s7 + $0x1148] sm:$0xff] }
 0x665   :  { %v12944_v11 = vcombine.high %v3361_v9, %v3385_v10 }
 0x666   :  { %v2527_v32 = vrot.slane %v2526_v26, 4 }
 0x668   :  { %v2528_v12 = vadd.f32 %v2527_v32, %v2526_v26  ;;  %v12943_v26 = vcombine.low %v3361_v9, %v3385_v10  ;;  %v3313_v9 = vld [vmem:[%s19634_s7 + $0xf08] sm:$0xff] }
 0x66a   :  { %v2529_v13 = vrot.slane %v2528_v12, 2 }
 0x66c   :  { %v2530_v15 = vadd.f32 %v2529_v13, %v2528_v12 }
 0x66e   :  { %v2531_v18 = vrot.slane %v2530_v15, 1 }
 0x670   :  { %v2532_v19 = vadd.f32 %v2531_v18, %v2530_v15 }
 0x672   :  { %v2533_v20 = vmul.f32 0.0625, %v2532_v19 }
 0x674   :  { %12407 = vmatmul.mubr.msk.f32.vlgmr.msra.gmra.mxu0 %vm2523_vm5, %v2533_v20 }
 0x675   :  { %12411 = vmatpush1.msk.msra.mxu0 %vm2537_vm4, %v2439_v4  ;;  %2792 = vmatprep.mubr.f32.mxu0 %v15336_v63 }
 0x676   :  { %2758 = vmatprep.subr.mxu0 %v2438_v5  ;;  %v2833_v5 = vld [vmem:[%s19634_s7 + $0x8] sm:$0xff] }
 0x677   :  { %2759 = vmatpush1.msra.mxu0 %v2437_v6  ;;  %v2857_v6 = vld [vmem:[%s19634_s7 + $0xc8] sm:$0xff] }
 0x678   :  { %6537 = vmatprep.subr.bf16.mxu0 %v12750_v39  ;;  %v12416_v7 = vcombine.high %v2833_v5, %v2857_v6  ;;  %v12415_v8 = vcombine.low %v2833_v5, %v2857_v6  ;;  %v3144_v39 = vld [vmem:[%s19634_s7 + $0x9c0] sm:$0xff] }
 0x679   :  { %v12702_v34 = vcombine.high %v3120_v30, %v3144_v39 }
 0x734   :  { %v2610_v28 = vpop.f32.mrf.mxu0 }
 0x735   :  { %v2618_v21 = vrot.slane %v2610_v28, %v15800_v17 }
 0x736   :  { %v2612_v56 = vpop.f32.mrf.mxu0 }
 0x737   :  { %v2622_v22 = vrot.slane %v2612_v56, %v15800_v17  ;;  %v16160_v23 = vsub.f32 %v2405_v55, %v2618_v21  ;;  %v16168_v27 = vsub.f32 %v2409_v3, %v2618_v21  ;;  %v2929_v55 = vld [vmem:[%s19634_s7 + $0x308] sm:$0xff] }
 0x738   :  { %v12512_v59 = vcombine.high %v2929_v55, %v2953_v57  ;;  %v12511_v1 = vcombine.low %v2929_v55, %v2953_v57  ;;  %v2905_v3 = vld [vmem:[%s19634_s7 + $0x248] sm:$0xff]  ;;  %v2832_v57 = vld [vmem:[%s19634_s7] sm:$0xff] }
 0x739   :  { %v16162_v61 = vsub.f32 %v2407_v53, %v2622_v22  ;;  %v16164_v24 = vsub.f32 %v2411_v2, %v2622_v22  ;;  %v2627_v63 = vmul.f32 %v16160_v23, %v16160_v23  ;;  %v2629_v60 = vmul.f32 %v16168_v27, %v16168_v27  ;;  %v2881_v2 = vld [vmem:[%s19634_s7 + $0x188] sm:$0xff] }
 0x73a   :  { %v12559_v53 = vcombine.low %v2977_v49, %v3001_v50  ;;  %v12464_v54 = vcombine.high %v2881_v2, %v2905_v3  ;;  %v12463_v4 = vcombine.low %v2881_v2, %v2905_v3  ;;  %v2880_v50 = vld [vmem:[%s19634_s7 + $0x180] sm:$0xff] }
 0x73b   :  { %v2628_v25 = vmul.f32 %v16162_v61, %v16162_v61  ;;  %v2630_v14 = vmul.f32 %v16164_v24, %v16164_v24  ;;  %v3360_v3 = vld [vmem:[%s19634_s7 + $0x1080] sm:$0xff] }
 0x73d   :  { %12408 = vmatprep.mubr.msk.f32.mxu1 %vm2441_vm3, %v2628_v25 }
 0x73e   :  { %2702 = vmatmul.mubr.f32.vlgmr.msra.gmra.mxu1 %v2627_v63 }
 0x73f   :  { %12409 = vmatprep.mubr.msk.f32.mxu1 %vm2441_vm3, %v2630_v14  ;;  %6581 = vmatpush1.bf16.msra.mxu1 %v12751_v33 }
 0x740   :  { %6582 = vmatprep.subr.bf16.mxu1 %v12704_v38  ;;  %v12701_v38 = vcombine.low %v3120_v30, %v3144_v39 }
 0x742   :  { %2707 = vmatmul.mubr.f32.gmra.mxu1 %v2629_v60  ;;  %v52_v60 = vld [vmem:[%s19636_s9 + $0x1] sm:$0x1] }
 0x743   :  { %6583 = vmatpush1.bf16.msra.mxu1 %v12703_v40  ;;  %v12654_v40 = vcombine.high %v3072_v35, %v3096_v36 }
 0x744   :  { %6584 = vmatprep.subr.bf16.mxu1 %v12656_v43  ;;  %v12653_v43 = vcombine.low %v3072_v35, %v3096_v36  ;;  %v3195_v36 = vld [vmem:[%s19634_s7 + $0xb58] sm:$0xff] }
 0x747   :  { %6585 = vmatpush1.bf16.msra.mxu1 %v12655_v44  ;;  %v12606_v44 = vcombine.high %v3024_v41, %v3048_v42 }
 0x748   :  { %6586 = vmatprep.subr.bf16.mxu1 %v12608_v47  ;;  %v2952_v47 = vld [vmem:[%s19634_s7 + $0x3c0] sm:$0xff] }
 0x749   :  { %v12510_v49 = vcombine.high %v2928_v46, %v2952_v47 }
 0x74b   :  { %6587 = vmatpush1.bf16.msra.mxu1 %v12607_v48  ;;  %v12557_v48 = vcombine.low %v2976_v29, %v3000_v31 }
 0x74c   :  { %6588 = vmatprep.subr.bf16.mxu1 %v12560_v52  ;;  %v2904_v52 = vld [vmem:[%s19634_s7 + $0x240] sm:$0xff] }
 0x74d   :  { %v12462_v55 = vcombine.high %v2880_v50, %v2904_v52 }
 0x74f   :  { %6589 = vmatpush1.bf16.msra.mxu1 %v12559_v53  ;;  %v12509_v53 = vcombine.low %v2928_v46, %v2952_v47 }
 0x750   :  { %6590 = vmatprep.subr.bf16.mxu1 %v12512_v59  ;;  %v2856_v59 = vld [vmem:[%s19634_s7 + $0xc0] sm:$0xff] }
 0x751   :  { %v12414_v2 = vcombine.high %v2832_v57, %v2856_v59 }
 0x753   :  { %6591 = vmatpush1.bf16.msra.mxu1 %v12511_v1  ;;  %v12461_v1 = vcombine.low %v2880_v50, %v2904_v52 }
 0x754   :  { %6592 = vmatprep.subr.bf16.mxu1 %v12464_v54  ;;  %v3384_v54 = vld [vmem:[%s19634_s7 + $0x1140] sm:$0xff] }
 0x755   :  { %v12942_v5 = vcombine.high %v3360_v3, %v3384_v54  ;;  %v12941_v6 = vcombine.low %v3360_v3, %v3384_v54 }
 0x757   :  { %6593 = vmatpush1.bf16.msra.mxu1 %v12463_v4  ;;  %v12413_v4 = vcombine.low %v2832_v57, %v2856_v59 }
 0x758   :  { %6594 = vmatprep.subr.bf16.mxu1 %v12416_v7  ;;  %v3312_v7 = vld [vmem:[%s19634_s7 + $0xf00] sm:$0xff] }
 0x75b   :  { %6595 = vmatpush1.bf16.msra.mxu1 %v12415_v8  ;;  %v3336_v8 = vld [vmem:[%s19634_s7 + $0xfc0] sm:$0xff] }
 0x75c   :  { %6604 = vmatprep.subr.bf16.mxu1 %v12944_v11  ;;  %v12894_v10 = vcombine.high %v3312_v7, %v3336_v8  ;;  %v3337_v11 = vld [vmem:[%s19634_s7 + $0xfc8] sm:$0xff] }
 0x75f   :  { %6605 = vmatpush2.bf16.msra.mxu1 %v12943_v26  ;;  %v12893_v26 = vcombine.low %v3312_v7, %v3336_v8  ;;  %v3098_v7 = vld [vmem:[%s19634_s7 + $0x850] sm:$0xff]  ;;  %v3075_v8 = vld [vmem:[%s19634_s7 + $0x798] sm:$0xff] }
 0x7fe   :  { %v2703_v0 = vpop.f32.mrf.mxu1 }
 0x7ff   :  { %v2712_v13 = vsel %vm2523_vm5, %v2703_v0, 0.0  ;;  %v12895_v0 = vcombine.low %v3313_v9, %v3337_v11 }
 0x800   :  { %v2705_v32 = vpop.f32.mrf.mxu1 }
 0x801   :  { %v12896_v32 = vcombine.high %v3313_v9, %v3337_v11  ;;  %v3099_v9 = vld [vmem:[%s19634_s7 + $0x858] sm:$0xff] }
 0x802   :  { %v2708_v12 = vpop.f32.mrf.mxu1 }
 0x803   :  { %v2713_v15 = vsel %vm2523_vm5, %v2708_v12, 0.0  ;;  %6606 = vmatprep.subr.bf16.mxu1 %v12896_v32  ;;  %v3264_v12 = vld [vmem:[%s19634_s7 + $0xd80] sm:$0xff]  ;;  %v3026_v32 = vld [vmem:[%s19634_s7 + $0x610] sm:$0xff] }
 0x804   :  { %v2714_v18 = vadd.f32 %v2713_v15, %v2712_v13  ;;  %v2710_v19 = vpop.f32.mrf.mxu1  ;;  %v3288_v13 = vld [vmem:[%s19634_s7 + $0xe40] sm:$0xff]  ;;  %v3265_v15 = vld [vmem:[%s19634_s7 + $0xd88] sm:$0xff]  ;;  %6607 = vmatpush2.bf16.msra.mxu1 %v12895_v0  ;;  %v12660_v0 = vcombine.high %v3075_v8, %v3099_v9 }
 0x805   :  { %v3289_v19 = vld [vmem:[%s19634_s7 + $0xe48] sm:$0xff] }
 0x806   :  { %v2715_v20 = vrot.slane %v2714_v18, 4 }
 0x808   :  { %v2716_v28 = vadd.f32 %v2715_v20, %v2714_v18  ;;  %v12846_v18 = vcombine.high %v3264_v12, %v3288_v13  ;;  %v12845_v20 = vcombine.low %v3264_v12, %v3288_v13  ;;  %v3050_v12 = vld [vmem:[%s19634_s7 + $0x6d0] sm:$0xff]  ;;  %v3027_v13 = vld [vmem:[%s19634_s7 + $0x618] sm:$0xff] }
 0x80a   :  { %v2717_v21 = vrot.slane %v2716_v28, 2 }
 0x80c   :  { %v2718_v56 = vadd.f32 %v2717_v21, %v2716_v28  ;;  %v12847_v28 = vcombine.low %v3265_v15, %v3289_v19  ;;  %v12848_v21 = vcombine.high %v3265_v15, %v3289_v19  ;;  %v3051_v15 = vld [vmem:[%s19634_s7 + $0x6d8] sm:$0xff]  ;;  %v12659_v19 = vcombine.low %v3075_v8, %v3099_v9 }
 0x80e   :  { %v2719_v22 = vrot.slane %v2718_v56, 1  ;;  %6608 = vmatprep.subr.bf16.mxu1 %v12848_v21  ;;  %v2978_v21 = vld [vmem:[%s19634_s7 + $0x490] sm:$0xff] }
 0x80f   :  { %6609 = vmatpush2.bf16.msra.mxu1 %v12847_v28  ;;  %v12612_v28 = vcombine.high %v3027_v13, %v3051_v15 }
 0x810   :  { %v2720_v25 = vadd.f32 %v2719_v22, %v2718_v56  ;;  %v3216_v56 = vld [vmem:[%s19634_s7 + $0xc00] sm:$0xff] }
 0x811   :  { %v3240_v22 = vld [vmem:[%s19634_s7 + $0xcc0] sm:$0xff] }
 0x812   :  { %v2721_v63 = vmul.f32 0.0625, %v2720_v25  ;;  %v3217_v25 = vld [vmem:[%s19634_s7 + $0xc08] sm:$0xff] }
 0x814   :  { %v2722_v14 = vadd.f32 1e-05, %v2721_v63  ;;  %v12798_v63 = vcombine.high %v3216_v56, %v3240_v22 }
 0x816   :  { %14847 = vrsqrt.f32 %v2722_v14  ;;  %v3241_v14 = vld [vmem:[%s19634_s7 + $0xcc8] sm:$0xff] }
 0x817   :  { %v12799_v30 = vcombine.low %v3217_v25, %v3241_v14  ;;  %v12800_v39 = vcombine.high %v3217_v25, %v3241_v14  ;;  %v3003_v25 = vld [vmem:[%s19634_s7 + $0x558] sm:$0xff]  ;;  %v12611_v14 = vcombine.low %v3027_v13, %v3051_v15 }
 0x819   :  { %6610 = vmatprep.subr.bf16.mxu1 %v12800_v39  ;;  %v2930_v39 = vld [vmem:[%s19634_s7 + $0x310] sm:$0xff] }
 0x81a   :  { %6611 = vmatpush2.bf16.msra.mxu1 %v12799_v30 }
 0x823   :  { %v14848_v62 = vpop.eup %14847 }
 0x824   :  { %v2724_v33 = vmul.f32 %v14848_v62, %v52_v60  ;;  %v12797_v60 = vcombine.low %v3216_v56, %v3240_v22  ;;  %v3170_v62 = vld [vmem:[%s19634_s7 + $0xa90] sm:$0xff]  ;;  %v2979_v22 = vld [vmem:[%s19634_s7 + $0x498] sm:$0xff] }
 0x825   :  { %v3002_v56 = vld [vmem:[%s19634_s7 + $0x550] sm:$0xff]  ;;  %v12564_v30 = vcombine.high %v2979_v22, %v3003_v25 }
 0x826   :  { %12412 = vmatmul.mubr.msk.f32.vlgmr.msra.gmra.mxu0 %vm2523_vm5, %v2724_v33  ;;  %v3194_v33 = vld [vmem:[%s19634_s7 + $0xb50] sm:$0xff] }
 0x827   :  { %6538 = vmatpush1.bf16.msra.mxu0 %v12749_v37  ;;  %v12605_v37 = vcombine.low %v3024_v41, %v3048_v42  ;;  %v12754_v35 = vcombine.high %v3170_v62, %v3194_v33  ;;  %v55_v42 = vld [vmem:[%s19636_s9 + $0x6] sm:$0x3] }
 0x828   :  { %6539 = vmatprep.subr.bf16.mxu0 %v12702_v34  ;;  %v3171_v34 = vld [vmem:[%s19634_s7 + $0xa98] sm:$0xff]  ;;  %v2815_v29 = vrot.slane %v55_v42, %v15800_v17  ;;  %v2819_v47 = vrot.slane %v55_v42, %v16000_v51  ;;  %v2906_v42 = vld [vmem:[%s19634_s7 + $0x250] sm:$0xff] }
 0x829   :  { %v12756_v41 = vcombine.high %v3171_v34, %v3195_v36 }
 0x82b   :  { %6540 = vmatpush1.bf16.msra.mxu0 %v12701_v38  ;;  %v12753_v38 = vcombine.low %v3170_v62, %v3194_v33  ;;  %6666 = vmatprep.subr.bf16.mxu1 %v12756_v41  ;;  %v2954_v62 = vld [vmem:[%s19634_s7 + $0x3d0] sm:$0xff]  ;;  %v2931_v33 = vld [vmem:[%s19634_s7 + $0x318] sm:$0xff] }
 0x82c   :  { %6541 = vmatprep.subr.bf16.mxu0 %v12654_v40  ;;  %v12755_v40 = vcombine.low %v3171_v34, %v3195_v36  ;;  %v2955_v34 = vld [vmem:[%s19634_s7 + $0x3d8] sm:$0xff]  ;;  %v12563_v36 = vcombine.low %v2979_v22, %v3003_v25  ;;  %v2882_v41 = vld [vmem:[%s19634_s7 + $0x190] sm:$0xff] }
 0x82f   :  { %6542 = vmatpush1.bf16.msra.mxu0 %v12653_v43 }
 0x830   :  { %6543 = vmatprep.subr.bf16.mxu0 %v12606_v44 }
 0x833   :  { %6544 = vmatpush1.bf16.msra.mxu0 %v12605_v37 }
 0x834   :  { %6545 = vmatprep.subr.bf16.mxu0 %v12558_v45 }
 0x837   :  { %6546 = vmatpush1.bf16.msra.mxu0 %v12557_v48 }
 0x838   :  { %6547 = vmatprep.subr.bf16.mxu0 %v12510_v49 }
 0x83b   :  { %6548 = vmatpush1.bf16.msra.mxu0 %v12509_v53 }
 0x83c   :  { %6549 = vmatprep.subr.bf16.mxu0 %v12462_v55 }
 0x83f   :  { %6550 = vmatpush1.bf16.msra.mxu0 %v12461_v1 }
 0x840   :  { %6551 = vmatprep.subr.bf16.mxu0 %v12414_v2 }
 0x843   :  { %6552 = vmatpush1.bf16.msra.mxu0 %v12413_v4  ;;  %v3074_v4 = vld [vmem:[%s19634_s7 + $0x790] sm:$0xff] }
 0x844   :  { %6561 = vmatprep.subr.bf16.mxu0 %v12942_v5 }
 0x847   :  { %6562 = vmatpush2.bf16.msra.mxu0 %v12941_v6 }
 0x848   :  { %6563 = vmatprep.subr.bf16.mxu0 %v12894_v10 }
 0x84b   :  { %6564 = vmatpush2.bf16.msra.mxu0 %v12893_v26  ;;  %v12658_v26 = vcombine.high %v3074_v4, %v3098_v7 }
 0x84c   :  { %6565 = vmatprep.subr.bf16.mxu0 %v12846_v18  ;;  %v12657_v18 = vcombine.low %v3074_v4, %v3098_v7  ;;  %v3314_v4 = vld [vmem:[%s19634_s7 + $0xf10] sm:$0xff]  ;;  %v3339_v7 = vld [vmem:[%s19634_s7 + $0xfd8] sm:$0xff] }
 0x84f   :  { %6566 = vmatpush2.bf16.msra.mxu0 %v12845_v20  ;;  %v12610_v20 = vcombine.high %v3026_v32, %v3050_v12 }
 0x850   :  { %6567 = vmatprep.subr.bf16.mxu0 %v12798_v63  ;;  %v12609_v63 = vcombine.low %v3026_v32, %v3050_v12  ;;  %v3267_v32 = vld [vmem:[%s19634_s7 + $0xd98] sm:$0xff] }
 0x851   :  { %v3291_v12 = vld [vmem:[%s19634_s7 + $0xe58] sm:$0xff] }
 0x852   :  { %v12851_v25 = vcombine.low %v3267_v32, %v3291_v12 }
 0x853   :  { %6568 = vmatpush2.bf16.msra.mxu0 %v12797_v60  ;;  %v12562_v60 = vcombine.high %v2978_v21, %v3002_v56 }
 0x854   :  { %6623 = vmatprep.subr.bf16.mxu0 %v12754_v35  ;;  %v12561_v35 = vcombine.low %v2978_v21, %v3002_v56  ;;  %v3219_v21 = vld [vmem:[%s19634_s7 + $0xc18] sm:$0xff] }
 0x855   :  { %v3243_v56 = vld [vmem:[%s19634_s7 + $0xcd8] sm:$0xff] }
 0x8e6   :  { %v2794_v43 = vpop.f32.mrf.mxu0 }
 0x8e7   :  { %v2802_v44 = vrot.slane %v2794_v43, %v15800_v17  ;;  %v2883_v43 = vld [vmem:[%s19634_s7 + $0x198] sm:$0xff] }
 0x8e8   :  { %v2796_v31 = vpop.f32.mrf.mxu0 }
 0x8e9   :  { %v2807_v37 = vmul.f32 %v2802_v44, %v16160_v23  ;;  %v2809_v45 = vmul.f32 %v2802_v44, %v16168_v27  ;;  %v2806_v46 = vrot.slane %v2796_v31, %v15800_v17  ;;  %v3122_v23 = vld [vmem:[%s19634_s7 + $0x910] sm:$0xff]  ;;  %v2907_v44 = vld [vmem:[%s19634_s7 + $0x258] sm:$0xff]  ;;  %v12515_v31 = vcombine.low %v2931_v33, %v2955_v34 }
 0x8ea   :  { %v3146_v27 = vld [vmem:[%s19634_s7 + $0x9d0] sm:$0xff] }
 0x8eb   :  { %v2822_v48 = vadd.f32 %v2815_v29, %v2807_v37  ;;  %v2824_v49 = vadd.f32 %v2815_v29, %v2809_v45  ;;  %v2808_v50 = vmul.f32 %v2806_v46, %v16162_v61  ;;  %v2810_v52 = vmul.f32 %v2806_v46, %v16164_v24  ;;  %v3123_v61 = vld [vmem:[%s19634_s7 + $0x918] sm:$0xff]  ;;  %v2834_v46 = vld [vmem:[%s19634_s7 + $0x10] sm:$0xff] }
 0x8ec   :  { %v3147_v24 = vld [vmem:[%s19634_s7 + $0x9d8] sm:$0xff]  ;;  %v12706_v5 = vcombine.high %v3122_v23, %v3146_v27  ;;  %v12705_v10 = vcombine.low %v3122_v23, %v3146_v27  ;;  %v12513_v29 = vcombine.low %v2930_v39, %v2954_v62  ;;  %v12466_v37 = vcombine.high %v2882_v41, %v2906_v42 }
 0x8ed   :  { %v2823_v53 = vadd.f32 %v2819_v47, %v2808_v50  ;;  %v2825_v55 = vadd.f32 %v2819_v47, %v2810_v52  ;;  %v2826_v57 = vmax.f32 %v2822_v48, 0.0  ;;  %v2828_v59 = vmax.f32 %v2824_v49, 0.0  ;;  %v2858_v47 = vld [vmem:[%s19634_s7 + $0xd0] sm:$0xff]  ;;  %v2835_v48 = vld [vmem:[%s19634_s7 + $0x18] sm:$0xff] }
 0x8ee   :  { %v12708_v6 = vcombine.high %v3123_v61, %v3147_v24  ;;  %v12707_v11 = vcombine.low %v3123_v61, %v3147_v24  ;;  %v12468_v45 = vcombine.high %v2883_v43, %v2907_v44  ;;  %v2859_v49 = vld [vmem:[%s19634_s7 + $0xd8] sm:$0xff]  ;;  %v12465_v50 = vcombine.low %v2882_v41, %v2906_v42  ;;  %v3125_v41 = vld [vmem:[%s19634_s7 + $0x928] sm:$0xff] }
 0x8ef   :  { %v2827_v1 = vmax.f32 %v2823_v53, 0.0  ;;  %v2829_v2 = vmax.f32 %v2825_v55, 0.0  ;;  %v16376_v54 = vpack.c.bf16 %v2828_v59, %v2826_v57  ;;  %v12467_v52 = vcombine.low %v2883_v43, %v2907_v44  ;;  %v3362_v57 = vld [vmem:[%s19634_s7 + $0x1090] sm:$0xff]  ;;  %v3149_v42 = vld [vmem:[%s19634_s7 + $0x9e8] sm:$0xff] }
 0x8f0   :  { %v12418_v53 = vcombine.high %v2834_v46, %v2858_v47  ;;  %v12420_v55 = vcombine.high %v2835_v48, %v2859_v49  ;;  %v3386_v59 = vld [vmem:[%s19634_s7 + $0x1150] sm:$0xff]  ;;  %v12417_v23 = vcombine.low %v2834_v46, %v2858_v47  ;;  %v12419_v27 = vcombine.low %v2835_v48, %v2859_v49  ;;  %v3077_v46 = vld [vmem:[%s19634_s7 + $0x7a8] sm:$0xff] }
 0x8f1   :  { %v16374_v3 = vpack.c.bf16 %v2829_v2, %v2827_v1  ;;  %v3363_v1 = vld [vmem:[%s19634_s7 + $0x1098] sm:$0xff]  ;;  %v12946_v61 = vcombine.high %v3362_v57, %v3386_v59  ;;  %v12945_v8 = vcombine.low %v3362_v57, %v3386_v59  ;;  %v3101_v47 = vld [vmem:[%s19634_s7 + $0x868] sm:$0xff]  ;;  %v12711_v49 = vcombine.low %v3125_v41, %v3149_v42 }
 0x8f2   :  { %v3387_v2 = vld [vmem:[%s19634_s7 + $0x1158] sm:$0xff]  ;;  %v3029_v57 = vld [vmem:[%s19634_s7 + $0x628] sm:$0xff] }
 0x8f3   :  { %12989 = vmatprep.mubr.msk.bf16.mxu0 %vm2441_vm3, %v16374_v3  ;;  %12990 = vmatprep.mubr.msk.bf16.mxu1 %vm2441_vm3, %v16374_v3  ;;  %v12948_v24 = vcombine.high %v3363_v1, %v3387_v2  ;;  %v12947_v9 = vcombine.low %v3363_v1, %v3387_v2  ;;  %v3053_v59 = vld [vmem:[%s19634_s7 + $0x6e8] sm:$0xff]  ;;  %v12663_v2 = vcombine.low %v3077_v46, %v3101_v47 }
 0x8f4   :  { %6570 = vmatmul.mubr.bf16.vlgmr.msra.gmra.mxu0 %v16376_v54  ;;  %6613 = vmatmul.mubr.bf16.vlgmr.msra.gmra.mxu1 %v16376_v54 }
 0x8f5   :  { %6624 = vmatpush1.bf16.msra.mxu0 %v12753_v38  ;;  %6667 = vmatpush1.bf16.msra.mxu1 %v12755_v40  ;;  %v12514_v38 = vcombine.high %v2930_v39, %v2954_v62  ;;  %v12516_v40 = vcombine.high %v2931_v33, %v2955_v34  ;;  %v3173_v39 = vld [vmem:[%s19634_s7 + $0xaa8] sm:$0xff]  ;;  %v12803_v34 = vcombine.low %v3219_v21, %v3243_v56 }
 0x8f6   :  { %12991 = vmatprep.mubr.msk.bf16.mxu0 %vm2441_vm3, %v16374_v3  ;;  %12992 = vmatprep.mubr.msk.bf16.mxu1 %vm2441_vm3, %v16374_v3  ;;  %v3197_v62 = vld [vmem:[%s19634_s7 + $0xb68] sm:$0xff] }
 0x8f7   :  { %6625 = vmatprep.subr.bf16.mxu0 %v12706_v5  ;;  %6668 = vmatprep.subr.bf16.mxu1 %v12708_v6  ;;  %v3338_v5 = vld [vmem:[%s19634_s7 + $0xfd0] sm:$0xff]  ;;  %v3315_v6 = vld [vmem:[%s19634_s7 + $0xf18] sm:$0xff]  ;;  %v12759_v44 = vcombine.low %v3173_v39, %v3197_v62 }
 0x8f8   :  { %v12897_v13 = vcombine.low %v3314_v4, %v3338_v5  ;;  %v12899_v15 = vcombine.low %v3315_v6, %v3339_v7 }
 0x8f9   :  { %6626 = vmatpush1.bf16.msra.mxu0 %v12705_v10  ;;  %6669 = vmatpush1.bf16.msra.mxu1 %v12707_v11  ;;  %v12898_v10 = vcombine.high %v3314_v4, %v3338_v5  ;;  %v12900_v11 = vcombine.high %v3315_v6, %v3339_v7  ;;  %v2981_v4 = vld [vmem:[%s19634_s7 + $0x4a8] sm:$0xff]  ;;  %v12615_v7 = vcombine.low %v3029_v57, %v3053_v59 }
 0x8fa   :  { %6627 = vmatprep.subr.bf16.mxu0 %v12658_v26  ;;  %6670 = vmatprep.subr.bf16.mxu1 %v12660_v0  ;;  %v3266_v26 = vld [vmem:[%s19634_s7 + $0xd90] sm:$0xff]  ;;  %v3005_v5 = vld [vmem:[%s19634_s7 + $0x568] sm:$0xff] }
 0x8fb   :  { %v3290_v0 = vld [vmem:[%s19634_s7 + $0xe50] sm:$0xff] }
 0x8fc   :  { %v12849_v22 = vcombine.low %v3266_v26, %v3290_v0 }
 0x8fd   :  { %6628 = vmatpush1.bf16.msra.mxu0 %v12657_v18  ;;  %6671 = vmatpush1.bf16.msra.mxu1 %v12659_v19  ;;  %v12850_v18 = vcombine.high %v3266_v26, %v3290_v0  ;;  %v12852_v19 = vcombine.high %v3267_v32, %v3291_v12  ;;  %v2933_v26 = vld [vmem:[%s19634_s7 + $0x328] sm:$0xff]  ;;  %v12567_v12 = vcombine.low %v2981_v4, %v3005_v5 }
 0x8fe   :  { %6629 = vmatprep.subr.bf16.mxu0 %v12610_v20  ;;  %6672 = vmatprep.subr.bf16.mxu1 %v12612_v28  ;;  %v3218_v20 = vld [vmem:[%s19634_s7 + $0xc10] sm:$0xff]  ;;  %v2957_v0 = vld [vmem:[%s19634_s7 + $0x3e8] sm:$0xff] }
 0x8ff   :  { %v3242_v28 = vld [vmem:[%s19634_s7 + $0xcd0] sm:$0xff] }
 0x900   :  { %v12801_v33 = vcombine.low %v3218_v20, %v3242_v28 }
 0x901   :  { %6630 = vmatpush1.bf16.msra.mxu0 %v12609_v63  ;;  %6673 = vmatpush1.bf16.msra.mxu1 %v12611_v14  ;;  %v12802_v63 = vcombine.high %v3218_v20, %v3242_v28  ;;  %v12804_v14 = vcombine.high %v3219_v21, %v3243_v56  ;;  %v2885_v20 = vld [vmem:[%s19634_s7 + $0x1a8] sm:$0xff]  ;;  %v12519_v56 = vcombine.low %v2933_v26, %v2957_v0 }
 0x902   :  { %6631 = vmatprep.subr.bf16.mxu0 %v12562_v60  ;;  %6674 = vmatprep.subr.bf16.mxu1 %v12564_v30  ;;  %v3172_v60 = vld [vmem:[%s19634_s7 + $0xaa0] sm:$0xff]  ;;  %v2909_v28 = vld [vmem:[%s19634_s7 + $0x268] sm:$0xff] }
 0x903   :  { %v3196_v30 = vld [vmem:[%s19634_s7 + $0xb60] sm:$0xff] }
 0x904   :  { %v12757_v43 = vcombine.low %v3172_v60, %v3196_v30 }
 0x905   :  { %6632 = vmatpush1.bf16.msra.mxu0 %v12561_v35  ;;  %6675 = vmatpush1.bf16.msra.mxu1 %v12563_v36  ;;  %v12758_v35 = vcombine.high %v3172_v60, %v3196_v30  ;;  %v12760_v36 = vcombine.high %v3173_v39, %v3197_v62  ;;  %v2837_v60 = vld [vmem:[%s19634_s7 + $0x28] sm:$0xff]  ;;  %v12471_v62 = vcombine.low %v2885_v20, %v2909_v28 }
 0x906   :  { %6633 = vmatprep.subr.bf16.mxu0 %v12514_v38  ;;  %6676 = vmatprep.subr.bf16.mxu1 %v12516_v40  ;;  %v3124_v38 = vld [vmem:[%s19634_s7 + $0x920] sm:$0xff]  ;;  %v2861_v30 = vld [vmem:[%s19634_s7 + $0xe8] sm:$0xff] }
 0x907   :  { %v3148_v40 = vld [vmem:[%s19634_s7 + $0x9e0] sm:$0xff] }
 0x908   :  { %v12709_v48 = vcombine.low %v3124_v38, %v3148_v40 }
 0x909   :  { %6634 = vmatpush1.bf16.msra.mxu0 %v12513_v29  ;;  %6677 = vmatpush1.bf16.msra.mxu1 %v12515_v31  ;;  %v12710_v29 = vcombine.high %v3124_v38, %v3148_v40  ;;  %v12712_v31 = vcombine.high %v3125_v41, %v3149_v42  ;;  %v3365_v38 = vld [vmem:[%s19634_s7 + $0x10a8] sm:$0xff]  ;;  %v12423_v42 = vcombine.low %v2837_v60, %v2861_v30 }
 0x90a   :  { %6635 = vmatprep.subr.bf16.mxu0 %v12466_v37  ;;  %6678 = vmatprep.subr.bf16.mxu1 %v12468_v45  ;;  %v3076_v37 = vld [vmem:[%s19634_s7 + $0x7a0] sm:$0xff]  ;;  %v3389_v40 = vld [vmem:[%s19634_s7 + $0x1168] sm:$0xff] }
 0x90b   :  { %v3100_v45 = vld [vmem:[%s19634_s7 + $0x860] sm:$0xff] }
 0x90c   :  { %v12661_v1 = vcombine.low %v3076_v37, %v3100_v45 }
 0x90d   :  { %6636 = vmatpush1.bf16.msra.mxu0 %v12465_v50  ;;  %6679 = vmatpush1.bf16.msra.mxu1 %v12467_v52  ;;  %v12662_v50 = vcombine.high %v3076_v37, %v3100_v45  ;;  %v12664_v52 = vcombine.high %v3077_v46, %v3101_v47  ;;  %v3317_v37 = vld [vmem:[%s19634_s7 + $0xf28] sm:$0xff]  ;;  %v12951_v47 = vcombine.low %v3365_v38, %v3389_v40 }
 0x90e   :  { %6637 = vmatprep.subr.bf16.mxu0 %v12418_v53  ;;  %6680 = vmatprep.subr.bf16.mxu1 %v12420_v55  ;;  %v3028_v53 = vld [vmem:[%s19634_s7 + $0x620] sm:$0xff]  ;;  %v3341_v45 = vld [vmem:[%s19634_s7 + $0xfe8] sm:$0xff] }
 0x90f   :  { %v3052_v55 = vld [vmem:[%s19634_s7 + $0x6e0] sm:$0xff] }
 0x910   :  { %v12613_v6 = vcombine.low %v3028_v53, %v3052_v55 }
 0x911   :  { %6638 = vmatpush1.bf16.msra.mxu0 %v12417_v23  ;;  %6681 = vmatpush1.bf16.msra.mxu1 %v12419_v27  ;;  %v12614_v23 = vcombine.high %v3028_v53, %v3052_v55  ;;  %v12616_v27 = vcombine.high %v3029_v57, %v3053_v59  ;;  %v3269_v53 = vld [vmem:[%s19634_s7 + $0xda8] sm:$0xff]  ;;  %v12903_v59 = vcombine.low %v3317_v37, %v3341_v45 }
 0x912   :  { %6647 = vmatprep.subr.bf16.mxu0 %v12946_v61  ;;  %6690 = vmatprep.subr.bf16.mxu1 %v12948_v24  ;;  %v2980_v61 = vld [vmem:[%s19634_s7 + $0x4a0] sm:$0xff]  ;;  %v3293_v55 = vld [vmem:[%s19634_s7 + $0xe68] sm:$0xff] }
 0x913   :  { %v3004_v24 = vld [vmem:[%s19634_s7 + $0x560] sm:$0xff] }
 0x914   :  { %v12565_v32 = vcombine.low %v2980_v61, %v3004_v24 }
 0x915   :  { %6648 = vmatpush2.bf16.msra.mxu0 %v12945_v8  ;;  %6691 = vmatpush2.bf16.msra.mxu1 %v12947_v9  ;;  %v12566_v8 = vcombine.high %v2980_v61, %v3004_v24  ;;  %v12568_v9 = vcombine.high %v2981_v4, %v3005_v5  ;;  %v3221_v61 = vld [vmem:[%s19634_s7 + $0xc28] sm:$0xff]  ;;  %v12855_v5 = vcombine.low %v3269_v53, %v3293_v55 }
 0x916   :  { %6649 = vmatprep.subr.bf16.mxu0 %v12898_v10  ;;  %6692 = vmatprep.subr.bf16.mxu1 %v12900_v11  ;;  %v2932_v10 = vld [vmem:[%s19634_s7 + $0x320] sm:$0xff]  ;;  %v3245_v24 = vld [vmem:[%s19634_s7 + $0xce8] sm:$0xff] }
 0x917   :  { %v2956_v11 = vld [vmem:[%s19634_s7 + $0x3e0] sm:$0xff] }
 0x918   :  { %v12517_v21 = vcombine.low %v2932_v10, %v2956_v11 }
 0x919   :  { %6650 = vmatpush2.bf16.msra.mxu0 %v12897_v13  ;;  %6693 = vmatpush2.bf16.msra.mxu1 %v12899_v15  ;;  %v12518_v13 = vcombine.high %v2932_v10, %v2956_v11  ;;  %v12520_v15 = vcombine.high %v2933_v26, %v2957_v0  ;;  %v3175_v10 = vld [vmem:[%s19634_s7 + $0xab8] sm:$0xff]  ;;  %v12807_v0 = vcombine.low %v3221_v61, %v3245_v24 }
 0x91a   :  { %6651 = vmatprep.subr.bf16.mxu0 %v12850_v18  ;;  %6694 = vmatprep.subr.bf16.mxu1 %v12852_v19  ;;  %v2884_v18 = vld [vmem:[%s19634_s7 + $0x1a0] sm:$0xff]  ;;  %v3199_v11 = vld [vmem:[%s19634_s7 + $0xb78] sm:$0xff] }
 0x91b   :  { %v2908_v19 = vld [vmem:[%s19634_s7 + $0x260] sm:$0xff] }
 0x91c   :  { %v12469_v39 = vcombine.low %v2884_v18, %v2908_v19 }
 0x91d   :  { %6652 = vmatpush2.bf16.msra.mxu0 %v12849_v22  ;;  %6695 = vmatpush2.bf16.msra.mxu1 %v12851_v25  ;;  %v12470_v22 = vcombine.high %v2884_v18, %v2908_v19  ;;  %v12472_v25 = vcombine.high %v2885_v20, %v2909_v28  ;;  %v3127_v19 = vld [vmem:[%s19634_s7 + $0x938] sm:$0xff]  ;;  %v12763_v28 = vcombine.low %v3175_v10, %v3199_v11 }
 0x91e   :  { %6653 = vmatprep.subr.bf16.mxu0 %v12802_v63  ;;  %6696 = vmatprep.subr.bf16.mxu1 %v12804_v14  ;;  %v2836_v63 = vld [vmem:[%s19634_s7 + $0x20] sm:$0xff]  ;;  %v3151_v20 = vld [vmem:[%s19634_s7 + $0x9f8] sm:$0xff] }
 0x91f   :  { %v2860_v14 = vld [vmem:[%s19634_s7 + $0xe0] sm:$0xff] }
 0x920   :  { %v12421_v41 = vcombine.low %v2836_v63, %v2860_v14 }
 0x921   :  { %6654 = vmatpush2.bf16.msra.mxu0 %v12801_v33  ;;  %6697 = vmatpush2.bf16.msra.mxu1 %v12803_v34  ;;  %v12422_v33 = vcombine.high %v2836_v63, %v2860_v14  ;;  %v12424_v34 = vcombine.high %v2837_v60, %v2861_v30  ;;  %v3079_v63 = vld [vmem:[%s19634_s7 + $0x7b8] sm:$0xff]  ;;  %v12715_v30 = vcombine.low %v3127_v19, %v3151_v20 }
 0x922   :  { %6709 = vmatprep.subr.bf16.mxu0 %v12758_v35  ;;  %6752 = vmatprep.subr.bf16.mxu1 %v12760_v36  ;;  %v3364_v35 = vld [vmem:[%s19634_s7 + $0x10a0] sm:$0xff]  ;;  %v3103_v14 = vld [vmem:[%s19634_s7 + $0x878] sm:$0xff] }
 0x923   :  { %v3388_v36 = vld [vmem:[%s19634_s7 + $0x1160] sm:$0xff] }
 0x924   :  { %6656 = vmatmul.mubr.bf16.vlgmr.msra.gmra.mxu0 %v16376_v54  ;;  %6699 = vmatmul.mubr.bf16.vlgmr.msra.gmra.mxu1 %v16376_v54  ;;  %v12949_v46 = vcombine.low %v3364_v35, %v3388_v36 }
 0x925   :  { %6710 = vmatpush1.bf16.msra.mxu0 %v12757_v43  ;;  %12993 = vmatprep.mubr.msk.bf16.mxu0 %vm2441_vm3, %v16374_v3  ;;  %v12950_v43 = vcombine.high %v3364_v35, %v3388_v36  ;;  %v3031_v35 = vld [vmem:[%s19634_s7 + $0x638] sm:$0xff] }
 0x926   :  { %6753 = vmatpush1.bf16.msra.mxu1 %v12759_v44  ;;  %12994 = vmatprep.mubr.msk.bf16.mxu1 %vm2441_vm3, %v16374_v3  ;;  %v12952_v44 = vcombine.high %v3365_v38, %v3389_v40  ;;  %v3055_v36 = vld [vmem:[%s19634_s7 + $0x6f8] sm:$0xff]  ;;  %v12667_v40 = vcombine.low %v3079_v63, %v3103_v14 }
 0x927   :  { %6711 = vmatprep.subr.bf16.mxu0 %v12710_v29  ;;  %6754 = vmatprep.subr.bf16.mxu1 %v12712_v31  ;;  %v3316_v29 = vld [vmem:[%s19634_s7 + $0xf20] sm:$0xff] }
 0x928   :  { %v3340_v31 = vld [vmem:[%s19634_s7 + $0xfe0] sm:$0xff] }
 0x929   :  { %6712 = vmatpush1.bf16.msra.mxu0 %v12709_v48  ;;  %v12902_v48 = vcombine.high %v3316_v29, %v3340_v31  ;;  %v12901_v57 = vcombine.low %v3316_v29, %v3340_v31  ;;  %v2983_v29 = vld [vmem:[%s19634_s7 + $0x4b8] sm:$0xff] }
 0x92a   :  { %6755 = vmatpush1.bf16.msra.mxu1 %v12711_v49  ;;  %6713 = vmatprep.subr.bf16.mxu0 %v12662_v50  ;;  %v12904_v49 = vcombine.high %v3317_v37, %v3341_v45  ;;  %v3268_v50 = vld [vmem:[%s19634_s7 + $0xda0] sm:$0xff]  ;;  %v3007_v31 = vld [vmem:[%s19634_s7 + $0x578] sm:$0xff]  ;;  %v12619_v45 = vcombine.low %v3031_v35, %v3055_v36 }
 0x92b   :  { %6756 = vmatprep.subr.bf16.mxu1 %v12664_v52  ;;  %v3292_v52 = vld [vmem:[%s19634_s7 + $0xe60] sm:$0xff] }
 0x92c   :  { %v12853_v4 = vcombine.low %v3268_v50, %v3292_v52 }
 0x92d   :  { %6714 = vmatpush1.bf16.msra.mxu0 %v12661_v1  ;;  %v12854_v1 = vcombine.high %v3268_v50, %v3292_v52  ;;  %v2935_v50 = vld [vmem:[%s19634_s7 + $0x338] sm:$0xff] }
 0x92e   :  { %6757 = vmatpush1.bf16.msra.mxu1 %v12663_v2  ;;  %6715 = vmatprep.subr.bf16.mxu0 %v12614_v23  ;;  %v12856_v2 = vcombine.high %v3269_v53, %v3293_v55  ;;  %v3220_v23 = vld [vmem:[%s19634_s7 + $0xc20] sm:$0xff]  ;;  %v2959_v52 = vld [vmem:[%s19634_s7 + $0x3f8] sm:$0xff]  ;;  %v12571_v55 = vcombine.low %v2983_v29, %v3007_v31 }
 0x92f   :  { %6758 = vmatprep.subr.bf16.mxu1 %v12616_v27  ;;  %v3244_v27 = vld [vmem:[%s19634_s7 + $0xce0] sm:$0xff] }
 0x930   :  { %v12805_v26 = vcombine.low %v3220_v23, %v3244_v27 }
 0x931   :  { %6716 = vmatpush1.bf16.msra.mxu0 %v12613_v6  ;;  %v12806_v6 = vcombine.high %v3220_v23, %v3244_v27  ;;  %v2887_v23 = vld [vmem:[%s19634_s7 + $0x1b8] sm:$0xff] }
 0x932   :  { %6759 = vmatpush1.bf16.msra.mxu1 %v12615_v7  ;;  %6717 = vmatprep.subr.bf16.mxu0 %v12566_v8  ;;  %v12808_v7 = vcombine.high %v3221_v61, %v3245_v24  ;;  %v3174_v8 = vld [vmem:[%s19634_s7 + $0xab0] sm:$0xff]  ;;  %v2911_v27 = vld [vmem:[%s19634_s7 + $0x278] sm:$0xff]  ;;  %v12523_v24 = vcombine.low %v2935_v50, %v2959_v52 }
 0x933   :  { %6760 = vmatprep.subr.bf16.mxu1 %v12568_v9  ;;  %v3198_v9 = vld [vmem:[%s19634_s7 + $0xb70] sm:$0xff] }
 0x934   :  { %v12761_v18 = vcombine.low %v3174_v8, %v3198_v9 }
 0x935   :  { %6718 = vmatpush1.bf16.msra.mxu0 %v12565_v32  ;;  %v12762_v32 = vcombine.high %v3174_v8, %v3198_v9  ;;  %v2839_v8 = vld [vmem:[%s19634_s7 + $0x38] sm:$0xff] }
 0x936   :  { %6761 = vmatpush1.bf16.msra.mxu1 %v12567_v12  ;;  %6719 = vmatprep.subr.bf16.mxu0 %v12518_v13  ;;  %v12764_v12 = vcombine.high %v3175_v10, %v3199_v11  ;;  %v3126_v13 = vld [vmem:[%s19634_s7 + $0x930] sm:$0xff]  ;;  %v2863_v9 = vld [vmem:[%s19634_s7 + $0xf8] sm:$0xff]  ;;  %v12475_v11 = vcombine.low %v2887_v23, %v2911_v27 }
 0x937   :  { %6762 = vmatprep.subr.bf16.mxu1 %v12520_v15  ;;  %v3150_v15 = vld [vmem:[%s19634_s7 + $0x9f0] sm:$0xff] }
 0x938   :  { %v12713_v60 = vcombine.low %v3126_v13, %v3150_v15 }
 0x939   :  { %6720 = vmatpush1.bf16.msra.mxu0 %v12517_v21  ;;  %v12714_v21 = vcombine.high %v3126_v13, %v3150_v15  ;;  %v3367_v13 = vld [vmem:[%s19634_s7 + $0x10b8] sm:$0xff] }
 0x93a   :  { %6763 = vmatpush1.bf16.msra.mxu1 %v12519_v56  ;;  %6721 = vmatprep.subr.bf16.mxu0 %v12470_v22  ;;  %v3078_v56 = vld [vmem:[%s19634_s7 + $0x7b0] sm:$0xff]  ;;  %v3391_v15 = vld [vmem:[%s19634_s7 + $0x1178] sm:$0xff] }
 0x93b   :  { %6764 = vmatprep.subr.bf16.mxu1 %v12472_v25  ;;  %v3102_v22 = vld [vmem:[%s19634_s7 + $0x870] sm:$0xff]  ;;  %v12716_v25 = vcombine.high %v3127_v19, %v3151_v20  ;;  %v12427_v19 = vcombine.low %v2839_v8, %v2863_v9 }
 0x93c   :  { %v12665_v38 = vcombine.low %v3078_v56, %v3102_v22 }
 0x93d   :  { %6722 = vmatpush1.bf16.msra.mxu0 %v12469_v39  ;;  %v12666_v39 = vcombine.high %v3078_v56, %v3102_v22  ;;  %v3342_v56 = vld [vmem:[%s19634_s7 + $0xff0] sm:$0xff]  ;;  %v3319_v22 = vld [vmem:[%s19634_s7 + $0xf38] sm:$0xff] }
 0x93e   :  { %6765 = vmatpush1.bf16.msra.mxu1 %v12471_v62  ;;  %6723 = vmatprep.subr.bf16.mxu0 %v12422_v33  ;;  %v12668_v62 = vcombine.high %v3079_v63, %v3103_v14  ;;  %v3030_v33 = vld [vmem:[%s19634_s7 + $0x630] sm:$0xff]  ;;  %v12955_v14 = vcombine.low %v3367_v13, %v3391_v15 }
 0x93f   :  { %6766 = vmatprep.subr.bf16.mxu1 %v12424_v34  ;;  %v3054_v34 = vld [vmem:[%s19634_s7 + $0x6f0] sm:$0xff] }
 0x940   :  { %v12617_v37 = vcombine.low %v3030_v33, %v3054_v34 }
 0x941   :  { %6724 = vmatpush1.bf16.msra.mxu0 %v12421_v41  ;;  %v12618_v41 = vcombine.high %v3030_v33, %v3054_v34  ;;  %v3271_v33 = vld [vmem:[%s19634_s7 + $0xdb8] sm:$0xff] }
 0x942   :  { %6767 = vmatpush1.bf16.msra.mxu1 %v12423_v42  ;;  %6733 = vmatprep.subr.bf16.mxu0 %v12950_v43  ;;  %v12620_v42 = vcombine.high %v3031_v35, %v3055_v36  ;;  %v2982_v43 = vld [vmem:[%s19634_s7 + $0x4b0] sm:$0xff]  ;;  %v3295_v34 = vld [vmem:[%s19634_s7 + $0xe78] sm:$0xff] }
 0x943   :  { %6776 = vmatprep.subr.bf16.mxu1 %v12952_v44  ;;  %v3006_v44 = vld [vmem:[%s19634_s7 + $0x570] sm:$0xff] }
 0x944   :  { %v12569_v53 = vcombine.low %v2982_v43, %v3006_v44 }
 0x945   :  { %6734 = vmatpush2.bf16.msra.mxu0 %v12949_v46  ;;  %v12570_v46 = vcombine.high %v2982_v43, %v3006_v44  ;;  %v3223_v43 = vld [vmem:[%s19634_s7 + $0xc38] sm:$0xff] }
 0x946   :  { %6777 = vmatpush2.bf16.msra.mxu1 %v12951_v47  ;;  %6735 = vmatprep.subr.bf16.mxu0 %v12902_v48  ;;  %v12572_v47 = vcombine.high %v2983_v29, %v3007_v31  ;;  %v2934_v48 = vld [vmem:[%s19634_s7 + $0x330] sm:$0xff]  ;;  %v3247_v44 = vld [vmem:[%s19634_s7 + $0xcf8] sm:$0xff]  ;;  %v12859_v31 = vcombine.low %v3271_v33, %v3295_v34 }
 0x947   :  { %6778 = vmatprep.subr.bf16.mxu1 %v12904_v49  ;;  %v2958_v49 = vld [vmem:[%s19634_s7 + $0x3f0] sm:$0xff] }
 0x948   :  { %v12521_v61 = vcombine.low %v2934_v48, %v2958_v49 }
 0x949   :  { %6736 = vmatpush2.bf16.msra.mxu0 %v12901_v57  ;;  %v12522_v57 = vcombine.high %v2934_v48, %v2958_v49  ;;  %v3177_v48 = vld [vmem:[%s19634_s7 + $0xac8] sm:$0xff] }
 0x94a   :  { %6779 = vmatpush2.bf16.msra.mxu1 %v12903_v59  ;;  %6737 = vmatprep.subr.bf16.mxu0 %v12854_v1  ;;  %v12524_v59 = vcombine.high %v2935_v50, %v2959_v52  ;;  %v2886_v1 = vld [vmem:[%s19634_s7 + $0x1b0] sm:$0xff]  ;;  %v3201_v49 = vld [vmem:[%s19634_s7 + $0xb88] sm:$0xff]  ;;  %v12811_v52 = vcombine.low %v3223_v43, %v3247_v44 }
 0x94b   :  { %6780 = vmatprep.subr.bf16.mxu1 %v12856_v2  ;;  %v2910_v2 = vld [vmem:[%s19634_s7 + $0x270] sm:$0xff] }
 0x94c   :  { %v12473_v10 = vcombine.low %v2886_v1, %v2910_v2 }
 0x94d   :  { %6738 = vmatpush2.bf16.msra.mxu0 %v12853_v4  ;;  %v12474_v4 = vcombine.high %v2886_v1, %v2910_v2  ;;  %v3129_v2 = vld [vmem:[%s19634_s7 + $0x948] sm:$0xff] }
 0x94e   :  { %6781 = vmatpush2.bf16.msra.mxu1 %v12855_v5  ;;  %6739 = vmatprep.subr.bf16.mxu0 %v12806_v6  ;;  %v12476_v5 = vcombine.high %v2887_v23, %v2911_v27  ;;  %v2838_v6 = vld [vmem:[%s19634_s7 + $0x30] sm:$0xff]  ;;  %v3153_v23 = vld [vmem:[%s19634_s7 + $0xa08] sm:$0xff]  ;;  %v12767_v27 = vcombine.low %v3177_v48, %v3201_v49 }
 0x94f   :  { %6782 = vmatprep.subr.bf16.mxu1 %v12808_v7  ;;  %v2862_v7 = vld [vmem:[%s19634_s7 + $0xf0] sm:$0xff] }
 0x951   :  { %6740 = vmatpush2.bf16.msra.mxu0 %v12805_v26  ;;  %v12426_v26 = vcombine.high %v2838_v6, %v2862_v7 }
 0x952   :  { %6783 = vmatpush2.bf16.msra.mxu1 %v12807_v0  ;;  %6795 = vmatprep.subr.bf16.mxu0 %v12762_v32  ;;  %v12428_v0 = vcombine.high %v2839_v8, %v2863_v9  ;;  %v3366_v32 = vld [vmem:[%s19634_s7 + $0x10b0] sm:$0xff]  ;;  %v12719_v9 = vcombine.low %v3129_v2, %v3153_v23 }
 0x953   :  { %6838 = vmatprep.subr.bf16.mxu1 %v12764_v12  ;;  %v3390_v12 = vld [vmem:[%s19634_s7 + $0x1170] sm:$0xff] }
 0x954   :  { %6742 = vmatmul.mubr.bf16.vlgmr.msra.gmra.mxu0 %v16376_v54  ;;  %v12954_v20 = vcombine.high %v3366_v32, %v3390_v12  ;;  %v12953_v63 = vcombine.low %v3366_v32, %v3390_v12  ;;  %v3033_v32 = vld [vmem:[%s19634_s7 + $0x648] sm:$0xff] }
 0x955   :  { %6785 = vmatmul.mubr.bf16.vlgmr.msra.gmra.mxu1 %v16376_v54  ;;  %6796 = vmatpush1.bf16.msra.mxu0 %v12761_v18  ;;  %v12425_v18 = vcombine.low %v2838_v6, %v2862_v7  ;;  %v3081_v6 = vld [vmem:[%s19634_s7 + $0x7c8] sm:$0xff] }
 0x956   :  { %12995 = vmatprep.mubr.msk.bf16.mxu0 %vm2441_vm3, %v16374_v3  ;;  %6839 = vmatpush1.bf16.msra.mxu1 %v12763_v28  ;;  %v12956_v28 = vcombine.high %v3367_v13, %v3391_v15  ;;  %v3105_v7 = vld [vmem:[%s19634_s7 + $0x888] sm:$0xff] }
 0x957   :  { %12996 = vmatprep.mubr.msk.bf16.mxu1 %vm2441_vm3, %v16374_v3  ;;  %6797 = vmatprep.subr.bf16.mxu0 %v12714_v21  ;;  %v3318_v21 = vld [vmem:[%s19634_s7 + $0xf30] sm:$0xff]  ;;  %v3057_v12 = vld [vmem:[%s19634_s7 + $0x708] sm:$0xff]  ;;  %v12671_v15 = vcombine.low %v3081_v6, %v3105_v7 }
 0x958   :  { %6840 = vmatprep.subr.bf16.mxu1 %v12716_v25  ;;  %v3343_v25 = vld [vmem:[%s19634_s7 + $0xff8] sm:$0xff]  ;;  %v12905_v35 = vcombine.low %v3318_v21, %v3342_v56 }
 0x959   :  { %6798 = vmatpush1.bf16.msra.mxu0 %v12713_v60  ;;  %v12906_v60 = vcombine.high %v3318_v21, %v3342_v56  ;;  %v12907_v36 = vcombine.low %v3319_v22, %v3343_v25  ;;  %v2985_v21 = vld [vmem:[%s19634_s7 + $0x4c8] sm:$0xff] }
 0x95a   :  { %6841 = vmatpush1.bf16.msra.mxu1 %v12715_v30  ;;  %6799 = vmatprep.subr.bf16.mxu0 %v12666_v39  ;;  %v12908_v30 = vcombine.high %v3319_v22, %v3343_v25  ;;  %v3270_v39 = vld [vmem:[%s19634_s7 + $0xdb0] sm:$0xff]  ;;  %v3009_v56 = vld [vmem:[%s19634_s7 + $0x588] sm:$0xff]  ;;  %v12623_v25 = vcombine.low %v3033_v32, %v3057_v12 }
 0x95b   :  { %6842 = vmatprep.subr.bf16.mxu1 %v12668_v62  ;;  %v3294_v62 = vld [vmem:[%s19634_s7 + $0xe70] sm:$0xff] }
 0x95c   :  { %v12857_v29 = vcombine.low %v3270_v39, %v3294_v62 }
 0x95d   :  { %6800 = vmatpush1.bf16.msra.mxu0 %v12665_v38  ;;  %v12858_v38 = vcombine.high %v3270_v39, %v3294_v62  ;;  %v2937_v39 = vld [vmem:[%s19634_s7 + $0x348] sm:$0xff] }
 0x95e   :  { %6843 = vmatpush1.bf16.msra.mxu1 %v12667_v40  ;;  %6801 = vmatprep.subr.bf16.mxu0 %v12618_v41  ;;  %v12860_v40 = vcombine.high %v3271_v33, %v3295_v34  ;;  %v3222_v41 = vld [vmem:[%s19634_s7 + $0xc30] sm:$0xff]  ;;  %v2961_v62 = vld [vmem:[%s19634_s7 + $0x408] sm:$0xff]  ;;  %v12575_v34 = vcombine.low %v2985_v21, %v3009_v56 }
 0x95f   :  { %6844 = vmatprep.subr.bf16.mxu1 %v12620_v42  ;;  %v3246_v42 = vld [vmem:[%s19634_s7 + $0xcf0] sm:$0xff] }
 0x960   :  { %v12809_v50 = vcombine.low %v3222_v41, %v3246_v42 }
 0x961   :  { %6802 = vmatpush1.bf16.msra.mxu0 %v12617_v37  ;;  %v12810_v37 = vcombine.high %v3222_v41, %v3246_v42  ;;  %v2889_v41 = vld [vmem:[%s19634_s7 + $0x1c8] sm:$0xff] }
 0x962   :  { %6845 = vmatpush1.bf16.msra.mxu1 %v12619_v45  ;;  %6803 = vmatprep.subr.bf16.mxu0 %v12570_v46  ;;  %v12812_v45 = vcombine.high %v3223_v43, %v3247_v44  ;;  %v3176_v46 = vld [vmem:[%s19634_s7 + $0xac0] sm:$0xff]  ;;  %v2913_v42 = vld [vmem:[%s19634_s7 + $0x288] sm:$0xff]  ;;  %v12527_v44 = vcombine.low %v2937_v39, %v2961_v62 }
 0x963   :  { %6846 = vmatprep.subr.bf16.mxu1 %v12572_v47  ;;  %v3200_v47 = vld [vmem:[%s19634_s7 + $0xb80] sm:$0xff] }
 0x964   :  { %v12765_v1 = vcombine.low %v3176_v46, %v3200_v47 }
 0x965   :  { %6804 = vmatpush1.bf16.msra.mxu0 %v12569_v53  ;;  %v12766_v53 = vcombine.high %v3176_v46, %v3200_v47  ;;  %v2841_v46 = vld [vmem:[%s19634_s7 + $0x48] sm:$0xff] }
 0x966   :  { %6847 = vmatpush1.bf16.msra.mxu1 %v12571_v55  ;;  %6805 = vmatprep.subr.bf16.mxu0 %v12522_v57  ;;  %v12768_v55 = vcombine.high %v3177_v48, %v3201_v49  ;;  %v3128_v57 = vld [vmem:[%s19634_s7 + $0x940] sm:$0xff]  ;;  %v2865_v47 = vld [vmem:[%s19634_s7 + $0x108] sm:$0xff]  ;;  %v12479_v49 = vcombine.low %v2889_v41, %v2913_v42 }
 0x967   :  { %6848 = vmatprep.subr.bf16.mxu1 %v12524_v59  ;;  %v3152_v59 = vld [vmem:[%s19634_s7 + $0xa00] sm:$0xff] }
 0x968   :  { %v12717_v8 = vcombine.low %v3128_v57, %v3152_v59 }
 0x969   :  { %6806 = vmatpush1.bf16.msra.mxu0 %v12521_v61  ;;  %v12718_v61 = vcombine.high %v3128_v57, %v3152_v59  ;;  %v3369_v57 = vld [vmem:[%s19634_s7 + $0x10c8] sm:$0xff] }
 0x96a   :  { %6849 = vmatpush1.bf16.msra.mxu1 %v12523_v24  ;;  %6807 = vmatprep.subr.bf16.mxu0 %v12474_v4  ;;  %v3080_v24 = vld [vmem:[%s19634_s7 + $0x7c0] sm:$0xff]  ;;  %v3393_v59 = vld [vmem:[%s19634_s7 + $0x1188] sm:$0xff] }
 0x96b   :  { %6850 = vmatprep.subr.bf16.mxu1 %v12476_v5  ;;  %v3104_v4 = vld [vmem:[%s19634_s7 + $0x880] sm:$0xff]  ;;  %v12720_v5 = vcombine.high %v3129_v2, %v3153_v23  ;;  %v12431_v2 = vcombine.low %v2841_v46, %v2865_v47 }
 0x96c   :  { %v12669_v13 = vcombine.low %v3080_v24, %v3104_v4 }
 0x96d   :  { %6808 = vmatpush1.bf16.msra.mxu0 %v12473_v10  ;;  %v12670_v10 = vcombine.high %v3080_v24, %v3104_v4  ;;  %v3344_v24 = vld [vmem:[%s19634_s7 + $0x1000] sm:$0xff]  ;;  %v3321_v4 = vld [vmem:[%s19634_s7 + $0xf48] sm:$0xff] }
 0x96e   :  { %6851 = vmatpush1.bf16.msra.mxu1 %v12475_v11  ;;  %6809 = vmatprep.subr.bf16.mxu0 %v12426_v26  ;;  %v12672_v11 = vcombine.high %v3081_v6, %v3105_v7  ;;  %v3032_v26 = vld [vmem:[%s19634_s7 + $0x640] sm:$0xff]  ;;  %v12959_v7 = vcombine.low %v3369_v57, %v3393_v59 }
 0x96f   :  { %6852 = vmatprep.subr.bf16.mxu1 %v12428_v0  ;;  %v3056_v0 = vld [vmem:[%s19634_s7 + $0x700] sm:$0xff] }
 0x970   :  { %v12621_v22 = vcombine.low %v3032_v26, %v3056_v0 }
 0x971   :  { %6810 = vmatpush1.bf16.msra.mxu0 %v12425_v18  ;;  %v12622_v18 = vcombine.high %v3032_v26, %v3056_v0  ;;  %v3273_v26 = vld [vmem:[%s19634_s7 + $0xdc8] sm:$0xff] }
 0x972   :  { %6853 = vmatpush1.bf16.msra.mxu1 %v12427_v19  ;;  %6819 = vmatprep.subr.bf16.mxu0 %v12954_v20  ;;  %v12624_v19 = vcombine.high %v3033_v32, %v3057_v12  ;;  %v2984_v20 = vld [vmem:[%s19634_s7 + $0x4c0] sm:$0xff]  ;;  %v3297_v0 = vld [vmem:[%s19634_s7 + $0xe88] sm:$0xff] }
 0x973   :  { %6862 = vmatprep.subr.bf16.mxu1 %v12956_v28  ;;  %v3008_v28 = vld [vmem:[%s19634_s7 + $0x580] sm:$0xff] }
 0x974   :  { %v12573_v33 = vcombine.low %v2984_v20, %v3008_v28 }
 0x975   :  { %6820 = vmatpush2.bf16.msra.mxu0 %v12953_v63  ;;  %v12574_v63 = vcombine.high %v2984_v20, %v3008_v28  ;;  %v3225_v20 = vld [vmem:[%s19634_s7 + $0xc48] sm:$0xff] }
 0x976   :  { %6863 = vmatpush2.bf16.msra.mxu1 %v12955_v14  ;;  %6821 = vmatprep.subr.bf16.mxu0 %v12906_v60  ;;  %v12576_v14 = vcombine.high %v2985_v21, %v3009_v56  ;;  %v2936_v60 = vld [vmem:[%s19634_s7 + $0x340] sm:$0xff]  ;;  %v3249_v28 = vld [vmem:[%s19634_s7 + $0xd08] sm:$0xff]  ;;  %v12863_v56 = vcombine.low %v3273_v26, %v3297_v0 }
 0x977   :  { %6864 = vmatprep.subr.bf16.mxu1 %v12908_v30  ;;  %v2960_v30 = vld [vmem:[%s19634_s7 + $0x400] sm:$0xff] }
 0x978   :  { %v12525_v43 = vcombine.low %v2936_v60, %v2960_v30 }
 0x979   :  { %6822 = vmatpush2.bf16.msra.mxu0 %v12905_v35  ;;  %v12526_v35 = vcombine.high %v2936_v60, %v2960_v30  ;;  %v3179_v60 = vld [vmem:[%s19634_s7 + $0xad8] sm:$0xff] }
 0x97a   :  { %6865 = vmatpush2.bf16.msra.mxu1 %v12907_v36  ;;  %6823 = vmatprep.subr.bf16.mxu0 %v12858_v38  ;;  %v12528_v36 = vcombine.high %v2937_v39, %v2961_v62  ;;  %v2888_v38 = vld [vmem:[%s19634_s7 + $0x1c0] sm:$0xff]  ;;  %v3203_v30 = vld [vmem:[%s19634_s7 + $0xb98] sm:$0xff]  ;;  %v12815_v62 = vcombine.low %v3225_v20, %v3249_v28 }
 0x97b   :  { %6866 = vmatprep.subr.bf16.mxu1 %v12860_v40  ;;  %v2912_v40 = vld [vmem:[%s19634_s7 + $0x280] sm:$0xff] }
 0x97c   :  { %v12477_v48 = vcombine.low %v2888_v38, %v2912_v40 }
 0x97d   :  { %6824 = vmatpush2.bf16.msra.mxu0 %v12857_v29  ;;  %v12478_v29 = vcombine.high %v2888_v38, %v2912_v40  ;;  %v3131_v40 = vld [vmem:[%s19634_s7 + $0x958] sm:$0xff] }
 0x97e   :  { %6867 = vmatpush2.bf16.msra.mxu1 %v12859_v31  ;;  %6825 = vmatprep.subr.bf16.mxu0 %v12810_v37  ;;  %v12480_v31 = vcombine.high %v2889_v41, %v2913_v42  ;;  %v2840_v37 = vld [vmem:[%s19634_s7 + $0x40] sm:$0xff]  ;;  %v3155_v41 = vld [vmem:[%s19634_s7 + $0xa18] sm:$0xff]  ;;  %v12771_v42 = vcombine.low %v3179_v60, %v3203_v30 }
 0x97f   :  { %6868 = vmatprep.subr.bf16.mxu1 %v12812_v45  ;;  %v2864_v45 = vld [vmem:[%s19634_s7 + $0x100] sm:$0xff] }
 0x981   :  { %6826 = vmatpush2.bf16.msra.mxu0 %v12809_v50  ;;  %v12430_v50 = vcombine.high %v2840_v37, %v2864_v45 }
 0x982   :  { %6869 = vmatpush2.bf16.msra.mxu1 %v12811_v52  ;;  %6881 = vmatprep.subr.bf16.mxu0 %v12766_v53  ;;  %v12432_v52 = vcombine.high %v2841_v46, %v2865_v47  ;;  %v3368_v53 = vld [vmem:[%s19634_s7 + $0x10c0] sm:$0xff]  ;;  %v12723_v47 = vcombine.low %v3131_v40, %v3155_v41 }
 0x983   :  { %6924 = vmatprep.subr.bf16.mxu1 %v12768_v55  ;;  %v3392_v55 = vld [vmem:[%s19634_s7 + $0x1180] sm:$0xff] }
 0x984   :  { %6828 = vmatmul.mubr.bf16.vlgmr.msra.gmra.mxu0 %v16376_v54  ;;  %v12958_v23 = vcombine.high %v3368_v53, %v3392_v55  ;;  %v12957_v6 = vcombine.low %v3368_v53, %v3392_v55  ;;  %v3035_v53 = vld [vmem:[%s19634_s7 + $0x658] sm:$0xff] }
 0x985   :  { %6871 = vmatmul.mubr.bf16.vlgmr.msra.gmra.mxu1 %v16376_v54  ;;  %6882 = vmatpush1.bf16.msra.mxu0 %v12765_v1  ;;  %v12429_v1 = vcombine.low %v2840_v37, %v2864_v45  ;;  %v3083_v37 = vld [vmem:[%s19634_s7 + $0x7d8] sm:$0xff] }
 0x986   :  { %12997 = vmatprep.mubr.msk.bf16.mxu0 %vm2441_vm3, %v16374_v3  ;;  %6925 = vmatpush1.bf16.msra.mxu1 %v12767_v27  ;;  %v12960_v27 = vcombine.high %v3369_v57, %v3393_v59  ;;  %v3107_v45 = vld [vmem:[%s19634_s7 + $0x898] sm:$0xff] }
 0x987   :  { %12998 = vmatprep.mubr.msk.bf16.mxu1 %vm2441_vm3, %v16374_v3  ;;  %6883 = vmatprep.subr.bf16.mxu0 %v12718_v61  ;;  %v3320_v61 = vld [vmem:[%s19634_s7 + $0xf40] sm:$0xff]  ;;  %v3059_v55 = vld [vmem:[%s19634_s7 + $0x718] sm:$0xff]  ;;  %v12675_v59 = vcombine.low %v3083_v37, %v3107_v45 }
 0x988   :  { %6926 = vmatprep.subr.bf16.mxu1 %v12720_v5  ;;  %v3345_v5 = vld [vmem:[%s19634_s7 + $0x1008] sm:$0xff]  ;;  %v12909_v32 = vcombine.low %v3320_v61, %v3344_v24 }
 0x989   :  { %6884 = vmatpush1.bf16.msra.mxu0 %v12717_v8  ;;  %v12910_v8 = vcombine.high %v3320_v61, %v3344_v24  ;;  %v12911_v12 = vcombine.low %v3321_v4, %v3345_v5  ;;  %v2987_v61 = vld [vmem:[%s19634_s7 + $0x4d8] sm:$0xff] }
 0x98a   :  { %6927 = vmatpush1.bf16.msra.mxu1 %v12719_v9  ;;  %6885 = vmatprep.subr.bf16.mxu0 %v12670_v10  ;;  %v12912_v9 = vcombine.high %v3321_v4, %v3345_v5  ;;  %v3272_v10 = vld [vmem:[%s19634_s7 + $0xdc0] sm:$0xff]  ;;  %v3011_v24 = vld [vmem:[%s19634_s7 + $0x598] sm:$0xff]  ;;  %v12627_v5 = vcombine.low %v3035_v53, %v3059_v55 }
 0x98b   :  { %6928 = vmatprep.subr.bf16.mxu1 %v12672_v11  ;;  %v3296_v11 = vld [vmem:[%s19634_s7 + $0xe80] sm:$0xff] }
 0x98c   :  { %v12861_v21 = vcombine.low %v3272_v10, %v3296_v11 }
 0x98d   :  { %6886 = vmatpush1.bf16.msra.mxu0 %v12669_v13  ;;  %v12862_v13 = vcombine.high %v3272_v10, %v3296_v11  ;;  %v2939_v10 = vld [vmem:[%s19634_s7 + $0x358] sm:$0xff] }
 0x98e   :  { %6929 = vmatpush1.bf16.msra.mxu1 %v12671_v15  ;;  %6887 = vmatprep.subr.bf16.mxu0 %v12622_v18  ;;  %v12864_v15 = vcombine.high %v3273_v26, %v3297_v0  ;;  %v3224_v18 = vld [vmem:[%s19634_s7 + $0xc40] sm:$0xff]  ;;  %v2963_v11 = vld [vmem:[%s19634_s7 + $0x418] sm:$0xff]  ;;  %v12579_v0 = vcombine.low %v2987_v61, %v3011_v24 }
 0x98f   :  { %6930 = vmatprep.subr.bf16.mxu1 %v12624_v19  ;;  %v3248_v19 = vld [vmem:[%s19634_s7 + $0xd00] sm:$0xff] }
 0x990   :  { %v12813_v39 = vcombine.low %v3224_v18, %v3248_v19 }
 0x991   :  { %6888 = vmatpush1.bf16.msra.mxu0 %v12621_v22  ;;  %v12814_v22 = vcombine.high %v3224_v18, %v3248_v19  ;;  %v2891_v18 = vld [vmem:[%s19634_s7 + $0x1d8] sm:$0xff] }
 0x992   :  { %6931 = vmatpush1.bf16.msra.mxu1 %v12623_v25  ;;  %6889 = vmatprep.subr.bf16.mxu0 %v12574_v63  ;;  %v12816_v25 = vcombine.high %v3225_v20, %v3249_v28  ;;  %v3178_v63 = vld [vmem:[%s19634_s7 + $0xad0] sm:$0xff]  ;;  %v2915_v19 = vld [vmem:[%s19634_s7 + $0x298] sm:$0xff]  ;;  %v12531_v28 = vcombine.low %v2939_v10, %v2963_v11 }
 0x993   :  { %6932 = vmatprep.subr.bf16.mxu1 %v12576_v14  ;;  %v3202_v14 = vld [vmem:[%s19634_s7 + $0xb90] sm:$0xff] }
 0x994   :  { %v12769_v38 = vcombine.low %v3178_v63, %v3202_v14 }
 0x995   :  { %6890 = vmatpush1.bf16.msra.mxu0 %v12573_v33  ;;  %v12770_v33 = vcombine.high %v3178_v63, %v3202_v14  ;;  %v2843_v63 = vld [vmem:[%s19634_s7 + $0x58] sm:$0xff] }
 0x996   :  { %6933 = vmatpush1.bf16.msra.mxu1 %v12575_v34  ;;  %6891 = vmatprep.subr.bf16.mxu0 %v12526_v35  ;;  %v12772_v34 = vcombine.high %v3179_v60, %v3203_v30  ;;  %v3130_v35 = vld [vmem:[%s19634_s7 + $0x950] sm:$0xff]  ;;  %v2867_v14 = vld [vmem:[%s19634_s7 + $0x118] sm:$0xff]  ;;  %v12483_v30 = vcombine.low %v2891_v18, %v2915_v19 }
 0x997   :  { %6934 = vmatprep.subr.bf16.mxu1 %v12528_v36  ;;  %v3154_v36 = vld [vmem:[%s19634_s7 + $0xa10] sm:$0xff] }
 0x998   :  { %v12721_v46 = vcombine.low %v3130_v35, %v3154_v36 }
 0x999   :  { %6892 = vmatpush1.bf16.msra.mxu0 %v12525_v43  ;;  %v12722_v43 = vcombine.high %v3130_v35, %v3154_v36  ;;  %v3371_v35 = vld [vmem:[%s19634_s7 + $0x10d8] sm:$0xff] }
 0x99a   :  { %6935 = vmatpush1.bf16.msra.mxu1 %v12527_v44  ;;  %6893 = vmatprep.subr.bf16.mxu0 %v12478_v29  ;;  %v3082_v44 = vld [vmem:[%s19634_s7 + $0x7d0] sm:$0xff]  ;;  %v3395_v36 = vld [vmem:[%s19634_s7 + $0x1198] sm:$0xff] }
 0x99b   :  { %6936 = vmatprep.subr.bf16.mxu1 %v12480_v31  ;;  %v3106_v29 = vld [vmem:[%s19634_s7 + $0x890] sm:$0xff]  ;;  %v12724_v31 = vcombine.high %v3131_v40, %v3155_v41  ;;  %v12435_v40 = vcombine.low %v2843_v63, %v2867_v14 }
 0x99c   :  { %v12673_v57 = vcombine.low %v3082_v44, %v3106_v29 }
 0x99d   :  { %6894 = vmatpush1.bf16.msra.mxu0 %v12477_v48  ;;  %v12674_v48 = vcombine.high %v3082_v44, %v3106_v29  ;;  %v3346_v44 = vld [vmem:[%s19634_s7 + $0x1010] sm:$0xff]  ;;  %v3323_v29 = vld [vmem:[%s19634_s7 + $0xf58] sm:$0xff] }
 0x99e   :  { %6937 = vmatpush1.bf16.msra.mxu1 %v12479_v49  ;;  %6895 = vmatprep.subr.bf16.mxu0 %v12430_v50  ;;  %v12676_v49 = vcombine.high %v3083_v37, %v3107_v45  ;;  %v3034_v50 = vld [vmem:[%s19634_s7 + $0x650] sm:$0xff]  ;;  %v12963_v45 = vcombine.low %v3371_v35, %v3395_v36 }
 0x99f   :  { %6938 = vmatprep.subr.bf16.mxu1 %v12432_v52  ;;  %v3058_v52 = vld [vmem:[%s19634_s7 + $0x710] sm:$0xff] }
 0x9a0   :  { %v12625_v4 = vcombine.low %v3034_v50, %v3058_v52 }
 0x9a1   :  { %6896 = vmatpush1.bf16.msra.mxu0 %v12429_v1  ;;  %v12626_v1 = vcombine.high %v3034_v50, %v3058_v52  ;;  %v3275_v50 = vld [vmem:[%s19634_s7 + $0xdd8] sm:$0xff] }
 0x9a2   :  { %6939 = vmatpush1.bf16.msra.mxu1 %v12431_v2  ;;  %6905 = vmatprep.subr.bf16.mxu0 %v12958_v23  ;;  %v12628_v2 = vcombine.high %v3035_v53, %v3059_v55  ;;  %v2986_v23 = vld [vmem:[%s19634_s7 + $0x4d0] sm:$0xff]  ;;  %v3299_v52 = vld [vmem:[%s19634_s7 + $0xe98] sm:$0xff] }
 0x9a3   :  { %6948 = vmatprep.subr.bf16.mxu1 %v12960_v27  ;;  %v3010_v27 = vld [vmem:[%s19634_s7 + $0x590] sm:$0xff] }
 0x9a4   :  { %v12577_v26 = vcombine.low %v2986_v23, %v3010_v27 }
 0x9a5   :  { %6906 = vmatpush2.bf16.msra.mxu0 %v12957_v6  ;;  %v12578_v6 = vcombine.high %v2986_v23, %v3010_v27  ;;  %v3227_v23 = vld [vmem:[%s19634_s7 + $0xc58] sm:$0xff] }
 0x9a6   :  { %6949 = vmatpush2.bf16.msra.mxu1 %v12959_v7  ;;  %6907 = vmatprep.subr.bf16.mxu0 %v12910_v8  ;;  %v12580_v7 = vcombine.high %v2987_v61, %v3011_v24  ;;  %v2938_v8 = vld [vmem:[%s19634_s7 + $0x350] sm:$0xff]  ;;  %v3251_v27 = vld [vmem:[%s19634_s7 + $0xd18] sm:$0xff]  ;;  %v12867_v24 = vcombine.low %v3275_v50, %v3299_v52 }
 0x9a7   :  { %6950 = vmatprep.subr.bf16.mxu1 %v12912_v9  ;;  %v2962_v9 = vld [vmem:[%s19634_s7 + $0x410] sm:$0xff] }
 0x9a8   :  { %v12529_v20 = vcombine.low %v2938_v8, %v2962_v9 }
 0x9a9   :  { %6908 = vmatpush2.bf16.msra.mxu0 %v12909_v32  ;;  %v12530_v32 = vcombine.high %v2938_v8, %v2962_v9  ;;  %v3181_v8 = vld [vmem:[%s19634_s7 + $0xae8] sm:$0xff] }
 0x9aa   :  { %6951 = vmatpush2.bf16.msra.mxu1 %v12911_v12  ;;  %6909 = vmatprep.subr.bf16.mxu0 %v12862_v13  ;;  %v12532_v12 = vcombine.high %v2939_v10, %v2963_v11  ;;  %v2890_v13 = vld [vmem:[%s19634_s7 + $0x1d0] sm:$0xff]  ;;  %v3205_v9 = vld [vmem:[%s19634_s7 + $0xba8] sm:$0xff]  ;;  %v12819_v11 = vcombine.low %v3227_v23, %v3251_v27 }
 0x9ab   :  { %6952 = vmatprep.subr.bf16.mxu1 %v12864_v15  ;;  %v2914_v15 = vld [vmem:[%s19634_s7 + $0x290] sm:$0xff] }
 0x9ac   :  { %v12481_v60 = vcombine.low %v2890_v13, %v2914_v15 }
 0x9ad   :  { %6910 = vmatpush2.bf16.msra.mxu0 %v12861_v21  ;;  %v12482_v21 = vcombine.high %v2890_v13, %v2914_v15  ;;  %v3133_v15 = vld [vmem:[%s19634_s7 + $0x968] sm:$0xff] }
 0x9ae   :  { %6953 = vmatpush2.bf16.msra.mxu1 %v12863_v56  ;;  %6911 = vmatprep.subr.bf16.mxu0 %v12814_v22  ;;  %v12484_v56 = vcombine.high %v2891_v18, %v2915_v19  ;;  %v2842_v22 = vld [vmem:[%s19634_s7 + $0x50] sm:$0xff]  ;;  %v3157_v18 = vld [vmem:[%s19634_s7 + $0xa28] sm:$0xff]  ;;  %v12775_v19 = vcombine.low %v3181_v8, %v3205_v9 }
 0x9af   :  { %6954 = vmatprep.subr.bf16.mxu1 %v12816_v25  ;;  %v2866_v25 = vld [vmem:[%s19634_s7 + $0x110] sm:$0xff] }
 0x9b1   :  { %6912 = vmatpush2.bf16.msra.mxu0 %v12813_v39  ;;  %v12434_v39 = vcombine.high %v2842_v22, %v2866_v25 }
 0x9b2   :  { %6955 = vmatpush2.bf16.msra.mxu1 %v12815_v62  ;;  %6967 = vmatprep.subr.bf16.mxu0 %v12770_v33  ;;  %v12436_v62 = vcombine.high %v2843_v63, %v2867_v14  ;;  %v3370_v33 = vld [vmem:[%s19634_s7 + $0x10d0] sm:$0xff]  ;;  %v12727_v14 = vcombine.low %v3133_v15, %v3157_v18 }
 0x9b3   :  { %7010 = vmatprep.subr.bf16.mxu1 %v12772_v34  ;;  %v3394_v34 = vld [vmem:[%s19634_s7 + $0x1190] sm:$0xff] }
 0x9b4   :  { %6914 = vmatmul.mubr.bf16.vlgmr.msra.gmra.mxu0 %v16376_v54  ;;  %v12962_v41 = vcombine.high %v3370_v33, %v3394_v34  ;;  %v12961_v37 = vcombine.low %v3370_v33, %v3394_v34  ;;  %v3037_v33 = vld [vmem:[%s19634_s7 + $0x668] sm:$0xff] }
 0x9b5   :  { %6957 = vmatmul.mubr.bf16.vlgmr.msra.gmra.mxu1 %v16376_v54  ;;  %6968 = vmatpush1.bf16.msra.mxu0 %v12769_v38  ;;  %v12433_v38 = vcombine.low %v2842_v22, %v2866_v25  ;;  %v3085_v22 = vld [vmem:[%s19634_s7 + $0x7e8] sm:$0xff] }
 0x9b6   :  { %12999 = vmatprep.mubr.msk.bf16.mxu0 %vm2441_vm3, %v16374_v3  ;;  %7011 = vmatpush1.bf16.msra.mxu1 %v12771_v42  ;;  %v12964_v42 = vcombine.high %v3371_v35, %v3395_v36  ;;  %v3109_v25 = vld [vmem:[%s19634_s7 + $0x8a8] sm:$0xff] }
 0x9b7   :  { %13000 = vmatprep.mubr.msk.bf16.mxu1 %vm2441_vm3, %v16374_v3  ;;  %6969 = vmatprep.subr.bf16.mxu0 %v12722_v43  ;;  %v3322_v43 = vld [vmem:[%s19634_s7 + $0xf50] sm:$0xff]  ;;  %v3061_v34 = vld [vmem:[%s19634_s7 + $0x728] sm:$0xff]  ;;  %v12679_v36 = vcombine.low %v3085_v22, %v3109_v25 }
 0x9b8   :  { %7012 = vmatprep.subr.bf16.mxu1 %v12724_v31  ;;  %v3347_v31 = vld [vmem:[%s19634_s7 + $0x1018] sm:$0xff]  ;;  %v12913_v53 = vcombine.low %v3322_v43, %v3346_v44 }
 0x9b9   :  { %6970 = vmatpush1.bf16.msra.mxu0 %v12721_v46  ;;  %v12914_v46 = vcombine.high %v3322_v43, %v3346_v44  ;;  %v12915_v55 = vcombine.low %v3323_v29, %v3347_v31  ;;  %v2989_v43 = vld [vmem:[%s19634_s7 + $0x4e8] sm:$0xff] }
 0x9ba   :  { %7013 = vmatpush1.bf16.msra.mxu1 %v12723_v47  ;;  %6971 = vmatprep.subr.bf16.mxu0 %v12674_v48  ;;  %v12916_v47 = vcombine.high %v3323_v29, %v3347_v31  ;;  %v3274_v48 = vld [vmem:[%s19634_s7 + $0xdd0] sm:$0xff]  ;;  %v3013_v44 = vld [vmem:[%s19634_s7 + $0x5a8] sm:$0xff]  ;;  %v12631_v31 = vcombine.low %v3037_v33, %v3061_v34 }
 0x9bb   :  { %7014 = vmatprep.subr.bf16.mxu1 %v12676_v49  ;;  %v3298_v49 = vld [vmem:[%s19634_s7 + $0xe90] sm:$0xff] }
 0x9bc   :  { %v12865_v61 = vcombine.low %v3274_v48, %v3298_v49 }
 0x9bd   :  { %6972 = vmatpush1.bf16.msra.mxu0 %v12673_v57  ;;  %v12866_v57 = vcombine.high %v3274_v48, %v3298_v49  ;;  %v2941_v48 = vld [vmem:[%s19634_s7 + $0x368] sm:$0xff] }
 0x9be   :  { %7015 = vmatpush1.bf16.msra.mxu1 %v12675_v59  ;;  %6973 = vmatprep.subr.bf16.mxu0 %v12626_v1  ;;  %v12868_v59 = vcombine.high %v3275_v50, %v3299_v52  ;;  %v3226_v1 = vld [vmem:[%s19634_s7 + $0xc50] sm:$0xff]  ;;  %v2965_v49 = vld [vmem:[%s19634_s7 + $0x428] sm:$0xff]  ;;  %v12583_v52 = vcombine.low %v2989_v43, %v3013_v44 }
 0x9bf   :  { %7016 = vmatprep.subr.bf16.mxu1 %v12628_v2  ;;  %v3250_v2 = vld [vmem:[%s19634_s7 + $0xd10] sm:$0xff] }
 0x9c0   :  { %v12817_v10 = vcombine.low %v3226_v1, %v3250_v2 }
 0x9c1   :  { %6974 = vmatpush1.bf16.msra.mxu0 %v12625_v4  ;;  %v12818_v4 = vcombine.high %v3226_v1, %v3250_v2  ;;  %v2893_v1 = vld [vmem:[%s19634_s7 + $0x1e8] sm:$0xff] }
 0x9c2   :  { %7017 = vmatpush1.bf16.msra.mxu1 %v12627_v5  ;;  %6975 = vmatprep.subr.bf16.mxu0 %v12578_v6  ;;  %v12820_v5 = vcombine.high %v3227_v23, %v3251_v27  ;;  %v3180_v6 = vld [vmem:[%s19634_s7 + $0xae0] sm:$0xff]  ;;  %v2917_v2 = vld [vmem:[%s19634_s7 + $0x2a8] sm:$0xff]  ;;  %v12535_v27 = vcombine.low %v2941_v48, %v2965_v49 }
 0x9c3   :  { %7018 = vmatprep.subr.bf16.mxu1 %v12580_v7  ;;  %v3204_v7 = vld [vmem:[%s19634_s7 + $0xba0] sm:$0xff] }
 0x9c4   :  { %v12773_v13 = vcombine.low %v3180_v6, %v3204_v7 }
 0x9c5   :  { %6976 = vmatpush1.bf16.msra.mxu0 %v12577_v26  ;;  %v12774_v26 = vcombine.high %v3180_v6, %v3204_v7  ;;  %v2845_v6 = vld [vmem:[%s19634_s7 + $0x68] sm:$0xff] }
 0x9c6   :  { %7019 = vmatpush1.bf16.msra.mxu1 %v12579_v0  ;;  %6977 = vmatprep.subr.bf16.mxu0 %v12530_v32  ;;  %v12776_v0 = vcombine.high %v3181_v8, %v3205_v9  ;;  %v3132_v32 = vld [vmem:[%s19634_s7 + $0x960] sm:$0xff]  ;;  %v2869_v7 = vld [vmem:[%s19634_s7 + $0x128] sm:$0xff]  ;;  %v12487_v9 = vcombine.low %v2893_v1, %v2917_v2 }
 0x9c7   :  { %7020 = vmatprep.subr.bf16.mxu1 %v12532_v12  ;;  %v3156_v12 = vld [vmem:[%s19634_s7 + $0xa20] sm:$0xff] }
 0x9c8   :  { %v12725_v63 = vcombine.low %v3132_v32, %v3156_v12 }
 0x9c9   :  { %6978 = vmatpush1.bf16.msra.mxu0 %v12529_v20  ;;  %v12726_v20 = vcombine.high %v3132_v32, %v3156_v12  ;;  %v3373_v32 = vld [vmem:[%s19634_s7 + $0x10e8] sm:$0xff] }
 0x9ca   :  { %7021 = vmatpush1.bf16.msra.mxu1 %v12531_v28  ;;  %6979 = vmatprep.subr.bf16.mxu0 %v12482_v21  ;;  %v3084_v28 = vld [vmem:[%s19634_s7 + $0x7e0] sm:$0xff]  ;;  %v3397_v12 = vld [vmem:[%s19634_s7 + $0x11a8] sm:$0xff] }
 0x9cb   :  { %7022 = vmatprep.subr.bf16.mxu1 %v12484_v56  ;;  %v3108_v21 = vld [vmem:[%s19634_s7 + $0x8a0] sm:$0xff]  ;;  %v12728_v56 = vcombine.high %v3133_v15, %v3157_v18  ;;  %v12439_v15 = vcombine.low %v2845_v6, %v2869_v7 }
 0x9cc   :  { %v12677_v35 = vcombine.low %v3084_v28, %v3108_v21 }
 0x9cd   :  { %6980 = vmatpush1.bf16.msra.mxu0 %v12481_v60  ;;  %v12678_v60 = vcombine.high %v3084_v28, %v3108_v21  ;;  %v3348_v28 = vld [vmem:[%s19634_s7 + $0x1020] sm:$0xff]  ;;  %v3325_v21 = vld [vmem:[%s19634_s7 + $0xf68] sm:$0xff] }
 0x9ce   :  { %7023 = vmatpush1.bf16.msra.mxu1 %v12483_v30  ;;  %6981 = vmatprep.subr.bf16.mxu0 %v12434_v39  ;;  %v12680_v30 = vcombine.high %v3085_v22, %v3109_v25  ;;  %v3036_v39 = vld [vmem:[%s19634_s7 + $0x660] sm:$0xff]  ;;  %v12967_v25 = vcombine.low %v3373_v32, %v3397_v12 }
 0x9cf   :  { %7024 = vmatprep.subr.bf16.mxu1 %v12436_v62  ;;  %v3060_v62 = vld [vmem:[%s19634_s7 + $0x720] sm:$0xff] }
 0x9d0   :  { %v12629_v29 = vcombine.low %v3036_v39, %v3060_v62 }
 0x9d1   :  { %6982 = vmatpush1.bf16.msra.mxu0 %v12433_v38  ;;  %v12630_v38 = vcombine.high %v3036_v39, %v3060_v62  ;;  %v3277_v39 = vld [vmem:[%s19634_s7 + $0xde8] sm:$0xff] }
 0x9d2   :  { %7025 = vmatpush1.bf16.msra.mxu1 %v12435_v40  ;;  %6991 = vmatprep.subr.bf16.mxu0 %v12962_v41  ;;  %v12632_v40 = vcombine.high %v3037_v33, %v3061_v34  ;;  %v2988_v41 = vld [vmem:[%s19634_s7 + $0x4e0] sm:$0xff]  ;;  %v3301_v62 = vld [vmem:[%s19634_s7 + $0xea8] sm:$0xff] }
 0x9d3   :  { %7034 = vmatprep.subr.bf16.mxu1 %v12964_v42  ;;  %v3012_v42 = vld [vmem:[%s19634_s7 + $0x5a0] sm:$0xff] }
 0x9d4   :  { %v12581_v50 = vcombine.low %v2988_v41, %v3012_v42 }
 0x9d5   :  { %6992 = vmatpush2.bf16.msra.mxu0 %v12961_v37  ;;  %v12582_v37 = vcombine.high %v2988_v41, %v3012_v42  ;;  %v3229_v41 = vld [vmem:[%s19634_s7 + $0xc68] sm:$0xff] }
 0x9d6   :  { %7035 = vmatpush2.bf16.msra.mxu1 %v12963_v45  ;;  %6993 = vmatprep.subr.bf16.mxu0 %v12914_v46  ;;  %v12584_v45 = vcombine.high %v2989_v43, %v3013_v44  ;;  %v2940_v46 = vld [vmem:[%s19634_s7 + $0x360] sm:$0xff]  ;;  %v3253_v42 = vld [vmem:[%s19634_s7 + $0xd28] sm:$0xff]  ;;  %v12871_v44 = vcombine.low %v3277_v39, %v3301_v62 }
 0x9d7   :  { %7036 = vmatprep.subr.bf16.mxu1 %v12916_v47  ;;  %v2964_v47 = vld [vmem:[%s19634_s7 + $0x420] sm:$0xff] }
 0x9d8   :  { %v12533_v23 = vcombine.low %v2940_v46, %v2964_v47 }
 0x9d9   :  { %6994 = vmatpush2.bf16.msra.mxu0 %v12913_v53  ;;  %v12534_v53 = vcombine.high %v2940_v46, %v2964_v47  ;;  %v3183_v46 = vld [vmem:[%s19634_s7 + $0xaf8] sm:$0xff] }
 0x9da   :  { %7037 = vmatpush2.bf16.msra.mxu1 %v12915_v55  ;;  %6995 = vmatprep.subr.bf16.mxu0 %v12866_v57  ;;  %v12536_v55 = vcombine.high %v2941_v48, %v2965_v49  ;;  %v2892_v57 = vld [vmem:[%s19634_s7 + $0x1e0] sm:$0xff]  ;;  %v3207_v47 = vld [vmem:[%s19634_s7 + $0xbb8] sm:$0xff]  ;;  %v12823_v49 = vcombine.low %v3229_v41, %v3253_v42 }
 0x9db   :  { %7038 = vmatprep.subr.bf16.mxu1 %v12868_v59  ;;  %v2916_v59 = vld [vmem:[%s19634_s7 + $0x2a0] sm:$0xff] }
 0x9dc   :  { %v12485_v8 = vcombine.low %v2892_v57, %v2916_v59 }
 0x9dd   :  { %6996 = vmatpush2.bf16.msra.mxu0 %v12865_v61  ;;  %v12486_v61 = vcombine.high %v2892_v57, %v2916_v59  ;;  %v3135_v59 = vld [vmem:[%s19634_s7 + $0x978] sm:$0xff] }
 0x9de   :  { %7039 = vmatpush2.bf16.msra.mxu1 %v12867_v24  ;;  %6997 = vmatprep.subr.bf16.mxu0 %v12818_v4  ;;  %v12488_v24 = vcombine.high %v2893_v1, %v2917_v2  ;;  %v2844_v4 = vld [vmem:[%s19634_s7 + $0x60] sm:$0xff]  ;;  %v3159_v1 = vld [vmem:[%s19634_s7 + $0xa38] sm:$0xff]  ;;  %v12779_v2 = vcombine.low %v3183_v46, %v3207_v47 }
 0x9df   :  { %7040 = vmatprep.subr.bf16.mxu1 %v12820_v5  ;;  %v2868_v5 = vld [vmem:[%s19634_s7 + $0x120] sm:$0xff] }
 0x9e1   :  { %6998 = vmatpush2.bf16.msra.mxu0 %v12817_v10  ;;  %v12438_v10 = vcombine.high %v2844_v4, %v2868_v5 }
 0x9e2   :  { %7041 = vmatpush2.bf16.msra.mxu1 %v12819_v11  ;;  %7053 = vmatprep.subr.bf16.mxu0 %v12774_v26  ;;  %v12440_v11 = vcombine.high %v2845_v6, %v2869_v7  ;;  %v3372_v26 = vld [vmem:[%s19634_s7 + $0x10e0] sm:$0xff]  ;;  %v12731_v7 = vcombine.low %v3135_v59, %v3159_v1 }
 0x9e3   :  { %7096 = vmatprep.subr.bf16.mxu1 %v12776_v0  ;;  %v3396_v0 = vld [vmem:[%s19634_s7 + $0x11a0] sm:$0xff] }
 0x9e4   :  { %7000 = vmatmul.mubr.bf16.vlgmr.msra.gmra.mxu0 %v16376_v54  ;;  %v12966_v18 = vcombine.high %v3372_v26, %v3396_v0  ;;  %v12965_v22 = vcombine.low %v3372_v26, %v3396_v0  ;;  %v3039_v26 = vld [vmem:[%s19634_s7 + $0x678] sm:$0xff] }
 0x9e5   :  { %7043 = vmatmul.mubr.bf16.vlgmr.msra.gmra.mxu1 %v16376_v54  ;;  %7054 = vmatpush1.bf16.msra.mxu0 %v12773_v13  ;;  %v12437_v13 = vcombine.low %v2844_v4, %v2868_v5  ;;  %v3087_v4 = vld [vmem:[%s19634_s7 + $0x7f8] sm:$0xff] }
 0x9e6   :  { %13001 = vmatprep.mubr.msk.bf16.mxu0 %vm2441_vm3, %v16374_v3  ;;  %7097 = vmatpush1.bf16.msra.mxu1 %v12775_v19  ;;  %v12968_v19 = vcombine.high %v3373_v32, %v3397_v12  ;;  %v3111_v5 = vld [vmem:[%s19634_s7 + $0x8b8] sm:$0xff] }
 0x9e7   :  { %13002 = vmatprep.mubr.msk.bf16.mxu1 %vm2441_vm3, %v16374_v3  ;;  %7055 = vmatprep.subr.bf16.mxu0 %v12726_v20  ;;  %v3324_v20 = vld [vmem:[%s19634_s7 + $0xf60] sm:$0xff]  ;;  %v3063_v0 = vld [vmem:[%s19634_s7 + $0x738] sm:$0xff]  ;;  %v12683_v12 = vcombine.low %v3087_v4, %v3111_v5 }
 0x9e8   :  { %7098 = vmatprep.subr.bf16.mxu1 %v12728_v56  ;;  %v3349_v56 = vld [vmem:[%s19634_s7 + $0x1028] sm:$0xff]  ;;  %v12917_v33 = vcombine.low %v3324_v20, %v3348_v28 }
 0x9e9   :  { %7056 = vmatpush1.bf16.msra.mxu0 %v12725_v63  ;;  %v12918_v63 = vcombine.high %v3324_v20, %v3348_v28  ;;  %v12919_v34 = vcombine.low %v3325_v21, %v3349_v56  ;;  %v2991_v20 = vld [vmem:[%s19634_s7 + $0x4f8] sm:$0xff] }
 0x9ea   :  { %7099 = vmatpush1.bf16.msra.mxu1 %v12727_v14  ;;  %7057 = vmatprep.subr.bf16.mxu0 %v12678_v60  ;;  %v12920_v14 = vcombine.high %v3325_v21, %v3349_v56  ;;  %v3276_v60 = vld [vmem:[%s19634_s7 + $0xde0] sm:$0xff]  ;;  %v3015_v28 = vld [vmem:[%s19634_s7 + $0x5b8] sm:$0xff]  ;;  %v12635_v56 = vcombine.low %v3039_v26, %v3063_v0 }
 0x9eb   :  { %7100 = vmatprep.subr.bf16.mxu1 %v12680_v30  ;;  %v3300_v30 = vld [vmem:[%s19634_s7 + $0xea0] sm:$0xff] }
 0x9ec   :  { %v12869_v43 = vcombine.low %v3276_v60, %v3300_v30 }
 0x9ed   :  { %7058 = vmatpush1.bf16.msra.mxu0 %v12677_v35  ;;  %v12870_v35 = vcombine.high %v3276_v60, %v3300_v30  ;;  %v2943_v60 = vld [vmem:[%s19634_s7 + $0x378] sm:$0xff] }
 0x9ee   :  { %7101 = vmatpush1.bf16.msra.mxu1 %v12679_v36  ;;  %7059 = vmatprep.subr.bf16.mxu0 %v12630_v38  ;;  %v12872_v36 = vcombine.high %v3277_v39, %v3301_v62  ;;  %v3228_v38 = vld [vmem:[%s19634_s7 + $0xc60] sm:$0xff]  ;;  %v2967_v30 = vld [vmem:[%s19634_s7 + $0x438] sm:$0xff]  ;;  %v12587_v62 = vcombine.low %v2991_v20, %v3015_v28 }
 0x9ef   :  { %7102 = vmatprep.subr.bf16.mxu1 %v12632_v40  ;;  %v3252_v40 = vld [vmem:[%s19634_s7 + $0xd20] sm:$0xff] }
 0x9f0   :  { %v12821_v48 = vcombine.low %v3228_v38, %v3252_v40 }
 0x9f1   :  { %7060 = vmatpush1.bf16.msra.mxu0 %v12629_v29  ;;  %v12822_v29 = vcombine.high %v3228_v38, %v3252_v40  ;;  %v2895_v38 = vld [vmem:[%s19634_s7 + $0x1f8] sm:$0xff] }
 0x9f2   :  { %7103 = vmatpush1.bf16.msra.mxu1 %v12631_v31  ;;  %7061 = vmatprep.subr.bf16.mxu0 %v12582_v37  ;;  %v12824_v31 = vcombine.high %v3229_v41, %v3253_v42  ;;  %v3182_v37 = vld [vmem:[%s19634_s7 + $0xaf0] sm:$0xff]  ;;  %v2919_v40 = vld [vmem:[%s19634_s7 + $0x2b8] sm:$0xff]  ;;  %v12539_v42 = vcombine.low %v2943_v60, %v2967_v30 }
 0x9f3   :  { %7104 = vmatprep.subr.bf16.mxu1 %v12584_v45  ;;  %v3206_v45 = vld [vmem:[%s19634_s7 + $0xbb0] sm:$0xff] }
 0x9f4   :  { %v12777_v57 = vcombine.low %v3182_v37, %v3206_v45 }
 0x9f5   :  { %7062 = vmatpush1.bf16.msra.mxu0 %v12581_v50  ;;  %v12778_v50 = vcombine.high %v3182_v37, %v3206_v45  ;;  %v2847_v37 = vld [vmem:[%s19634_s7 + $0x78] sm:$0xff] }
 0x9f6   :  { %7105 = vmatpush1.bf16.msra.mxu1 %v12583_v52  ;;  %7063 = vmatprep.subr.bf16.mxu0 %v12534_v53  ;;  %v12780_v52 = vcombine.high %v3183_v46, %v3207_v47  ;;  %v3134_v53 = vld [vmem:[%s19634_s7 + $0x970] sm:$0xff]  ;;  %v2871_v45 = vld [vmem:[%s19634_s7 + $0x138] sm:$0xff]  ;;  %v12491_v47 = vcombine.low %v2895_v38, %v2919_v40 }
 0x9f7   :  { %7106 = vmatprep.subr.bf16.mxu1 %v12536_v55  ;;  %v3158_v55 = vld [vmem:[%s19634_s7 + $0xa30] sm:$0xff] }
 0x9f8   :  { %v12729_v6 = vcombine.low %v3134_v53, %v3158_v55 }
 0x9f9   :  { %7064 = vmatpush1.bf16.msra.mxu0 %v12533_v23  ;;  %v12730_v23 = vcombine.high %v3134_v53, %v3158_v55  ;;  %v3375_v53 = vld [vmem:[%s19634_s7 + $0x10f8] sm:$0xff] }
 0x9fa   :  { %7107 = vmatpush1.bf16.msra.mxu1 %v12535_v27  ;;  %7065 = vmatprep.subr.bf16.mxu0 %v12486_v61  ;;  %v3086_v27 = vld [vmem:[%s19634_s7 + $0x7f0] sm:$0xff]  ;;  %v3399_v55 = vld [vmem:[%s19634_s7 + $0x11b8] sm:$0xff] }
 0x9fb   :  { %7108 = vmatprep.subr.bf16.mxu1 %v12488_v24  ;;  %v3110_v61 = vld [vmem:[%s19634_s7 + $0x8b0] sm:$0xff]  ;;  %v12732_v24 = vcombine.high %v3135_v59, %v3159_v1  ;;  %v12443_v59 = vcombine.low %v2847_v37, %v2871_v45 }
 0x9fc   :  { %v12681_v32 = vcombine.low %v3086_v27, %v3110_v61 }
 0x9fd   :  { %7066 = vmatpush1.bf16.msra.mxu0 %v12485_v8  ;;  %v12682_v8 = vcombine.high %v3086_v27, %v3110_v61  ;;  %v3350_v27 = vld [vmem:[%s19634_s7 + $0x1030] sm:$0xff]  ;;  %v3327_v61 = vld [vmem:[%s19634_s7 + $0xf78] sm:$0xff] }
 0x9fe   :  { %7109 = vmatpush1.bf16.msra.mxu1 %v12487_v9  ;;  %7067 = vmatprep.subr.bf16.mxu0 %v12438_v10  ;;  %v12684_v9 = vcombine.high %v3087_v4, %v3111_v5  ;;  %v3038_v10 = vld [vmem:[%s19634_s7 + $0x670] sm:$0xff]  ;;  %v12971_v5 = vcombine.low %v3375_v53, %v3399_v55 }
 0x9ff   :  { %7110 = vmatprep.subr.bf16.mxu1 %v12440_v11  ;;  %v3062_v11 = vld [vmem:[%s19634_s7 + $0x730] sm:$0xff] }
 0xa00   :  { %v12633_v21 = vcombine.low %v3038_v10, %v3062_v11 }
 0xa01   :  { %7068 = vmatpush1.bf16.msra.mxu0 %v12437_v13  ;;  %v12634_v13 = vcombine.high %v3038_v10, %v3062_v11  ;;  %v3279_v10 = vld [vmem:[%s19634_s7 + $0xdf8] sm:$0xff] }
 0xa02   :  { %7111 = vmatpush1.bf16.msra.mxu1 %v12439_v15  ;;  %7077 = vmatprep.subr.bf16.mxu0 %v12966_v18  ;;  %v12636_v15 = vcombine.high %v3039_v26, %v3063_v0  ;;  %v2990_v18 = vld [vmem:[%s19634_s7 + $0x4f0] sm:$0xff]  ;;  %v3303_v11 = vld [vmem:[%s19634_s7 + $0xeb8] sm:$0xff] }
 0xa03   :  { %7120 = vmatprep.subr.bf16.mxu1 %v12968_v19  ;;  %v3014_v19 = vld [vmem:[%s19634_s7 + $0x5b0] sm:$0xff] }
 0xa04   :  { %v12585_v39 = vcombine.low %v2990_v18, %v3014_v19 }
 0xa05   :  { %7078 = vmatpush2.bf16.msra.mxu0 %v12965_v22  ;;  %v12586_v22 = vcombine.high %v2990_v18, %v3014_v19  ;;  %v3231_v18 = vld [vmem:[%s19634_s7 + $0xc78] sm:$0xff] }
 0xa06   :  { %7121 = vmatpush2.bf16.msra.mxu1 %v12967_v25  ;;  %7079 = vmatprep.subr.bf16.mxu0 %v12918_v63  ;;  %v12588_v25 = vcombine.high %v2991_v20, %v3015_v28  ;;  %v2942_v63 = vld [vmem:[%s19634_s7 + $0x370] sm:$0xff]  ;;  %v3255_v19 = vld [vmem:[%s19634_s7 + $0xd38] sm:$0xff]  ;;  %v12875_v28 = vcombine.low %v3279_v10, %v3303_v11 }
 0xa07   :  { %7122 = vmatprep.subr.bf16.mxu1 %v12920_v14  ;;  %v2966_v14 = vld [vmem:[%s19634_s7 + $0x430] sm:$0xff] }
 0xa08   :  { %v12537_v41 = vcombine.low %v2942_v63, %v2966_v14 }
 0xa09   :  { %7080 = vmatpush2.bf16.msra.mxu0 %v12917_v33  ;;  %v12538_v33 = vcombine.high %v2942_v63, %v2966_v14  ;;  %v3185_v63 = vld [vmem:[%s19634_s7 + $0xb08] sm:$0xff] }
 0xa0a   :  { %7123 = vmatpush2.bf16.msra.mxu1 %v12919_v34  ;;  %7081 = vmatprep.subr.bf16.mxu0 %v12870_v35  ;;  %v12540_v34 = vcombine.high %v2943_v60, %v2967_v30  ;;  %v2894_v35 = vld [vmem:[%s19634_s7 + $0x1f0] sm:$0xff]  ;;  %v3209_v14 = vld [vmem:[%s19634_s7 + $0xbc8] sm:$0xff]  ;;  %v12827_v30 = vcombine.low %v3231_v18, %v3255_v19 }
 0xa0b   :  { %7124 = vmatprep.subr.bf16.mxu1 %v12872_v36  ;;  %v2918_v36 = vld [vmem:[%s19634_s7 + $0x2b0] sm:$0xff] }
 0xa0c   :  { %v12489_v46 = vcombine.low %v2894_v35, %v2918_v36 }
 0xa0d   :  { %7082 = vmatpush2.bf16.msra.mxu0 %v12869_v43  ;;  %v12490_v43 = vcombine.high %v2894_v35, %v2918_v36  ;;  %v3137_v36 = vld [vmem:[%s19634_s7 + $0x988] sm:$0xff] }
 0xa0e   :  { %7125 = vmatpush2.bf16.msra.mxu1 %v12871_v44  ;;  %7083 = vmatprep.subr.bf16.mxu0 %v12822_v29  ;;  %v12492_v44 = vcombine.high %v2895_v38, %v2919_v40  ;;  %v2846_v29 = vld [vmem:[%s19634_s7 + $0x70] sm:$0xff]  ;;  %v3161_v38 = vld [vmem:[%s19634_s7 + $0xa48] sm:$0xff]  ;;  %v12783_v40 = vcombine.low %v3185_v63, %v3209_v14 }
 0xa0f   :  { %7126 = vmatprep.subr.bf16.mxu1 %v12824_v31  ;;  %v2870_v31 = vld [vmem:[%s19634_s7 + $0x130] sm:$0xff] }
 0xa11   :  { %7084 = vmatpush2.bf16.msra.mxu0 %v12821_v48  ;;  %v12442_v48 = vcombine.high %v2846_v29, %v2870_v31 }
 0xa12   :  { %7127 = vmatpush2.bf16.msra.mxu1 %v12823_v49  ;;  %7139 = vmatprep.subr.bf16.mxu0 %v12778_v50  ;;  %v12444_v49 = vcombine.high %v2847_v37, %v2871_v45  ;;  %v3374_v50 = vld [vmem:[%s19634_s7 + $0x10f0] sm:$0xff]  ;;  %v12735_v45 = vcombine.low %v3137_v36, %v3161_v38 }
 0xa13   :  { %7182 = vmatprep.subr.bf16.mxu1 %v12780_v52  ;;  %v3398_v52 = vld [vmem:[%s19634_s7 + $0x11b0] sm:$0xff] }
 0xa14   :  { %7086 = vmatmul.mubr.bf16.vlgmr.msra.gmra.mxu0 %v16376_v54  ;;  %v12970_v1 = vcombine.high %v3374_v50, %v3398_v52  ;;  %v12969_v4 = vcombine.low %v3374_v50, %v3398_v52  ;;  %v3041_v50 = vld [vmem:[%s19634_s7 + $0x688] sm:$0xff] }
 0xa15   :  { %7129 = vmatmul.mubr.bf16.vlgmr.msra.gmra.mxu1 %v16376_v54  ;;  %7140 = vmatpush1.bf16.msra.mxu0 %v12777_v57  ;;  %v12441_v57 = vcombine.low %v2846_v29, %v2870_v31  ;;  %v3089_v29 = vld [vmem:[%s19634_s7 + $0x808] sm:$0xff] }
 0xa16   :  { %13003 = vmatprep.mubr.msk.bf16.mxu0 %vm2441_vm3, %v16374_v3  ;;  %7183 = vmatpush1.bf16.msra.mxu1 %v12779_v2  ;;  %v12972_v2 = vcombine.high %v3375_v53, %v3399_v55  ;;  %v3113_v31 = vld [vmem:[%s19634_s7 + $0x8c8] sm:$0xff] }
 0xa17   :  { %13004 = vmatprep.mubr.msk.bf16.mxu1 %vm2441_vm3, %v16374_v3  ;;  %7141 = vmatprep.subr.bf16.mxu0 %v12730_v23  ;;  %v3326_v23 = vld [vmem:[%s19634_s7 + $0xf70] sm:$0xff]  ;;  %v3065_v52 = vld [vmem:[%s19634_s7 + $0x748] sm:$0xff]  ;;  %v12687_v55 = vcombine.low %v3089_v29, %v3113_v31 }
 0xa18   :  { %7184 = vmatprep.subr.bf16.mxu1 %v12732_v24  ;;  %v3351_v24 = vld [vmem:[%s19634_s7 + $0x1038] sm:$0xff]  ;;  %v12921_v26 = vcombine.low %v3326_v23, %v3350_v27 }
 0xa19   :  { %7142 = vmatpush1.bf16.msra.mxu0 %v12729_v6  ;;  %v12922_v6 = vcombine.high %v3326_v23, %v3350_v27  ;;  %v12923_v0 = vcombine.low %v3327_v61, %v3351_v24  ;;  %v2993_v23 = vld [vmem:[%s19634_s7 + $0x508] sm:$0xff] }
 0xa1a   :  { %7185 = vmatpush1.bf16.msra.mxu1 %v12731_v7  ;;  %7143 = vmatprep.subr.bf16.mxu0 %v12682_v8  ;;  %v12924_v7 = vcombine.high %v3327_v61, %v3351_v24  ;;  %v3278_v8 = vld [vmem:[%s19634_s7 + $0xdf0] sm:$0xff]  ;;  %v3017_v27 = vld [vmem:[%s19634_s7 + $0x5c8] sm:$0xff]  ;;  %v12639_v24 = vcombine.low %v3041_v50, %v3065_v52 }
 0xa1b   :  { %7186 = vmatprep.subr.bf16.mxu1 %v12684_v9  ;;  %v3302_v9 = vld [vmem:[%s19634_s7 + $0xeb0] sm:$0xff] }
 0xa1c   :  { %v12873_v20 = vcombine.low %v3278_v8, %v3302_v9 }
 0xa1d   :  { %7144 = vmatpush1.bf16.msra.mxu0 %v12681_v32  ;;  %v12874_v32 = vcombine.high %v3278_v8, %v3302_v9  ;;  %v2945_v8 = vld [vmem:[%s19634_s7 + $0x388] sm:$0xff] }
 0xa1e   :  { %7187 = vmatpush1.bf16.msra.mxu1 %v12683_v12  ;;  %7145 = vmatprep.subr.bf16.mxu0 %v12634_v13  ;;  %v12876_v12 = vcombine.high %v3279_v10, %v3303_v11  ;;  %v3230_v13 = vld [vmem:[%s19634_s7 + $0xc70] sm:$0xff]  ;;  %v2969_v9 = vld [vmem:[%s19634_s7 + $0x448] sm:$0xff]  ;;  %v12591_v11 = vcombine.low %v2993_v23, %v3017_v27 }
 0xa1f   :  { %7188 = vmatprep.subr.bf16.mxu1 %v12636_v15  ;;  %v3254_v15 = vld [vmem:[%s19634_s7 + $0xd30] sm:$0xff] }
 0xa20   :  { %v12825_v60 = vcombine.low %v3230_v13, %v3254_v15 }
 0xa21   :  { %7146 = vmatpush1.bf16.msra.mxu0 %v12633_v21  ;;  %v12826_v21 = vcombine.high %v3230_v13, %v3254_v15  ;;  %v2897_v13 = vld [vmem:[%s19634_s7 + $0x208] sm:$0xff] }
 0xa22   :  { %7189 = vmatpush1.bf16.msra.mxu1 %v12635_v56  ;;  %7147 = vmatprep.subr.bf16.mxu0 %v12586_v22  ;;  %v12828_v56 = vcombine.high %v3231_v18, %v3255_v19  ;;  %v3184_v22 = vld [vmem:[%s19634_s7 + $0xb00] sm:$0xff]  ;;  %v2921_v15 = vld [vmem:[%s19634_s7 + $0x2c8] sm:$0xff]  ;;  %v12543_v19 = vcombine.low %v2945_v8, %v2969_v9 }
 0xa23   :  { %7190 = vmatprep.subr.bf16.mxu1 %v12588_v25  ;;  %v3208_v25 = vld [vmem:[%s19634_s7 + $0xbc0] sm:$0xff] }
 0xa24   :  { %v12781_v35 = vcombine.low %v3184_v22, %v3208_v25 }
 0xa25   :  { %7148 = vmatpush1.bf16.msra.mxu0 %v12585_v39  ;;  %v12782_v39 = vcombine.high %v3184_v22, %v3208_v25  ;;  %v2849_v22 = vld [vmem:[%s19634_s7 + $0x88] sm:$0xff] }
 0xa26   :  { %7191 = vmatpush1.bf16.msra.mxu1 %v12587_v62  ;;  %7149 = vmatprep.subr.bf16.mxu0 %v12538_v33  ;;  %v12784_v62 = vcombine.high %v3185_v63, %v3209_v14  ;;  %v3136_v33 = vld [vmem:[%s19634_s7 + $0x980] sm:$0xff]  ;;  %v2873_v25 = vld [vmem:[%s19634_s7 + $0x148] sm:$0xff]  ;;  %v12495_v14 = vcombine.low %v2897_v13, %v2921_v15 }
 0xa27   :  { %7192 = vmatprep.subr.bf16.mxu1 %v12540_v34  ;;  %v3160_v34 = vld [vmem:[%s19634_s7 + $0xa40] sm:$0xff] }
 0xa28   :  { %v12733_v37 = vcombine.low %v3136_v33, %v3160_v34 }
 0xa29   :  { %7150 = vmatpush1.bf16.msra.mxu0 %v12537_v41  ;;  %v12734_v41 = vcombine.high %v3136_v33, %v3160_v34  ;;  %v3377_v33 = vld [vmem:[%s19634_s7 + $0x1108] sm:$0xff] }
 0xa2a   :  { %7193 = vmatpush1.bf16.msra.mxu1 %v12539_v42  ;;  %7151 = vmatprep.subr.bf16.mxu0 %v12490_v43  ;;  %v3088_v42 = vld [vmem:[%s19634_s7 + $0x800] sm:$0xff]  ;;  %v3401_v34 = vld [vmem:[%s19634_s7 + $0x11c8] sm:$0xff] }
 0xa2b   :  { %7194 = vmatprep.subr.bf16.mxu1 %v12492_v44  ;;  %v3112_v43 = vld [vmem:[%s19634_s7 + $0x8c0] sm:$0xff]  ;;  %v12736_v44 = vcombine.high %v3137_v36, %v3161_v38  ;;  %v12447_v36 = vcombine.low %v2849_v22, %v2873_v25 }
 0xa2c   :  { %v12685_v53 = vcombine.low %v3088_v42, %v3112_v43 }
 0xa2d   :  { %7152 = vmatpush1.bf16.msra.mxu0 %v12489_v46  ;;  %v12686_v46 = vcombine.high %v3088_v42, %v3112_v43  ;;  %v3352_v42 = vld [vmem:[%s19634_s7 + $0x1040] sm:$0xff]  ;;  %v3329_v43 = vld [vmem:[%s19634_s7 + $0xf88] sm:$0xff] }
 0xa2e   :  { %7195 = vmatpush1.bf16.msra.mxu1 %v12491_v47  ;;  %7153 = vmatprep.subr.bf16.mxu0 %v12442_v48  ;;  %v12688_v47 = vcombine.high %v3089_v29, %v3113_v31  ;;  %v3040_v48 = vld [vmem:[%s19634_s7 + $0x680] sm:$0xff]  ;;  %v12975_v31 = vcombine.low %v3377_v33, %v3401_v34 }
 0xa2f   :  { %7196 = vmatprep.subr.bf16.mxu1 %v12444_v49  ;;  %v3064_v49 = vld [vmem:[%s19634_s7 + $0x740] sm:$0xff] }
 0xa30   :  { %v12637_v61 = vcombine.low %v3040_v48, %v3064_v49 }
 0xa31   :  { %7154 = vmatpush1.bf16.msra.mxu0 %v12441_v57  ;;  %v12638_v57 = vcombine.high %v3040_v48, %v3064_v49  ;;  %v3281_v48 = vld [vmem:[%s19634_s7 + $0xe08] sm:$0xff] }
 0xa32   :  { %7197 = vmatpush1.bf16.msra.mxu1 %v12443_v59  ;;  %7163 = vmatprep.subr.bf16.mxu0 %v12970_v1  ;;  %v12640_v59 = vcombine.high %v3041_v50, %v3065_v52  ;;  %v2992_v1 = vld [vmem:[%s19634_s7 + $0x500] sm:$0xff]  ;;  %v3305_v49 = vld [vmem:[%s19634_s7 + $0xec8] sm:$0xff] }
 0xa33   :  { %7206 = vmatprep.subr.bf16.mxu1 %v12972_v2  ;;  %v3016_v2 = vld [vmem:[%s19634_s7 + $0x5c0] sm:$0xff] }
 0xa34   :  { %v12589_v10 = vcombine.low %v2992_v1, %v3016_v2 }
 0xa35   :  { %7164 = vmatpush2.bf16.msra.mxu0 %v12969_v4  ;;  %v12590_v4 = vcombine.high %v2992_v1, %v3016_v2  ;;  %v3233_v1 = vld [vmem:[%s19634_s7 + $0xc88] sm:$0xff] }
 0xa36   :  { %7207 = vmatpush2.bf16.msra.mxu1 %v12971_v5  ;;  %7165 = vmatprep.subr.bf16.mxu0 %v12922_v6  ;;  %v12592_v5 = vcombine.high %v2993_v23, %v3017_v27  ;;  %v2944_v6 = vld [vmem:[%s19634_s7 + $0x380] sm:$0xff]  ;;  %v3257_v2 = vld [vmem:[%s19634_s7 + $0xd48] sm:$0xff]  ;;  %v12879_v27 = vcombine.low %v3281_v48, %v3305_v49 }
 0xa37   :  { %7208 = vmatprep.subr.bf16.mxu1 %v12924_v7  ;;  %v2968_v7 = vld [vmem:[%s19634_s7 + $0x440] sm:$0xff] }
 0xa38   :  { %v12541_v18 = vcombine.low %v2944_v6, %v2968_v7 }
 0xa39   :  { %7166 = vmatpush2.bf16.msra.mxu0 %v12921_v26  ;;  %v12542_v26 = vcombine.high %v2944_v6, %v2968_v7  ;;  %v3187_v6 = vld [vmem:[%s19634_s7 + $0xb18] sm:$0xff] }
 0xa3a   :  { %7209 = vmatpush2.bf16.msra.mxu1 %v12923_v0  ;;  %7167 = vmatprep.subr.bf16.mxu0 %v12874_v32  ;;  %v12544_v0 = vcombine.high %v2945_v8, %v2969_v9  ;;  %v2896_v32 = vld [vmem:[%s19634_s7 + $0x200] sm:$0xff]  ;;  %v3211_v7 = vld [vmem:[%s19634_s7 + $0xbd8] sm:$0xff]  ;;  %v12831_v9 = vcombine.low %v3233_v1, %v3257_v2 }
 0xa3b   :  { %7210 = vmatprep.subr.bf16.mxu1 %v12876_v12  ;;  %v2920_v12 = vld [vmem:[%s19634_s7 + $0x2c0] sm:$0xff] }
 0xa3c   :  { %v12493_v63 = vcombine.low %v2896_v32, %v2920_v12 }
 0xa3d   :  { %7168 = vmatpush2.bf16.msra.mxu0 %v12873_v20  ;;  %v12494_v20 = vcombine.high %v2896_v32, %v2920_v12  ;;  %v3139_v12 = vld [vmem:[%s19634_s7 + $0x998] sm:$0xff] }
 0xa3e   :  { %7211 = vmatpush2.bf16.msra.mxu1 %v12875_v28  ;;  %7169 = vmatprep.subr.bf16.mxu0 %v12826_v21  ;;  %v12496_v28 = vcombine.high %v2897_v13, %v2921_v15  ;;  %v2848_v21 = vld [vmem:[%s19634_s7 + $0x80] sm:$0xff]  ;;  %v3163_v13 = vld [vmem:[%s19634_s7 + $0xa58] sm:$0xff]  ;;  %v12787_v15 = vcombine.low %v3187_v6, %v3211_v7 }
 0xa3f   :  { %7212 = vmatprep.subr.bf16.mxu1 %v12828_v56  ;;  %v2872_v56 = vld [vmem:[%s19634_s7 + $0x140] sm:$0xff] }
 0xa41   :  { %7170 = vmatpush2.bf16.msra.mxu0 %v12825_v60  ;;  %v12446_v60 = vcombine.high %v2848_v21, %v2872_v56 }
 0xa42   :  { %7213 = vmatpush2.bf16.msra.mxu1 %v12827_v30  ;;  %7225 = vmatprep.subr.bf16.mxu0 %v12782_v39  ;;  %v12448_v30 = vcombine.high %v2849_v22, %v2873_v25  ;;  %v3376_v39 = vld [vmem:[%s19634_s7 + $0x1100] sm:$0xff]  ;;  %v12739_v25 = vcombine.low %v3139_v12, %v3163_v13 }
 0xa43   :  { %7268 = vmatprep.subr.bf16.mxu1 %v12784_v62  ;;  %v3400_v62 = vld [vmem:[%s19634_s7 + $0x11c0] sm:$0xff] }
 0xa44   :  { %7172 = vmatmul.mubr.bf16.vlgmr.msra.gmra.mxu0 %v16376_v54  ;;  %v12974_v38 = vcombine.high %v3376_v39, %v3400_v62  ;;  %v12973_v29 = vcombine.low %v3376_v39, %v3400_v62  ;;  %v3043_v39 = vld [vmem:[%s19634_s7 + $0x698] sm:$0xff] }
 0xa45   :  { %7215 = vmatmul.mubr.bf16.vlgmr.msra.gmra.mxu1 %v16376_v54  ;;  %7226 = vmatpush1.bf16.msra.mxu0 %v12781_v35  ;;  %v12445_v35 = vcombine.low %v2848_v21, %v2872_v56  ;;  %v3091_v21 = vld [vmem:[%s19634_s7 + $0x818] sm:$0xff] }
 0xa46   :  { %13005 = vmatprep.mubr.msk.bf16.mxu0 %vm2441_vm3, %v16374_v3  ;;  %7269 = vmatpush1.bf16.msra.mxu1 %v12783_v40  ;;  %v12976_v40 = vcombine.high %v3377_v33, %v3401_v34  ;;  %v3115_v56 = vld [vmem:[%s19634_s7 + $0x8d8] sm:$0xff] }
 0xa47   :  { %13006 = vmatprep.mubr.msk.bf16.mxu1 %vm2441_vm3, %v16374_v3  ;;  %7227 = vmatprep.subr.bf16.mxu0 %v12734_v41  ;;  %v3328_v41 = vld [vmem:[%s19634_s7 + $0xf80] sm:$0xff]  ;;  %v3067_v62 = vld [vmem:[%s19634_s7 + $0x758] sm:$0xff]  ;;  %v12691_v34 = vcombine.low %v3091_v21, %v3115_v56 }
 0xa48   :  { %7270 = vmatprep.subr.bf16.mxu1 %v12736_v44  ;;  %v3353_v44 = vld [vmem:[%s19634_s7 + $0x1048] sm:$0xff]  ;;  %v12925_v50 = vcombine.low %v3328_v41, %v3352_v42 }
 0xa49   :  { %7228 = vmatpush1.bf16.msra.mxu0 %v12733_v37  ;;  %v12926_v37 = vcombine.high %v3328_v41, %v3352_v42  ;;  %v12927_v52 = vcombine.low %v3329_v43, %v3353_v44  ;;  %v2995_v41 = vld [vmem:[%s19634_s7 + $0x518] sm:$0xff] }
 0xa4a   :  { %7271 = vmatpush1.bf16.msra.mxu1 %v12735_v45  ;;  %7229 = vmatprep.subr.bf16.mxu0 %v12686_v46  ;;  %v12928_v45 = vcombine.high %v3329_v43, %v3353_v44  ;;  %v3280_v46 = vld [vmem:[%s19634_s7 + $0xe00] sm:$0xff]  ;;  %v3019_v42 = vld [vmem:[%s19634_s7 + $0x5d8] sm:$0xff]  ;;  %v12643_v44 = vcombine.low %v3043_v39, %v3067_v62 }
 0xa4b   :  { %7272 = vmatprep.subr.bf16.mxu1 %v12688_v47  ;;  %v3304_v47 = vld [vmem:[%s19634_s7 + $0xec0] sm:$0xff] }
 0xa4c   :  { %v12877_v23 = vcombine.low %v3280_v46, %v3304_v47 }
 0xa4d   :  { %7230 = vmatpush1.bf16.msra.mxu0 %v12685_v53  ;;  %v12878_v53 = vcombine.high %v3280_v46, %v3304_v47  ;;  %v2947_v46 = vld [vmem:[%s19634_s7 + $0x398] sm:$0xff] }
 0xa4e   :  { %7273 = vmatpush1.bf16.msra.mxu1 %v12687_v55  ;;  %7231 = vmatprep.subr.bf16.mxu0 %v12638_v57  ;;  %v12880_v55 = vcombine.high %v3281_v48, %v3305_v49  ;;  %v3232_v57 = vld [vmem:[%s19634_s7 + $0xc80] sm:$0xff]  ;;  %v2971_v47 = vld [vmem:[%s19634_s7 + $0x458] sm:$0xff]  ;;  %v12595_v49 = vcombine.low %v2995_v41, %v3019_v42 }
 0xa4f   :  { %7274 = vmatprep.subr.bf16.mxu1 %v12640_v59  ;;  %v3256_v59 = vld [vmem:[%s19634_s7 + $0xd40] sm:$0xff] }
 0xa50   :  { %v12829_v8 = vcombine.low %v3232_v57, %v3256_v59 }
 0xa51   :  { %7232 = vmatpush1.bf16.msra.mxu0 %v12637_v61  ;;  %v12830_v61 = vcombine.high %v3232_v57, %v3256_v59  ;;  %v2899_v57 = vld [vmem:[%s19634_s7 + $0x218] sm:$0xff] }
 0xa52   :  { %7275 = vmatpush1.bf16.msra.mxu1 %v12639_v24  ;;  %7233 = vmatprep.subr.bf16.mxu0 %v12590_v4  ;;  %v12832_v24 = vcombine.high %v3233_v1, %v3257_v2  ;;  %v3186_v4 = vld [vmem:[%s19634_s7 + $0xb10] sm:$0xff]  ;;  %v2923_v59 = vld [vmem:[%s19634_s7 + $0x2d8] sm:$0xff]  ;;  %v12547_v2 = vcombine.low %v2947_v46, %v2971_v47 }
 0xa53   :  { %7276 = vmatprep.subr.bf16.mxu1 %v12592_v5  ;;  %v3210_v5 = vld [vmem:[%s19634_s7 + $0xbd0] sm:$0xff] }
 0xa54   :  { %v12785_v32 = vcombine.low %v3186_v4, %v3210_v5 }
 0xa55   :  { %7234 = vmatpush1.bf16.msra.mxu0 %v12589_v10  ;;  %v12786_v10 = vcombine.high %v3186_v4, %v3210_v5  ;;  %v2851_v4 = vld [vmem:[%s19634_s7 + $0x98] sm:$0xff] }
 0xa56   :  { %7277 = vmatpush1.bf16.msra.mxu1 %v12591_v11  ;;  %7235 = vmatprep.subr.bf16.mxu0 %v12542_v26  ;;  %v12788_v11 = vcombine.high %v3187_v6, %v3211_v7  ;;  %v3138_v26 = vld [vmem:[%s19634_s7 + $0x990] sm:$0xff]  ;;  %v2875_v5 = vld [vmem:[%s19634_s7 + $0x158] sm:$0xff]  ;;  %v12499_v7 = vcombine.low %v2899_v57, %v2923_v59 }
 0xa57   :  { %7278 = vmatprep.subr.bf16.mxu1 %v12544_v0  ;;  %v3162_v0 = vld [vmem:[%s19634_s7 + $0xa50] sm:$0xff] }
 0xa58   :  { %v12737_v22 = vcombine.low %v3138_v26, %v3162_v0 }
 0xa59   :  { %7236 = vmatpush1.bf16.msra.mxu0 %v12541_v18  ;;  %v12738_v18 = vcombine.high %v3138_v26, %v3162_v0  ;;  %v3379_v26 = vld [vmem:[%s19634_s7 + $0x1118] sm:$0xff] }
 0xa5a   :  { %7279 = vmatpush1.bf16.msra.mxu1 %v12543_v19  ;;  %7237 = vmatprep.subr.bf16.mxu0 %v12494_v20  ;;  %v3090_v19 = vld [vmem:[%s19634_s7 + $0x810] sm:$0xff]  ;;  %v3403_v0 = vld [vmem:[%s19634_s7 + $0x11d8] sm:$0xff] }
 0xa5b   :  { %7280 = vmatprep.subr.bf16.mxu1 %v12496_v28  ;;  %v3114_v20 = vld [vmem:[%s19634_s7 + $0x8d0] sm:$0xff]  ;;  %v12740_v28 = vcombine.high %v3139_v12, %v3163_v13  ;;  %v12451_v12 = vcombine.low %v2851_v4, %v2875_v5 }
 0xa5c   :  { %v12689_v33 = vcombine.low %v3090_v19, %v3114_v20 }
 0xa5d   :  { %7238 = vmatpush1.bf16.msra.mxu0 %v12493_v63  ;;  %v12690_v63 = vcombine.high %v3090_v19, %v3114_v20  ;;  %v3354_v19 = vld [vmem:[%s19634_s7 + $0x1050] sm:$0xff]  ;;  %v3331_v20 = vld [vmem:[%s19634_s7 + $0xf98] sm:$0xff] }
 0xa5e   :  { %7281 = vmatpush1.bf16.msra.mxu1 %v12495_v14  ;;  %7239 = vmatprep.subr.bf16.mxu0 %v12446_v60  ;;  %v12692_v14 = vcombine.high %v3091_v21, %v3115_v56  ;;  %v3042_v60 = vld [vmem:[%s19634_s7 + $0x690] sm:$0xff]  ;;  %v12979_v56 = vcombine.low %v3379_v26, %v3403_v0 }
 0xa5f   :  { %7282 = vmatprep.subr.bf16.mxu1 %v12448_v30  ;;  %v3066_v30 = vld [vmem:[%s19634_s7 + $0x750] sm:$0xff] }
 0xa60   :  { %v12641_v43 = vcombine.low %v3042_v60, %v3066_v30 }
 0xa61   :  { %7240 = vmatpush1.bf16.msra.mxu0 %v12445_v35  ;;  %v12642_v35 = vcombine.high %v3042_v60, %v3066_v30  ;;  %v3283_v60 = vld [vmem:[%s19634_s7 + $0xe18] sm:$0xff] }
 0xa62   :  { %7283 = vmatpush1.bf16.msra.mxu1 %v12447_v36  ;;  %7249 = vmatprep.subr.bf16.mxu0 %v12974_v38  ;;  %v12644_v36 = vcombine.high %v3043_v39, %v3067_v62  ;;  %v2994_v38 = vld [vmem:[%s19634_s7 + $0x510] sm:$0xff]  ;;  %v3307_v30 = vld [vmem:[%s19634_s7 + $0xed8] sm:$0xff] }
 0xa63   :  { %7292 = vmatprep.subr.bf16.mxu1 %v12976_v40  ;;  %v3018_v40 = vld [vmem:[%s19634_s7 + $0x5d0] sm:$0xff] }
 0xa64   :  { %v12593_v48 = vcombine.low %v2994_v38, %v3018_v40 }
 0xa65   :  { %7250 = vmatpush2.bf16.msra.mxu0 %v12973_v29  ;;  %v12594_v29 = vcombine.high %v2994_v38, %v3018_v40  ;;  %v3235_v38 = vld [vmem:[%s19634_s7 + $0xc98] sm:$0xff] }
 0xa66   :  { %7293 = vmatpush2.bf16.msra.mxu1 %v12975_v31  ;;  %7251 = vmatprep.subr.bf16.mxu0 %v12926_v37  ;;  %v12596_v31 = vcombine.high %v2995_v41, %v3019_v42  ;;  %v2946_v37 = vld [vmem:[%s19634_s7 + $0x390] sm:$0xff]  ;;  %v3259_v40 = vld [vmem:[%s19634_s7 + $0xd58] sm:$0xff]  ;;  %v12883_v42 = vcombine.low %v3283_v60, %v3307_v30 }
 0xa67   :  { %7294 = vmatprep.subr.bf16.mxu1 %v12928_v45  ;;  %v2970_v45 = vld [vmem:[%s19634_s7 + $0x450] sm:$0xff] }
 0xa68   :  { %v12545_v1 = vcombine.low %v2946_v37, %v2970_v45 }
 0xa69   :  { %7252 = vmatpush2.bf16.msra.mxu0 %v12925_v50  ;;  %v12546_v50 = vcombine.high %v2946_v37, %v2970_v45  ;;  %v3189_v37 = vld [vmem:[%s19634_s7 + $0xb28] sm:$0xff] }
 0xa6a   :  { %7295 = vmatpush2.bf16.msra.mxu1 %v12927_v52  ;;  %7253 = vmatprep.subr.bf16.mxu0 %v12878_v53  ;;  %v12548_v52 = vcombine.high %v2947_v46, %v2971_v47  ;;  %v2898_v53 = vld [vmem:[%s19634_s7 + $0x210] sm:$0xff]  ;;  %v3213_v45 = vld [vmem:[%s19634_s7 + $0xbe8] sm:$0xff]  ;;  %v12835_v47 = vcombine.low %v3235_v38, %v3259_v40 }
 0xa6b   :  { %7296 = vmatprep.subr.bf16.mxu1 %v12880_v55  ;;  %v2922_v55 = vld [vmem:[%s19634_s7 + $0x2d0] sm:$0xff] }
 0xa6c   :  { %v12497_v6 = vcombine.low %v2898_v53, %v2922_v55 }
 0xa6d   :  { %7254 = vmatpush2.bf16.msra.mxu0 %v12877_v23  ;;  %v12498_v23 = vcombine.high %v2898_v53, %v2922_v55  ;;  %v3141_v55 = vld [vmem:[%s19634_s7 + $0x9a8] sm:$0xff] }
 0xa6e   :  { %7297 = vmatpush2.bf16.msra.mxu1 %v12879_v27  ;;  %7255 = vmatprep.subr.bf16.mxu0 %v12830_v61  ;;  %v12500_v27 = vcombine.high %v2899_v57, %v2923_v59  ;;  %v2850_v61 = vld [vmem:[%s19634_s7 + $0x90] sm:$0xff]  ;;  %v3165_v57 = vld [vmem:[%s19634_s7 + $0xa68] sm:$0xff]  ;;  %v12791_v59 = vcombine.low %v3189_v37, %v3213_v45 }
 0xa6f   :  { %7298 = vmatprep.subr.bf16.mxu1 %v12832_v24  ;;  %v2874_v24 = vld [vmem:[%s19634_s7 + $0x150] sm:$0xff] }
 0xa71   :  { %7256 = vmatpush2.bf16.msra.mxu0 %v12829_v8  ;;  %v12450_v8 = vcombine.high %v2850_v61, %v2874_v24 }
 0xa72   :  { %7299 = vmatpush2.bf16.msra.mxu1 %v12831_v9  ;;  %7311 = vmatprep.subr.bf16.mxu0 %v12786_v10  ;;  %v12452_v9 = vcombine.high %v2851_v4, %v2875_v5  ;;  %v3378_v10 = vld [vmem:[%s19634_s7 + $0x1110] sm:$0xff]  ;;  %v12743_v5 = vcombine.low %v3141_v55, %v3165_v57 }
 0xa73   :  { %7354 = vmatprep.subr.bf16.mxu1 %v12788_v11  ;;  %v3402_v11 = vld [vmem:[%s19634_s7 + $0x11d0] sm:$0xff] }
 0xa74   :  { %7258 = vmatmul.mubr.bf16.vlgmr.msra.gmra.mxu0 %v16376_v54  ;;  %v12978_v13 = vcombine.high %v3378_v10, %v3402_v11  ;;  %v12977_v21 = vcombine.low %v3378_v10, %v3402_v11  ;;  %v3045_v10 = vld [vmem:[%s19634_s7 + $0x6a8] sm:$0xff] }
 0xa75   :  { %7301 = vmatmul.mubr.bf16.vlgmr.msra.gmra.mxu1 %v16376_v54  ;;  %7312 = vmatpush1.bf16.msra.mxu0 %v12785_v32  ;;  %v12449_v32 = vcombine.low %v2850_v61, %v2874_v24  ;;  %v3093_v61 = vld [vmem:[%s19634_s7 + $0x828] sm:$0xff] }
 0xa76   :  { %13007 = vmatprep.mubr.msk.bf16.mxu0 %vm2441_vm3, %v16374_v3  ;;  %7355 = vmatpush1.bf16.msra.mxu1 %v12787_v15  ;;  %v12980_v15 = vcombine.high %v3379_v26, %v3403_v0  ;;  %v3117_v24 = vld [vmem:[%s19634_s7 + $0x8e8] sm:$0xff] }
 0xa77   :  { %13008 = vmatprep.mubr.msk.bf16.mxu1 %vm2441_vm3, %v16374_v3  ;;  %7313 = vmatprep.subr.bf16.mxu0 %v12738_v18  ;;  %v3330_v18 = vld [vmem:[%s19634_s7 + $0xf90] sm:$0xff]  ;;  %v3069_v11 = vld [vmem:[%s19634_s7 + $0x768] sm:$0xff]  ;;  %v12695_v0 = vcombine.low %v3093_v61, %v3117_v24 }
 0xa78   :  { %7356 = vmatprep.subr.bf16.mxu1 %v12740_v28  ;;  %v3355_v28 = vld [vmem:[%s19634_s7 + $0x1058] sm:$0xff]  ;;  %v12929_v39 = vcombine.low %v3330_v18, %v3354_v19 }
 0xa79   :  { %7314 = vmatpush1.bf16.msra.mxu0 %v12737_v22  ;;  %v12930_v22 = vcombine.high %v3330_v18, %v3354_v19  ;;  %v12931_v62 = vcombine.low %v3331_v20, %v3355_v28  ;;  %v2997_v18 = vld [vmem:[%s19634_s7 + $0x528] sm:$0xff] }
 0xa7a   :  { %7357 = vmatpush1.bf16.msra.mxu1 %v12739_v25  ;;  %7315 = vmatprep.subr.bf16.mxu0 %v12690_v63  ;;  %v12932_v25 = vcombine.high %v3331_v20, %v3355_v28  ;;  %v3282_v63 = vld [vmem:[%s19634_s7 + $0xe10] sm:$0xff]  ;;  %v3021_v19 = vld [vmem:[%s19634_s7 + $0x5e8] sm:$0xff]  ;;  %v12647_v28 = vcombine.low %v3045_v10, %v3069_v11 }
 0xa7b   :  { %7358 = vmatprep.subr.bf16.mxu1 %v12692_v14  ;;  %v3306_v14 = vld [vmem:[%s19634_s7 + $0xed0] sm:$0xff] }
 0xa7c   :  { %v12881_v41 = vcombine.low %v3282_v63, %v3306_v14 }
 0xa7d   :  { %7316 = vmatpush1.bf16.msra.mxu0 %v12689_v33  ;;  %v12882_v33 = vcombine.high %v3282_v63, %v3306_v14  ;;  %v2949_v63 = vld [vmem:[%s19634_s7 + $0x3a8] sm:$0xff] }
 0xa7e   :  { %7359 = vmatpush1.bf16.msra.mxu1 %v12691_v34  ;;  %7317 = vmatprep.subr.bf16.mxu0 %v12642_v35  ;;  %v12884_v34 = vcombine.high %v3283_v60, %v3307_v30  ;;  %v3234_v35 = vld [vmem:[%s19634_s7 + $0xc90] sm:$0xff]  ;;  %v2973_v14 = vld [vmem:[%s19634_s7 + $0x468] sm:$0xff]  ;;  %v12599_v30 = vcombine.low %v2997_v18, %v3021_v19 }
 0xa7f   :  { %7360 = vmatprep.subr.bf16.mxu1 %v12644_v36  ;;  %v3258_v36 = vld [vmem:[%s19634_s7 + $0xd50] sm:$0xff] }
 0xa80   :  { %v12833_v46 = vcombine.low %v3234_v35, %v3258_v36 }
 0xa81   :  { %7318 = vmatpush1.bf16.msra.mxu0 %v12641_v43  ;;  %v12834_v43 = vcombine.high %v3234_v35, %v3258_v36  ;;  %v2901_v35 = vld [vmem:[%s19634_s7 + $0x228] sm:$0xff] }
 0xa82   :  { %7361 = vmatpush1.bf16.msra.mxu1 %v12643_v44  ;;  %7319 = vmatprep.subr.bf16.mxu0 %v12594_v29  ;;  %v12836_v44 = vcombine.high %v3235_v38, %v3259_v40  ;;  %v3188_v29 = vld [vmem:[%s19634_s7 + $0xb20] sm:$0xff]  ;;  %v2925_v36 = vld [vmem:[%s19634_s7 + $0x2e8] sm:$0xff]  ;;  %v12551_v40 = vcombine.low %v2949_v63, %v2973_v14 }
 0xa83   :  { %7362 = vmatprep.subr.bf16.mxu1 %v12596_v31  ;;  %v3212_v31 = vld [vmem:[%s19634_s7 + $0xbe0] sm:$0xff] }
 0xa84   :  { %v12789_v53 = vcombine.low %v3188_v29, %v3212_v31 }
 0xa85   :  { %7320 = vmatpush1.bf16.msra.mxu0 %v12593_v48  ;;  %v12790_v48 = vcombine.high %v3188_v29, %v3212_v31  ;;  %v2853_v29 = vld [vmem:[%s19634_s7 + $0xa8] sm:$0xff] }
 0xa86   :  { %7363 = vmatpush1.bf16.msra.mxu1 %v12595_v49  ;;  %7321 = vmatprep.subr.bf16.mxu0 %v12546_v50  ;;  %v12792_v49 = vcombine.high %v3189_v37, %v3213_v45  ;;  %v3140_v50 = vld [vmem:[%s19634_s7 + $0x9a0] sm:$0xff]  ;;  %v2877_v31 = vld [vmem:[%s19634_s7 + $0x168] sm:$0xff]  ;;  %v12503_v45 = vcombine.low %v2901_v35, %v2925_v36 }
 0xa87   :  { %7364 = vmatprep.subr.bf16.mxu1 %v12548_v52  ;;  %v3164_v52 = vld [vmem:[%s19634_s7 + $0xa60] sm:$0xff] }
 0xa88   :  { %v12741_v4 = vcombine.low %v3140_v50, %v3164_v52 }
 0xa89   :  { %7322 = vmatpush1.bf16.msra.mxu0 %v12545_v1  ;;  %v12742_v1 = vcombine.high %v3140_v50, %v3164_v52  ;;  %v3381_v50 = vld [vmem:[%s19634_s7 + $0x1128] sm:$0xff] }
 0xa8a   :  { %7365 = vmatpush1.bf16.msra.mxu1 %v12547_v2  ;;  %7323 = vmatprep.subr.bf16.mxu0 %v12498_v23  ;;  %v3092_v2 = vld [vmem:[%s19634_s7 + $0x820] sm:$0xff]  ;;  %v3405_v52 = vld [vmem:[%s19634_s7 + $0x11e8] sm:$0xff] }
 0xa8b   :  { %7366 = vmatprep.subr.bf16.mxu1 %v12500_v27  ;;  %v3116_v23 = vld [vmem:[%s19634_s7 + $0x8e0] sm:$0xff]  ;;  %v12744_v27 = vcombine.high %v3141_v55, %v3165_v57  ;;  %v12455_v55 = vcombine.low %v2853_v29, %v2877_v31 }
 0xa8c   :  { %v12693_v26 = vcombine.low %v3092_v2, %v3116_v23 }
 0xa8d   :  { %7324 = vmatpush1.bf16.msra.mxu0 %v12497_v6  ;;  %v12694_v6 = vcombine.high %v3092_v2, %v3116_v23  ;;  %v3356_v2 = vld [vmem:[%s19634_s7 + $0x1060] sm:$0xff]  ;;  %v3333_v23 = vld [vmem:[%s19634_s7 + $0xfa8] sm:$0xff] }
 0xa8e   :  { %7367 = vmatpush1.bf16.msra.mxu1 %v12499_v7  ;;  %7325 = vmatprep.subr.bf16.mxu0 %v12450_v8  ;;  %v12696_v7 = vcombine.high %v3093_v61, %v3117_v24  ;;  %v3044_v8 = vld [vmem:[%s19634_s7 + $0x6a0] sm:$0xff]  ;;  %v12983_v24 = vcombine.low %v3381_v50, %v3405_v52 }
 0xa8f   :  { %7368 = vmatprep.subr.bf16.mxu1 %v12452_v9  ;;  %v3068_v9 = vld [vmem:[%s19634_s7 + $0x760] sm:$0xff] }
 0xa90   :  { %v12645_v20 = vcombine.low %v3044_v8, %v3068_v9 }
 0xa91   :  { %7326 = vmatpush1.bf16.msra.mxu0 %v12449_v32  ;;  %v12646_v32 = vcombine.high %v3044_v8, %v3068_v9  ;;  %v3285_v8 = vld [vmem:[%s19634_s7 + $0xe28] sm:$0xff] }
 0xa92   :  { %7369 = vmatpush1.bf16.msra.mxu1 %v12451_v12  ;;  %7335 = vmatprep.subr.bf16.mxu0 %v12978_v13  ;;  %v12648_v12 = vcombine.high %v3045_v10, %v3069_v11  ;;  %v2996_v13 = vld [vmem:[%s19634_s7 + $0x520] sm:$0xff]  ;;  %v3309_v9 = vld [vmem:[%s19634_s7 + $0xee8] sm:$0xff]  ;;  %v17846_v10 = vpop.f32.mrf.mxu0 }
 0xa93   :  { %7378 = vmatprep.subr.bf16.mxu1 %v12980_v15  ;;  %v3020_v15 = vld [vmem:[%s19634_s7 + $0x5e0] sm:$0xff] }
 0xa94   :  { %v12597_v60 = vcombine.low %v2996_v13, %v3020_v15 }
 0xa95   :  { %7336 = vmatpush2.bf16.msra.mxu0 %v12977_v21  ;;  %v12598_v21 = vcombine.high %v2996_v13, %v3020_v15  ;;  %v3236_v13 = vld [vmem:[%s19634_s7 + $0xca0] sm:$0xff] }
 0xa96   :  { %7379 = vmatpush2.bf16.msra.mxu1 %v12979_v56  ;;  %7337 = vmatprep.subr.bf16.mxu0 %v12930_v22  ;;  %v12600_v56 = vcombine.high %v2997_v18, %v3021_v19  ;;  %v2948_v22 = vld [vmem:[%s19634_s7 + $0x3a0] sm:$0xff]  ;;  %v3237_v18 = vld [vmem:[%s19634_s7 + $0xca8] sm:$0xff] }
 0xa97   :  { %7380 = vmatprep.subr.bf16.mxu1 %v12932_v25  ;;  %v2972_v25 = vld [vmem:[%s19634_s7 + $0x460] sm:$0xff]  ;;  %v3261_v19 = vld [vmem:[%s19634_s7 + $0xd68] sm:$0xff] }
 0xa98   :  { %v12549_v38 = vcombine.low %v2948_v22, %v2972_v25  ;;  %v3260_v15 = vld [vmem:[%s19634_s7 + $0xd60] sm:$0xff] }
 0xa99   :  { %7338 = vmatpush2.bf16.msra.mxu0 %v12929_v39  ;;  %v12550_v39 = vcombine.high %v2948_v22, %v2972_v25  ;;  %v12838_v22 = vcombine.high %v3236_v13, %v3260_v15  ;;  %v12840_v25 = vcombine.high %v3237_v18, %v3261_v19 }
 0xa9a   :  { %7381 = vmatpush2.bf16.msra.mxu1 %v12931_v62  ;;  %7339 = vmatprep.subr.bf16.mxu0 %v12882_v33  ;;  %v12552_v62 = vcombine.high %v2949_v63, %v2973_v14  ;;  %v2900_v33 = vld [vmem:[%s19634_s7 + $0x220] sm:$0xff]  ;;  %v3190_v63 = vld [vmem:[%s19634_s7 + $0xb30] sm:$0xff] }
 0xa9b   :  { %7382 = vmatprep.subr.bf16.mxu1 %v12884_v34  ;;  %v2924_v34 = vld [vmem:[%s19634_s7 + $0x2e0] sm:$0xff]  ;;  %v3214_v14 = vld [vmem:[%s19634_s7 + $0xbf0] sm:$0xff] }
 0xa9c   :  { %v12501_v37 = vcombine.low %v2900_v33, %v2924_v34 }
 0xa9d   :  { %7340 = vmatpush2.bf16.msra.mxu0 %v12881_v41  ;;  %v12502_v41 = vcombine.high %v2900_v33, %v2924_v34  ;;  %v12839_v34 = vcombine.low %v3237_v18, %v3261_v19  ;;  %v3022_v18 = vld [vmem:[%s19634_s7 + $0x5f0] sm:$0xff] }
 0xa9e   :  { %7383 = vmatpush2.bf16.msra.mxu1 %v12883_v42  ;;  %7341 = vmatprep.subr.bf16.mxu0 %v12834_v43  ;;  %v12504_v42 = vcombine.high %v2901_v35, %v2925_v36  ;;  %v2852_v43 = vld [vmem:[%s19634_s7 + $0xa0] sm:$0xff]  ;;  %v12794_v35 = vcombine.high %v3190_v63, %v3214_v14  ;;  %v17879_v36 = vsub.s32 3, %v15797_v16 }
 0xa9f   :  { %7384 = vmatprep.subr.bf16.mxu1 %v12836_v44  ;;  %v2876_v44 = vld [vmem:[%s19634_s7 + $0x160] sm:$0xff] }
 0xaa1   :  { %7342 = vmatpush2.bf16.msra.mxu0 %v12833_v46  ;;  %v12454_v46 = vcombine.high %v2852_v43, %v2876_v44 }
 0xaa2   :  { %7385 = vmatpush2.bf16.msra.mxu1 %v12835_v47  ;;  %7397 = vmatprep.subr.bf16.mxu0 %v12790_v48  ;;  %v12456_v47 = vcombine.high %v2853_v29, %v2877_v31  ;;  %v3380_v48 = vld [vmem:[%s19634_s7 + $0x1120] sm:$0xff]  ;;  %v3143_v29 = vld [vmem:[%s19634_s7 + $0x9b8] sm:$0xff] }
 0xaa3   :  { %7440 = vmatprep.subr.bf16.mxu1 %v12792_v49  ;;  %v3404_v49 = vld [vmem:[%s19634_s7 + $0x11e0] sm:$0xff]  ;;  %v3167_v31 = vld [vmem:[%s19634_s7 + $0xa78] sm:$0xff] }
 0xaa4   :  { %7344 = vmatmul.mubr.bf16.vlgmr.msra.gmra.mxu0 %v16376_v54  ;;  %v12982_v57 = vcombine.high %v3380_v48, %v3404_v49  ;;  %v12981_v61 = vcombine.low %v3380_v48, %v3404_v49  ;;  %v3094_v49 = vld [vmem:[%s19634_s7 + $0x830] sm:$0xff] }
 0xaa5   :  { %7387 = vmatmul.mubr.bf16.vlgmr.msra.gmra.mxu1 %v16376_v54  ;;  %7398 = vmatpush1.bf16.msra.mxu0 %v12789_v53  ;;  %v12453_v53 = vcombine.low %v2852_v43, %v2876_v44  ;;  %v12793_v44 = vcombine.low %v3190_v63, %v3214_v14 }
 0xaa6   :  { %13009 = vmatprep.mubr.msk.bf16.mxu0 %vm2441_vm3, %v16374_v3  ;;  %7441 = vmatpush1.bf16.msra.mxu1 %v12791_v59  ;;  %v12984_v59 = vcombine.high %v3381_v50, %v3405_v52  ;;  %v3118_v50 = vld [vmem:[%s19634_s7 + $0x8f0] sm:$0xff] }
 0xaa7   :  { %13010 = vmatprep.mubr.msk.bf16.mxu1 %vm2441_vm3, %v16374_v3  ;;  %7399 = vmatprep.subr.bf16.mxu0 %v12742_v1  ;;  %v3332_v1 = vld [vmem:[%s19634_s7 + $0xfa0] sm:$0xff] }
 0xaa8   :  { %7442 = vmatprep.subr.bf16.mxu1 %v12744_v27  ;;  %v3357_v27 = vld [vmem:[%s19634_s7 + $0x1068] sm:$0xff]  ;;  %v12933_v11 = vcombine.low %v3332_v1, %v3356_v2 }
 0xaa9   :  { %7400 = vmatpush1.bf16.msra.mxu0 %v12741_v4  ;;  %v12934_v4 = vcombine.high %v3332_v1, %v3356_v2 }
 0xaaa   :  { %7443 = vmatpush1.bf16.msra.mxu1 %v12743_v5  ;;  %7401 = vmatprep.subr.bf16.mxu0 %v12694_v6  ;;  %v12936_v5 = vcombine.high %v3333_v23, %v3357_v27  ;;  %v3284_v6 = vld [vmem:[%s19634_s7 + $0xe20] sm:$0xff] }
 0xaab   :  { %7444 = vmatprep.subr.bf16.mxu1 %v12696_v7  ;;  %v3308_v7 = vld [vmem:[%s19634_s7 + $0xee0] sm:$0xff] }
 0xaad   :  { %7402 = vmatpush1.bf16.msra.mxu0 %v12693_v26  ;;  %v17848_v26 = vpop.f32.mrf.mxu1 }
 0xaae   :  { %7445 = vmatpush1.bf16.msra.mxu1 %v12695_v0  ;;  %7403 = vmatprep.subr.bf16.mxu0 %v12646_v32  ;;  %v12935_v0 = vcombine.low %v3333_v23, %v3357_v27  ;;  %v12886_v32 = vcombine.high %v3284_v6, %v3308_v7  ;;  %v12747_v23 = vcombine.low %v3143_v29, %v3167_v31 }
 0xaaf   :  { %7446 = vmatprep.subr.bf16.mxu1 %v12648_v12  ;;  %v12888_v12 = vcombine.high %v3285_v8, %v3309_v9  ;;  %v12698_v27 = vcombine.high %v3094_v49, %v3118_v50 }
 0xab1   :  { %7404 = vmatpush1.bf16.msra.mxu0 %v12645_v20  ;;  %v6573_v20 = vpop.f32.mrf.mxu0 }
 0xab2   :  { %7447 = vmatpush1.bf16.msra.mxu1 %v12647_v28  ;;  %7405 = vmatprep.subr.bf16.mxu0 %v12598_v21  ;;  %v12885_v28 = vcombine.low %v3284_v6, %v3308_v7  ;;  %v6616_v21 = vpop.f32.mrf.mxu1  ;;  %v3047_v7 = vld [vmem:[%s19634_s7 + $0x6b8] sm:$0xff] }
 0xab3   :  { %7448 = vmatprep.subr.bf16.mxu1 %v12600_v56  ;;  %v12887_v56 = vcombine.low %v3285_v8, %v3309_v9  ;;  %v12697_v9 = vcombine.low %v3094_v49, %v3118_v50 }
 0xab4   :  { %v17876_v33 = vpop.f32.mrf.mxu1 }
 0xab5   :  { %7406 = vmatpush1.bf16.msra.mxu0 %v12597_v60  ;;  %v3191_v60 = vld [vmem:[%s19634_s7 + $0xb38] sm:$0xff] }
 0xab6   :  { %7449 = vmatpush1.bf16.msra.mxu1 %v12599_v30  ;;  %7407 = vmatprep.subr.bf16.mxu0 %v12550_v39  ;;  %v3215_v30 = vld [vmem:[%s19634_s7 + $0xbf8] sm:$0xff]  ;;  %v17874_v39 = vpop.f32.mrf.mxu0 }
 0xab7   :  { %7450 = vmatprep.subr.bf16.mxu1 %v12552_v62  ;;  %v12837_v62 = vcombine.low %v3236_v13, %v3260_v15  ;;  %v2998_v15 = vld [vmem:[%s19634_s7 + $0x530] sm:$0xff] }
 0xab8   :  { %v6577_v43 = vpop.f32.mrf.mxu0  ;;  %v12602_v63 = vcombine.high %v2998_v15, %v3022_v18 }
 0xab9   :  { %7408 = vmatpush1.bf16.msra.mxu0 %v12549_v38  ;;  %v12796_v38 = vcombine.high %v3191_v60, %v3215_v30 }
 0xaba   :  { %7451 = vmatpush1.bf16.msra.mxu1 %v12551_v40  ;;  %7409 = vmatprep.subr.bf16.mxu0 %v12502_v41  ;;  %v3142_v40 = vld [vmem:[%s19634_s7 + $0x9b0] sm:$0xff] }
 0xabb   :  { %7452 = vmatprep.subr.bf16.mxu1 %v12504_v42  ;;  %v3166_v41 = vld [vmem:[%s19634_s7 + $0xa70] sm:$0xff]  ;;  %v17890_v42 = vld [vmem:[%s19636_s9 + $0x8] sm:$0xff] }
 0xabc   :  { %v12746_v48 = vcombine.high %v3142_v40, %v3166_v41  ;;  %v12745_v1 = vcombine.low %v3142_v40, %v3166_v41 }
 0xabd   :  { %7410 = vmatpush1.bf16.msra.mxu0 %v12501_v37  ;;  %v3421_v37 = vrot.slane %v17890_v42, %v16000_v51 }
 0xabe   :  { %7453 = vmatpush1.bf16.msra.mxu1 %v12503_v45  ;;  %7411 = vmatprep.subr.bf16.mxu0 %v12454_v46  ;;  %v6620_v45 = vpop.f32.mrf.mxu1  ;;  %v12795_v46 = vcombine.low %v3191_v60, %v3215_v30  ;;  %v2950_v30 = vld [vmem:[%s19634_s7 + $0x3b0] sm:$0xff] }
 0xabf   :  { %7454 = vmatprep.subr.bf16.mxu1 %v12456_v47  ;;  %v3429_v47 = vrot.slane %v17890_v42, %v17879_v36  ;;  %v6578_v52 = vadd.f32 %v6577_v43, %v3421_v37  ;;  %v6574_v2 = vadd.f32 %v6573_v20, %v3421_v37  ;;  %v2999_v20 = vld [vmem:[%s19634_s7 + $0x538] sm:$0xff] }
 0xac0   :  { %v2927_v37 = vld [vmem:[%s19634_s7 + $0x2f8] sm:$0xff] }
 0xac1   :  { %7412 = vmatpush1.bf16.msra.mxu0 %v12453_v53  ;;  %v12748_v53 = vcombine.high %v3143_v29, %v3167_v31  ;;  %v7618_v6 = vsub.f32 0.0, %v6578_v52  ;;  %v2926_v29 = vld [vmem:[%s19634_s7 + $0x2f0] sm:$0xff]  ;;  %v2903_v31 = vld [vmem:[%s19634_s7 + $0x238] sm:$0xff] }
 0xac2   :  { %7455 = vmatpush1.bf16.msra.mxu1 %v12455_v55  ;;  %7421 = vmatprep.subr.bf16.mxu0 %v12982_v57  ;;  %v3095_v55 = vld [vmem:[%s19634_s7 + $0x838] sm:$0xff]  ;;  %v12508_v50 = vcombine.high %v2903_v31, %v2927_v37  ;;  %v2854_v52 = vld [vmem:[%s19634_s7 + $0xb0] sm:$0xff] }
 0xac3   :  { %7464 = vmatprep.subr.bf16.mxu1 %v12984_v59  ;;  %v3119_v57 = vld [vmem:[%s19634_s7 + $0x8f8] sm:$0xff]  ;;  %v6621_v59 = vadd.f32 %v6620_v45, %v3429_v47  ;;  %v7763_v19 = vmul.f32 1.442695, %v7618_v6  ;;  %v17968_v45 = vpop.f32.mrf.mxu0  ;;  %v3425_v6 = vrot.slane %v17890_v42, %v16005_v58 }
 0xac5   :  { %7422 = vmatpush2.bf16.msra.mxu0 %v12981_v61  ;;  %v6617_v61 = vadd.f32 %v6616_v21, %v3429_v47  ;;  %v7620_v8 = vsub.f32 0.0, %v6621_v59  ;;  %14849 = vpow2.f32 %v7763_v19  ;;  %v17970_v47 = vpop.f32.mrf.mxu1  ;;  %v17984_v59 = vpop.f32.mrf.mxu0  ;;  %v18012_v19 = vsub.s32 7, %v15797_v16 }
 0xac6   :  { %7465 = vmatpush2.bf16.msra.mxu1 %v12983_v24  ;;  %7423 = vmatprep.subr.bf16.mxu0 %v12934_v4  ;;  %v12700_v24 = vcombine.high %v3095_v55, %v3119_v57  ;;  %v3046_v4 = vld [vmem:[%s19634_s7 + $0x6b0] sm:$0xff] }
 0xac7   :  { %7466 = vmatprep.subr.bf16.mxu1 %v12936_v5  ;;  %v3070_v5 = vld [vmem:[%s19634_s7 + $0x770] sm:$0xff]  ;;  %v7767_v21 = vmul.f32 1.442695, %v7620_v8 }
 0xac9   :  { %7424 = vmatpush2.bf16.msra.mxu0 %v12933_v11  ;;  %v7570_v11 = vsub.f32 0.0, %v6574_v2  ;;  %14851 = vpow2.f32 %v7767_v21  ;;  %v17986_v2 = vpop.f32.mrf.mxu1  ;;  %v3358_v21 = vld [vmem:[%s19634_s7 + $0x1070] sm:$0xff] }
 0xaca   :  { %7467 = vmatpush2.bf16.msra.mxu1 %v12935_v0  ;;  %7425 = vmatprep.subr.bf16.mxu0 %v12886_v32  ;;  %v12699_v0 = vcombine.low %v3095_v55, %v3119_v57  ;;  %v12650_v32 = vcombine.high %v3046_v4, %v3070_v5  ;;  %v2855_v55 = vld [vmem:[%s19634_s7 + $0xb8] sm:$0xff] }
 0xacb   :  { %7468 = vmatprep.subr.bf16.mxu1 %v12888_v12  ;;  %v7572_v12 = vsub.f32 0.0, %v6617_v61  ;;  %v2879_v57 = vld [vmem:[%s19634_s7 + $0x178] sm:$0xff] }
 0xacc   :  { %v12460_v61 = vcombine.high %v2855_v55, %v2879_v57 }
 0xacd   :  { %7426 = vmatpush2.bf16.msra.mxu0 %v12885_v28  ;;  %v3023_v28 = vld [vmem:[%s19634_s7 + $0x5f8] sm:$0xff]  ;;  %v7671_v14 = vmul.f32 1.442695, %v7572_v12  ;;  %v18009_v12 = vpop.f32.mrf.mxu1 }
 0xace   :  { %7469 = vmatpush2.bf16.msra.mxu1 %v12887_v56  ;;  %7427 = vmatprep.subr.bf16.mxu0 %v12838_v22  ;;  %v12649_v56 = vcombine.low %v3046_v4, %v3070_v5  ;;  %v7667_v22 = vmul.f32 1.442695, %v7570_v11  ;;  %v12604_v60 = vcombine.high %v2999_v20, %v3023_v28  ;;  %v12603_v40 = vcombine.low %v2999_v20, %v3023_v28  ;;  %v3406_v4 = vld [vmem:[%s19634_s7 + $0x11f0] sm:$0xff] }
 0xacf   :  { %7470 = vmatprep.subr.bf16.mxu1 %v12840_v25  ;;  %v3417_v5 = vrot.slane %v17890_v42, %v15800_v17  ;;  %v3334_v28 = vld [vmem:[%s19634_s7 + $0xfb0] sm:$0xff] }
 0xad0   :  { %14853 = vpow2.f32 %v7667_v22 }
 0xad1   :  { %7428 = vmatpush2.bf16.msra.mxu0 %v12837_v62  ;;  %v2974_v62 = vld [vmem:[%s19634_s7 + $0x470] sm:$0xff]  ;;  %14855 = vpow2.f32 %v7671_v14  ;;  %v6572_v22 = vadd.f32 %v17846_v10, %v3417_v5  ;;  %v3335_v14 = vld [vmem:[%s19634_s7 + $0xfb8] sm:$0xff] }
 0xad2   :  { %7471 = vmatpush2.bf16.msra.mxu1 %v12839_v34  ;;  %7483 = vmatprep.subr.bf16.mxu0 %v12794_v35  ;;  %v2951_v34 = vld [vmem:[%s19634_s7 + $0x3b8] sm:$0xff]  ;;  %v12554_v41 = vcombine.high %v2950_v30, %v2974_v62  ;;  %v14850_v8 = vpop.eup %14849 }
 0xad3   :  { %7526 = vmatprep.subr.bf16.mxu1 %v12796_v38  ;;  %v2975_v35 = vld [vmem:[%s19634_s7 + $0x478] sm:$0xff]  ;;  %v12601_v38 = vcombine.low %v2998_v15, %v3022_v18 }
 0xad4   :  { %7430 = vmatmul.mubr.bf16.vlgmr.msra.gmra.mxu0 %v16376_v54  ;;  %v12556_v43 = vcombine.high %v2951_v34, %v2975_v35 }
 0xad5   :  { %7473 = vmatmul.mubr.bf16.vlgmr.msra.gmra.mxu1 %v16376_v54  ;;  %7484 = vmatpush1.bf16.msra.mxu0 %v12793_v44  ;;  %v2902_v44 = vld [vmem:[%s19634_s7 + $0x230] sm:$0xff] }
 0xad6   :  { %13011 = vmatprep.mubr.msk.bf16.mxu0 %vm2441_vm3, %v16374_v3  ;;  %7527 = vmatpush1.bf16.msra.mxu1 %v12795_v46  ;;  %v12553_v46 = vcombine.low %v2950_v30, %v2974_v62  ;;  %v12506_v49 = vcombine.high %v2902_v44, %v2926_v29  ;;  %v6576_v30 = vadd.f32 %v17874_v39, %v3417_v5  ;;  %v3262_v5 = vld [vmem:[%s19634_s7 + $0xd70] sm:$0xff] }
 0xad7   :  { %13012 = vmatprep.mubr.msk.bf16.mxu1 %vm2441_vm3, %v16374_v3  ;;  %7485 = vmatprep.subr.bf16.mxu0 %v12746_v48  ;;  %v3071_v3 = vld [vmem:[%s19634_s7 + $0x778] sm:$0xff]  ;;  %v12555_v48 = vcombine.low %v2951_v34, %v2975_v35 }
 0xad8   :  { %7528 = vmatprep.subr.bf16.mxu1 %v12748_v53  ;;  %v12652_v13 = vcombine.high %v3047_v7, %v3071_v3  ;;  %v12651_v25 = vcombine.low %v3047_v7, %v3071_v3  ;;  %v2878_v53 = vld [vmem:[%s19634_s7 + $0x170] sm:$0xff]  ;;  %v3383_v7 = vld [vmem:[%s19634_s7 + $0x1138] sm:$0xff] }
 0xad9   :  { %7486 = vmatpush1.bf16.msra.mxu0 %v12745_v1  ;;  %v12505_v1 = vcombine.low %v2902_v44, %v2926_v29  ;;  %v3407_v3 = vld [vmem:[%s19634_s7 + $0x11f8] sm:$0xff]  ;;  %v12457_v11 = vcombine.low %v2854_v52, %v2878_v53  ;;  %v6619_v44 = vadd.f32 %v17876_v33, %v3425_v6  ;;  %v3445_v29 = vrot.slane %v17890_v42, %v18012_v19 }
 0xada   :  { %7529 = vmatpush1.bf16.msra.mxu1 %v12747_v23  ;;  %7487 = vmatprep.subr.bf16.mxu0 %v12698_v27  ;;  %v12507_v23 = vcombine.low %v2903_v31, %v2927_v37  ;;  %v12458_v27 = vcombine.high %v2854_v52, %v2878_v53  ;;  %v12988_v20 = vcombine.high %v3383_v7, %v3407_v3  ;;  %v3286_v31 = vld [vmem:[%s19634_s7 + $0xe30] sm:$0xff]  ;;  %v3287_v33 = vld [vmem:[%s19634_s7 + $0xe38] sm:$0xff]  ;;  %v7617_v52 = vsub.f32 0.0, %v6576_v30 }
 0xadb   :  { %7530 = vmatprep.subr.bf16.mxu1 %v12700_v24  ;;  %v3382_v24 = vld [vmem:[%s19634_s7 + $0x1130] sm:$0xff] }
 0xadc   :  { %v12986_v15 = vcombine.high %v3382_v24, %v3406_v4  ;;  %v12985_v35 = vcombine.low %v3382_v24, %v3406_v4  ;;  %v3310_v37 = vld [vmem:[%s19634_s7 + $0xef0] sm:$0xff] }
 0xadd   :  { %7488 = vmatpush1.bf16.msra.mxu0 %v12697_v9  ;;  %v18004_v9 = vpop.f32.mrf.mxu0  ;;  %v3238_v4 = vld [vmem:[%s19634_s7 + $0xcb0] sm:$0xff] }
 0xade   :  { %7531 = vmatpush1.bf16.msra.mxu1 %v12699_v0  ;;  %7489 = vmatprep.subr.bf16.mxu0 %v12650_v32  ;;  %v14852_v0 = vpop.eup %14851  ;;  %v18007_v32 = vsub.s32 5, %v15797_v16 }
 0xadf   :  { %7532 = vmatprep.subr.bf16.mxu1 %v12652_v13  ;;  %v12459_v13 = vcombine.low %v2855_v55, %v2879_v57  ;;  %v14854_v18 = vpop.eup %14853  ;;  %v7908_v62 = vadd.f32 1.0, %v14852_v0  ;;  %v6663_v34 = vpop.f32.mrf.mxu0  ;;  %v12937_v55 = vcombine.low %v3334_v28, %v3358_v21  ;;  %v7761_v0 = vmul.f32 1.442695, %v7617_v52 }
 0xae0   :  { %v3437_v10 = vrot.slane %v17890_v42, %v18007_v32 }
 0xae1   :  { %7490 = vmatpush1.bf16.msra.mxu0 %v12649_v56  ;;  %v14856_v56 = vpop.eup %14855 }
 0xae2   :  { %7533 = vmatpush1.bf16.msra.mxu1 %v12651_v25  ;;  %7491 = vmatprep.subr.bf16.mxu0 %v12602_v63  ;;  %v6615_v25 = vadd.f32 %v17848_v26, %v3425_v6  ;;  %v7906_v63 = vadd.f32 1.0, %v14850_v8  ;;  %v6706_v26 = vpop.f32.mrf.mxu1  ;;  %v6660_v57 = vadd.f32 %v17984_v59, %v3437_v10 }
 0xae3   :  { %7534 = vmatprep.subr.bf16.mxu1 %v12604_v60  ;;  %v3359_v60 = vld [vmem:[%s19634_s7 + $0x1078] sm:$0xff]  ;;  %v6707_v53 = vadd.f32 %v6706_v26, %v3445_v29 }
 0xae4   :  { %v12940_v39 = vcombine.high %v3335_v14, %v3359_v60  ;;  %14857 = vrcp.f32 %v7906_v63 }
 0xae5   :  { %7492 = vmatpush1.bf16.msra.mxu0 %v12601_v38  ;;  %v7858_v38 = vadd.f32 1.0, %v14854_v18  ;;  %14859 = vrcp.f32 %v7908_v62  ;;  %v7624_v8 = vsub.f32 0.0, %v6707_v53  ;;  %v12842_v18 = vcombine.high %v3238_v4, %v3262_v5  ;;  %v14462_v62 = vld [vmem:[%s19635_s8 + $0xf8] sm:$0xff]   ;;  %v14471_v53 = vld [vmem:[%s19635_s8 + $0x28] sm:$0xff]  }
 0xae6   :  { %7535 = vmatpush1.bf16.msra.mxu1 %v12603_v40  ;;  %7493 = vmatprep.subr.bf16.mxu0 %v12554_v41  ;;  %v12987_v40 = vcombine.low %v3383_v7, %v3407_v3  ;;  %v12938_v41 = vcombine.high %v3334_v28, %v3358_v21  ;;  %v3239_v7 = vld [vmem:[%s19634_s7 + $0xcb8] sm:$0xff] }
 0xae7   :  { %7536 = vmatprep.subr.bf16.mxu1 %v12556_v43  ;;  %v7860_v43 = vadd.f32 1.0, %v14856_v56  ;;  %14861 = vrcp.f32 %v7858_v38 }
 0xae9   :  { %7494 = vmatpush1.bf16.msra.mxu0 %v12553_v46  ;;  %v7569_v46 = vsub.f32 0.0, %v6572_v22  ;;  %14863 = vrcp.f32 %v7860_v43  ;;  %v7775_v22 = vmul.f32 1.442695, %v7624_v8 }
 0xaea   :  { %7537 = vmatpush1.bf16.msra.mxu1 %v12555_v48  ;;  %7495 = vmatprep.subr.bf16.mxu0 %v12506_v49  ;;  %v7571_v48 = vsub.f32 0.0, %v6615_v25  ;;  %v6664_v49 = vadd.f32 %v6663_v34, %v3437_v10  ;;  %v12841_v25 = vcombine.low %v3238_v4, %v3262_v5  ;;  %v14464_v10 = vld [vmem:[%s19635_s8 + $0xb8] sm:$0xff]  }
 0xaeb   :  { %7538 = vmatprep.subr.bf16.mxu1 %v12508_v50  ;;  %v3311_v50 = vld [vmem:[%s19634_s7 + $0xef8] sm:$0xff]  ;;  %v7665_v6 = vmul.f32 1.442695, %v7569_v46  ;;  %v14468_v46 = vld [vmem:[%s19635_s8 + $0xb0] sm:$0xff]  }
 0xaec   :  { %v12892_v24 = vcombine.high %v3287_v33, %v3311_v50  ;;  %v7622_v59 = vsub.f32 0.0, %v6664_v49  ;;  %v7669_v3 = vmul.f32 1.442695, %v7571_v48  ;;  %v14469_v48 = vld [vmem:[%s19635_s8 + $0x68] sm:$0xff]   ;;  %v18097_v49 = vsub.s32 4, %v15797_v16 }
 0xaed   :  { %7496 = vmatpush1.bf16.msra.mxu0 %v12505_v1  ;;  %v12939_v1 = vcombine.low %v3335_v14, %v3359_v60  ;;  %14865 = vpow2.f32 %v7665_v6  ;;  %v14461_v60 = vld [vmem:[%s19635_s8 + $0x78] sm:$0xff]  }
 0xaee   :  { %7539 = vmatpush1.bf16.msra.mxu1 %v12507_v23  ;;  %7497 = vmatprep.subr.bf16.mxu0 %v12458_v27  ;;  %v12890_v23 = vcombine.high %v3286_v31, %v3310_v37  ;;  %v7619_v27 = vsub.f32 0.0, %v6619_v44  ;;  %v7771_v56 = vmul.f32 1.442695, %v7622_v59  ;;  %14867 = vpow2.f32 %v7669_v3  ;;  %v14466_v44 = vld [vmem:[%s19635_s8 + $0xf0] sm:$0xff]  }
 0xaef   :  { %7540 = vmatprep.subr.bf16.mxu1 %v12460_v61  ;;  %v6703_v61 = vadd.f32 %v17986_v2, %v3445_v29  ;;  %v3263_v2 = vld [vmem:[%s19634_s7 + $0xd78] sm:$0xff]  ;;  %14869 = vpow2.f32 %v7761_v0  ;;  %v18079_v29 = vpop.f32.mrf.mxu0  ;;  %v3433_v4 = vrot.slane %v17890_v42, %v18097_v49  ;;  %v14476_v0 = vld [vmem:[%s19635_s8 + $0xa0] sm:$0xff]  }
 0xaf0   :  { %v12844_v21 = vcombine.high %v3239_v7, %v3263_v2  ;;  %v12843_v14 = vcombine.low %v3239_v7, %v3263_v2  ;;  %v14475_v2 = vld [vmem:[%s19635_s8 + $0x20] sm:$0xff]  }
 0xaf1   :  { %7498 = vmatpush1.bf16.msra.mxu0 %v12457_v11  ;;  %v12889_v11 = vcombine.low %v3286_v31, %v3310_v37  ;;  %v7576_v28 = vsub.f32 0.0, %v6703_v61  ;;  %v14858_v34 = vpop.eup %14857  ;;  %v14467_v31 = vld [vmem:[%s19635_s8 + $0x30] sm:$0xff]   ;;  %v18085_v37 = vpop.f32.mrf.mxu1 }
 0xaf2   :  { %7541 = vmatpush1.bf16.msra.mxu1 %v12459_v13  ;;  %7507 = vmatprep.subr.bf16.mxu0 %v12986_v15  ;;  %v7574_v13 = vsub.f32 0.0, %v6660_v57  ;;  %v12891_v15 = vcombine.low %v3287_v33, %v3311_v50  ;;  %v14860_v38 = vpop.eup %14859  ;;  %v18100_v50 = vsub.s32 6, %v15797_v16  ;;  %v18102_v52 = vpop.f32.mrf.mxu0  ;;  %v14473_v16 = vld [vmem:[%s19635_s8 + $0x60] sm:$0xff]  }
 0xaf3   :  { %7550 = vmatprep.subr.bf16.mxu1 %v12988_v20  ;;  %v7765_v20 = vmul.f32 1.442695, %v7619_v27  ;;  %v7679_v30 = vmul.f32 1.442695, %v7576_v28  ;;  %v18107_v57 = vpop.f32.mrf.mxu1  ;;  %v14474_v27 = vld [vmem:[%s19635_s8 + $0xe0] sm:$0xff]   ;;  %v6658_v28 = vadd.f32 %v17968_v45, %v3433_v4  ;;  %v6662_v45 = vadd.f32 %v18004_v9, %v3433_v4 }
 0xaf4   :  { %v7675_v63 = vmul.f32 1.442695, %v7574_v13  ;;  %v14862_v26 = vpop.eup %14861  ;;  %v3441_v59 = vrot.slane %v17890_v42, %v18100_v50  ;;  %v18122_v7 = vpop.f32.mrf.mxu0  ;;  %v14477_v42 = vld [vmem:[%s19635_s8 + $0x58] sm:$0xff]  }
 0xaf5   :  { %7508 = vmatpush2.bf16.msra.mxu0 %v12985_v35  ;;  %14871 = vpow2.f32 %v7765_v20  ;;  %v14463_v35 = vld [vmem:[%s19635_s8 + $0x38] sm:$0xff]   ;;  %v8050_v43 = vpack.c.bf16 %v14858_v34, %v14862_v26  ;;  %v14481_v34 = vld [vmem:[%s19635_s8 + $0x50] sm:$0xff]   ;;  %v7573_v26 = vsub.f32 0.0, %v6658_v28 }
 0xaf6   :  { %7551 = vmatpush2.bf16.msra.mxu1 %v12987_v40  ;;  %7509 = vmatprep.subr.bf16.mxu0 %v12938_v41  ;;  %14873 = vpow2.f32 %v7771_v56  ;;  %v14465_v40 = vld [vmem:[%s19635_s8 + $0x70] sm:$0xff]   ;;  %v14864_v41 = vpop.eup %14863  ;;  %v6701_v56 = vadd.f32 %v17970_v47, %v3441_v59 }
 0xaf7   :  { %7552 = vmatprep.subr.bf16.mxu1 %v12940_v39  ;;  %14875 = vpow2.f32 %v7775_v22  ;;  %v8052_v39 = vpack.c.bf16 %v14860_v38, %v14864_v41  ;;  %v6705_v38 = vadd.f32 %v18009_v12, %v3441_v59  ;;  %v7621_v12 = vsub.f32 0.0, %v6662_v45 }
 0xaf8   :  { %14877 = vpow2.f32 %v7675_v63  ;;  %v6749_v63 = vpop.f32.mrf.mxu0  ;;  %v7575_v41 = vsub.f32 0.0, %v6701_v56  ;;  %v14495_v56 = vld [vmem:[%s19635_s8 + $0x138] sm:$0xff]  }
 0xaf9   :  { %7510 = vmatpush2.bf16.msra.mxu0 %v12937_v55  ;;  %14879 = vpow2.f32 %v7679_v30 }
 0xafa   :  { %7553 = vmatpush2.bf16.msra.mxu1 %v12939_v1  ;;  %7511 = vmatprep.subr.bf16.mxu0 %v12890_v23  ;;  %v14866_v33 = vpop.eup %14865  ;;  %v14472_v1 = vld [vmem:[%s19635_s8 + $0xa8] sm:$0xff]  }
 0xafb   :  { %7554 = vmatprep.subr.bf16.mxu1 %v12892_v24  ;;  %v14868_v55 = vpop.eup %14867  ;;  %v7857_v24 = vadd.f32 1.0, %v14866_v33  ;;  %v14486_v33 = vld [vmem:[%s19635_s8 + $0xc8] sm:$0xff]  }
 0xafc   :  { %v14870_v23 = vpop.eup %14869  ;;  %v7859_v6 = vadd.f32 1.0, %v14868_v55  ;;  %v7677_v55 = vmul.f32 1.442695, %v7575_v41  ;;  %v14502_v41 = vld [vmem:[%s19635_s8 + $0x1e8] sm:$0xff]  }
 0xafd   :  { %7512 = vmatpush2.bf16.msra.mxu0 %v12889_v11  ;;  %v7905_v8 = vadd.f32 1.0, %v14870_v23  ;;  %v18127_v11 = vpop.f32.mrf.mxu1  ;;  %14881 = vrcp.f32 %v7857_v24  ;;  %v7769_v23 = vmul.f32 1.442695, %v7621_v12  ;;  %v14503_v12 = vld [vmem:[%s19635_s8 + $0x128] sm:$0xff]  }
 0xafe   :  { %7555 = vmatpush2.bf16.msra.mxu1 %v12891_v15  ;;  %7513 = vmatprep.subr.bf16.mxu0 %v12842_v18  ;;  %v14478_v18 = vld [vmem:[%s19635_s8 + $0xd8] sm:$0xff]   ;;  %14883 = vrcp.f32 %v7859_v6 }
 0xaff   :  { %7556 = vmatprep.subr.bf16.mxu1 %v12844_v21  ;;  %14885 = vrcp.f32 %v7905_v8  ;;  %v6792_v47 = vpop.f32.mrf.mxu1 }
 0xb01   :  { %7514 = vmatpush2.bf16.msra.mxu0 %v12841_v25  ;;  %v18143_v25 = vld [vmem:[%s19636_s9 + $0x10] sm:$0xff] }
 0xb02   :  { %7557 = vmatpush2.bf16.msra.mxu1 %v12843_v14  ;;  %13580 = vmatprep.subr.bf16.mxu0 %v14461_v60  ;;  %v14872_v61 = vpop.eup %14871  ;;  %v14479_v14 = vld [vmem:[%s19635_s8 + $0x18] sm:$0xff]   ;;  %v3453_v30 = vrot.slane %v18143_v25, %v16000_v51  ;;  %v3461_v9 = vrot.slane %v18143_v25, %v17879_v36 }
 0xb03   :  { %13602 = vmatprep.subr.bf16.mxu1 %v14462_v62  ;;  %v14874_v5 = vpop.eup %14873  ;;  %v7907_v15 = vadd.f32 1.0, %v14872_v61  ;;  %v14480_v62 = vld [vmem:[%s19635_s8 + $0x98] sm:$0xff]   ;;  %v14489_v61 = vld [vmem:[%s19635_s8 + $0x40] sm:$0xff]  }
 0xb04   :  { %7516 = vmatmul.mubr.bf16.vlgmr.msra.gmra.mxu0 %v16376_v54  ;;  %v14876_v3 = vpop.eup %14875  ;;  %v7910_v21 = vadd.f32 1.0, %v14874_v5  ;;  %v14490_v5 = vld [vmem:[%s19635_s8 + $0xc0] sm:$0xff]  }
 0xb05   :  { %7559 = vmatmul.mubr.bf16.vlgmr.msra.gmra.mxu1 %v16376_v54  ;;  %13581 = vmatpush3.bf16.msra.mxu0 %v14463_v35  ;;  %v14470_v54 = vld [vmem:[%s19635_s8 + $0xe8] sm:$0xff]   ;;  %v14878_v13 = vpop.eup %14877  ;;  %v7912_v22 = vadd.f32 1.0, %v14876_v3  ;;  %14887 = vrcp.f32 %v7907_v15  ;;  %v14491_v3 = vld [vmem:[%s19635_s8] sm:$0xff]  }
 0xb06   :  { %11207 = vmatprep.mubr.bf16.mxu0 %v8050_v43  ;;  %13603 = vmatpush3.bf16.msra.mxu1 %v14464_v10  ;;  %v14880_v20 = vpop.eup %14879  ;;  %v7862_v60 = vadd.f32 1.0, %v14878_v13  ;;  %v14482_v10 = vld [vmem:[%s19635_s8 + $0xd0] sm:$0xff]   ;;  %14889 = vrcp.f32 %v7910_v21  ;;  %v6793_v43 = vadd.f32 %v6792_v47, %v3461_v9  ;;  %v14493_v13 = vld [vmem:[%s19635_s8 + $0x178] sm:$0xff]  }
 0xb07   :  { %11248 = vmatprep.mubr.bf16.mxu1 %v8052_v39  ;;  %13582 = vmatprep.subr.bf16.mxu0 %v14465_v40  ;;  %v7864_v35 = vadd.f32 1.0, %v14880_v20  ;;  %v6750_v40 = vadd.f32 %v6749_v63, %v3453_v30  ;;  %14891 = vrcp.f32 %v7912_v22  ;;  %v6746_v39 = vadd.f32 %v18102_v52, %v3453_v30  ;;  %v14494_v20 = vld [vmem:[%s19635_s8 + $0x1f8] sm:$0xff]   ;;  %v14497_v30 = vld [vmem:[%s19635_s8 + $0x170] sm:$0xff]  }
 0xb08   :  { %13604 = vmatprep.subr.bf16.mxu1 %v14466_v44  ;;  %v14483_v44 = vld [vmem:[%s19635_s8 + $0x10] sm:$0xff]   ;;  %14893 = vrcp.f32 %v7862_v60  ;;  %v7673_v52 = vmul.f32 1.442695, %v7573_v26 }
 0xb09   :  { %13583 = vmatpush3.bf16.msra.mxu0 %v14467_v31  ;;  %v14484_v31 = vld [vmem:[%s19635_s8 + $0x90] sm:$0xff]   ;;  %14895 = vrcp.f32 %v7864_v35  ;;  %v18213_v35 = vpop.f32.mrf.mxu0 }
 0xb0a   :  { %13605 = vmatpush3.bf16.msra.mxu1 %v14468_v46  ;;  %13584 = vmatprep.subr.bf16.mxu0 %v14469_v48  ;;  %v14485_v46 = vld [vmem:[%s19635_s8 + $0x48] sm:$0xff]   ;;  %v7623_v48 = vsub.f32 0.0, %v6705_v38  ;;  %14897 = vpow2.f32 %v7673_v52  ;;  %v14882_v59 = vpop.eup %14881  ;;  %v14500_v26 = vld [vmem:[%s19635_s8 + $0x1b0] sm:$0xff]  }
 0xb0b   :  { %13606 = vmatprep.subr.bf16.mxu1 %v14470_v54  ;;  %v6789_v54 = vadd.f32 %v18107_v57, %v3461_v9  ;;  %v14488_v57 = vld [vmem:[%s19635_s8 + $0x88] sm:$0xff]   ;;  %14899 = vpow2.f32 %v7677_v55  ;;  %v14884_v8 = vpop.eup %14883  ;;  %v14499_v9 = vld [vmem:[%s19635_s8 + $0x130] sm:$0xff]   ;;  %v3449_v55 = vrot.slane %v18143_v25, %v15800_v17 }
 0xb0c   :  { %v7773_v24 = vmul.f32 1.442695, %v7623_v48  ;;  %14901 = vpow2.f32 %v7769_v23  ;;  %v14886_v15 = vpop.eup %14885  ;;  %v14505_v48 = vld [vmem:[%s19635_s8 + $0x160] sm:$0xff]   ;;  %v3457_v23 = vrot.slane %v18143_v25, %v16005_v58 }
 0xb0d   :  { %13585 = vmatpush3.bf16.msra.mxu0 %v14471_v53  ;;  %v7626_v53 = vsub.f32 0.0, %v6750_v40  ;;  %v7580_v4 = vsub.f32 0.0, %v6789_v54  ;;  %v8049_v63 = vpack.c.bf16 %v14886_v15, %v14882_v59  ;;  %v14501_v40 = vld [vmem:[%s19635_s8 + $0x168] sm:$0xff]  }
 0xb0e   :  { %13607 = vmatpush3.bf16.msra.mxu1 %v14472_v1  ;;  %13586 = vmatprep.subr.bf16.mxu0 %v14473_v16  ;;  %v7628_v1 = vsub.f32 0.0, %v6793_v43  ;;  %v14487_v16 = vld [vmem:[%s19635_s8 + $0x8] sm:$0xff]   ;;  %14903 = vpow2.f32 %v7773_v24 }
 0xb0f   :  { %13608 = vmatprep.subr.bf16.mxu1 %v14474_v27  ;;  %v7578_v27 = vsub.f32 0.0, %v6746_v39  ;;  %v7779_v6 = vmul.f32 1.442695, %v7626_v53 }
 0xb11   :  { %13587 = vmatpush3.bf16.msra.mxu0 %v14475_v2  ;;  %v7783_v2 = vmul.f32 1.442695, %v7628_v1  ;;  %14905 = vpow2.f32 %v7779_v6  ;;  %v14509_v6 = vld [vmem:[%s19635_s8 + $0x158] sm:$0xff]  }
 0xb12   :  { %13609 = vmatpush3.bf16.msra.mxu1 %v14476_v0  ;;  %13588 = vmatprep.subr.bf16.mxu0 %v14477_v42  ;;  %v7683_v0 = vmul.f32 1.442695, %v7578_v27  ;;  %v14492_v42 = vld [vmem:[%s19635_s8 + $0x80] sm:$0xff]   ;;  %v14888_v28 = vpop.eup %14887 }
 0xb13   :  { %13610 = vmatprep.subr.bf16.mxu1 %v14478_v18  ;;  %v7687_v18 = vmul.f32 1.442695, %v7580_v4  ;;  %v14890_v21 = vpop.eup %14889  ;;  %14907 = vpow2.f32 %v7783_v2  ;;  %v8051_v45 = vpack.c.bf16 %v14888_v28, %v14884_v8 }
 0xb14   :  { %v14892_v22 = vpop.eup %14891  ;;  %14909 = vpow2.f32 %v7683_v0  ;;  %v6744_v0 = vadd.f32 %v18079_v29, %v3449_v55  ;;  %v14512_v29 = vld [vmem:[%s19635_s8 + $0x198] sm:$0xff]  }
 0xb15   :  { %13589 = vmatpush3.bf16.msra.mxu0 %v14479_v14  ;;  %v14496_v14 = vld [vmem:[%s19635_s8 + $0x1b8] sm:$0xff]   ;;  %v14894_v60 = vpop.eup %14893  ;;  %14911 = vpow2.f32 %v7687_v18 }
 0xb16   :  { %13611 = vmatpush3.bf16.msra.mxu1 %v14480_v62  ;;  %13590 = vmatprep.subr.bf16.mxu0 %v14481_v34  ;;  %v14896_v47 = vpop.eup %14895  ;;  %v8054_v62 = vpack.c.bf16 %v14890_v21, %v14894_v60  ;;  %v14498_v34 = vld [vmem:[%s19635_s8 + $0x1f0] sm:$0xff]   ;;  %v6748_v21 = vadd.f32 %v18122_v7, %v3449_v55  ;;  %v3477_v7 = vrot.slane %v18143_v25, %v18012_v19 }
 0xb17   :  { %13612 = vmatprep.subr.bf16.mxu1 %v14482_v10  ;;  %v8056_v38 = vpack.c.bf16 %v14892_v22, %v14896_v47  ;;  %v18218_v10 = vpop.f32.mrf.mxu1  ;;  %v14898_v43 = vpop.eup %14897  ;;  %v14514_v60 = vld [vmem:[%s19635_s8 + $0x1d0] sm:$0xff]  }
 0xb18   :  { %v14900_v39 = vpop.eup %14899  ;;  %v7861_v53 = vadd.f32 1.0, %v14898_v43  ;;  %v14518_v43 = vld [vmem:[%s19635_s8 + $0x1c8] sm:$0xff]  }
 0xb19   :  { %13591 = vmatpush3.bf16.msra.mxu0 %v14483_v44  ;;  %v18229_v44 = vpop.f32.mrf.mxu0  ;;  %v14902_v54 = vpop.eup %14901 }
 0xb1a   :  { %13613 = vmatpush3.bf16.msra.mxu1 %v14484_v31  ;;  %13592 = vmatprep.subr.bf16.mxu0 %v14485_v46  ;;  %v18234_v31 = vpop.f32.mrf.mxu1  ;;  %v14504_v46 = vld [vmem:[%s19635_s8 + $0x1a8] sm:$0xff]   ;;  %v7909_v24 = vadd.f32 1.0, %v14902_v54  ;;  %14913 = vrcp.f32 %v7861_v53 }
 0xb1b   :  { %13614 = vmatprep.subr.bf16.mxu1 %v14486_v33  ;;  %v14506_v33 = vld [vmem:[%s19635_s8 + $0x1e0] sm:$0xff]   ;;  %v14904_v52 = vpop.eup %14903  ;;  %v18249_v27 = vpop.f32.mrf.mxu0 }
 0xb1c   :  { %v18254_v4 = vpop.f32.mrf.mxu1  ;;  %v7911_v2 = vadd.f32 1.0, %v14904_v52  ;;  %v14521_v52 = vld [vmem:[%s19635_s8 + $0x140] sm:$0xff]  }
 0xb1d   :  { %13593 = vmatpush3.bf16.msra.mxu0 %v14487_v16  ;;  %v7863_v16 = vadd.f32 1.0, %v14900_v39  ;;  %v6835_v18 = vpop.f32.mrf.mxu0 }
 0xb1e   :  { %13615 = vmatpush3.bf16.msra.mxu1 %v14488_v57  ;;  %13594 = vmatprep.subr.bf16.mxu0 %v14489_v61  ;;  %v14906_v1 = vpop.eup %14905  ;;  %v14507_v57 = vld [vmem:[%s19635_s8 + $0x120] sm:$0xff]   ;;  %v6878_v22 = vpop.f32.mrf.mxu1 }
 0xb1f   :  { %13616 = vmatprep.subr.bf16.mxu1 %v14490_v5  ;;  %v14508_v5 = vld [vmem:[%s19635_s8 + $0x1a0] sm:$0xff]   ;;  %14915 = vrcp.f32 %v7863_v16 }
 0xb20   :  { %v14908_v61 = vpop.eup %14907  ;;  %14917 = vrcp.f32 %v7909_v24 }
 0xb21   :  { %13595 = vmatpush3.bf16.msra.mxu0 %v14491_v3  ;;  %v14910_v59 = vpop.eup %14909  ;;  %v14510_v3 = vld [vmem:[%s19635_s8 + $0x1d8] sm:$0xff]   ;;  %v7916_v15 = vadd.f32 1.0, %v14908_v61  ;;  %14919 = vrcp.f32 %v7911_v2  ;;  %v14523_v61 = vld [vmem:[%s19635_s8 + $0x100] sm:$0xff]  }
 0xb22   :  { %13617 = vmatpush3.bf16.msra.mxu1 %v14492_v42  ;;  %13624 = vmatprep.subr.bf16.mxu0 %v14493_v13  ;;  %v14912_v8 = vpop.eup %14911  ;;  %v7914_v42 = vadd.f32 1.0, %v14906_v1  ;;  %v6787_v13 = vadd.f32 %v18085_v37, %v3457_v23  ;;  %v7866_v28 = vadd.f32 1.0, %v14910_v59  ;;  %v14513_v37 = vld [vmem:[%s19635_s8 + $0x150] sm:$0xff]   ;;  %v14522_v1 = vld [vmem:[%s19635_s8 + $0x1c0] sm:$0xff]   ;;  %v14525_v59 = vld [vmem:[%s19635_s8 + $0x278] sm:$0xff]  }
 0xb23   :  { %13646 = vmatprep.subr.bf16.mxu1 %v14494_v20  ;;  %v14511_v20 = vld [vmem:[%s19635_s8 + $0x118] sm:$0xff]  }
 0xb24   :  { %11208 = vmatmul.mubr.bf16.vlgmr.msra.gmra.mxu0 %v8049_v63  ;;  %v7868_v63 = vadd.f32 1.0, %v14912_v8  ;;  %14921 = vrcp.f32 %v7914_v42  ;;  %v7579_v47 = vsub.f32 0.0, %v6787_v13  ;;  %v14526_v8 = vld [vmem:[%s19635_s8 + $0x2f8] sm:$0xff]  }
 0xb25   :  { %11249 = vmatmul.mubr.bf16.vlgmr.msra.gmra.mxu1 %v8051_v45  ;;  %13625 = vmatpush3.bf16.msra.mxu0 %v14495_v56  ;;  %v3469_v56 = vrot.slane %v18143_v25, %v18007_v32  ;;  %v7577_v45 = vsub.f32 0.0, %v6744_v0  ;;  %14923 = vrcp.f32 %v7916_v15  ;;  %v14527_v13 = vld [vmem:[%s19635_s8 + $0x238] sm:$0xff]  }
 0xb26   :  { %11289 = vmatprep.mubr.bf16.mxu0 %v8054_v62  ;;  %13647 = vmatpush3.bf16.msra.mxu1 %v14496_v14  ;;  %v6791_v14 = vadd.f32 %v18127_v11, %v3457_v23  ;;  %v6879_v62 = vadd.f32 %v6878_v22, %v3477_v7  ;;  %14925 = vrcp.f32 %v7866_v28  ;;  %v7625_v11 = vsub.f32 0.0, %v6748_v21 }
 0xb27   :  { %11330 = vmatprep.mubr.bf16.mxu1 %v8056_v38  ;;  %13626 = vmatprep.subr.bf16.mxu0 %v14497_v30  ;;  %v6836_v30 = vadd.f32 %v6835_v18, %v3469_v56  ;;  %v6832_v38 = vadd.f32 %v18229_v44, %v3469_v56  ;;  %14927 = vrcp.f32 %v7868_v63  ;;  %v7681_v44 = vmul.f32 1.442695, %v7577_v45  ;;  %v14914_v23 = vpop.eup %14913  ;;  %v14529_v56 = vld [vmem:[%s19635_s8 + $0x270] sm:$0xff]   ;;  %v18335_v63 = vpop.f32.mrf.mxu0 }
 0xb28   :  { %13648 = vmatprep.subr.bf16.mxu1 %v14498_v34  ;;  %v14515_v34 = vld [vmem:[%s19635_s8 + $0x110] sm:$0xff]   ;;  %v7685_v39 = vmul.f32 1.442695, %v7579_v47  ;;  %v7777_v54 = vmul.f32 1.442695, %v7625_v11  ;;  %v14534_v47 = vld [vmem:[%s19635_s8 + $0x2e8] sm:$0xff]  }
 0xb29   :  { %13627 = vmatpush3.bf16.msra.mxu0 %v14499_v9  ;;  %v14516_v9 = vld [vmem:[%s19635_s8 + $0x190] sm:$0xff]   ;;  %14929 = vpow2.f32 %v7681_v44  ;;  %v14535_v11 = vld [vmem:[%s19635_s8 + $0x228] sm:$0xff]  }
 0xb2a   :  { %13649 = vmatpush3.bf16.msra.mxu1 %v14500_v26  ;;  %13628 = vmatprep.subr.bf16.mxu0 %v14501_v40  ;;  %v14517_v26 = vld [vmem:[%s19635_s8 + $0x148] sm:$0xff]   ;;  %v7627_v40 = vsub.f32 0.0, %v6791_v14  ;;  %14931 = vpow2.f32 %v7685_v39  ;;  %v14532_v45 = vld [vmem:[%s19635_s8 + $0x2b0] sm:$0xff]   ;;  %v3465_v39 = vrot.slane %v18143_v25, %v18097_v49 }
 0xb2b   :  { %13650 = vmatprep.subr.bf16.mxu1 %v14502_v41  ;;  %v6875_v41 = vadd.f32 %v18234_v31, %v3477_v7  ;;  %v14520_v31 = vld [vmem:[%s19635_s8 + $0x188] sm:$0xff]   ;;  %14933 = vpow2.f32 %v7777_v54  ;;  %v14531_v7 = vld [vmem:[%s19635_s8 + $0x230] sm:$0xff]   ;;  %v3473_v54 = vrot.slane %v18143_v25, %v18100_v50  ;;  %v14541_v25 = vld [vmem:[%s19635_s8 + $0x258] sm:$0xff]  }
 0xb2c   :  { %v7781_v53 = vmul.f32 1.442695, %v7627_v40  ;;  %v14916_v24 = vpop.eup %14915  ;;  %v14537_v40 = vld [vmem:[%s19635_s8 + $0x260] sm:$0xff]  }
 0xb2d   :  { %13629 = vmatpush3.bf16.msra.mxu0 %v14503_v12  ;;  %v7630_v12 = vsub.f32 0.0, %v6836_v30  ;;  %v7584_v55 = vsub.f32 0.0, %v6875_v41  ;;  %v14918_v2 = vpop.eup %14917  ;;  %v14533_v30 = vld [vmem:[%s19635_s8 + $0x268] sm:$0xff]  }
 0xb2e   :  { %13651 = vmatpush3.bf16.msra.mxu1 %v14504_v46  ;;  %13630 = vmatprep.subr.bf16.mxu0 %v14505_v48  ;;  %v7632_v46 = vsub.f32 0.0, %v6879_v62  ;;  %v14519_v48 = vld [vmem:[%s19635_s8 + $0x108] sm:$0xff]   ;;  %14935 = vpow2.f32 %v7781_v53  ;;  %v14920_v0 = vpop.eup %14919  ;;  %v8053_v18 = vpack.c.bf16 %v14918_v2, %v14914_v23  ;;  %v18392_v2 = vld [vmem:[%s19636_s9 + $0x18] sm:$0xff] }
 0xb2f   :  { %13652 = vmatprep.subr.bf16.mxu1 %v14506_v33  ;;  %v7582_v33 = vsub.f32 0.0, %v6832_v38  ;;  %v7787_v16 = vmul.f32 1.442695, %v7630_v12  ;;  %v8055_v21 = vpack.c.bf16 %v14920_v0, %v14916_v24  ;;  %v6830_v24 = vadd.f32 %v18213_v35, %v3465_v39 }
 0xb30   :  { %v6834_v35 = vadd.f32 %v18249_v27, %v3465_v39  ;;  %v3493_v27 = vrot.slane %v18392_v2, %v17879_v36 }
 0xb31   :  { %13631 = vmatpush3.bf16.msra.mxu0 %v14507_v57  ;;  %v7791_v57 = vmul.f32 1.442695, %v7632_v46  ;;  %14937 = vpow2.f32 %v7787_v16  ;;  %v14922_v42 = vpop.eup %14921 }
 0xb32   :  { %13653 = vmatpush3.bf16.msra.mxu1 %v14508_v5  ;;  %13632 = vmatprep.subr.bf16.mxu0 %v14509_v6  ;;  %v7691_v5 = vmul.f32 1.442695, %v7582_v33  ;;  %v14524_v6 = vld [vmem:[%s19635_s8 + $0x180] sm:$0xff]   ;;  %v14924_v15 = vpop.eup %14923 }
 0xb33   :  { %13654 = vmatprep.subr.bf16.mxu1 %v14510_v3  ;;  %v7695_v3 = vmul.f32 1.442695, %v7584_v55  ;;  %14939 = vpow2.f32 %v7791_v57  ;;  %v14926_v28 = vpop.eup %14925  ;;  %v14542_v57 = vld [vmem:[%s19635_s8 + $0x2d8] sm:$0xff]  }
 0xb34   :  { %14941 = vpow2.f32 %v7691_v5  ;;  %v14928_v22 = vpop.eup %14927 }
 0xb35   :  { %13633 = vmatpush3.bf16.msra.mxu0 %v14511_v20  ;;  %v14528_v20 = vld [vmem:[%s19635_s8 + $0x2b8] sm:$0xff]   ;;  %14943 = vpow2.f32 %v7695_v3  ;;  %v8060_v14 = vpack.c.bf16 %v14924_v15, %v14928_v22  ;;  %v14545_v15 = vld [vmem:[%s19635_s8 + $0x250] sm:$0xff]  }
 0xb36   :  { %13655 = vmatpush3.bf16.msra.mxu1 %v14512_v29  ;;  %13634 = vmatprep.subr.bf16.mxu0 %v14513_v37  ;;  %v8058_v29 = vpack.c.bf16 %v14922_v42, %v14926_v28  ;;  %v14530_v37 = vld [vmem:[%s19635_s8 + $0x2f0] sm:$0xff]   ;;  %v14930_v62 = vpop.eup %14929  ;;  %v3485_v42 = vrot.slane %v18392_v2, %v16000_v51 }
 0xb37   :  { %13656 = vmatprep.subr.bf16.mxu1 %v14514_v60  ;;  %v18340_v60 = vpop.f32.mrf.mxu1  ;;  %v14932_v38 = vpop.eup %14931  ;;  %v7865_v12 = vadd.f32 1.0, %v14930_v62  ;;  %v14546_v28 = vld [vmem:[%s19635_s8 + $0x2d0] sm:$0xff]   ;;  %v14550_v62 = vld [vmem:[%s19635_s8 + $0x2c8] sm:$0xff]  }
 0xb38   :  { %v14934_v41 = vpop.eup %14933 }
 0xb39   :  { %13635 = vmatpush3.bf16.msra.mxu0 %v14515_v34  ;;  %v18351_v34 = vpop.f32.mrf.mxu0  ;;  %v7913_v53 = vadd.f32 1.0, %v14934_v41  ;;  %14945 = vrcp.f32 %v7865_v12 }
 0xb3a   :  { %13657 = vmatpush3.bf16.msra.mxu1 %v14516_v9  ;;  %13636 = vmatprep.subr.bf16.mxu0 %v14517_v26  ;;  %v18356_v9 = vpop.f32.mrf.mxu1  ;;  %v14536_v26 = vld [vmem:[%s19635_s8 + $0x2a8] sm:$0xff]  }
 0xb3b   :  { %13658 = vmatprep.subr.bf16.mxu1 %v14518_v43  ;;  %v14538_v43 = vld [vmem:[%s19635_s8 + $0x2e0] sm:$0xff]   ;;  %v14936_v44 = vpop.eup %14935  ;;  %v18371_v33 = vpop.f32.mrf.mxu0 }
 0xb3c   :  { %v18376_v55 = vpop.f32.mrf.mxu1  ;;  %v7915_v23 = vadd.f32 1.0, %v14936_v44  ;;  %v14553_v44 = vld [vmem:[%s19635_s8 + $0x240] sm:$0xff]  }
 0xb3d   :  { %13637 = vmatpush3.bf16.msra.mxu0 %v14519_v48  ;;  %v7867_v48 = vadd.f32 1.0, %v14932_v38  ;;  %v6921_v3 = vpop.f32.mrf.mxu0 }
 0xb3e   :  { %13659 = vmatpush3.bf16.msra.mxu1 %v14520_v31  ;;  %13638 = vmatprep.subr.bf16.mxu0 %v14521_v52  ;;  %v14938_v46 = vpop.eup %14937  ;;  %v14539_v31 = vld [vmem:[%s19635_s8 + $0x220] sm:$0xff]  }
 0xb3f   :  { %13660 = vmatprep.subr.bf16.mxu1 %v14522_v1  ;;  %v14540_v1 = vld [vmem:[%s19635_s8 + $0x2a0] sm:$0xff]   ;;  %v7918_v5 = vadd.f32 1.0, %v14938_v46  ;;  %14947 = vrcp.f32 %v7867_v48 }
 0xb40   :  { %v14940_v52 = vpop.eup %14939  ;;  %14949 = vrcp.f32 %v7913_v53  ;;  %v14554_v46 = vld [vmem:[%s19635_s8 + $0x2c0] sm:$0xff]  }
 0xb41   :  { %13639 = vmatpush3.bf16.msra.mxu0 %v14523_v61  ;;  %v14942_v16 = vpop.eup %14941  ;;  %14951 = vrcp.f32 %v7915_v23 }
 0xb42   :  { %13661 = vmatpush3.bf16.msra.mxu1 %v14524_v6  ;;  %13668 = vmatprep.subr.bf16.mxu0 %v14525_v59  ;;  %v14944_v61 = vpop.eup %14943  ;;  %v6873_v6 = vadd.f32 %v18218_v10, %v3473_v54  ;;  %v7920_v59 = vadd.f32 1.0, %v14940_v52  ;;  %v7870_v0 = vadd.f32 1.0, %v14942_v16  ;;  %v6964_v10 = vpop.f32.mrf.mxu1  ;;  %14953 = vrcp.f32 %v7918_v5  ;;  %v14555_v52 = vld [vmem:[%s19635_s8 + $0x200] sm:$0xff]   ;;  %v14557_v16 = vld [vmem:[%s19635_s8 + $0x378] sm:$0xff]  }
 0xb43   :  { %13690 = vmatprep.subr.bf16.mxu1 %v14526_v8  ;;  %v14543_v8 = vld [vmem:[%s19635_s8 + $0x218] sm:$0xff]  }
 0xb44   :  { %11290 = vmatmul.mubr.bf16.vlgmr.msra.gmra.mxu0 %v8053_v18  ;;  %v7872_v18 = vadd.f32 1.0, %v14944_v61  ;;  %v7583_v22 = vsub.f32 0.0, %v6873_v6  ;;  %14955 = vrcp.f32 %v7920_v59  ;;  %v14558_v61 = vld [vmem:[%s19635_s8 + $0x3f8] sm:$0xff]  }
 0xb45   :  { %11331 = vmatmul.mubr.bf16.vlgmr.msra.gmra.mxu1 %v8055_v21  ;;  %13669 = vmatpush3.bf16.msra.mxu0 %v14527_v13  ;;  %v14544_v13 = vld [vmem:[%s19635_s8 + $0x298] sm:$0xff]   ;;  %v7581_v21 = vsub.f32 0.0, %v6830_v24  ;;  %14957 = vrcp.f32 %v7870_v0 }
 0xb46   :  { %11371 = vmatprep.mubr.bf16.mxu0 %v8058_v29  ;;  %13691 = vmatpush3.bf16.msra.mxu1 %v14528_v20  ;;  %v6877_v20 = vadd.f32 %v18254_v4, %v3473_v54  ;;  %v6965_v29 = vadd.f32 %v6964_v10, %v3493_v27  ;;  %v7629_v4 = vsub.f32 0.0, %v6834_v35  ;;  %14959 = vrcp.f32 %v7872_v18  ;;  %v14946_v54 = vpop.eup %14945  ;;  %v14559_v6 = vld [vmem:[%s19635_s8 + $0x338] sm:$0xff]   ;;  %v18462_v18 = vpop.f32.mrf.mxu0 }
 0xb47   :  { %11412 = vmatprep.mubr.bf16.mxu1 %v8060_v14  ;;  %13670 = vmatprep.subr.bf16.mxu0 %v14529_v56  ;;  %v6922_v56 = vadd.f32 %v6921_v3, %v3485_v42  ;;  %v6918_v14 = vadd.f32 %v18351_v34, %v3485_v42  ;;  %v7689_v34 = vmul.f32 1.442695, %v7581_v21  ;;  %v7693_v38 = vmul.f32 1.442695, %v7583_v22  ;;  %v14561_v42 = vld [vmem:[%s19635_s8 + $0x370] sm:$0xff]   ;;  %v14566_v22 = vld [vmem:[%s19635_s8 + $0x3e8] sm:$0xff]  }
 0xb48   :  { %13692 = vmatprep.subr.bf16.mxu1 %v14530_v37  ;;  %v14547_v37 = vld [vmem:[%s19635_s8 + $0x210] sm:$0xff]   ;;  %v7785_v41 = vmul.f32 1.442695, %v7629_v4  ;;  %v14567_v4 = vld [vmem:[%s19635_s8 + $0x328] sm:$0xff]  }
 0xb49   :  { %13671 = vmatpush3.bf16.msra.mxu0 %v14531_v7  ;;  %v14548_v7 = vld [vmem:[%s19635_s8 + $0x290] sm:$0xff]   ;;  %14961 = vpow2.f32 %v7689_v34 }
 0xb4a   :  { %13693 = vmatpush3.bf16.msra.mxu1 %v14532_v45  ;;  %13672 = vmatprep.subr.bf16.mxu0 %v14533_v30  ;;  %v14549_v45 = vld [vmem:[%s19635_s8 + $0x248] sm:$0xff]   ;;  %v7631_v30 = vsub.f32 0.0, %v6877_v20  ;;  %14963 = vpow2.f32 %v7693_v38  ;;  %v14564_v21 = vld [vmem:[%s19635_s8 + $0x3b0] sm:$0xff]   ;;  %v3481_v38 = vrot.slane %v18392_v2, %v15800_v17 }
 0xb4b   :  { %13694 = vmatprep.subr.bf16.mxu1 %v14534_v47  ;;  %v6961_v47 = vadd.f32 %v18356_v9, %v3493_v27  ;;  %v14552_v9 = vld [vmem:[%s19635_s8 + $0x288] sm:$0xff]   ;;  %14965 = vpow2.f32 %v7785_v41  ;;  %v14563_v27 = vld [vmem:[%s19635_s8 + $0x330] sm:$0xff]   ;;  %v3489_v41 = vrot.slane %v18392_v2, %v16005_v58 }
 0xb4c   :  { %v7789_v12 = vmul.f32 1.442695, %v7631_v30  ;;  %v14948_v53 = vpop.eup %14947  ;;  %v14569_v30 = vld [vmem:[%s19635_s8 + $0x360] sm:$0xff]  }
 0xb4d   :  { %13673 = vmatpush3.bf16.msra.mxu0 %v14535_v11  ;;  %v7634_v11 = vsub.f32 0.0, %v6922_v56  ;;  %v7588_v39 = vsub.f32 0.0, %v6961_v47  ;;  %v14950_v23 = vpop.eup %14949  ;;  %v14565_v56 = vld [vmem:[%s19635_s8 + $0x368] sm:$0xff]  }
 0xb4e   :  { %13695 = vmatpush3.bf16.msra.mxu1 %v14536_v26  ;;  %13674 = vmatprep.subr.bf16.mxu0 %v14537_v40  ;;  %v7636_v26 = vsub.f32 0.0, %v6965_v29  ;;  %v14551_v40 = vld [vmem:[%s19635_s8 + $0x208] sm:$0xff]   ;;  %14967 = vpow2.f32 %v7789_v12  ;;  %v14952_v24 = vpop.eup %14951  ;;  %v8057_v3 = vpack.c.bf16 %v14950_v23, %v14946_v54 }
 0xb4f   :  { %13696 = vmatprep.subr.bf16.mxu1 %v14538_v43  ;;  %v7586_v43 = vsub.f32 0.0, %v6918_v14  ;;  %v7795_v48 = vmul.f32 1.442695, %v7634_v11  ;;  %v14954_v5 = vpop.eup %14953  ;;  %v8059_v35 = vpack.c.bf16 %v14952_v24, %v14948_v53 }
 0xb51   :  { %13675 = vmatpush3.bf16.msra.mxu0 %v14539_v31  ;;  %v7799_v31 = vmul.f32 1.442695, %v7636_v26  ;;  %14969 = vpow2.f32 %v7795_v48  ;;  %v14956_v59 = vpop.eup %14955  ;;  %v14573_v48 = vld [vmem:[%s19635_s8 + $0x358] sm:$0xff]  }
 0xb52   :  { %13697 = vmatpush3.bf16.msra.mxu1 %v14540_v1  ;;  %13676 = vmatprep.subr.bf16.mxu0 %v14541_v25  ;;  %v7699_v1 = vmul.f32 1.442695, %v7586_v43  ;;  %v14556_v25 = vld [vmem:[%s19635_s8 + $0x280] sm:$0xff]   ;;  %v14958_v0 = vpop.eup %14957 }
 0xb53   :  { %13698 = vmatprep.subr.bf16.mxu1 %v14542_v57  ;;  %v7703_v57 = vmul.f32 1.442695, %v7588_v39  ;;  %14971 = vpow2.f32 %v7799_v31  ;;  %v14960_v10 = vpop.eup %14959 }
 0xb54   :  { %14973 = vpow2.f32 %v7699_v1  ;;  %v8064_v20 = vpack.c.bf16 %v14956_v59, %v14960_v10  ;;  %v6916_v1 = vadd.f32 %v18335_v63, %v3481_v38  ;;  %v14576_v63 = vld [vmem:[%s19635_s8 + $0x398] sm:$0xff]  }
 0xb55   :  { %13677 = vmatpush3.bf16.msra.mxu0 %v14543_v8  ;;  %v14560_v8 = vld [vmem:[%s19635_s8 + $0x3b8] sm:$0xff]   ;;  %14975 = vpow2.f32 %v7703_v57 }
 0xb56   :  { %13699 = vmatpush3.bf16.msra.mxu1 %v14544_v13  ;;  %13678 = vmatprep.subr.bf16.mxu0 %v14545_v15  ;;  %v8062_v13 = vpack.c.bf16 %v14954_v5, %v14958_v0  ;;  %v14562_v15 = vld [vmem:[%s19635_s8 + $0x3f0] sm:$0xff]   ;;  %v14962_v29 = vpop.eup %14961  ;;  %v6920_v5 = vadd.f32 %v18371_v33, %v3481_v38  ;;  %v3509_v33 = vrot.slane %v18392_v2, %v18012_v19 }
 0xb57   :  { %13700 = vmatprep.subr.bf16.mxu1 %v14546_v28  ;;  %v18467_v28 = vpop.f32.mrf.mxu1  ;;  %v14964_v14 = vpop.eup %14963  ;;  %v7869_v11 = vadd.f32 1.0, %v14962_v29  ;;  %v14578_v0 = vld [vmem:[%s19635_s8 + $0x3d0] sm:$0xff]   ;;  %v14582_v29 = vld [vmem:[%s19635_s8 + $0x3c8] sm:$0xff]  }
 0xb58   :  { %v14966_v47 = vpop.eup %14965 }
 0xb59   :  { %13679 = vmatpush3.bf16.msra.mxu0 %v14547_v37  ;;  %v18478_v37 = vpop.f32.mrf.mxu0  ;;  %v7917_v12 = vadd.f32 1.0, %v14966_v47  ;;  %14977 = vrcp.f32 %v7869_v11 }
 0xb5a   :  { %13701 = vmatpush3.bf16.msra.mxu1 %v14548_v7  ;;  %13680 = vmatprep.subr.bf16.mxu0 %v14549_v45  ;;  %v18483_v7 = vpop.f32.mrf.mxu1  ;;  %v14568_v45 = vld [vmem:[%s19635_s8 + $0x3a8] sm:$0xff]  }
 0xb5b   :  { %13702 = vmatprep.subr.bf16.mxu1 %v14550_v62  ;;  %v14570_v62 = vld [vmem:[%s19635_s8 + $0x3e0] sm:$0xff]   ;;  %v14968_v34 = vpop.eup %14967  ;;  %v18498_v43 = vpop.f32.mrf.mxu0 }
 0xb5c   :  { %v18503_v39 = vpop.f32.mrf.mxu1  ;;  %v7919_v31 = vadd.f32 1.0, %v14968_v34  ;;  %v14585_v34 = vld [vmem:[%s19635_s8 + $0x340] sm:$0xff]  }
 0xb5d   :  { %13681 = vmatpush3.bf16.msra.mxu0 %v14551_v40  ;;  %v7871_v40 = vadd.f32 1.0, %v14964_v14  ;;  %v7007_v57 = vpop.f32.mrf.mxu0 }
 0xb5e   :  { %13703 = vmatpush3.bf16.msra.mxu1 %v14552_v9  ;;  %13682 = vmatprep.subr.bf16.mxu0 %v14553_v44  ;;  %v14970_v26 = vpop.eup %14969  ;;  %v14571_v9 = vld [vmem:[%s19635_s8 + $0x320] sm:$0xff]   ;;  %v7050_v59 = vpop.f32.mrf.mxu1 }
 0xb5f   :  { %13704 = vmatprep.subr.bf16.mxu1 %v14554_v46  ;;  %v14572_v46 = vld [vmem:[%s19635_s8 + $0x3a0] sm:$0xff]   ;;  %14979 = vrcp.f32 %v7871_v40 }
 0xb60   :  { %v14972_v44 = vpop.eup %14971  ;;  %14981 = vrcp.f32 %v7917_v12 }
 0xb61   :  { %13683 = vmatpush3.bf16.msra.mxu0 %v14555_v52  ;;  %v14974_v54 = vpop.eup %14973  ;;  %v14574_v52 = vld [vmem:[%s19635_s8 + $0x3d8] sm:$0xff]   ;;  %v7924_v23 = vadd.f32 1.0, %v14972_v44  ;;  %14983 = vrcp.f32 %v7919_v31  ;;  %v14587_v44 = vld [vmem:[%s19635_s8 + $0x300] sm:$0xff]  }
 0xb62   :  { %13705 = vmatpush3.bf16.msra.mxu1 %v14556_v25  ;;  %13712 = vmatprep.subr.bf16.mxu0 %v14557_v16  ;;  %v14976_v53 = vpop.eup %14975  ;;  %v7922_v25 = vadd.f32 1.0, %v14970_v26  ;;  %v6959_v16 = vadd.f32 %v18340_v60, %v3489_v41  ;;  %v7874_v24 = vadd.f32 1.0, %v14974_v54  ;;  %v14577_v60 = vld [vmem:[%s19635_s8 + $0x350] sm:$0xff]   ;;  %v14586_v26 = vld [vmem:[%s19635_s8 + $0x3c0] sm:$0xff]   ;;  %v14589_v54 = vld [vmem:[%s19635_s8 + $0x478] sm:$0xff]  }
 0xb63   :  { %13734 = vmatprep.subr.bf16.mxu1 %v14558_v61  ;;  %v14575_v61 = vld [vmem:[%s19635_s8 + $0x318] sm:$0xff]  }
 0xb64   :  { %11372 = vmatmul.mubr.bf16.vlgmr.msra.gmra.mxu0 %v8057_v3  ;;  %v7876_v3 = vadd.f32 1.0, %v14976_v53  ;;  %14985 = vrcp.f32 %v7922_v25  ;;  %v7587_v10 = vsub.f32 0.0, %v6959_v16  ;;  %v14590_v53 = vld [vmem:[%s19635_s8 + $0x4f8] sm:$0xff]  }
 0xb65   :  { %11413 = vmatmul.mubr.bf16.vlgmr.msra.gmra.mxu1 %v8059_v35  ;;  %13713 = vmatpush3.bf16.msra.mxu0 %v14559_v6  ;;  %v3501_v6 = vrot.slane %v18392_v2, %v18007_v32  ;;  %v7585_v35 = vsub.f32 0.0, %v6916_v1  ;;  %14987 = vrcp.f32 %v7924_v23  ;;  %v14591_v16 = vld [vmem:[%s19635_s8 + $0x438] sm:$0xff]  }
 0xb66   :  { %11453 = vmatprep.mubr.bf16.mxu0 %v8062_v13  ;;  %13735 = vmatpush3.bf16.msra.mxu1 %v14560_v8  ;;  %v6963_v8 = vadd.f32 %v18376_v55, %v3489_v41  ;;  %v7051_v13 = vadd.f32 %v7050_v59, %v3509_v33  ;;  %14989 = vrcp.f32 %v7874_v24  ;;  %v7633_v55 = vsub.f32 0.0, %v6920_v5  ;;  %v14978_v41 = vpop.eup %14977 }
 0xb67   :  { %11494 = vmatprep.mubr.bf16.mxu1 %v8064_v20  ;;  %13714 = vmatprep.subr.bf16.mxu0 %v14561_v42  ;;  %v7008_v42 = vadd.f32 %v7007_v57, %v3501_v6  ;;  %v7004_v20 = vadd.f32 %v18478_v37, %v3501_v6  ;;  %14991 = vrcp.f32 %v7876_v3  ;;  %v7697_v37 = vmul.f32 1.442695, %v7585_v35  ;;  %v14593_v6 = vld [vmem:[%s19635_s8 + $0x470] sm:$0xff]   ;;  %v18584_v3 = vpop.f32.mrf.mxu0 }
 0xb68   :  { %13736 = vmatprep.subr.bf16.mxu1 %v14562_v15  ;;  %v14579_v15 = vld [vmem:[%s19635_s8 + $0x310] sm:$0xff]   ;;  %v7701_v14 = vmul.f32 1.442695, %v7587_v10  ;;  %v7793_v47 = vmul.f32 1.442695, %v7633_v55  ;;  %v14598_v10 = vld [vmem:[%s19635_s8 + $0x4e8] sm:$0xff]  }
 0xb69   :  { %13715 = vmatpush3.bf16.msra.mxu0 %v14563_v27  ;;  %v14580_v27 = vld [vmem:[%s19635_s8 + $0x390] sm:$0xff]   ;;  %14993 = vpow2.f32 %v7697_v37  ;;  %v14599_v55 = vld [vmem:[%s19635_s8 + $0x428] sm:$0xff]  }
 0xb6a   :  { %13737 = vmatpush3.bf16.msra.mxu1 %v14564_v21  ;;  %13716 = vmatprep.subr.bf16.mxu0 %v14565_v56  ;;  %v14581_v21 = vld [vmem:[%s19635_s8 + $0x348] sm:$0xff]   ;;  %v7635_v56 = vsub.f32 0.0, %v6963_v8  ;;  %14995 = vpow2.f32 %v7701_v14  ;;  %v14596_v35 = vld [vmem:[%s19635_s8 + $0x4b0] sm:$0xff]   ;;  %v3497_v14 = vrot.slane %v18392_v2, %v18097_v49 }
 0xb6b   :  { %13738 = vmatprep.subr.bf16.mxu1 %v14566_v22  ;;  %v7047_v22 = vadd.f32 %v18483_v7, %v3509_v33  ;;  %v14584_v7 = vld [vmem:[%s19635_s8 + $0x388] sm:$0xff]   ;;  %14997 = vpow2.f32 %v7793_v47  ;;  %v14595_v33 = vld [vmem:[%s19635_s8 + $0x430] sm:$0xff]   ;;  %v3505_v47 = vrot.slane %v18392_v2, %v18100_v50  ;;  %v14605_v2 = vld [vmem:[%s19635_s8 + $0x458] sm:$0xff]  }
 0xb6c   :  { %v7797_v11 = vmul.f32 1.442695, %v7635_v56  ;;  %v14980_v12 = vpop.eup %14979  ;;  %v14601_v56 = vld [vmem:[%s19635_s8 + $0x460] sm:$0xff]  }
 0xb6d   :  { %13717 = vmatpush3.bf16.msra.mxu0 %v14567_v4  ;;  %v7638_v4 = vsub.f32 0.0, %v7008_v42  ;;  %v7592_v38 = vsub.f32 0.0, %v7047_v22  ;;  %v14982_v31 = vpop.eup %14981  ;;  %v14597_v42 = vld [vmem:[%s19635_s8 + $0x468] sm:$0xff]  }
 0xb6e   :  { %13739 = vmatpush3.bf16.msra.mxu1 %v14568_v45  ;;  %13718 = vmatprep.subr.bf16.mxu0 %v14569_v30  ;;  %v7640_v45 = vsub.f32 0.0, %v7051_v13  ;;  %v14583_v30 = vld [vmem:[%s19635_s8 + $0x308] sm:$0xff]   ;;  %14999 = vpow2.f32 %v7797_v11  ;;  %v14984_v1 = vpop.eup %14983  ;;  %v8061_v57 = vpack.c.bf16 %v14982_v31, %v14978_v41  ;;  %v18641_v31 = vld [vmem:[%s19636_s9 + $0x20] sm:$0xff] }
 0xb6f   :  { %13740 = vmatprep.subr.bf16.mxu1 %v14570_v62  ;;  %v7590_v62 = vsub.f32 0.0, %v7004_v20  ;;  %v7803_v40 = vmul.f32 1.442695, %v7638_v4  ;;  %v8063_v5 = vpack.c.bf16 %v14984_v1, %v14980_v12  ;;  %v7002_v12 = vadd.f32 %v18462_v18, %v3497_v14 }
 0xb70   :  { %v7006_v18 = vadd.f32 %v18498_v43, %v3497_v14  ;;  %v3525_v43 = vrot.slane %v18641_v31, %v17879_v36 }
 0xb71   :  { %13719 = vmatpush3.bf16.msra.mxu0 %v14571_v9  ;;  %v7807_v9 = vmul.f32 1.442695, %v7640_v45  ;;  %15001 = vpow2.f32 %v7803_v40  ;;  %v14986_v25 = vpop.eup %14985 }
 0xb72   :  { %13741 = vmatpush3.bf16.msra.mxu1 %v14572_v46  ;;  %13720 = vmatprep.subr.bf16.mxu0 %v14573_v48  ;;  %v7707_v46 = vmul.f32 1.442695, %v7590_v62  ;;  %v14588_v48 = vld [vmem:[%s19635_s8 + $0x380] sm:$0xff]   ;;  %v14988_v23 = vpop.eup %14987 }
 0xb73   :  { %13742 = vmatprep.subr.bf16.mxu1 %v14574_v52  ;;  %v7711_v52 = vmul.f32 1.442695, %v7592_v38  ;;  %15003 = vpow2.f32 %v7807_v9  ;;  %v14990_v24 = vpop.eup %14989  ;;  %v14606_v9 = vld [vmem:[%s19635_s8 + $0x4d8] sm:$0xff]  }
 0xb74   :  { %15005 = vpow2.f32 %v7707_v46  ;;  %v14992_v59 = vpop.eup %14991 }
 0xb75   :  { %13721 = vmatpush3.bf16.msra.mxu0 %v14575_v61  ;;  %v14592_v61 = vld [vmem:[%s19635_s8 + $0x4b8] sm:$0xff]   ;;  %15007 = vpow2.f32 %v7711_v52  ;;  %v8068_v8 = vpack.c.bf16 %v14988_v23, %v14992_v59  ;;  %v14609_v23 = vld [vmem:[%s19635_s8 + $0x450] sm:$0xff]  }
 0xb76   :  { %13743 = vmatpush3.bf16.msra.mxu1 %v14576_v63  ;;  %13722 = vmatprep.subr.bf16.mxu0 %v14577_v60  ;;  %v8066_v63 = vpack.c.bf16 %v14986_v25, %v14990_v24  ;;  %v14594_v60 = vld [vmem:[%s19635_s8 + $0x4f0] sm:$0xff]   ;;  %v14994_v13 = vpop.eup %14993  ;;  %v3517_v25 = vrot.slane %v18641_v31, %v16000_v51 }
 0xb77   :  { %13744 = vmatprep.subr.bf16.mxu1 %v14578_v0  ;;  %v18589_v0 = vpop.f32.mrf.mxu1  ;;  %v14996_v20 = vpop.eup %14995  ;;  %v7873_v4 = vadd.f32 1.0, %v14994_v13  ;;  %v14610_v24 = vld [vmem:[%s19635_s8 + $0x4d0] sm:$0xff]   ;;  %v14614_v13 = vld [vmem:[%s19635_s8 + $0x4c8] sm:$0xff]  }
 0xb78   :  { %v14998_v22 = vpop.eup %14997 }
 0xb79   :  { %13723 = vmatpush3.bf16.msra.mxu0 %v14579_v15  ;;  %v18600_v15 = vpop.f32.mrf.mxu0  ;;  %v7921_v11 = vadd.f32 1.0, %v14998_v22  ;;  %15009 = vrcp.f32 %v7873_v4 }
 0xb7a   :  { %13745 = vmatpush3.bf16.msra.mxu1 %v14580_v27  ;;  %13724 = vmatprep.subr.bf16.mxu0 %v14581_v21  ;;  %v18605_v27 = vpop.f32.mrf.mxu1  ;;  %v14600_v21 = vld [vmem:[%s19635_s8 + $0x4a8] sm:$0xff]  }
 0xb7b   :  { %13746 = vmatprep.subr.bf16.mxu1 %v14582_v29  ;;  %v14602_v29 = vld [vmem:[%s19635_s8 + $0x4e0] sm:$0xff]   ;;  %v15000_v37 = vpop.eup %14999  ;;  %v18620_v62 = vpop.f32.mrf.mxu0 }
 0xb7c   :  { %v18625_v38 = vpop.f32.mrf.mxu1  ;;  %v7923_v41 = vadd.f32 1.0, %v15000_v37  ;;  %v14617_v37 = vld [vmem:[%s19635_s8 + $0x440] sm:$0xff]  }
 0xb7d   :  { %13725 = vmatpush3.bf16.msra.mxu0 %v14583_v30  ;;  %v7875_v30 = vadd.f32 1.0, %v14996_v20  ;;  %v7093_v52 = vpop.f32.mrf.mxu0 }
 0xb7e   :  { %13747 = vmatpush3.bf16.msra.mxu1 %v14584_v7  ;;  %13726 = vmatprep.subr.bf16.mxu0 %v14585_v34  ;;  %v15002_v45 = vpop.eup %15001  ;;  %v14603_v7 = vld [vmem:[%s19635_s8 + $0x420] sm:$0xff]  }
 0xb7f   :  { %13748 = vmatprep.subr.bf16.mxu1 %v14586_v26  ;;  %v14604_v26 = vld [vmem:[%s19635_s8 + $0x4a0] sm:$0xff]   ;;  %v7926_v46 = vadd.f32 1.0, %v15002_v45  ;;  %15011 = vrcp.f32 %v7875_v30 }
 0xb80   :  { %v15004_v34 = vpop.eup %15003  ;;  %15013 = vrcp.f32 %v7921_v11  ;;  %v14618_v45 = vld [vmem:[%s19635_s8 + $0x4c0] sm:$0xff]  }
 0xb81   :  { %13727 = vmatpush3.bf16.msra.mxu0 %v14587_v44  ;;  %v15006_v40 = vpop.eup %15005  ;;  %15015 = vrcp.f32 %v7923_v41 }
 0xb82   :  { %13749 = vmatpush3.bf16.msra.mxu1 %v14588_v48  ;;  %13756 = vmatprep.subr.bf16.mxu0 %v14589_v54  ;;  %v15008_v44 = vpop.eup %15007  ;;  %v7045_v48 = vadd.f32 %v18467_v28, %v3505_v47  ;;  %v7928_v54 = vadd.f32 1.0, %v15004_v34  ;;  %v7878_v1 = vadd.f32 1.0, %v15006_v40  ;;  %v7136_v28 = vpop.f32.mrf.mxu1  ;;  %15017 = vrcp.f32 %v7926_v46  ;;  %v14619_v34 = vld [vmem:[%s19635_s8 + $0x400] sm:$0xff]   ;;  %v14621_v40 = vld [vmem:[%s19635_s8 + $0x578] sm:$0xff]  }
 0xb83   :  { %13778 = vmatprep.subr.bf16.mxu1 %v14590_v53  ;;  %v14607_v53 = vld [vmem:[%s19635_s8 + $0x418] sm:$0xff]  }
 0xb84   :  { %11454 = vmatmul.mubr.bf16.vlgmr.msra.gmra.mxu0 %v8061_v57  ;;  %v7880_v57 = vadd.f32 1.0, %v15008_v44  ;;  %v7591_v59 = vsub.f32 0.0, %v7045_v48  ;;  %15019 = vrcp.f32 %v7928_v54  ;;  %v14622_v44 = vld [vmem:[%s19635_s8 + $0x5f8] sm:$0xff]  }
 0xb85   :  { %11495 = vmatmul.mubr.bf16.vlgmr.msra.gmra.mxu1 %v8063_v5  ;;  %13757 = vmatpush3.bf16.msra.mxu0 %v14591_v16  ;;  %v14608_v16 = vld [vmem:[%s19635_s8 + $0x498] sm:$0xff]   ;;  %v7589_v5 = vsub.f32 0.0, %v7002_v12  ;;  %15021 = vrcp.f32 %v7878_v1 }
 0xb86   :  { %11535 = vmatprep.mubr.bf16.mxu0 %v8066_v63  ;;  %13779 = vmatpush3.bf16.msra.mxu1 %v14592_v61  ;;  %v7049_v61 = vadd.f32 %v18503_v39, %v3505_v47  ;;  %v7137_v63 = vadd.f32 %v7136_v28, %v3525_v43  ;;  %v7637_v39 = vsub.f32 0.0, %v7006_v18  ;;  %15023 = vrcp.f32 %v7880_v57  ;;  %v15010_v47 = vpop.eup %15009  ;;  %v14623_v48 = vld [vmem:[%s19635_s8 + $0x538] sm:$0xff]   ;;  %v18711_v57 = vpop.f32.mrf.mxu0 }
 0xb87   :  { %11576 = vmatprep.mubr.bf16.mxu1 %v8068_v8  ;;  %13758 = vmatprep.subr.bf16.mxu0 %v14593_v6  ;;  %v7094_v6 = vadd.f32 %v7093_v52, %v3517_v25  ;;  %v7090_v8 = vadd.f32 %v18600_v15, %v3517_v25  ;;  %v7705_v15 = vmul.f32 1.442695, %v7589_v5  ;;  %v7709_v20 = vmul.f32 1.442695, %v7591_v59  ;;  %v14625_v25 = vld [vmem:[%s19635_s8 + $0x570] sm:$0xff]   ;;  %v14630_v59 = vld [vmem:[%s19635_s8 + $0x5e8] sm:$0xff]  }
 0xb88   :  { %13780 = vmatprep.subr.bf16.mxu1 %v14594_v60  ;;  %v14611_v60 = vld [vmem:[%s19635_s8 + $0x410] sm:$0xff]   ;;  %v7801_v22 = vmul.f32 1.442695, %v7637_v39  ;;  %v14631_v39 = vld [vmem:[%s19635_s8 + $0x528] sm:$0xff]  }
 0xb89   :  { %13759 = vmatpush3.bf16.msra.mxu0 %v14595_v33  ;;  %v14612_v33 = vld [vmem:[%s19635_s8 + $0x490] sm:$0xff]   ;;  %15025 = vpow2.f32 %v7705_v15 }
 0xb8a   :  { %13781 = vmatpush3.bf16.msra.mxu1 %v14596_v35  ;;  %13760 = vmatprep.subr.bf16.mxu0 %v14597_v42  ;;  %v14613_v35 = vld [vmem:[%s19635_s8 + $0x448] sm:$0xff]   ;;  %v7639_v42 = vsub.f32 0.0, %v7049_v61  ;;  %15027 = vpow2.f32 %v7709_v20  ;;  %v14628_v5 = vld [vmem:[%s19635_s8 + $0x5b0] sm:$0xff]   ;;  %v3513_v20 = vrot.slane %v18641_v31, %v15800_v17 }
 0xb8b   :  { %13782 = vmatprep.subr.bf16.mxu1 %v14598_v10  ;;  %v7133_v10 = vadd.f32 %v18605_v27, %v3525_v43  ;;  %v14616_v27 = vld [vmem:[%s19635_s8 + $0x488] sm:$0xff]   ;;  %15029 = vpow2.f32 %v7801_v22  ;;  %v14627_v43 = vld [vmem:[%s19635_s8 + $0x530] sm:$0xff]   ;;  %v3521_v22 = vrot.slane %v18641_v31, %v16005_v58 }
 0xb8c   :  { %v7805_v4 = vmul.f32 1.442695, %v7639_v42  ;;  %v15012_v11 = vpop.eup %15011  ;;  %v14633_v42 = vld [vmem:[%s19635_s8 + $0x560] sm:$0xff]  }
 0xb8d   :  { %13761 = vmatpush3.bf16.msra.mxu0 %v14599_v55  ;;  %v7642_v55 = vsub.f32 0.0, %v7094_v6  ;;  %v7596_v14 = vsub.f32 0.0, %v7133_v10  ;;  %v15014_v41 = vpop.eup %15013  ;;  %v14629_v6 = vld [vmem:[%s19635_s8 + $0x568] sm:$0xff]  }
 0xb8e   :  { %13783 = vmatpush3.bf16.msra.mxu1 %v14600_v21  ;;  %13762 = vmatprep.subr.bf16.mxu0 %v14601_v56  ;;  %v7644_v21 = vsub.f32 0.0, %v7137_v63  ;;  %v14615_v56 = vld [vmem:[%s19635_s8 + $0x408] sm:$0xff]   ;;  %15031 = vpow2.f32 %v7805_v4  ;;  %v15016_v12 = vpop.eup %15015  ;;  %v8065_v52 = vpack.c.bf16 %v15014_v41, %v15010_v47 }
 0xb8f   :  { %13784 = vmatprep.subr.bf16.mxu1 %v14602_v29  ;;  %v7594_v29 = vsub.f32 0.0, %v7090_v8  ;;  %v7811_v30 = vmul.f32 1.442695, %v7642_v55  ;;  %v15018_v46 = vpop.eup %15017  ;;  %v8067_v18 = vpack.c.bf16 %v15016_v12, %v15012_v11 }
 0xb91   :  { %13763 = vmatpush3.bf16.msra.mxu0 %v14603_v7  ;;  %v7815_v7 = vmul.f32 1.442695, %v7644_v21  ;;  %15033 = vpow2.f32 %v7811_v30  ;;  %v15020_v54 = vpop.eup %15019  ;;  %v14637_v30 = vld [vmem:[%s19635_s8 + $0x558] sm:$0xff]  }
 0xb92   :  { %13785 = vmatpush3.bf16.msra.mxu1 %v14604_v26  ;;  %13764 = vmatprep.subr.bf16.mxu0 %v14605_v2  ;;  %v7715_v26 = vmul.f32 1.442695, %v7594_v29  ;;  %v14620_v2 = vld [vmem:[%s19635_s8 + $0x480] sm:$0xff]   ;;  %v15022_v1 = vpop.eup %15021 }
 0xb93   :  { %13786 = vmatprep.subr.bf16.mxu1 %v14606_v9  ;;  %v7719_v9 = vmul.f32 1.442695, %v7596_v14  ;;  %15035 = vpow2.f32 %v7815_v7  ;;  %v15024_v28 = vpop.eup %15023 }
 0xb94   :  { %15037 = vpow2.f32 %v7715_v26  ;;  %v8072_v61 = vpack.c.bf16 %v15020_v54, %v15024_v28  ;;  %v7088_v26 = vadd.f32 %v18584_v3, %v3513_v20  ;;  %v14640_v3 = vld [vmem:[%s19635_s8 + $0x598] sm:$0xff]  }
 0xb95   :  { %13765 = vmatpush3.bf16.msra.mxu0 %v14607_v53  ;;  %v14624_v53 = vld [vmem:[%s19635_s8 + $0x5b8] sm:$0xff]   ;;  %15039 = vpow2.f32 %v7719_v9 }
 0xb96   :  { %13787 = vmatpush3.bf16.msra.mxu1 %v14608_v16  ;;  %13766 = vmatprep.subr.bf16.mxu0 %v14609_v23  ;;  %v8070_v16 = vpack.c.bf16 %v15018_v46, %v15022_v1  ;;  %v14626_v23 = vld [vmem:[%s19635_s8 + $0x5f0] sm:$0xff]   ;;  %v15026_v63 = vpop.eup %15025  ;;  %v7092_v46 = vadd.f32 %v18620_v62, %v3513_v20  ;;  %v3541_v62 = vrot.slane %v18641_v31, %v18012_v19 }
 0xb97   :  { %13788 = vmatprep.subr.bf16.mxu1 %v14610_v24  ;;  %v18716_v24 = vpop.f32.mrf.mxu1  ;;  %v15028_v8 = vpop.eup %15027  ;;  %v7877_v55 = vadd.f32 1.0, %v15026_v63  ;;  %v14642_v1 = vld [vmem:[%s19635_s8 + $0x5d0] sm:$0xff]   ;;  %v14646_v63 = vld [vmem:[%s19635_s8 + $0x5c8] sm:$0xff]  }
 0xb98   :  { %v15030_v10 = vpop.eup %15029 }
 0xb99   :  { %13767 = vmatpush3.bf16.msra.mxu0 %v14611_v60  ;;  %v18727_v60 = vpop.f32.mrf.mxu0  ;;  %v7925_v4 = vadd.f32 1.0, %v15030_v10  ;;  %15041 = vrcp.f32 %v7877_v55 }
 0xb9a   :  { %13789 = vmatpush3.bf16.msra.mxu1 %v14612_v33  ;;  %13768 = vmatprep.subr.bf16.mxu0 %v14613_v35  ;;  %v18732_v33 = vpop.f32.mrf.mxu1  ;;  %v14632_v35 = vld [vmem:[%s19635_s8 + $0x5a8] sm:$0xff]  }
 0xb9b   :  { %13790 = vmatprep.subr.bf16.mxu1 %v14614_v13  ;;  %v14634_v13 = vld [vmem:[%s19635_s8 + $0x5e0] sm:$0xff]   ;;  %v15032_v15 = vpop.eup %15031  ;;  %v18747_v29 = vpop.f32.mrf.mxu0 }
 0xb9c   :  { %v18752_v14 = vpop.f32.mrf.mxu1  ;;  %v7927_v7 = vadd.f32 1.0, %v15032_v15  ;;  %v14649_v15 = vld [vmem:[%s19635_s8 + $0x540] sm:$0xff]  }
 0xb9d   :  { %13769 = vmatpush3.bf16.msra.mxu0 %v14615_v56  ;;  %v7879_v56 = vadd.f32 1.0, %v15028_v8  ;;  %v7179_v9 = vpop.f32.mrf.mxu0 }
 0xb9e   :  { %13791 = vmatpush3.bf16.msra.mxu1 %v14616_v27  ;;  %13770 = vmatprep.subr.bf16.mxu0 %v14617_v37  ;;  %v15034_v21 = vpop.eup %15033  ;;  %v14635_v27 = vld [vmem:[%s19635_s8 + $0x520] sm:$0xff]   ;;  %v7222_v54 = vpop.f32.mrf.mxu1 }
 0xb9f   :  { %13792 = vmatprep.subr.bf16.mxu1 %v14618_v45  ;;  %v14636_v45 = vld [vmem:[%s19635_s8 + $0x5a0] sm:$0xff]   ;;  %15043 = vrcp.f32 %v7879_v56 }
 0xba0   :  { %v15036_v37 = vpop.eup %15035  ;;  %15045 = vrcp.f32 %v7925_v4 }
 0xba1   :  { %13771 = vmatpush3.bf16.msra.mxu0 %v14619_v34  ;;  %v15038_v47 = vpop.eup %15037  ;;  %v14638_v34 = vld [vmem:[%s19635_s8 + $0x5d8] sm:$0xff]   ;;  %v7932_v41 = vadd.f32 1.0, %v15036_v37  ;;  %15047 = vrcp.f32 %v7927_v7  ;;  %v14651_v37 = vld [vmem:[%s19635_s8 + $0x500] sm:$0xff]  }
 0xba2   :  { %13793 = vmatpush3.bf16.msra.mxu1 %v14620_v2  ;;  %13800 = vmatprep.subr.bf16.mxu0 %v14621_v40  ;;  %v15040_v11 = vpop.eup %15039  ;;  %v7930_v2 = vadd.f32 1.0, %v15034_v21  ;;  %v7131_v40 = vadd.f32 %v18589_v0, %v3521_v22  ;;  %v7882_v12 = vadd.f32 1.0, %v15038_v47  ;;  %v14641_v0 = vld [vmem:[%s19635_s8 + $0x550] sm:$0xff]   ;;  %v14650_v21 = vld [vmem:[%s19635_s8 + $0x5c0] sm:$0xff]   ;;  %v14653_v47 = vld [vmem:[%s19635_s8 + $0x678] sm:$0xff]  }
 0xba3   :  { %13822 = vmatprep.subr.bf16.mxu1 %v14622_v44  ;;  %v14639_v44 = vld [vmem:[%s19635_s8 + $0x518] sm:$0xff]  }
 0xba4   :  { %11536 = vmatmul.mubr.bf16.vlgmr.msra.gmra.mxu0 %v8065_v52  ;;  %v7884_v52 = vadd.f32 1.0, %v15040_v11  ;;  %15049 = vrcp.f32 %v7930_v2  ;;  %v7595_v28 = vsub.f32 0.0, %v7131_v40  ;;  %v14654_v11 = vld [vmem:[%s19635_s8 + $0x6f8] sm:$0xff]  }
 0xba5   :  { %11577 = vmatmul.mubr.bf16.vlgmr.msra.gmra.mxu1 %v8067_v18  ;;  %13801 = vmatpush3.bf16.msra.mxu0 %v14623_v48  ;;  %v3533_v48 = vrot.slane %v18641_v31, %v18007_v32  ;;  %v7593_v18 = vsub.f32 0.0, %v7088_v26  ;;  %15051 = vrcp.f32 %v7932_v41  ;;  %v14655_v40 = vld [vmem:[%s19635_s8 + $0x638] sm:$0xff]  }
 0xba6   :  { %11617 = vmatprep.mubr.bf16.mxu0 %v8070_v16  ;;  %13823 = vmatpush3.bf16.msra.mxu1 %v14624_v53  ;;  %v7135_v53 = vadd.f32 %v18625_v38, %v3521_v22  ;;  %v7223_v16 = vadd.f32 %v7222_v54, %v3541_v62  ;;  %15053 = vrcp.f32 %v7882_v12  ;;  %v7641_v38 = vsub.f32 0.0, %v7092_v46  ;;  %v15042_v22 = vpop.eup %15041 }
 0xba7   :  { %11658 = vmatprep.mubr.bf16.mxu1 %v8072_v61  ;;  %13802 = vmatprep.subr.bf16.mxu0 %v14625_v25  ;;  %v7180_v25 = vadd.f32 %v7179_v9, %v3533_v48  ;;  %v7176_v61 = vadd.f32 %v18727_v60, %v3533_v48  ;;  %15055 = vrcp.f32 %v7884_v52  ;;  %v7713_v60 = vmul.f32 1.442695, %v7593_v18  ;;  %v14657_v48 = vld [vmem:[%s19635_s8 + $0x670] sm:$0xff]   ;;  %v18833_v52 = vpop.f32.mrf.mxu0 }
 0xba8   :  { %13824 = vmatprep.subr.bf16.mxu1 %v14626_v23  ;;  %v14643_v23 = vld [vmem:[%s19635_s8 + $0x510] sm:$0xff]   ;;  %v7717_v8 = vmul.f32 1.442695, %v7595_v28  ;;  %v7809_v10 = vmul.f32 1.442695, %v7641_v38  ;;  %v14662_v28 = vld [vmem:[%s19635_s8 + $0x6e8] sm:$0xff]  }
 0xba9   :  { %13803 = vmatpush3.bf16.msra.mxu0 %v14627_v43  ;;  %v14644_v43 = vld [vmem:[%s19635_s8 + $0x590] sm:$0xff]   ;;  %15057 = vpow2.f32 %v7713_v60  ;;  %v14663_v38 = vld [vmem:[%s19635_s8 + $0x628] sm:$0xff]  }
 0xbaa   :  { %13825 = vmatpush3.bf16.msra.mxu1 %v14628_v5  ;;  %13804 = vmatprep.subr.bf16.mxu0 %v14629_v6  ;;  %v14645_v5 = vld [vmem:[%s19635_s8 + $0x548] sm:$0xff]   ;;  %v7643_v6 = vsub.f32 0.0, %v7135_v53  ;;  %15059 = vpow2.f32 %v7717_v8  ;;  %v14660_v18 = vld [vmem:[%s19635_s8 + $0x6b0] sm:$0xff]   ;;  %v3529_v8 = vrot.slane %v18641_v31, %v18097_v49 }
 0xbab   :  { %13826 = vmatprep.subr.bf16.mxu1 %v14630_v59  ;;  %v7219_v59 = vadd.f32 %v18732_v33, %v3541_v62  ;;  %v14648_v33 = vld [vmem:[%s19635_s8 + $0x588] sm:$0xff]   ;;  %15061 = vpow2.f32 %v7809_v10  ;;  %v14659_v62 = vld [vmem:[%s19635_s8 + $0x630] sm:$0xff]   ;;  %v3537_v10 = vrot.slane %v18641_v31, %v18100_v50  ;;  %v14669_v31 = vld [vmem:[%s19635_s8 + $0x658] sm:$0xff]  }
 0xbac   :  { %v7813_v55 = vmul.f32 1.442695, %v7643_v6  ;;  %v15044_v4 = vpop.eup %15043  ;;  %v14665_v6 = vld [vmem:[%s19635_s8 + $0x660] sm:$0xff]  }
 0xbad   :  { %13805 = vmatpush3.bf16.msra.mxu0 %v14631_v39  ;;  %v7646_v39 = vsub.f32 0.0, %v7180_v25  ;;  %v7600_v20 = vsub.f32 0.0, %v7219_v59  ;;  %v15046_v7 = vpop.eup %15045  ;;  %v14661_v25 = vld [vmem:[%s19635_s8 + $0x668] sm:$0xff]  }
 0xbae   :  { %13827 = vmatpush3.bf16.msra.mxu1 %v14632_v35  ;;  %13806 = vmatprep.subr.bf16.mxu0 %v14633_v42  ;;  %v7648_v35 = vsub.f32 0.0, %v7223_v16  ;;  %v14647_v42 = vld [vmem:[%s19635_s8 + $0x508] sm:$0xff]   ;;  %15063 = vpow2.f32 %v7813_v55  ;;  %v15048_v26 = vpop.eup %15047  ;;  %v8069_v9 = vpack.c.bf16 %v15046_v7, %v15042_v22 }
 0xbaf   :  { %13828 = vmatprep.subr.bf16.mxu1 %v14634_v13  ;;  %v7598_v13 = vsub.f32 0.0, %v7176_v61  ;;  %v7819_v56 = vmul.f32 1.442695, %v7646_v39  ;;  %v8071_v46 = vpack.c.bf16 %v15048_v26, %v15044_v4  ;;  %v7174_v4 = vadd.f32 %v18711_v57, %v3529_v8  ;;  %v18890_v7 = vld [vmem:[%s19636_s9 + $0x28] sm:$0xff] }
 0xbb0   :  { %v7178_v57 = vadd.f32 %v18747_v29, %v3529_v8  ;;  %v3557_v29 = vrot.slane %v18890_v7, %v17879_v36 }
 0xbb1   :  { %13807 = vmatpush3.bf16.msra.mxu0 %v14635_v27  ;;  %v7823_v27 = vmul.f32 1.442695, %v7648_v35  ;;  %15065 = vpow2.f32 %v7819_v56  ;;  %v15050_v2 = vpop.eup %15049 }
 0xbb2   :  { %13829 = vmatpush3.bf16.msra.mxu1 %v14636_v45  ;;  %13808 = vmatprep.subr.bf16.mxu0 %v14637_v30  ;;  %v7723_v45 = vmul.f32 1.442695, %v7598_v13  ;;  %v14652_v30 = vld [vmem:[%s19635_s8 + $0x580] sm:$0xff]   ;;  %v15052_v41 = vpop.eup %15051 }
 0xbb3   :  { %13830 = vmatprep.subr.bf16.mxu1 %v14638_v34  ;;  %v7727_v34 = vmul.f32 1.442695, %v7600_v20  ;;  %15067 = vpow2.f32 %v7823_v27  ;;  %v15054_v12 = vpop.eup %15053  ;;  %v14670_v27 = vld [vmem:[%s19635_s8 + $0x6d8] sm:$0xff]  }
 0xbb4   :  { %15069 = vpow2.f32 %v7723_v45  ;;  %v15056_v54 = vpop.eup %15055 }
 0xbb5   :  { %13809 = vmatpush3.bf16.msra.mxu0 %v14639_v44  ;;  %v14656_v44 = vld [vmem:[%s19635_s8 + $0x6b8] sm:$0xff]   ;;  %15071 = vpow2.f32 %v7727_v34  ;;  %v8076_v53 = vpack.c.bf16 %v15052_v41, %v15056_v54  ;;  %v14673_v41 = vld [vmem:[%s19635_s8 + $0x650] sm:$0xff]  }
 0xbb6   :  { %13831 = vmatpush3.bf16.msra.mxu1 %v14640_v3  ;;  %13810 = vmatprep.subr.bf16.mxu0 %v14641_v0  ;;  %v8074_v3 = vpack.c.bf16 %v15050_v2, %v15054_v12  ;;  %v14658_v0 = vld [vmem:[%s19635_s8 + $0x6f0] sm:$0xff]   ;;  %v15058_v16 = vpop.eup %15057  ;;  %v3549_v2 = vrot.slane %v18890_v7, %v16000_v51 }
 0xbb7   :  { %13832 = vmatprep.subr.bf16.mxu1 %v14642_v1  ;;  %v18838_v1 = vpop.f32.mrf.mxu1  ;;  %v15060_v61 = vpop.eup %15059  ;;  %v7881_v39 = vadd.f32 1.0, %v15058_v16  ;;  %v14674_v12 = vld [vmem:[%s19635_s8 + $0x6d0] sm:$0xff]   ;;  %v14678_v16 = vld [vmem:[%s19635_s8 + $0x6c8] sm:$0xff]  }
 0xbb8   :  { %v15062_v59 = vpop.eup %15061 }
 0xbb9   :  { %13811 = vmatpush3.bf16.msra.mxu0 %v14643_v23  ;;  %v18849_v23 = vpop.f32.mrf.mxu0  ;;  %v7929_v55 = vadd.f32 1.0, %v15062_v59  ;;  %15073 = vrcp.f32 %v7881_v39 }
 0xbba   :  { %13833 = vmatpush3.bf16.msra.mxu1 %v14644_v43  ;;  %13812 = vmatprep.subr.bf16.mxu0 %v14645_v5  ;;  %v18854_v43 = vpop.f32.mrf.mxu1  ;;  %v14664_v5 = vld [vmem:[%s19635_s8 + $0x6a8] sm:$0xff]  }
 0xbbb   :  { %13834 = vmatprep.subr.bf16.mxu1 %v14646_v63  ;;  %v14666_v63 = vld [vmem:[%s19635_s8 + $0x6e0] sm:$0xff]   ;;  %v15064_v60 = vpop.eup %15063  ;;  %v18869_v13 = vpop.f32.mrf.mxu0 }
 0xbbc   :  { %v18874_v20 = vpop.f32.mrf.mxu1  ;;  %v7931_v22 = vadd.f32 1.0, %v15064_v60  ;;  %v14681_v60 = vld [vmem:[%s19635_s8 + $0x640] sm:$0xff]  }
 0xbbd   :  { %13813 = vmatpush3.bf16.msra.mxu0 %v14647_v42  ;;  %v7883_v42 = vadd.f32 1.0, %v15060_v61  ;;  %v7265_v34 = vpop.f32.mrf.mxu0 }
 0xbbe   :  { %13835 = vmatpush3.bf16.msra.mxu1 %v14648_v33  ;;  %13814 = vmatprep.subr.bf16.mxu0 %v14649_v15  ;;  %v15066_v35 = vpop.eup %15065  ;;  %v14667_v33 = vld [vmem:[%s19635_s8 + $0x620] sm:$0xff]  }
 0xbbf   :  { %13836 = vmatprep.subr.bf16.mxu1 %v14650_v21  ;;  %v14668_v21 = vld [vmem:[%s19635_s8 + $0x6a0] sm:$0xff]   ;;  %v7934_v45 = vadd.f32 1.0, %v15066_v35  ;;  %15075 = vrcp.f32 %v7883_v42 }
 0xbc0   :  { %v15068_v15 = vpop.eup %15067  ;;  %15077 = vrcp.f32 %v7929_v55  ;;  %v14682_v35 = vld [vmem:[%s19635_s8 + $0x6c0] sm:$0xff]  }
 0xbc1   :  { %13815 = vmatpush3.bf16.msra.mxu0 %v14651_v37  ;;  %v15070_v56 = vpop.eup %15069  ;;  %15079 = vrcp.f32 %v7931_v22 }
 0xbc2   :  { %13837 = vmatpush3.bf16.msra.mxu1 %v14652_v30  ;;  %13844 = vmatprep.subr.bf16.mxu0 %v14653_v47  ;;  %v15072_v37 = vpop.eup %15071  ;;  %v7217_v30 = vadd.f32 %v18716_v24, %v3537_v10  ;;  %v7936_v47 = vadd.f32 1.0, %v15068_v15  ;;  %v7886_v26 = vadd.f32 1.0, %v15070_v56  ;;  %v7308_v24 = vpop.f32.mrf.mxu1  ;;  %15081 = vrcp.f32 %v7934_v45  ;;  %v14683_v15 = vld [vmem:[%s19635_s8 + $0x600] sm:$0xff]   ;;  %v14685_v56 = vld [vmem:[%s19635_s8 + $0x778] sm:$0xff]  }
 0xbc3   :  { %13866 = vmatprep.subr.bf16.mxu1 %v14654_v11  ;;  %v14671_v11 = vld [vmem:[%s19635_s8 + $0x618] sm:$0xff]  }
 0xbc4   :  { %11618 = vmatmul.mubr.bf16.vlgmr.msra.gmra.mxu0 %v8069_v9  ;;  %v7888_v9 = vadd.f32 1.0, %v15072_v37  ;;  %v7599_v54 = vsub.f32 0.0, %v7217_v30  ;;  %15083 = vrcp.f32 %v7936_v47  ;;  %v14686_v37 = vld [vmem:[%s19635_s8 + $0x7f8] sm:$0xff]  }
 0xbc5   :  { %11659 = vmatmul.mubr.bf16.vlgmr.msra.gmra.mxu1 %v8071_v46  ;;  %13845 = vmatpush3.bf16.msra.mxu0 %v14655_v40  ;;  %v14672_v40 = vld [vmem:[%s19635_s8 + $0x698] sm:$0xff]   ;;  %v7597_v46 = vsub.f32 0.0, %v7174_v4  ;;  %15085 = vrcp.f32 %v7886_v26 }
 0xbc6   :  { %11699 = vmatprep.mubr.bf16.mxu0 %v8074_v3  ;;  %13867 = vmatpush3.bf16.msra.mxu1 %v14656_v44  ;;  %v7221_v44 = vadd.f32 %v18752_v14, %v3537_v10  ;;  %v7309_v3 = vadd.f32 %v7308_v24, %v3557_v29  ;;  %v7645_v14 = vsub.f32 0.0, %v7178_v57  ;;  %15087 = vrcp.f32 %v7888_v9  ;;  %v15074_v10 = vpop.eup %15073  ;;  %v14687_v30 = vld [vmem:[%s19635_s8 + $0x738] sm:$0xff]   ;;  %v18960_v9 = vpop.f32.mrf.mxu0 }
 0xbc7   :  { %11740 = vmatprep.mubr.bf16.mxu1 %v8076_v53  ;;  %13846 = vmatprep.subr.bf16.mxu0 %v14657_v48  ;;  %v7266_v48 = vadd.f32 %v7265_v34, %v3549_v2  ;;  %v7262_v53 = vadd.f32 %v18849_v23, %v3549_v2  ;;  %v7721_v23 = vmul.f32 1.442695, %v7597_v46  ;;  %v7725_v61 = vmul.f32 1.442695, %v7599_v54  ;;  %v14689_v2 = vld [vmem:[%s19635_s8 + $0x770] sm:$0xff]   ;;  %v14694_v54 = vld [vmem:[%s19635_s8 + $0x7e8] sm:$0xff]  }
 0xbc8   :  { %13868 = vmatprep.subr.bf16.mxu1 %v14658_v0  ;;  %v14675_v0 = vld [vmem:[%s19635_s8 + $0x610] sm:$0xff]   ;;  %v7817_v59 = vmul.f32 1.442695, %v7645_v14  ;;  %v14695_v14 = vld [vmem:[%s19635_s8 + $0x728] sm:$0xff]  }
 0xbc9   :  { %13847 = vmatpush3.bf16.msra.mxu0 %v14659_v62  ;;  %v14676_v62 = vld [vmem:[%s19635_s8 + $0x690] sm:$0xff]   ;;  %15089 = vpow2.f32 %v7721_v23 }
 0xbca   :  { %13869 = vmatpush3.bf16.msra.mxu1 %v14660_v18  ;;  %13848 = vmatprep.subr.bf16.mxu0 %v14661_v25  ;;  %v14677_v18 = vld [vmem:[%s19635_s8 + $0x648] sm:$0xff]   ;;  %v7647_v25 = vsub.f32 0.0, %v7221_v44  ;;  %15091 = vpow2.f32 %v7725_v61  ;;  %v14692_v46 = vld [vmem:[%s19635_s8 + $0x7b0] sm:$0xff]   ;;  %v3545_v61 = vrot.slane %v18890_v7, %v15800_v17 }
 0xbcb   :  { %13870 = vmatprep.subr.bf16.mxu1 %v14662_v28  ;;  %v7305_v28 = vadd.f32 %v18854_v43, %v3557_v29  ;;  %v14680_v43 = vld [vmem:[%s19635_s8 + $0x688] sm:$0xff]   ;;  %15093 = vpow2.f32 %v7817_v59  ;;  %v14691_v29 = vld [vmem:[%s19635_s8 + $0x730] sm:$0xff]   ;;  %v3553_v59 = vrot.slane %v18890_v7, %v16005_v58 }
 0xbcc   :  { %v7821_v39 = vmul.f32 1.442695, %v7647_v25  ;;  %v15076_v55 = vpop.eup %15075  ;;  %v14697_v25 = vld [vmem:[%s19635_s8 + $0x760] sm:$0xff]  }
 0xbcd   :  { %13849 = vmatpush3.bf16.msra.mxu0 %v14663_v38  ;;  %v7650_v38 = vsub.f32 0.0, %v7266_v48  ;;  %v7604_v8 = vsub.f32 0.0, %v7305_v28  ;;  %v15078_v22 = vpop.eup %15077  ;;  %v14693_v48 = vld [vmem:[%s19635_s8 + $0x768] sm:$0xff]  }
 0xbce   :  { %13871 = vmatpush3.bf16.msra.mxu1 %v14664_v5  ;;  %13850 = vmatprep.subr.bf16.mxu0 %v14665_v6  ;;  %v7652_v5 = vsub.f32 0.0, %v7309_v3  ;;  %v14679_v6 = vld [vmem:[%s19635_s8 + $0x608] sm:$0xff]   ;;  %15095 = vpow2.f32 %v7821_v39  ;;  %v15080_v4 = vpop.eup %15079  ;;  %v8073_v34 = vpack.c.bf16 %v15078_v22, %v15074_v10 }
 0xbcf   :  { %13872 = vmatprep.subr.bf16.mxu1 %v14666_v63  ;;  %v7602_v63 = vsub.f32 0.0, %v7262_v53  ;;  %v7827_v42 = vmul.f32 1.442695, %v7650_v38  ;;  %v15082_v45 = vpop.eup %15081  ;;  %v8075_v57 = vpack.c.bf16 %v15080_v4, %v15076_v55 }
 0xbd1   :  { %13851 = vmatpush3.bf16.msra.mxu0 %v14667_v33  ;;  %v7831_v33 = vmul.f32 1.442695, %v7652_v5  ;;  %15097 = vpow2.f32 %v7827_v42  ;;  %v15084_v47 = vpop.eup %15083  ;;  %v14701_v42 = vld [vmem:[%s19635_s8 + $0x758] sm:$0xff]  }
 0xbd2   :  { %13873 = vmatpush3.bf16.msra.mxu1 %v14668_v21  ;;  %13852 = vmatprep.subr.bf16.mxu0 %v14669_v31  ;;  %v7731_v21 = vmul.f32 1.442695, %v7602_v63  ;;  %v14684_v31 = vld [vmem:[%s19635_s8 + $0x680] sm:$0xff]   ;;  %v15086_v26 = vpop.eup %15085 }
 0xbd3   :  { %13874 = vmatprep.subr.bf16.mxu1 %v14670_v27  ;;  %v7735_v27 = vmul.f32 1.442695, %v7604_v8  ;;  %15099 = vpow2.f32 %v7831_v33  ;;  %v15088_v24 = vpop.eup %15087 }
 0xbd4   :  { %15101 = vpow2.f32 %v7731_v21  ;;  %v8080_v44 = vpack.c.bf16 %v15084_v47, %v15088_v24  ;;  %v7260_v21 = vadd.f32 %v18833_v52, %v3545_v61  ;;  %v14704_v52 = vld [vmem:[%s19635_s8 + $0x798] sm:$0xff]  }
 0xbd5   :  { %13853 = vmatpush3.bf16.msra.mxu0 %v14671_v11  ;;  %v14688_v11 = vld [vmem:[%s19635_s8 + $0x7b8] sm:$0xff]   ;;  %15103 = vpow2.f32 %v7735_v27 }
 0xbd6   :  { %13875 = vmatpush3.bf16.msra.mxu1 %v14672_v40  ;;  %13854 = vmatprep.subr.bf16.mxu0 %v14673_v41  ;;  %v8078_v40 = vpack.c.bf16 %v15082_v45, %v15086_v26  ;;  %v14690_v41 = vld [vmem:[%s19635_s8 + $0x7f0] sm:$0xff]   ;;  %v15090_v3 = vpop.eup %15089  ;;  %v7264_v45 = vadd.f32 %v18869_v13, %v3545_v61  ;;  %v3573_v13 = vrot.slane %v18890_v7, %v18012_v19 }
 0xbd7   :  { %13876 = vmatprep.subr.bf16.mxu1 %v14674_v12  ;;  %v18965_v12 = vpop.f32.mrf.mxu1  ;;  %v15092_v53 = vpop.eup %15091  ;;  %v7885_v38 = vadd.f32 1.0, %v15090_v3  ;;  %v14706_v26 = vld [vmem:[%s19635_s8 + $0x7d0] sm:$0xff]   ;;  %v14710_v3 = vld [vmem:[%s19635_s8 + $0x7c8] sm:$0xff]  }
 0xbd8   :  { %v15094_v28 = vpop.eup %15093 }
 0xbd9   :  { %13855 = vmatpush3.bf16.msra.mxu0 %v14675_v0  ;;  %v18976_v0 = vpop.f32.mrf.mxu0  ;;  %v7933_v39 = vadd.f32 1.0, %v15094_v28  ;;  %15105 = vrcp.f32 %v7885_v38 }
 0xbda   :  { %13877 = vmatpush3.bf16.msra.mxu1 %v14676_v62  ;;  %13856 = vmatprep.subr.bf16.mxu0 %v14677_v18  ;;  %v18981_v62 = vpop.f32.mrf.mxu1  ;;  %v14696_v18 = vld [vmem:[%s19635_s8 + $0x7a8] sm:$0xff]  }
 0xbdb   :  { %13878 = vmatprep.subr.bf16.mxu1 %v14678_v16  ;;  %v14698_v16 = vld [vmem:[%s19635_s8 + $0x7e0] sm:$0xff]   ;;  %v15096_v23 = vpop.eup %15095  ;;  %v18996_v63 = vpop.f32.mrf.mxu0 }
 0xbdc   :  { %v19001_v8 = vpop.f32.mrf.mxu1  ;;  %v7935_v33 = vadd.f32 1.0, %v15096_v23  ;;  %v14713_v23 = vld [vmem:[%s19635_s8 + $0x740] sm:$0xff]  }
 0xbdd   :  { %13857 = vmatpush3.bf16.msra.mxu0 %v14679_v6  ;;  %v7887_v6 = vadd.f32 1.0, %v15092_v53  ;;  %v7351_v27 = vpop.f32.mrf.mxu0 }
 0xbde   :  { %13879 = vmatpush3.bf16.msra.mxu1 %v14680_v43  ;;  %13858 = vmatprep.subr.bf16.mxu0 %v14681_v60  ;;  %v15098_v5 = vpop.eup %15097  ;;  %v14699_v43 = vld [vmem:[%s19635_s8 + $0x720] sm:$0xff]   ;;  %v7394_v47 = vpop.f32.mrf.mxu1 }
 0xbdf   :  { %13880 = vmatprep.subr.bf16.mxu1 %v14682_v35  ;;  %v14700_v35 = vld [vmem:[%s19635_s8 + $0x7a0] sm:$0xff]   ;;  %15107 = vrcp.f32 %v7887_v6 }
 0xbe0   :  { %v15100_v60 = vpop.eup %15099  ;;  %15109 = vrcp.f32 %v7933_v39 }
 0xbe1   :  { %13859 = vmatpush3.bf16.msra.mxu0 %v14683_v15  ;;  %v15102_v10 = vpop.eup %15101  ;;  %v14702_v15 = vld [vmem:[%s19635_s8 + $0x7d8] sm:$0xff]   ;;  %v7940_v22 = vadd.f32 1.0, %v15100_v60  ;;  %15111 = vrcp.f32 %v7935_v33  ;;  %v14715_v60 = vld [vmem:[%s19635_s8 + $0x700] sm:$0xff]  }
 0xbe2   :  { %13881 = vmatpush3.bf16.msra.mxu1 %v14684_v31  ;;  %13888 = vmatprep.subr.bf16.mxu0 %v14685_v56  ;;  %v15104_v55 = vpop.eup %15103  ;;  %v7938_v31 = vadd.f32 1.0, %v15098_v5  ;;  %v7303_v56 = vadd.f32 %v18838_v1, %v3553_v59  ;;  %v7890_v4 = vadd.f32 1.0, %v15102_v10  ;;  %v14705_v1 = vld [vmem:[%s19635_s8 + $0x750] sm:$0xff]   ;;  %v14714_v5 = vld [vmem:[%s19635_s8 + $0x7c0] sm:$0xff]   ;;  %v14717_v10 = vld [vmem:[%s19635_s8 + $0x878] sm:$0xff]  }
 0xbe3   :  { %13910 = vmatprep.subr.bf16.mxu1 %v14686_v37  ;;  %v14703_v37 = vld [vmem:[%s19635_s8 + $0x718] sm:$0xff]  }
 0xbe4   :  { %11700 = vmatmul.mubr.bf16.vlgmr.msra.gmra.mxu0 %v8073_v34  ;;  %v7892_v34 = vadd.f32 1.0, %v15104_v55  ;;  %15113 = vrcp.f32 %v7938_v31  ;;  %v7603_v24 = vsub.f32 0.0, %v7303_v56  ;;  %v14718_v55 = vld [vmem:[%s19635_s8 + $0x8f8] sm:$0xff]  }
 0xbe5   :  { %11741 = vmatmul.mubr.bf16.vlgmr.msra.gmra.mxu1 %v8075_v57  ;;  %13889 = vmatpush3.bf16.msra.mxu0 %v14687_v30  ;;  %v3565_v30 = vrot.slane %v18890_v7, %v18007_v32  ;;  %v7601_v57 = vsub.f32 0.0, %v7260_v21  ;;  %15115 = vrcp.f32 %v7940_v22  ;;  %v14719_v56 = vld [vmem:[%s19635_s8 + $0x838] sm:$0xff]  }
 0xbe6   :  { %11781 = vmatprep.mubr.bf16.mxu0 %v8078_v40  ;;  %13911 = vmatpush3.bf16.msra.mxu1 %v14688_v11  ;;  %v7307_v11 = vadd.f32 %v18874_v20, %v3553_v59  ;;  %v7395_v40 = vadd.f32 %v7394_v47, %v3573_v13  ;;  %15117 = vrcp.f32 %v7890_v4  ;;  %v7649_v20 = vsub.f32 0.0, %v7264_v45  ;;  %v15106_v59 = vpop.eup %15105 }
 0xbe7   :  { %11822 = vmatprep.mubr.bf16.mxu1 %v8080_v44  ;;  %13890 = vmatprep.subr.bf16.mxu0 %v14689_v2  ;;  %v7352_v2 = vadd.f32 %v7351_v27, %v3565_v30  ;;  %v7348_v44 = vadd.f32 %v18976_v0, %v3565_v30  ;;  %15119 = vrcp.f32 %v7892_v34  ;;  %v7729_v0 = vmul.f32 1.442695, %v7601_v57  ;;  %v14721_v30 = vld [vmem:[%s19635_s8 + $0x870] sm:$0xff]   ;;  %v19082_v34 = vpop.f32.mrf.mxu0 }
 0xbe8   :  { %13912 = vmatprep.subr.bf16.mxu1 %v14690_v41  ;;  %v14707_v41 = vld [vmem:[%s19635_s8 + $0x710] sm:$0xff]   ;;  %v7733_v53 = vmul.f32 1.442695, %v7603_v24  ;;  %v7825_v28 = vmul.f32 1.442695, %v7649_v20  ;;  %v14726_v24 = vld [vmem:[%s19635_s8 + $0x8e8] sm:$0xff]  }
 0xbe9   :  { %13891 = vmatpush3.bf16.msra.mxu0 %v14691_v29  ;;  %v14708_v29 = vld [vmem:[%s19635_s8 + $0x790] sm:$0xff]   ;;  %15121 = vpow2.f32 %v7729_v0  ;;  %v14727_v20 = vld [vmem:[%s19635_s8 + $0x828] sm:$0xff]  }
 0xbea   :  { %13913 = vmatpush3.bf16.msra.mxu1 %v14692_v46  ;;  %13892 = vmatprep.subr.bf16.mxu0 %v14693_v48  ;;  %v14709_v46 = vld [vmem:[%s19635_s8 + $0x748] sm:$0xff]   ;;  %v7651_v48 = vsub.f32 0.0, %v7307_v11  ;;  %15123 = vpow2.f32 %v7733_v53  ;;  %v14724_v57 = vld [vmem:[%s19635_s8 + $0x8b0] sm:$0xff]   ;;  %v3561_v53 = vrot.slane %v18890_v7, %v18097_v49 }
 0xbeb   :  { %13914 = vmatprep.subr.bf16.mxu1 %v14694_v54  ;;  %v7391_v54 = vadd.f32 %v18981_v62, %v3573_v13  ;;  %v14712_v62 = vld [vmem:[%s19635_s8 + $0x788] sm:$0xff]   ;;  %15125 = vpow2.f32 %v7825_v28  ;;  %v14723_v13 = vld [vmem:[%s19635_s8 + $0x830] sm:$0xff]   ;;  %v3569_v28 = vrot.slane %v18890_v7, %v18100_v50  ;;  %v14733_v7 = vld [vmem:[%s19635_s8 + $0x858] sm:$0xff]  }
 0xbec   :  { %v7829_v38 = vmul.f32 1.442695, %v7651_v48  ;;  %v15108_v39 = vpop.eup %15107  ;;  %v14729_v48 = vld [vmem:[%s19635_s8 + $0x860] sm:$0xff]  }
 0xbed   :  { %13893 = vmatpush3.bf16.msra.mxu0 %v14695_v14  ;;  %v7654_v14 = vsub.f32 0.0, %v7352_v2  ;;  %v7608_v61 = vsub.f32 0.0, %v7391_v54  ;;  %v15110_v33 = vpop.eup %15109  ;;  %v14725_v2 = vld [vmem:[%s19635_s8 + $0x868] sm:$0xff]  }
 0xbee   :  { %13915 = vmatpush3.bf16.msra.mxu1 %v14696_v18  ;;  %13894 = vmatprep.subr.bf16.mxu0 %v14697_v25  ;;  %v7656_v18 = vsub.f32 0.0, %v7395_v40  ;;  %v14711_v25 = vld [vmem:[%s19635_s8 + $0x708] sm:$0xff]   ;;  %15127 = vpow2.f32 %v7829_v38  ;;  %v15112_v21 = vpop.eup %15111  ;;  %v8077_v27 = vpack.c.bf16 %v15110_v33, %v15106_v59  ;;  %v19139_v33 = vld [vmem:[%s19636_s9 + $0x30] sm:$0xff] }
 0xbef   :  { %13916 = vmatprep.subr.bf16.mxu1 %v14698_v16  ;;  %v7606_v16 = vsub.f32 0.0, %v7348_v44  ;;  %v7835_v6 = vmul.f32 1.442695, %v7654_v14  ;;  %v8079_v45 = vpack.c.bf16 %v15112_v21, %v15108_v39  ;;  %v7346_v39 = vadd.f32 %v18960_v9, %v3561_v53 }
 0xbf0   :  { %v7350_v9 = vadd.f32 %v18996_v63, %v3561_v53  ;;  %v3589_v63 = vrot.slane %v19139_v33, %v17879_v36 }
 0xbf1   :  { %13895 = vmatpush3.bf16.msra.mxu0 %v14699_v43  ;;  %v7839_v43 = vmul.f32 1.442695, %v7656_v18  ;;  %15129 = vpow2.f32 %v7835_v6  ;;  %v15114_v31 = vpop.eup %15113 }
 0xbf2   :  { %13917 = vmatpush3.bf16.msra.mxu1 %v14700_v35  ;;  %13896 = vmatprep.subr.bf16.mxu0 %v14701_v42  ;;  %v7739_v35 = vmul.f32 1.442695, %v7606_v16  ;;  %v14716_v42 = vld [vmem:[%s19635_s8 + $0x780] sm:$0xff]   ;;  %v15116_v22 = vpop.eup %15115 }
 0xbf3   :  { %13918 = vmatprep.subr.bf16.mxu1 %v14702_v15  ;;  %v7743_v15 = vmul.f32 1.442695, %v7608_v61  ;;  %15131 = vpow2.f32 %v7839_v43  ;;  %v15118_v4 = vpop.eup %15117  ;;  %v14734_v43 = vld [vmem:[%s19635_s8 + $0x8d8] sm:$0xff]  }
 0xbf4   :  { %15133 = vpow2.f32 %v7739_v35  ;;  %v15120_v47 = vpop.eup %15119 }
 0xbf5   :  { %13897 = vmatpush3.bf16.msra.mxu0 %v14703_v37  ;;  %v14720_v37 = vld [vmem:[%s19635_s8 + $0x8b8] sm:$0xff]   ;;  %15135 = vpow2.f32 %v7743_v15  ;;  %v8084_v11 = vpack.c.bf16 %v15116_v22, %v15120_v47  ;;  %v14737_v22 = vld [vmem:[%s19635_s8 + $0x850] sm:$0xff]  }
 0xbf6   :  { %13919 = vmatpush3.bf16.msra.mxu1 %v14704_v52  ;;  %13898 = vmatprep.subr.bf16.mxu0 %v14705_v1  ;;  %v8082_v52 = vpack.c.bf16 %v15114_v31, %v15118_v4  ;;  %v14722_v1 = vld [vmem:[%s19635_s8 + $0x8f0] sm:$0xff]   ;;  %v15122_v40 = vpop.eup %15121  ;;  %v3581_v31 = vrot.slane %v19139_v33, %v16000_v51  ;;  %v7605_v4 = vsub.f32 0.0, %v7346_v39  ;;  %v14751_v39 = vld [vmem:[%s19635_s8 + $0x938] sm:$0xff]  }
 0xbf7   :  { %13920 = vmatprep.subr.bf16.mxu1 %v14706_v26  ;;  %v19087_v26 = vpop.f32.mrf.mxu1  ;;  %v15124_v44 = vpop.eup %15123  ;;  %v7889_v14 = vadd.f32 1.0, %v15122_v40  ;;  %v14738_v51 = vld [vmem:[%s19635_s8 + $0x8d0] sm:$0xff]  }
 0xbf8   :  { %v15126_v54 = vpop.eup %15125 }
 0xbf9   :  { %13899 = vmatpush3.bf16.msra.mxu0 %v14707_v41  ;;  %v19098_v41 = vpop.f32.mrf.mxu0  ;;  %v7937_v38 = vadd.f32 1.0, %v15126_v54  ;;  %15137 = vrcp.f32 %v7889_v14  ;;  %v14745_v54 = vld [vmem:[%s19635_s8 + $0x840] sm:$0xff]  }
 0xbfa   :  { %13921 = vmatpush3.bf16.msra.mxu1 %v14708_v29  ;;  %13900 = vmatprep.subr.bf16.mxu0 %v14709_v46  ;;  %v19103_v29 = vpop.f32.mrf.mxu1  ;;  %v14728_v46 = vld [vmem:[%s19635_s8 + $0x8a8] sm:$0xff]   ;;  %v7434_v36 = vadd.f32 %v19098_v41, %v3581_v31  ;;  %v14746_v14 = vld [vmem:[%s19635_s8 + $0x8c0] sm:$0xff]  }
 0xbfb   :  { %13922 = vmatprep.subr.bf16.mxu1 %v14710_v3  ;;  %v14730_v3 = vld [vmem:[%s19635_s8 + $0x8e0] sm:$0xff]   ;;  %v15128_v0 = vpop.eup %15127  ;;  %v19118_v16 = vpop.f32.mrf.mxu0 }
 0xbfc   :  { %v19123_v61 = vpop.f32.mrf.mxu1  ;;  %v7939_v59 = vadd.f32 1.0, %v15128_v0 }
 0xbfd   :  { %13901 = vmatpush3.bf16.msra.mxu0 %v14711_v25  ;;  %v7891_v25 = vadd.f32 1.0, %v15124_v44  ;;  %v7437_v15 = vpop.f32.mrf.mxu0  ;;  %v14743_v44 = vld [vmem:[%s19635_s8 + $0x808] sm:$0xff]  }
 0xbfe   :  { %13923 = vmatpush3.bf16.msra.mxu1 %v14712_v62  ;;  %13902 = vmatprep.subr.bf16.mxu0 %v14713_v23  ;;  %v15130_v18 = vpop.eup %15129  ;;  %v14731_v62 = vld [vmem:[%s19635_s8 + $0x820] sm:$0xff]  }
 0xbff   :  { %13924 = vmatprep.subr.bf16.mxu1 %v14714_v5  ;;  %v14732_v5 = vld [vmem:[%s19635_s8 + $0x8a0] sm:$0xff]   ;;  %v7942_v35 = vadd.f32 1.0, %v15130_v18  ;;  %15139 = vrcp.f32 %v7891_v25 }
 0xc00   :  { %v15132_v23 = vpop.eup %15131  ;;  %15141 = vrcp.f32 %v7937_v38  ;;  %v14748_v38 = vld [vmem:[%s19635_s8 + $0x880] sm:$0xff]  }
 0xc01   :  { %13903 = vmatpush3.bf16.msra.mxu0 %v14715_v60  ;;  %v15134_v6 = vpop.eup %15133  ;;  %15143 = vrcp.f32 %v7939_v59  ;;  %v14750_v59 = vld [vmem:[%s19635_s8 + $0x9f8] sm:$0xff]  }
 0xc02   :  { %13925 = vmatpush3.bf16.msra.mxu1 %v14716_v42  ;;  %13932 = vmatprep.subr.bf16.mxu0 %v14717_v10  ;;  %v15136_v60 = vpop.eup %15135  ;;  %v7389_v42 = vadd.f32 %v18965_v12, %v3569_v28  ;;  %v7944_v10 = vadd.f32 1.0, %v15132_v23  ;;  %v7894_v21 = vadd.f32 1.0, %v15134_v6  ;;  %v7480_v12 = vpop.f32.mrf.mxu1  ;;  %15145 = vrcp.f32 %v7942_v35 }
 0xc03   :  { %13954 = vmatprep.subr.bf16.mxu1 %v14718_v55  ;;  %v14735_v55 = vld [vmem:[%s19635_s8 + $0x818] sm:$0xff]   ;;  %v7481_v47 = vadd.f32 %v7480_v12, %v3589_v63  ;;  %v14754_v12 = vld [vmem:[%s19635_s8 + $0x9f0] sm:$0xff]  }
 0xc04   :  { %11782 = vmatmul.mubr.bf16.vlgmr.msra.gmra.mxu0 %v8077_v27  ;;  %v7896_v27 = vadd.f32 1.0, %v15136_v60  ;;  %15147 = vrcp.f32 %v7944_v10  ;;  %v14752_v10 = vld [vmem:[%s19635_s8 + $0x9b8] sm:$0xff]  }
 0xc05   :  { %11823 = vmatmul.mubr.bf16.vlgmr.msra.gmra.mxu1 %v8079_v45  ;;  %13933 = vmatpush3.bf16.msra.mxu0 %v14719_v56  ;;  %v14736_v56 = vld [vmem:[%s19635_s8 + $0x898] sm:$0xff]   ;;  %v7438_v45 = vadd.f32 %v7437_v15, %v3581_v31  ;;  %15149 = vrcp.f32 %v7894_v21  ;;  %v14753_v21 = vld [vmem:[%s19635_s8 + $0x970] sm:$0xff]  }
 0xc06   :  { %11863 = vmatprep.mubr.bf16.mxu0 %v8082_v52  ;;  %13955 = vmatpush3.bf16.msra.mxu1 %v14720_v37  ;;  %v7393_v37 = vadd.f32 %v19001_v8, %v3569_v28  ;;  %v14739_v52 = vld [vmem:[%s19635_s8 + $0x810] sm:$0xff]   ;;  %v7653_v8 = vsub.f32 0.0, %v7350_v9  ;;  %15151 = vrcp.f32 %v7896_v27  ;;  %v15138_v18 = vpop.eup %15137  ;;  %v14747_v28 = vld [vmem:[%s19635_s8 + $0x800] sm:$0xff]  }
 0xc07   :  { %11904 = vmatprep.mubr.bf16.mxu1 %v8084_v11  ;;  %13934 = vmatprep.subr.bf16.mxu0 %v14721_v30  ;;  %v7607_v30 = vsub.f32 0.0, %v7389_v42  ;;  %v14741_v11 = vld [vmem:[%s19635_s8 + $0x848] sm:$0xff]   ;;  %v7658_v40 = vsub.f32 0.0, %v7438_v45  ;;  %v14755_v27 = vld [vmem:[%s19635_s8 + $0x930] sm:$0xff]  }
 0xc08   :  { %13956 = vmatprep.subr.bf16.mxu1 %v14722_v1  ;;  %v14740_v1 = vld [vmem:[%s19635_s8 + $0x890] sm:$0xff]  }
 0xc09   :  { %13935 = vmatpush3.bf16.msra.mxu0 %v14723_v13  ;;  %v7655_v13 = vsub.f32 0.0, %v7393_v37  ;;  %v7741_v41 = vmul.f32 1.442695, %v7607_v30  ;;  %v7843_v53 = vmul.f32 1.442695, %v7658_v40  ;;  %v19214_v37 = vpop.f32.mrf.mxu1 }
 0xc0a   :  { %13957 = vmatpush3.bf16.msra.mxu1 %v14724_v57  ;;  %13936 = vmatprep.subr.bf16.mxu0 %v14725_v2  ;;  %v7477_v57 = vadd.f32 %v19103_v29, %v3589_v63  ;;  %v14742_v2 = vld [vmem:[%s19635_s8 + $0x8c8] sm:$0xff]   ;;  %v14756_v63 = vld [vmem:[%s19635_s8 + $0x9b0] sm:$0xff]  }
 0xc0b   :  { %13958 = vmatprep.subr.bf16.mxu1 %v14726_v24  ;;  %v7737_v24 = vmul.f32 1.442695, %v7605_v4  ;;  %v14744_v29 = vld [vmem:[%s19635_s8 + $0x888] sm:$0xff]  }
 0xc0c   :  { %v7612_v0 = vsub.f32 0.0, %v7477_v57  ;;  %v14758_v4 = vld [vmem:[%s19635_s8 + $0x9e8] sm:$0xff]  }
 0xc0d   :  { %13937 = vmatpush3.bf16.msra.mxu0 %v14727_v20  ;;  %v7660_v20 = vsub.f32 0.0, %v7481_v47  ;;  %15153 = vpow2.f32 %v7737_v24  ;;  %v14759_v47 = vld [vmem:[%s19635_s8 + $0x928] sm:$0xff]   ;;  %v3577_v24 = vrot.slane %v19139_v33, %v15800_v17  ;;  %v14764_v17 = vld [vmem:[%s19635_s8 + $0x9a0] sm:$0xff]  }
 0xc0e   :  { %13959 = vmatpush3.bf16.msra.mxu1 %v14728_v46  ;;  %13938 = vmatprep.subr.bf16.mxu0 %v14729_v48  ;;  %v7833_v46 = vmul.f32 1.442695, %v7653_v8  ;;  %v7610_v48 = vsub.f32 0.0, %v7434_v36  ;;  %15155 = vpow2.f32 %v7741_v41  ;;  %v7751_v6 = vmul.f32 1.442695, %v7612_v0  ;;  %v19230_v8 = vpop.f32.mrf.mxu1  ;;  %v14760_v36 = vld [vmem:[%s19635_s8 + $0x9a8] sm:$0xff]  }
 0xc0f   :  { %13960 = vmatprep.subr.bf16.mxu1 %v14730_v3  ;;  %v7837_v3 = vmul.f32 1.442695, %v7655_v13  ;;  %v7847_v25 = vmul.f32 1.442695, %v7660_v20  ;;  %v14762_v13 = vld [vmem:[%s19635_s8 + $0x9e0] sm:$0xff]   ;;  %v3585_v20 = vrot.slane %v19139_v33, %v16005_v58  ;;  %v14765_v58 = vld [vmem:[%s19635_s8 + $0x958] sm:$0xff]  }
 0xc10   :  { %15157 = vpow2.f32 %v7833_v46  ;;  %v7747_v23 = vmul.f32 1.442695, %v7610_v48  ;;  %v14763_v46 = vld [vmem:[%s19635_s8 + $0x920] sm:$0xff]  }
 0xc11   :  { %13939 = vmatpush3.bf16.msra.mxu0 %v14731_v62  ;;  %v15140_v62 = vpop.eup %15139  ;;  %15159 = vpow2.f32 %v7837_v3 }
 0xc12   :  { %13961 = vmatpush3.bf16.msra.mxu1 %v14732_v5  ;;  %13940 = vmatprep.subr.bf16.mxu0 %v14733_v7  ;;  %v14749_v5 = vld [vmem:[%s19635_s8 + $0x978] sm:$0xff]   ;;  %v15142_v7 = vpop.eup %15141  ;;  %15161 = vpow2.f32 %v7843_v53 }
 0xc13   :  { %13962 = vmatprep.subr.bf16.mxu1 %v14734_v43  ;;  %v15144_v43 = vpop.eup %15143  ;;  %15163 = vpow2.f32 %v7847_v25  ;;  %v8081_v42 = vpack.c.bf16 %v15142_v7, %v15138_v18  ;;  %v7432_v18 = vadd.f32 %v19082_v34, %v3577_v24  ;;  %v7436_v7 = vadd.f32 %v19118_v16, %v3577_v24  ;;  %v14768_v34 = vld [vmem:[%s19635_s8 + $0x998] sm:$0xff]  }
 0xc14   :  { %v15146_v60 = vpop.eup %15145  ;;  %15165 = vpow2.f32 %v7747_v23  ;;  %v3605_v16 = vrot.slane %v19139_v33, %v18012_v19 }
 0xc15   :  { %13941 = vmatpush3.bf16.msra.mxu0 %v14735_v55  ;;  %v15148_v35 = vpop.eup %15147  ;;  %15167 = vpow2.f32 %v7751_v6  ;;  %v8083_v55 = vpack.c.bf16 %v15144_v43, %v15140_v62  ;;  %v3597_v6 = vrot.slane %v19139_v33, %v18007_v32  ;;  %v14770_v32 = vld [vmem:[%s19635_s8 + $0x9d0] sm:$0xff]  }
 0xc16   :  { %13963 = vmatpush3.bf16.msra.mxu1 %v14736_v56  ;;  %13942 = vmatprep.subr.bf16.mxu0 %v14737_v22  ;;  %v15150_v15 = vpop.eup %15149  ;;  %v19209_v56 = vpop.f32.mrf.mxu0 }
 0xc17   :  { %13964 = vmatprep.subr.bf16.mxu1 %v14738_v51  ;;  %v15152_v9 = vpop.eup %15151  ;;  %v8086_v31 = vpack.c.bf16 %v15146_v60, %v15150_v15  ;;  %v14757_v51 = vld [vmem:[%s19635_s8 + $0x968] sm:$0xff]   ;;  %v7479_v60 = vadd.f32 %v19123_v61, %v3585_v20  ;;  %v14771_v15 = vld [vmem:[%s19635_s8 + $0x910] sm:$0xff]   ;;  %v7657_v61 = vsub.f32 0.0, %v7436_v7 }
 0xc18   :  { %v8088_v22 = vpack.c.bf16 %v15148_v35, %v15152_v9  ;;  %v19225_v30 = vpop.f32.mrf.mxu0  ;;  %v14787_v7 = vld [vmem:[%s19635_s8 + $0xa30] sm:$0xff]  }
 0xc19   :  { %13943 = vmatpush3.bf16.msra.mxu0 %v14739_v52  ;;  %v7520_v19 = vadd.f32 %v19225_v30, %v3597_v6  ;;  %v7659_v9 = vsub.f32 0.0, %v7479_v60 }
 0xc1a   :  { %13965 = vmatpush3.bf16.msra.mxu1 %v14740_v1  ;;  %13944 = vmatprep.subr.bf16.mxu0 %v14741_v11  ;;  %v15154_v45 = vpop.eup %15153  ;;  %v14761_v1 = vld [vmem:[%s19635_s8 + $0x960] sm:$0xff]  }
 0xc1b   :  { %13966 = vmatprep.subr.bf16.mxu1 %v14742_v2  ;;  %v15156_v52 = vpop.eup %15155  ;;  %v7893_v2 = vadd.f32 1.0, %v15154_v45  ;;  %v7841_v45 = vmul.f32 1.442695, %v7657_v61  ;;  %v7614_v30 = vsub.f32 0.0, %v7520_v19  ;;  %v14795_v19 = vld [vmem:[%s19635_s8 + $0xa20] sm:$0xff]  }
 0xc1c   :  { %v7895_v41 = vadd.f32 1.0, %v15156_v52  ;;  %v14777_v52 = vld [vmem:[%s19635_s8 + $0x940] sm:$0xff]  }
 0xc1d   :  { %13945 = vmatpush3.bf16.msra.mxu0 %v14743_v44  ;;  %v15158_v11 = vpop.eup %15157  ;;  %v19245_v44 = vpop.f32.mrf.mxu0  ;;  %15169 = vrcp.f32 %v7893_v2  ;;  %v14779_v2 = vld [vmem:[%s19635_s8 + $0x900] sm:$0xff]  }
 0xc1e   :  { %13967 = vmatpush3.bf16.msra.mxu1 %v14744_v29  ;;  %13946 = vmatprep.subr.bf16.mxu0 %v14745_v54  ;;  %v15160_v57 = vpop.eup %15159  ;;  %v7941_v29 = vadd.f32 1.0, %v15158_v11  ;;  %v19250_v54 = vpop.f32.mrf.mxu1  ;;  %15171 = vrcp.f32 %v7895_v41  ;;  %v14780_v41 = vld [vmem:[%s19635_s8 + $0x980] sm:$0xff]  }
 0xc1f   :  { %13968 = vmatprep.subr.bf16.mxu1 %v14746_v14  ;;  %v15162_v40 = vpop.eup %15161  ;;  %v7943_v0 = vadd.f32 1.0, %v15160_v57  ;;  %v14766_v14 = vld [vmem:[%s19635_s8 + $0x9d8] sm:$0xff]   ;;  %v7523_v23 = vpop.f32.mrf.mxu0 }
 0xc20   :  { %v15164_v48 = vpop.eup %15163  ;;  %v7946_v25 = vadd.f32 1.0, %v15162_v40  ;;  %15173 = vrcp.f32 %v7941_v29  ;;  %v7524_v35 = vadd.f32 %v7523_v23, %v3597_v6  ;;  %v7755_v40 = vmul.f32 1.442695, %v7614_v30  ;;  %v14782_v29 = vld [vmem:[%s19635_s8 + $0xaf8] sm:$0xff]   ;;  %v14788_v6 = vld [vmem:[%s19635_s8 + $0xab0] sm:$0xff]  }
 0xc21   :  { %13947 = vmatpush3.bf16.msra.mxu0 %v14747_v28  ;;  %v15166_v3 = vpop.eup %15165  ;;  %v7475_v28 = vadd.f32 %v19087_v26, %v3585_v20  ;;  %v7948_v62 = vadd.f32 1.0, %v15164_v48  ;;  %v14769_v26 = vld [vmem:[%s19635_s8 + $0x950] sm:$0xff]   ;;  %15175 = vrcp.f32 %v7943_v0  ;;  %v14781_v20 = vld [vmem:[%s19635_s8 + $0xa78] sm:$0xff]  }
 0xc22   :  { %13969 = vmatpush3.bf16.msra.mxu1 %v14748_v38  ;;  %13976 = vmatprep.subr.bf16.mxu0 %v14749_v5  ;;  %v15168_v53 = vpop.eup %15167  ;;  %v14767_v38 = vld [vmem:[%s19635_s8 + $0x918] sm:$0xff]   ;;  %v7898_v5 = vadd.f32 1.0, %v15166_v3  ;;  %15177 = vrcp.f32 %v7946_v25 }
 0xc23   :  { %13998 = vmatprep.subr.bf16.mxu1 %v14750_v59  ;;  %v7566_v59 = vpop.f32.mrf.mxu1  ;;  %v7900_v43 = vadd.f32 1.0, %v15168_v53  ;;  %15179 = vrcp.f32 %v7948_v62  ;;  %v14783_v3 = vld [vmem:[%s19635_s8 + $0xa38] sm:$0xff]  }
 0xc24   :  { %11864 = vmatmul.mubr.bf16.vlgmr.msra.gmra.mxu0 %v8081_v42  ;;  %v7611_v42 = vsub.f32 0.0, %v7475_v28  ;;  %15181 = vrcp.f32 %v7898_v5  ;;  %v14784_v53 = vld [vmem:[%s19635_s8 + $0xab8] sm:$0xff]   ;;  %v14785_v28 = vld [vmem:[%s19635_s8 + $0xa70] sm:$0xff]  }
 0xc25   :  { %11905 = vmatmul.mubr.bf16.vlgmr.msra.gmra.mxu1 %v8083_v55  ;;  %13977 = vmatpush3.bf16.msra.mxu0 %v14751_v39  ;;  %v7609_v39 = vsub.f32 0.0, %v7432_v18  ;;  %v14772_v55 = vld [vmem:[%s19635_s8 + $0x990] sm:$0xff]   ;;  %15183 = vrcp.f32 %v7900_v43  ;;  %v14791_v43 = vld [vmem:[%s19635_s8 + $0xa28] sm:$0xff]  }
 0xc26   :  { %11945 = vmatprep.mubr.bf16.mxu0 %v8086_v31  ;;  %13999 = vmatpush3.bf16.msra.mxu1 %v14752_v10  ;;  %v7567_v10 = vadd.f32 %v7566_v59, %v3605_v16  ;;  %v7563_v31 = vadd.f32 %v19230_v8, %v3605_v16  ;;  %v7845_v8 = vmul.f32 1.442695, %v7659_v9  ;;  %v14789_v59 = vld [vmem:[%s19635_s8 + $0xa68] sm:$0xff]   ;;  %v14796_v9 = vld [vmem:[%s19635_s8 + $0xaa0] sm:$0xff]  }
 0xc27   :  { %11986 = vmatprep.mubr.bf16.mxu1 %v8088_v22  ;;  %13978 = vmatprep.subr.bf16.mxu0 %v14753_v21  ;;  %v14773_v21 = vld [vmem:[%s19635_s8 + $0x948] sm:$0xff]   ;;  %v7745_v22 = vmul.f32 1.442695, %v7609_v39 }
 0xc28   :  { %14000 = vmatprep.subr.bf16.mxu1 %v14754_v12  ;;  %v14774_v12 = vld [vmem:[%s19635_s8 + $0x9c8] sm:$0xff]  }
 0xc29   :  { %13979 = vmatpush3.bf16.msra.mxu0 %v14755_v27  ;;  %v7662_v27 = vsub.f32 0.0, %v7524_v35  ;;  %15185 = vpow2.f32 %v7745_v22  ;;  %v14792_v16 = vld [vmem:[%s19635_s8 + $0xaa8] sm:$0xff]   ;;  %v14794_v35 = vld [vmem:[%s19635_s8 + $0xae0] sm:$0xff]  }
 0xc2a   :  { %14001 = vmatpush3.bf16.msra.mxu1 %v14756_v63  ;;  %13980 = vmatprep.subr.bf16.mxu0 %v14757_v51  ;;  %v7749_v63 = vmul.f32 1.442695, %v7611_v42  ;;  %v7664_v51 = vsub.f32 0.0, %v7567_v10 }
 0xc2b   :  { %14002 = vmatprep.subr.bf16.mxu1 %v14758_v4  ;;  %v14775_v4 = vld [vmem:[%s19635_s8 + $0x908] sm:$0xff]   ;;  %v7851_v11 = vmul.f32 1.442695, %v7662_v27  ;;  %v14798_v27 = vld [vmem:[%s19635_s8 + $0xad8] sm:$0xff]  }
 0xc2c   :  { %15187 = vpow2.f32 %v7749_v63  ;;  %v7855_v57 = vmul.f32 1.442695, %v7664_v51  ;;  %v3593_v51 = vrot.slane %v19139_v33, %v18097_v49  ;;  %v14800_v49 = vld [vmem:[%s19635_s8 + $0xa98] sm:$0xff]  }
 0xc2d   :  { %13981 = vmatpush3.bf16.msra.mxu0 %v14759_v47  ;;  %v14776_v47 = vld [vmem:[%s19635_s8 + $0x988] sm:$0xff]   ;;  %15189 = vpow2.f32 %v7841_v45  ;;  %v3601_v45 = vrot.slane %v19139_v33, %v18100_v50  ;;  %v14801_v50 = vld [vmem:[%s19635_s8 + $0xa50] sm:$0xff]  }
 0xc2e   :  { %14003 = vmatpush3.bf16.msra.mxu1 %v14760_v36  ;;  %13982 = vmatprep.subr.bf16.mxu0 %v14761_v1  ;;  %v7616_v36 = vsub.f32 0.0, %v7563_v31  ;;  %v14778_v1 = vld [vmem:[%s19635_s8 + $0x9c0] sm:$0xff]   ;;  %15191 = vpow2.f32 %v7845_v8  ;;  %v14797_v31 = vld [vmem:[%s19635_s8 + $0xa58] sm:$0xff]   ;;  %v7522_v8 = vadd.f32 %v19245_v44, %v3593_v51  ;;  %v7518_v44 = vadd.f32 %v19209_v56, %v3593_v51  ;;  %v14805_v56 = vld [vmem:[%s19635_s8 + $0xa48] sm:$0xff]  }
 0xc2f   :  { %14004 = vmatprep.subr.bf16.mxu1 %v14762_v13  ;;  %v15170_v13 = vpop.eup %15169  ;;  %15193 = vpow2.f32 %v7851_v11  ;;  %v7561_v11 = vadd.f32 %v19214_v37, %v3601_v45  ;;  %v14828_v51 = vld [vmem:[%s19635_s8 + $0xba0] sm:$0xff]  }
 0xc30   :  { %v15172_v24 = vpop.eup %15171  ;;  %v7759_v48 = vmul.f32 1.442695, %v7616_v36  ;;  %15195 = vpow2.f32 %v7855_v57  ;;  %v7565_v36 = vadd.f32 %v19250_v54, %v3601_v45  ;;  %v7661_v57 = vsub.f32 0.0, %v7522_v8  ;;  %v14804_v54 = vld [vmem:[%s19635_s8 + $0xa90] sm:$0xff]   ;;  %v14831_v8 = vld [vmem:[%s19635_s8 + $0xb18] sm:$0xff]  }
 0xc31   :  { %13983 = vmatpush3.bf16.msra.mxu0 %v14763_v46  ;;  %v15174_v46 = vpop.eup %15173  ;;  %15197 = vpow2.f32 %v7755_v40  ;;  %v7615_v40 = vsub.f32 0.0, %v7561_v11  ;;  %v14838_v11 = vld [vmem:[%s19635_s8 + $0xbc8] sm:$0xff]  }
 0xc32   :  { %14005 = vmatpush3.bf16.msra.mxu1 %v14764_v17  ;;  %13984 = vmatprep.subr.bf16.mxu0 %v14765_v58  ;;  %v15176_v17 = vpop.eup %15175  ;;  %15199 = vpow2.f32 %v7759_v48  ;;  %v7663_v37 = vsub.f32 0.0, %v7565_v36  ;;  %v14809_v48 = vld [vmem:[%s19635_s8 + $0xa40] sm:$0xff]   ;;  %v14835_v36 = vld [vmem:[%s19635_s8 + $0xb10] sm:$0xff]  }
 0xc33   :  { %14006 = vmatprep.subr.bf16.mxu1 %v14766_v14  ;;  %v15178_v58 = vpop.eup %15177  ;;  %v8085_v14 = vpack.c.bf16 %v15174_v46, %v15170_v13  ;;  %v8087_v25 = vpack.c.bf16 %v15176_v17, %v15172_v24  ;;  %v14803_v13 = vld [vmem:[%s19635_s8 + $0xa10] sm:$0xff]   ;;  %v7613_v24 = vsub.f32 0.0, %v7518_v44  ;;  %v14808_v46 = vld [vmem:[%s19635_s8 + $0xa88] sm:$0xff]   ;;  %v14810_v17 = vld [vmem:[%s19635_s8 + $0xac0] sm:$0xff]  }
 0xc34   :  { %v15180_v0 = vpop.eup %15179  ;;  %v14837_v44 = vld [vmem:[%s19635_s8 + $0xb48] sm:$0xff]  }
 0xc35   :  { %13985 = vmatpush3.bf16.msra.mxu0 %v14767_v38  ;;  %v15182_v18 = vpop.eup %15181  ;;  %v14786_v38 = vld [vmem:[%s19635_s8 + $0xaf0] sm:$0xff]  }
 0xc36   :  { %14007 = vmatpush3.bf16.msra.mxu1 %v14768_v34  ;;  %13986 = vmatprep.subr.bf16.mxu0 %v14769_v26  ;;  %v15184_v62 = vpop.eup %15183  ;;  %v8090_v23 = vpack.c.bf16 %v15178_v58, %v15182_v18  ;;  %v14790_v34 = vld [vmem:[%s19635_s8 + $0xae8] sm:$0xff]   ;;  %v7753_v58 = vmul.f32 1.442695, %v7613_v24  ;;  %v14812_v18 = vld [vmem:[%s19635_s8 + $0xa80] sm:$0xff]  }
 0xc37   :  { %14008 = vmatprep.subr.bf16.mxu1 %v14770_v32  ;;  %v8092_v5 = vpack.c.bf16 %v15180_v0, %v15184_v62  ;;  %v15186_v26 = vpop.eup %15185  ;;  %v14793_v32 = vld [vmem:[%s19635_s8 + $0xa60] sm:$0xff]   ;;  %v7757_v0 = vmul.f32 1.442695, %v7615_v40  ;;  %v14814_v62 = vld [vmem:[%s19635_s8 + $0xbf8] sm:$0xff]  }
 0xc38   :  { %v7897_v10 = vadd.f32 1.0, %v15186_v26 }
 0xc39   :  { %13987 = vmatpush3.bf16.msra.mxu0 %v14771_v15  ;;  %v15188_v60 = vpop.eup %15187 }
 0xc3a   :  { %14009 = vmatpush3.bf16.msra.mxu1 %v14772_v55  ;;  %13988 = vmatprep.subr.bf16.mxu0 %v14773_v21  ;;  %v15190_v39 = vpop.eup %15189  ;;  %v7899_v61 = vadd.f32 1.0, %v15188_v60  ;;  %15201 = vrcp.f32 %v7897_v10  ;;  %v14821_v10 = vld [vmem:[%s19635_s8 + $0xb68] sm:$0xff]  }
 0xc3b   :  { %14010 = vmatprep.subr.bf16.mxu1 %v14774_v12  ;;  %v15192_v42 = vpop.eup %15191  ;;  %v7945_v21 = vadd.f32 1.0, %v15190_v39 }
 0xc3c   :  { %v15194_v15 = vpop.eup %15193  ;;  %v7947_v22 = vadd.f32 1.0, %v15192_v42  ;;  %15203 = vrcp.f32 %v7899_v61  ;;  %v14820_v42 = vld [vmem:[%s19635_s8 + $0xbb0] sm:$0xff]   ;;  %v14823_v61 = vld [vmem:[%s19635_s8 + $0xb28] sm:$0xff]  }
 0xc3d   :  { %13989 = vmatpush3.bf16.msra.mxu0 %v14775_v4  ;;  %v15196_v55 = vpop.eup %15195  ;;  %v7950_v4 = vadd.f32 1.0, %v15194_v15  ;;  %15205 = vrcp.f32 %v7945_v21  ;;  %v14822_v15 = vld [vmem:[%s19635_s8 + $0xbe8] sm:$0xff]  }
 0xc3e   :  { %14011 = vmatpush3.bf16.msra.mxu1 %v14776_v47  ;;  %13990 = vmatprep.subr.bf16.mxu0 %v14777_v52  ;;  %v15198_v12 = vpop.eup %15197  ;;  %v7952_v30 = vadd.f32 1.0, %v15196_v55  ;;  %v14799_v47 = vld [vmem:[%s19635_s8 + $0xa18] sm:$0xff]   ;;  %15207 = vrcp.f32 %v7947_v22  ;;  %v14825_v55 = vld [vmem:[%s19635_s8 + $0xb60] sm:$0xff]  }
 0xc3f   :  { %14012 = vmatprep.subr.bf16.mxu1 %v14778_v1  ;;  %v15200_v63 = vpop.eup %15199  ;;  %v7902_v52 = vadd.f32 1.0, %v15198_v12  ;;  %v14802_v1 = vld [vmem:[%s19635_s8 + $0xad0] sm:$0xff]   ;;  %15209 = vrcp.f32 %v7950_v4  ;;  %v14827_v22 = vld [vmem:[%s19635_s8 + $0xb20] sm:$0xff]   ;;  %v14829_v4 = vld [vmem:[%s19635_s8 + $0xb58] sm:$0xff]  }
 0xc40   :  { %v7904_v33 = vadd.f32 1.0, %v15200_v63  ;;  %15211 = vrcp.f32 %v7952_v30  ;;  %v14830_v30 = vld [vmem:[%s19635_s8 + $0xbd8] sm:$0xff]  }
 0xc41   :  { %13991 = vmatpush3.bf16.msra.mxu0 %v14779_v2  ;;  %15213 = vrcp.f32 %v7902_v52  ;;  %v14806_v2 = vld [vmem:[%s19635_s8 + $0xac8] sm:$0xff]  }
 0xc42   :  { %14013 = vmatpush3.bf16.msra.mxu1 %v14780_v41  ;;  %14020 = vmatprep.subr.bf16.mxu0 %v14781_v20  ;;  %15215 = vrcp.f32 %v7904_v33  ;;  %v14807_v41 = vld [vmem:[%s19635_s8 + $0xa08] sm:$0xff]   ;;  %v7849_v20 = vmul.f32 1.442695, %v7661_v57  ;;  %v14834_v33 = vld [vmem:[%s19635_s8 + $0xbd0] sm:$0xff]  }
 0xc43   :  { %14042 = vmatprep.subr.bf16.mxu1 %v14782_v29  ;;  %v7853_v29 = vmul.f32 1.442695, %v7663_v37  ;;  %v14840_v57 = vld [vmem:[%s19635_s8 + $0xb88] sm:$0xff]   ;;  %v14843_v37 = vld [vmem:[%s19635_s8 + $0xb00] sm:$0xff]  }
 0xc44   :  { %11946 = vmatmul.mubr.bf16.vlgmr.msra.gmra.mxu0 %v8085_v14  ;;  %v14811_v14 = vld [vmem:[%s19635_s8 + $0xa00] sm:$0xff]   ;;  %15217 = vpow2.f32 %v7849_v20 }
 0xc45   :  { %11987 = vmatmul.mubr.bf16.vlgmr.msra.gmra.mxu1 %v8087_v25  ;;  %14021 = vmatpush3.bf16.msra.mxu0 %v14783_v3  ;;  %v14813_v25 = vld [vmem:[%s19635_s8 + $0xb78] sm:$0xff]   ;;  %15219 = vpow2.f32 %v7853_v29  ;;  %v13596_v29 = vpop.f32.mrf.mxu0 }
 0xc46   :  { %12027 = vmatprep.mubr.bf16.mxu0 %v8090_v23  ;;  %14043 = vmatpush3.bf16.msra.mxu1 %v14784_v53  ;;  %15221 = vpow2.f32 %v7753_v58 }
 0xc47   :  { %12068 = vmatprep.mubr.bf16.mxu1 %v8092_v5  ;;  %14022 = vmatprep.subr.bf16.mxu0 %v14785_v28  ;;  %v15202_v3 = vpop.eup %15201  ;;  %15223 = vpow2.f32 %v7757_v0  ;;  %v14815_v5 = vld [vmem:[%s19635_s8 + $0xb38] sm:$0xff]   ;;  %v13597_v58 = vpop.f32.mrf.mxu0 }
 0xc48   :  { %14044 = vmatprep.subr.bf16.mxu1 %v14786_v38 }
 0xc49   :  { %14023 = vmatpush3.bf16.msra.mxu0 %v14787_v7  ;;  %v15204_v53 = vpop.eup %15203  ;;  %v13599_v0 = vpop.f32.mrf.mxu0 }
 0xc4a   :  { %14045 = vmatpush3.bf16.msra.mxu1 %v14788_v6  ;;  %14024 = vmatprep.subr.bf16.mxu0 %v14789_v59  ;;  %v15206_v28 = vpop.eup %15205  ;;  %v14816_v59 = vld [vmem:[%s19635_s8 + $0xbb8] sm:$0xff]  }
 0xc4b   :  { %14046 = vmatprep.subr.bf16.mxu1 %v14790_v34  ;;  %v15208_v23 = vpop.eup %15207  ;;  %v8089_v6 = vpack.c.bf16 %v15206_v28, %v15202_v3 }
 0xc4c   :  { %v15210_v38 = vpop.eup %15209  ;;  %v8091_v26 = vpack.c.bf16 %v15208_v23, %v15204_v53  ;;  %v13600_v53 = vpop.f32.mrf.mxu0 }
 0xc4d   :  { %14025 = vmatpush3.bf16.msra.mxu0 %v14791_v43  ;;  %v15212_v7 = vpop.eup %15211  ;;  %v14817_v43 = vld [vmem:[%s19635_s8 + $0xb70] sm:$0xff]  }
 0xc4e   :  { %14047 = vmatpush3.bf16.msra.mxu1 %v14792_v16  ;;  %14026 = vmatprep.subr.bf16.mxu0 %v14793_v32  ;;  %v15214_v34 = vpop.eup %15213  ;;  %v14818_v32 = vld [vmem:[%s19635_s8 + $0xbf0] sm:$0xff]  }
 0xc4f   :  { %14048 = vmatprep.subr.bf16.mxu1 %v14794_v35  ;;  %v15216_v60 = vpop.eup %15215  ;;  %v8094_v16 = vpack.c.bf16 %v15210_v38, %v15214_v34  ;;  %v14819_v35 = vld [vmem:[%s19635_s8 + $0xb30] sm:$0xff]  }
 0xc50   :  { %v8096_v39 = vpack.c.bf16 %v15212_v7, %v15216_v60 }
 0xc51   :  { %14027 = vmatpush3.bf16.msra.mxu0 %v14795_v19  ;;  %v14824_v19 = vld [vmem:[%s19635_s8 + $0xba8] sm:$0xff]   ;;  %v15218_v21 = vpop.eup %15217 }
 0xc52   :  { %14049 = vmatpush3.bf16.msra.mxu1 %v14796_v9  ;;  %14028 = vmatprep.subr.bf16.mxu0 %v14797_v31  ;;  %v14826_v9 = vld [vmem:[%s19635_s8 + $0xbe0] sm:$0xff]   ;;  %v15220_v31 = vpop.eup %15219  ;;  %v7949_v63 = vadd.f32 1.0, %v15218_v21 }
 0xc53   :  { %14050 = vmatprep.subr.bf16.mxu1 %v14798_v27  ;;  %v15222_v12 = vpop.eup %15221  ;;  %v7951_v45 = vadd.f32 1.0, %v15220_v31 }
 0xc54   :  { %v15224_v27 = vpop.eup %15223  ;;  %15225 = vrcp.f32 %v7949_v63 }
 0xc55   :  { %14029 = vmatpush3.bf16.msra.mxu0 %v14799_v47  ;;  %v7901_v47 = vadd.f32 1.0, %v15222_v12  ;;  %v7903_v52 = vadd.f32 1.0, %v15224_v27  ;;  %15227 = vrcp.f32 %v7951_v45 }
 0xc56   :  { %14051 = vmatpush3.bf16.msra.mxu1 %v14800_v49  ;;  %14030 = vmatprep.subr.bf16.mxu0 %v14801_v50  ;;  %v14832_v49 = vld [vmem:[%s19635_s8 + $0xb98] sm:$0xff]   ;;  %v14833_v50 = vld [vmem:[%s19635_s8 + $0xb50] sm:$0xff]  }
 0xc57   :  { %14052 = vmatprep.subr.bf16.mxu1 %v14802_v1  ;;  %15229 = vrcp.f32 %v7901_v47  ;;  %v14836_v1 = vld [vmem:[%s19635_s8 + $0xb90] sm:$0xff]  }
 0xc58   :  { %15231 = vrcp.f32 %v7903_v52 }
 0xc59   :  { %14031 = vmatpush3.bf16.msra.mxu0 %v14803_v13  ;;  %v14839_v13 = vld [vmem:[%s19635_s8 + $0xb08] sm:$0xff]  }
 0xc5a   :  { %14053 = vmatpush3.bf16.msra.mxu1 %v14804_v54  ;;  %14032 = vmatprep.subr.bf16.mxu0 %v14805_v56  ;;  %v14841_v54 = vld [vmem:[%s19635_s8 + $0xb40] sm:$0xff]  }
 0xc5b   :  { %14054 = vmatprep.subr.bf16.mxu1 %v14806_v2  ;;  %v14842_v56 = vld [vmem:[%s19635_s8 + $0xbc0] sm:$0xff]  }
 0xc5c   :  { %v14844_v2 = vld [vmem:[%s19635_s8 + $0xb80] sm:$0xff]  }
 0xc5d   :  { %14033 = vmatpush3.bf16.msra.mxu0 %v14807_v41 }
 0xc5e   :  { %14055 = vmatpush3.bf16.msra.mxu1 %v14808_v46  ;;  %14034 = vmatprep.subr.bf16.mxu0 %v14809_v48 }
 0xc5f   :  { %14056 = vmatprep.subr.bf16.mxu1 %v14810_v17  ;;  %v13618_v17 = vpop.f32.mrf.mxu1 }
 0xc61   :  { %14035 = vmatpush3.bf16.msra.mxu0 %v14811_v14  ;;  %v15226_v24 = vpop.eup %15225  ;;  %v13619_v3 = vpop.f32.mrf.mxu1 }
 0xc62   :  { %14057 = vmatpush3.bf16.msra.mxu1 %v14812_v18  ;;  %14064 = vmatprep.subr.bf16.mxu0 %v14813_v25  ;;  %v15228_v40 = vpop.eup %15227  ;;  %v13640_v18 = vpop.f32.mrf.mxu0 }
 0xc63   :  { %14086 = vmatprep.subr.bf16.mxu1 %v14814_v62  ;;  %v13621_v14 = vpop.f32.mrf.mxu1 }
 0xc64   :  { %12028 = vmatmul.mubr.bf16.vlgmr.msra.gmra.mxu0 %v8089_v6  ;;  %v15230_v41 = vpop.eup %15229  ;;  %v13641_v62 = vpop.f32.mrf.mxu0 }
 0xc65   :  { %12069 = vmatmul.mubr.bf16.vlgmr.msra.gmra.mxu1 %v8091_v26  ;;  %14065 = vmatpush3.bf16.msra.mxu0 %v14815_v5  ;;  %v15232_v20 = vpop.eup %15231  ;;  %v8093_v46 = vpack.c.bf16 %v15226_v24, %v15230_v41  ;;  %v13622_v25 = vpop.f32.mrf.mxu1  ;;  %v13642_v41 = vadd.f32 %v13641_v62, %v13640_v18 }
 0xc66   :  { %12109 = vmatprep.mubr.bf16.mxu0 %v8094_v16  ;;  %14087 = vmatpush3.bf16.msra.mxu1 %v14816_v59  ;;  %v8095_v48 = vpack.c.bf16 %v15228_v40, %v15232_v20  ;;  %v13643_v38 = vpop.f32.mrf.mxu0  ;;  %v13620_v40 = vadd.f32 %v13619_v3, %v13618_v17 }
 0xc67   :  { %12150 = vmatprep.mubr.bf16.mxu1 %v8096_v39  ;;  %14066 = vmatprep.subr.bf16.mxu0 %v14817_v43  ;;  %v13662_v28 = vpop.f32.mrf.mxu1 }
 0xc68   :  { %14088 = vmatprep.subr.bf16.mxu1 %v14818_v32  ;;  %v13644_v7 = vpop.f32.mrf.mxu0 }
 0xc69   :  { %14067 = vmatpush3.bf16.msra.mxu0 %v14819_v35  ;;  %v13663_v23 = vpop.f32.mrf.mxu1 }
 0xc6a   :  { %14089 = vmatpush3.bf16.msra.mxu1 %v14820_v42  ;;  %14068 = vmatprep.subr.bf16.mxu0 %v14821_v10  ;;  %v13684_v6 = vpop.f32.mrf.mxu0 }
 0xc6b   :  { %14090 = vmatprep.subr.bf16.mxu1 %v14822_v15  ;;  %v19513_v5 = vpop.f32.mrf.mxu1 }
 0xc6c   :  { %v13685_v26 = vpop.f32.mrf.mxu0 }
 0xc6d   :  { %14069 = vmatpush3.bf16.msra.mxu0 %v14823_v61  ;;  %v13666_v59 = vpop.f32.mrf.mxu1 }
 0xc6e   :  { %14091 = vmatpush3.bf16.msra.mxu1 %v14824_v19  ;;  %14070 = vmatprep.subr.bf16.mxu0 %v14825_v55  ;;  %v13687_v60 = vpop.f32.mrf.mxu0  ;;  %v13667_v3 = vadd.f32 %v13666_v59, %v19513_v5 }
 0xc6f   :  { %14092 = vmatprep.subr.bf16.mxu1 %v14826_v9  ;;  %v19515_v34 = vpop.f32.mrf.mxu1 }
 0xc70   :  { %v13688_v32 = vpop.f32.mrf.mxu0 }
 0xc71   :  { %14071 = vmatpush3.bf16.msra.mxu0 %v14827_v22  ;;  %v13707_v43 = vpop.f32.mrf.mxu1  ;;  %v13689_v62 = vadd.f32 %v13688_v32, %v13687_v60 }
 0xc72   :  { %14093 = vmatpush3.bf16.msra.mxu1 %v14828_v51  ;;  %14072 = vmatprep.subr.bf16.mxu0 %v14829_v4  ;;  %v13728_v39 = vpop.f32.mrf.mxu0 }
 0xc73   :  { %14094 = vmatprep.subr.bf16.mxu1 %v14830_v30  ;;  %v19517_v16 = vpop.f32.mrf.mxu1 }
 0xc74   :  { %v13729_v10 = vpop.f32.mrf.mxu0 }
 0xc75   :  { %14073 = vmatpush3.bf16.msra.mxu0 %v14831_v8  ;;  %v19519_v35 = vpop.f32.mrf.mxu1 }
 0xc76   :  { %14095 = vmatpush3.bf16.msra.mxu1 %v14832_v49  ;;  %14074 = vmatprep.subr.bf16.mxu0 %v14833_v50  ;;  %v13731_v61 = vpop.f32.mrf.mxu0 }
 0xc77   :  { %14096 = vmatprep.subr.bf16.mxu1 %v14834_v33  ;;  %v19521_v42 = vpop.f32.mrf.mxu1 }
 0xc78   :  { %v13732_v55 = vpop.f32.mrf.mxu0 }
 0xc79   :  { %14075 = vmatpush3.bf16.msra.mxu0 %v14835_v36  ;;  %v19523_v15 = vpop.f32.mrf.mxu1 }
 0xc7a   :  { %14097 = vmatpush3.bf16.msra.mxu1 %v14836_v1  ;;  %14076 = vmatprep.subr.bf16.mxu0 %v14837_v44  ;;  %v19527_v21 = vpop.f32.mrf.mxu0  ;;  %v13752_v5 = vadd.f32 %v19523_v15, %v19521_v42 }
 0xc7b   :  { %14098 = vmatprep.subr.bf16.mxu1 %v14838_v11  ;;  %v19525_v19 = vpop.f32.mrf.mxu1  ;;  %v13598_v11 = vadd.f32 %v13597_v58, %v13596_v29  ;;  %v13623_v58 = vadd.f32 %v13622_v25, %v13621_v14  ;;  %v13708_v14 = vadd.f32 %v13707_v43, %v19515_v34  ;;  %v13730_v25 = vadd.f32 %v13729_v10, %v13728_v39 }
 0xc7c   :  { %v13773_v12 = vpop.f32.mrf.mxu0 }
 0xc7d   :  { %14077 = vmatpush3.bf16.msra.mxu0 %v14839_v13  ;;  %v19529_v9 = vpop.f32.mrf.mxu1  ;;  %v13774_v59 = vadd.f32 %v13773_v12, %v19527_v21 }
 0xc7e   :  { %14099 = vmatpush3.bf16.msra.mxu1 %v14840_v57  ;;  %14078 = vmatprep.subr.bf16.mxu0 %v14841_v54  ;;  %v19535_v27 = vpop.f32.mrf.mxu0  ;;  %v13013_v57 = vld [vmem:[%s19636_s9 + $0x2] ss:$0 sm:$0xff]  ;;  %v13755_v39 = vadd.f32 %v19529_v9, %v19525_v19  ;;  %s15339_s9 = smov [#allocation5]  }
 0xc7f   :  { %14100 = vmatprep.subr.bf16.mxu1 %v14842_v56  ;;  %v19531_v31 = vpop.f32.mrf.mxu1  ;;  %v11210_v56 = vadd.f32 %v13598_v11, %v13013_v57  ;;  %s12189_s5 = sshll.u32 %s15339_s9, 4  ;;  %s12190_s5 = int_to_ptr.vmem [resolvable:$true] %s12189_s5 }
 0xc80   :  { %v19539_v51 = vpop.f32.mrf.mxu0  ;;  %s15309_s19 = scalar_lea.vmem %s12190_s5, 256  ;;  %p15314_p6 = scmp.lt.s32.totalorder %s12190_s5, %s12190_s5 }
 0xc81   :  { %14079 = vmatpush3.bf16.msra.mxu0 %v14843_v37  ;;  %v19533_v22 = vpop.f32.mrf.mxu1  ;;  %v13601_v37 = vadd.f32 %v13600_v53, %v13599_v0  ;;  %v13664_v0 = vadd.f32 %v13663_v23, %v13662_v28  ;;  %v13686_v53 = vadd.f32 %v13685_v26, %v13684_v6  ;;  %v13711_v28 = vadd.f32 %v19519_v35, %v19517_v16  ;;  %p15310_p5 = scmp.ne.s32.totalorder %s12190_s5, %s15309_s19  ;;  %p15315_p7 = scmp.lt.s32.totalorder %s15309_s19, %s15309_s19 }
 0xc82   :  { %14101 = vmatpush3.bf16.msra.mxu1 %v14844_v2  ;;  %v13733_v6 = vadd.f32 %v13732_v55, %v13731_v61  ;;  %v13777_v16 = vadd.f32 %v19539_v51, %v19535_v27 }
 0xc83   :  { %v19537_v63 = vpop.f32.mrf.mxu1  ;;  %p15316_p8 = por %p15315_p7, %p15314_p6 }
 0xc84   :  { %12110 = vmatmul.mubr.bf16.vlgmr.msra.gmra.mxu0 %v8093_v46  ;;  %v19541_v4 = vpop.f32.mrf.mxu0  ;;  %v11251_v46 = vadd.f32 %v13620_v40, %v11210_v56 }
 0xc85   :  { %12151 = vmatmul.mubr.bf16.vlgmr.msra.gmra.mxu1 %v8095_v48  ;;  %v19543_v45 = vpop.f32.mrf.mxu1  ;;  %v11213_v48 = vadd.f32 %v13601_v37, %v13013_v57  ;;  %p15317_p9 = pnand %p15316_p8, %p15310_p5 }
 0xc86   :  { %v19547_v47 = vpop.f32.mrf.mxu0  ;;  %v13799_v19 = vadd.f32 %v19543_v45, %v19537_v63 }
 0xc87   :  { %v19545_v30 = vpop.f32.mrf.mxu1  ;;  %v11254_v11 = vadd.f32 %v13623_v58, %v11213_v48  ;;  %v13818_v42 = vadd.f32 %v19547_v47, %v19541_v4 }
 0xc88   :  { %v19551_v8 = vpop.f32.mrf.mxu0 }
 0xc89   :  { %v19549_v52 = vpop.f32.mrf.mxu1 }
 0xc8a   :  { %v19555_v50 = vpop.f32.mrf.mxu0 }
 0xc8b   :  { %v19553_v49 = vpop.f32.mrf.mxu1  ;;  %v13821_v27 = vadd.f32 %v19555_v50, %v19551_v8 }
 0xc8c   :  { %19638 = vst [vmem:[#allocation8_spill] sm:$0xff] %v19553_v49 }
 0xc8d   :  { %v19559_v36 = vpop.f32.mrf.mxu1 }
 0xc8e   :  { %19639 = vst [vmem:[#allocation9_spill] sm:$0xff] %v19559_v36 }
 0xc93   :  { %v19645_v58 = vld [vmem:[#allocation8_spill] sm:$0xff] }
 0xca4   :  { %v19557_v33 = vpop.f32.mrf.mxu0 }
 0xca5   :  { %v19561_v1 = vpop.f32.mrf.mxu1 }
 0xca6   :  { %19640 = vst [vmem:[#allocation10_spill] sm:$0xff] %v19561_v1  ;;  %v19563_v44 = vpop.f32.mrf.mxu0  ;;  %v13645_v1 = vadd.f32 %v13644_v7, %v13643_v38 }
 0xca7   :  { %v19565_v13 = vpop.f32.mrf.mxu1 }
 0xca8   :  { %19641 = vst [vmem:[#allocation11_spill] sm:$0xff] %v19565_v13  ;;  %v19570_v54 = vpop.f32.mrf.mxu0  ;;  %v11292_v13 = vadd.f32 %v13642_v41, %v11251_v46  ;;  %v11295_v49 = vadd.f32 %v13645_v1, %v11254_v11  ;;  %v13840_v41 = vadd.f32 %v19549_v52, %v19545_v30  ;;  %v19646_v11 = vld [vmem:[#allocation9_spill] sm:$0xff] }
 0xca9   :  { %19642 = vst [vmem:[#allocation12_spill] sm:$0xff] %v19570_v54  ;;  %v19572_v2 = vpop.f32.mrf.mxu1  ;;  %v13843_v63 = vadd.f32 %v19646_v11, %v19645_v58 }
 0xcaa   :  { %19643 = vst [vmem:[#allocation13_spill] sm:$0xff] %v19572_v2  ;;  %v19574_v24 = vpop.f32.mrf.mxu0  ;;  %v11333_v2 = vadd.f32 %v13664_v0, %v11292_v13  ;;  %v11336_v57 = vadd.f32 %v13667_v3, %v11295_v49  ;;  %v13796_v49 = vadd.f32 %v19533_v22, %v19531_v31  ;;  %v13862_v31 = vadd.f32 %v19563_v44, %v19557_v33 }
 0xcab   :  { %19644 = vst [vmem:[#allocation14_spill] sm:$0xff] %v19574_v24  ;;  %v19578_v29 = vpop.f32.mrf.mxu1 }
 0xcac   :  { %v11374_v18 = vadd.f32 %v13686_v53, %v11333_v2  ;;  %v11377_v37 = vadd.f32 %v13689_v62, %v11336_v57 }
 0xcad   :  { %v19649_v3 = vld [vmem:[#allocation10_spill] sm:$0xff] }
 0xcae   :  { %v11415_v56 = vadd.f32 %v13708_v14, %v11374_v18  ;;  %v11418_v1 = vadd.f32 %v13711_v28, %v11377_v37 }
 0xcaf   :  { %v19650_v18 = vld [vmem:[#allocation11_spill] sm:$0xff] }
 0xcb0   :  { %v11456_v23 = vadd.f32 %v13730_v25, %v11415_v56  ;;  %v11459_v32 = vadd.f32 %v13733_v6, %v11418_v1  ;;  %v19647_v0 = vld [vmem:[#allocation12_spill] sm:$0xff]  ;;  %v13884_v62 = vadd.f32 %v19650_v18, %v19649_v3 }
 0xcb1   :  { %v19651_v14 = vld [vmem:[#allocation13_spill] sm:$0xff] }
 0xcb2   :  { %v11497_v43 = vadd.f32 %v13752_v5, %v11456_v23  ;;  %v11500_v55 = vadd.f32 %v13755_v39, %v11459_v32  ;;  %v19648_v53 = vld [vmem:[#allocation14_spill] sm:$0xff]  ;;  %v13887_v25 = vadd.f32 %v19578_v29, %v19651_v14 }
 0xcb3   :  { %v13865_v8 = vadd.f32 %v19648_v53, %v19647_v0 }
 0xcb4   :  { %v11538_v10 = vadd.f32 %v13774_v59, %v11497_v43  ;;  %v11541_v21 = vadd.f32 %v13777_v16, %v11500_v55 }
 0xcb6   :  { %v11579_v15 = vadd.f32 %v13796_v49, %v11538_v10  ;;  %v11582_v2 = vadd.f32 %v13799_v19, %v11541_v21 }
 0xcb8   :  { %v11620_v9 = vadd.f32 %v13818_v42, %v11579_v15  ;;  %v11623_v47 = vadd.f32 %v13821_v27, %v11582_v2 }
 0xcba   :  { %v11661_v4 = vadd.f32 %v13840_v41, %v11620_v9  ;;  %v11664_v50 = vadd.f32 %v13843_v63, %v11623_v47 }
 0xcbc   :  { %v11702_v45 = vadd.f32 %v13862_v31, %v11661_v4  ;;  %v11705_v57 = vadd.f32 %v13865_v8, %v11664_v50 }
 0xcbe   :  { %v11743_v44 = vadd.f32 %v13884_v62, %v11702_v45  ;;  %v11746_v6 = vadd.f32 %v13887_v25, %v11705_v57 }
 0xcc4   :  { %v19576_v20 = vpop.f32.mrf.mxu0 }
 0xcc5   :  { %v19580_v36 = vpop.f32.mrf.mxu1 }
 0xcc6   :  { %v13905_v54 = vpop.f32.mrf.mxu0 }
 0xcc7   :  { %v19582_v24 = vpop.f32.mrf.mxu1  ;;  %v13906_v30 = vadd.f32 %v13905_v54, %v19576_v20 }
 0xcc8   :  { %v13907_v17 = vpop.f32.mrf.mxu0  ;;  %v13928_v1 = vadd.f32 %v19582_v24, %v19580_v36 }
 0xcc9   :  { %v13929_v38 = vpop.f32.mrf.mxu1  ;;  %v11784_v56 = vadd.f32 %v13906_v30, %v11743_v44 }
 0xcca   :  { %v13908_v7 = vpop.f32.mrf.mxu0 }
 0xccb   :  { %v13930_v26 = vpop.f32.mrf.mxu1  ;;  %v13909_v37 = vadd.f32 %v13908_v7, %v13907_v17  ;;  %v11825_v43 = vadd.f32 %v13928_v1, %v11784_v56 }
 0xccc   :  { %v13931_v20 = vadd.f32 %v13930_v26, %v13929_v38 }
 0xccd   :  { %v11787_v32 = vadd.f32 %v13909_v37, %v11746_v6 }
 0xccf   :  { %v11828_v49 = vadd.f32 %v13931_v20, %v11787_v32 }
 0xce4   :  { %v13948_v40 = vpop.f32.mrf.mxu0 }
 0xce5   :  { %v13970_v60 = vpop.f32.mrf.mxu1 }
 0xce6   :  { %v13949_v34 = vpop.f32.mrf.mxu0 }
 0xce7   :  { %v13971_v35 = vpop.f32.mrf.mxu1  ;;  %v13950_v5 = vadd.f32 %v13949_v34, %v13948_v40 }
 0xce8   :  { %v13951_v61 = vpop.f32.mrf.mxu0  ;;  %v13972_v29 = vadd.f32 %v13971_v35, %v13970_v60 }
 0xce9   :  { %v13973_v12 = vpop.f32.mrf.mxu1  ;;  %v11866_v39 = vadd.f32 %v13950_v5, %v11825_v43 }
 0xcea   :  { %v13952_v13 = vpop.f32.mrf.mxu0 }
 0xceb   :  { %v13974_v22 = vpop.f32.mrf.mxu1  ;;  %v13953_v10 = vadd.f32 %v13952_v13, %v13951_v61  ;;  %v11907_v17 = vadd.f32 %v13972_v29, %v11866_v39 }
 0xcec   :  { %v13975_v19 = vadd.f32 %v13974_v22, %v13973_v12 }
 0xced   :  { %v11869_v7 = vadd.f32 %v13953_v10, %v11828_v49 }
 0xcef   :  { %v11910_v24 = vadd.f32 %v13975_v19, %v11869_v7 }
 0xd04   :  { %v13992_v51 = vpop.f32.mrf.mxu0 }
 0xd05   :  { %v14014_v46 = vpop.f32.mrf.mxu1 }
 0xd06   :  { %v13993_v48 = vpop.f32.mrf.mxu0 }
 0xd07   :  { %v14015_v52 = vpop.f32.mrf.mxu1  ;;  %v13994_v42 = vadd.f32 %v13993_v48, %v13992_v51 }
 0xd08   :  { %v13995_v33 = vpop.f32.mrf.mxu0  ;;  %v14016_v40 = vadd.f32 %v14015_v52, %v14014_v46 }
 0xd09   :  { %v14017_v28 = vpop.f32.mrf.mxu1  ;;  %v11948_v9 = vadd.f32 %v13994_v42, %v11907_v17 }
 0xd0a   :  { %v13996_v23 = vpop.f32.mrf.mxu0 }
 0xd0b   :  { %v14018_v54 = vpop.f32.mrf.mxu1  ;;  %v13997_v36 = vadd.f32 %v13996_v23, %v13995_v33  ;;  %v11989_v38 = vadd.f32 %v14016_v40, %v11948_v9 }
 0xd0c   :  { %v14019_v61 = vadd.f32 %v14018_v54, %v14017_v28 }
 0xd0d   :  { %v11951_v26 = vadd.f32 %v13997_v36, %v11910_v24 }
 0xd0f   :  { %v11992_v35 = vadd.f32 %v14019_v61, %v11951_v26 }
 0xd24   :  { %v14036_v59 = vpop.f32.mrf.mxu0 }
 0xd25   :  { %v14058_v16 = vpop.f32.mrf.mxu1 }
 0xd26   :  { %v14037_v55 = vpop.f32.mrf.mxu0 }
 0xd27   :  { %v14059_v15 = vpop.f32.mrf.mxu1  ;;  %v14038_v34 = vadd.f32 %v14037_v55, %v14036_v59 }
 0xd28   :  { %v14039_v21 = vpop.f32.mrf.mxu0  ;;  %v14060_v51 = vadd.f32 %v14059_v15, %v14058_v16 }
 0xd29   :  { %v14061_v27 = vpop.f32.mrf.mxu1  ;;  %v12030_v13 = vadd.f32 %v14038_v34, %v11989_v38 }
 0xd2a   :  { %v14040_v2 = vpop.f32.mrf.mxu0 }
 0xd2b   :  { %v14041_v41 = vadd.f32 %v14040_v2, %v14039_v21  ;;  %v14062_v31 = vpop.f32.mrf.mxu1  ;;  %v12071_v48 = vadd.f32 %v14060_v51, %v12030_v13 }
 0xd2c   :  { %v14063_v46 = vadd.f32 %v14062_v31, %v14061_v27 }
 0xd2d   :  { %v12033_v12 = vadd.f32 %v14041_v41, %v11992_v35 }
 0xd2f   :  { %v12074_v8 = vadd.f32 %v14063_v46, %v12033_v12 }
 0xd44   :  { %v14080_v60 = vpop.f32.mrf.mxu0 }
 0xd45   :  { %v14102_v4 = vpop.f32.mrf.mxu1 }
 0xd46   :  { %v14081_v47 = vpop.f32.mrf.mxu0 }
 0xd47   :  { %v14082_v22 = vadd.f32 %v14081_v47, %v14080_v60  ;;  %v14103_v58 = vpop.f32.mrf.mxu1 }
 0xd48   :  { %v14083_v11 = vpop.f32.mrf.mxu0  ;;  %v14104_v45 = vadd.f32 %v14103_v58, %v14102_v4 }
 0xd49   :  { %v12112_v63 = vadd.f32 %v14082_v22, %v12071_v48  ;;  %v14105_v0 = vpop.f32.mrf.mxu1 }
 0xd4a   :  { %v14084_v53 = vpop.f32.mrf.mxu0 }
 0xd4b   :  { %v14085_v50 = vadd.f32 %v14084_v53, %v14083_v11  ;;  %v14106_v3 = vpop.f32.mrf.mxu1  ;;  %v12153_v18 = vadd.f32 %v14104_v45, %v12112_v63 }
 0xd4c   :  { %v14107_v30 = vadd.f32 %v14106_v3, %v14105_v0 }
 0xd4d   :  { %v12115_v62 = vadd.f32 %v14085_v50, %v12074_v8  ;;  %v12160_v52 = vsel %vm12159_vm6, %v12153_v18, -inf }
 0xd4e   :  { %12161 = vmax.xlane.f32.xlu0 %v12160_v52 }
 0xd4f   :  { %v12156_v33 = vadd.f32 %v14107_v30, %v12115_v62 }
 0xd51   :  { %v12163_v44 = vsel %vm12159_vm6, %v12156_v33, -inf }
 0xd52   :  { %12164 = vmax.xlane.f32.xlu0 %v12163_v44 }
 0xdd7   :  { %v12162_v57 = vpop.xlane.xlu0 %12161 }
 0xdd8   :  { %v12166_v14 = vsub.f32 %v12153_v18, %v12162_v57 }
 0xdda   :  { %v12168_v25 = vmul.f32 1.442695, %v12166_v14 }
 0xddb   :  { %v12165_v56 = vpop.xlane.xlu0 %12164 }
 0xddc   :  { %15233 = vpow2.f32 %v12168_v25  ;;  %v12167_v37 = vsub.f32 %v12156_v33, %v12165_v56 }
 0xdde   :  { %v12170_v28 = vmul.f32 1.442695, %v12167_v37 }
 0xde0   :  { %15235 = vpow2.f32 %v12170_v28 }
 0xde9   :  { %v15234_v23 = vpop.eup %15233 }
 0xdea   :  { %v12172_v6 = vsel %vm12159_vm6, %v15234_v23, 0.0 }
 0xdeb   :  { %12173 = vadd.xlane.f32.xlu1 %v12172_v6 }
 0xded   :  { %v15236_v1 = vpop.eup %15235 }
 0xdee   :  { %v12175_v5 = vsel %vm12159_vm6, %v15236_v1, 0.0 }
 0xdef   :  { %12176 = vadd.xlane.f32.xlu1 %v12175_v5 }
 0xe74   :  { %v12174_v59 = vpop.xlane.xlu1 %12173 }
 0xe75   :  { %15237 = vrcp.f32 %v12174_v59 }
 0xe78   :  { %v12177_v43 = vpop.xlane.xlu1 %12176 }
 0xe79   :  { %15239 = vrcp.f32 %v12177_v43 }
 0xe82   :  { %v15238_v32 = vpop.eup %15237 }
 0xe83   :  { %v12180_v54 = vmul.f32 %v15238_v32, %v15234_v23 }
 0xe85   :  { %12182 = vst.msk [vmem:[#allocation5] sm:$0xff] %vm12159_vm6, %v12180_v54 }
 0xe86   :  { %v15240_v20 = vpop.eup %15239 }
 0xe87   :  { %v12181_v39 = vmul.f32 %v15240_v20, %v15236_v1 }
 0xe89   :  { %12183 = vst.msk [vmem:[#allocation5 + $0x8] sm:$0xff] %vm12159_vm6, %v12181_v39 }
 0xe8a   :  { %15320 = shalt.err (!%p15317_p9)
}
 0xe8b   :  { %s15340_s1 = smov 128   ;;  %s15341_s4 = smov 8  }
 0xe8c   :  { %12195 = dma.vmem_to_hbm [thread:$0]  %s12190_s5, 256, %s19637_s10, [#allocation4], %s15340_s1, %s15340_s1, %s15341_s4  }
 0xe8d   :  { %15331 = dma.done.wait [#allocation4], 256  }
 0xe8e   :  { %15332 = vsyncadd [#allocation4], 4294967040 }
 0xe8f   :  { %12199 = vsyncpa [#allocation3], 1 }
 0xe90   :  { %12200 = vsyncpa [#allocation4], 1 }

</bundles_post_ra>
